<compile_context>
chip_gen: v7x
topology: tpu7x:2x2x1
jax: 0.10.0
libtpu: 0.0.40
codegen_flags: <defaults>
</compile_context>

<pallas_src>
import math
from functools import partial

import jax
import jax.numpy as jnp
from jax import lax
from jax.experimental import pallas as pl
from jax.experimental.pallas import tpu as pltpu


# --------------------------------------------------------------------------- #
# elementwise helpers (identical math inside the kernel and in the reference)
# --------------------------------------------------------------------------- #
def _gelu(x):
    # TODO(synk): torch nn.GELU() default is exact erf-GELU; erf has no
    # guaranteed Mosaic lowering, so the tanh approximation is used (~3e-4).
    c0 = math.sqrt(2.0 / math.pi)
    return 0.5 * x * (1.0 + jnp.tanh(c0 * (x + 0.044715 * x * x * x)))


def _sigmoid(x):
    # exact identity: one EUP tanh, no divide
    return 0.5 * (jnp.tanh(0.5 * x) + 1.0)


# --------------------------------------------------------------------------- #
# fused AttUp kernel: proj+LN -> conv block -> SepConvGRU (both stages)
# --------------------------------------------------------------------------- #
def _make_attup_kernel(h, w, c, eps=1e-5):
    l = h * w
    off_3x3 = tuple((dy - 1, dx - 1) for dy in range(3) for dx in range(3))
    off_1x5 = tuple((0, d - 2) for d in range(5))
    off_5x1 = tuple((d - 2, 0) for d in range(5))

    def kernel(att_ref, msg_ref,
               wp_ref, g_ref, beta_ref,
               w1_ref, b1_ref, w2_ref, b2_ref, w3_ref, b3_ref,
               wzr1_ref, bzr1_ref, wq1_ref, bq1_ref,
               wzr2_ref, bzr2_ref, wq2_ref, bq2_ref,
               o_ref):
        # (y, x) coordinate of every flattened row as exact-integer floats
        # (avoids vector integer div/mod; fractional part of (i+0.5)/w is
        #  bounded away from 0/1 by 0.5/w so floor is exact).
        flat = lax.broadcasted_iota(jnp.int32, (l, 1), 0).astype(jnp.float32)
        yy = jnp.floor((flat + 0.5) * (1.0 / w))
        xx = flat - yy * w

        def tap_plan(offsets):
            # hoisted (roll shift, boundary mask) per tap -- computed once and
            # reused by every im2col call with the same kernel footprint
            plan = []
            for oy, ox in offsets:
                shift = (-(oy * w + ox)) % l
                if oy == 0 and ox == 0:
                    plan.append((0, None))
                    continue
                cond = None
                if oy != 0:
                    cy = (yy + oy >= 0) & (yy + oy < h)
                    cond = cy if cond is None else cond & cy
                if ox != 0:
                    cx = (xx + ox >= 0) & (xx + ox < w)
                    cond = cx if cond is None else cond & cx
                plan.append((shift, cond.astype(jnp.float32)))
            return plan

        plan_3x3 = tap_plan(off_3x3)
        plan_1x5 = tap_plan(off_1x5)
        plan_5x1 = tap_plan(off_5x1)

        def im2col(t, plan):
            # shifted taps via XLU roll + VPU mask; lane-aligned concat -> slab
            cols = []
            for shift, valid in plan:
                v = pltpu.roll(t, shift=shift, axis=0) if shift else t
                cols.append(v if valid is None else v * valid)
            return jnp.concatenate(cols, axis=-1)        # (l, ntaps*c)

        # ---- phase 1: msg = LayerNorm(proj(message)) ------------------------
        y = jnp.dot(msg_ref[0], wp_ref[...], preferred_element_type=jnp.float32)
        mu = jnp.mean(y, axis=-1, keepdims=True)
        yc = y - mu
        var = jnp.mean(yc * yc, axis=-1, keepdims=True)
        msg = yc * lax.rsqrt(var + eps) * g_ref[...] + beta_ref[...]

        a = att_ref[0]                                   # (l, c)

        # ---- phase 2: m = GELU(c3(GELU(c3(GELU(c1(cat[att, msg])))))) -------
        t = _gelu(jnp.dot(jnp.concatenate([a, msg], axis=-1), w1_ref[...],
                          preferred_element_type=jnp.float32) + b1_ref[...])
        t = _gelu(jnp.dot(im2col(t, plan_3x3), w2_ref[...],
                          preferred_element_type=jnp.float32) + b2_ref[...])
        m = _gelu(jnp.dot(im2col(t, plan_3x3), w3_ref[...],
                          preferred_element_type=jnp.float32) + b3_ref[...])

        # ---- phases 3/4: SepConvGRU -----------------------------------------
        def gru_stage(hv, plan, wzr_ref, bzr_ref, wq_ref, bq_ref):
            x_taps = im2col(m, plan)                     # shared by z/r and q
            zr = _sigmoid(
                jnp.dot(jnp.concatenate([im2col(hv, plan), x_taps], axis=-1),
                        wzr_ref[...], preferred_element_type=jnp.float32)
                + bzr_ref[...])                          # (l, 2c): z | r
            z, r = zr[:, :c], zr[:, c:]
            q = jnp.tanh(
                jnp.dot(jnp.concatenate([im2col(r * hv, plan), x_taps], axis=-1),
                        wq_ref[...], preferred_element_type=jnp.float32)
                + bq_ref[...])
            return (1.0 - z) * hv + z * q

        hcur = gru_stage(a, plan_1x5, wzr1_ref, bzr1_ref, wq1_ref, bq1_ref)
        hcur = gru_stage(hcur, plan_5x1, wzr2_ref, bzr2_ref, wq2_ref, bq2_ref)

        o_ref[0] = hcur

    return kernel


# --------------------------------------------------------------------------- #
# wrapper: pack weights into im2col / N-stacked layouts and launch the kernel
# --------------------------------------------------------------------------- #
def _pack_params(p, c):
    def gru_w(wk):      # (5, 2c, c) -> (10c, c): rows = [5 h-taps | 5 x-taps]
        return jnp.concatenate([wk[:, :c, :].reshape(5 * c, c),
                                wk[:, c:, :].reshape(5 * c, c)], axis=0)

    return (
        p['wp'], p['ln_g'], p['ln_b'],
        jnp.concatenate([p['w1a'], p['w1m']], axis=0), p['b1'],        # (2c, c)
        p['w2'].reshape(9 * c, c), p['b2'],                            # (9c, c)
        p['w3'].reshape(9 * c, c), p['b3'],
        jnp.concatenate([gru_w(p['wz1']), gru_w(p['wr1'])], axis=1),   # (10c,2c)
        jnp.concatenate([p['bz1'], p['br1']], axis=-1),                # (1, 2c)
        gru_w(p['wq1']), p['bq1'],
        jnp.concatenate([gru_w(p['wz2']), gru_w(p['wr2'])], axis=1),
        jnp.concatenate([p['bz2'], p['br2']], axis=-1),
        gru_w(p['wq2']), p['bq2'],
    )


@partial(jax.jit, static_argnames=("shape",))
def att_up_forward(att, message, shape, params):
    b, l, c = att.shape
    h, w = shape
    assert l == h * w
    packed = _pack_params(params, c)

    def full(shp):      # grid-invariant (DMA'd once) full-array block
        return pl.BlockSpec(shp, lambda i, _n=len(shp): (0,) * _n)

    io_spec = pl.BlockSpec((1, l, c), lambda i: (i, 0, 0))
    weight_specs = [full(x.shape) for x in packed]

    return pl.pallas_call(
        _make_attup_kernel(h, w, c),
        out_shape=jax.ShapeDtypeStruct((b, l, c), jnp.float32),
        grid_spec=pltpu.PrefetchScalarGridSpec(
            num_scalar_prefetch=0,
            grid=(b,),
            in_specs=[io_spec, io_spec] + weight_specs,
            out_specs=io_spec,
        ),
        compiler_params=pltpu.CompilerParams(
            dimension_semantics=("parallel",),
            vmem_limit_bytes=48 * 1024 * 1024,
        ),
    )(att, message, *packed)


# --------------------------------------------------------------------------- #
# pure-JAX reference (XLA convs) for the correctness check
# --------------------------------------------------------------------------- #
def _reference(att, message, shape, p):
    b, l, c = att.shape
    h, w = shape

    y = message @ p['wp']
    mu = y.mean(-1, keepdims=True)
    var = ((y - mu) ** 2).mean(-1, keepdims=True)
    msg = (y - mu) / jnp.sqrt(var + 1e-5) * p['ln_g'] + p['ln_b']

    def conv2d(x, w_hwio, bias):
        out = lax.conv_general_dilated(
            x, w_hwio, window_strides=(1, 1), padding='SAME',
            dimension_numbers=('NHWC', 'HWIO', 'NHWC'))
        return out + bias.reshape(1, 1, 1, -1)

    att_hw = att.reshape(b, h, w, c)
    msg_hw = msg.reshape(b, h, w, c)

    t = jnp.concatenate([att_hw, msg_hw], axis=-1)
    w1 = jnp.concatenate([p['w1a'], p['w1m']], axis=0).reshape(1, 1, 2 * c, c)
    t = _gelu(conv2d(t, w1, p['b1']))
    t = _gelu(conv2d(t, p['w2'], p['b2']))
    m = _gelu(conv2d(t, p['w3'], p['b3']))

    def gru_stage(hh, xx, wz, bz, wr, br, wq, bq, horizontal):
        ks = (1, 5) if horizontal else (5, 1)
        rw = lambda wk: wk.reshape(ks[0], ks[1], 2 * c, c)
        hx = jnp.concatenate([hh, xx], axis=-1)
        z = _sigmoid(conv2d(hx, rw(wz), bz))
        r = _sigmoid(conv2d(hx, rw(wr), br))
        q = jnp.tanh(conv2d(jnp.concatenate([r * hh, xx], axis=-1), rw(wq), bq))
        return (1.0 - z) * hh + z * q

    hcur = gru_stage(att_hw, m, p['wz1'], p['bz1'], p['wr1'], p['br1'],
                     p['wq1'], p['bq1'], True)
    hcur = gru_stage(hcur, m, p['wz2'], p['bz2'], p['wr2'], p['br2'],
                     p['wq2'], p['bq2'], False)
    return hcur.reshape(b, h * w, c)


# --------------------------------------------------------------------------- #
# deterministic parameter init
# --------------------------------------------------------------------------- #
def _init_params(key, c):
    it = iter(jax.random.split(key, 24))
    nrm = lambda shape, s: jax.random.normal(next(it), shape, jnp.float32) * s
    s_lin = 1.0 / math.sqrt(c)
    s_1x1 = 1.0 / math.sqrt(2 * c)
    s_3x3 = 1.0 / math.sqrt(9 * c)
    s_k5 = 1.0 / math.sqrt(5 * 2 * c)
    p = {
        'wp': nrm((c, c), s_lin),
        'ln_g': 1.0 + 0.1 * nrm((1, c), 1.0),
        'ln_b': 0.1 * nrm((1, c), 1.0),
        'w1a': nrm((c, c), s_1x1),
        'w1m': nrm((c, c), s_1x1),
        'b1': nrm((1, c), 0.02),
        'w2': nrm((3, 3, c, c), s_3x3),    # HWIO
        'b2': nrm((1, c), 0.02),
        'w3': nrm((3, 3, c, c), s_3x3),    # HWIO
        'b3': nrm((1, c), 0.02),
    }
    for idx in ('1', '2'):
        for g in ('z', 'r', 'q'):
            p['w' + g + idx] = nrm((5, 2 * c, c), s_k5)   # (tap, in=2c, out=c)
            p['b' + g + idx] = nrm((1, c), 0.02)
    return p


if __name__ == "__main__":
    key = jax.random.PRNGKey(0)
    c = 128                 # AttUp(c); default is 512 — 128 keeps the demo small & lane-aligned
    b, h, w = 2, 8, 8
    l = h * w
    k1, k2, k3 = jax.random.split(key, 3)
    att = jax.random.normal(k1, (b, l, c), jnp.float32)
    message = jax.random.normal(k2, (b, l, c), jnp.float32)
    params = _init_params(k3, c)

    out = att_up_forward(att, message, shape=(h, w), params=params)
    out = jax.block_until_ready(out)
    assert out.shape == (b, l, c), out.shape

    ref = _reference(att, message, (h, w), params)
    err = float(jnp.max(jnp.abs(out - ref)))
    assert err < 5e-3, f"max abs err vs reference: {err}"

    print("KERNEL_OK")
</pallas_src>

<mosaic_0001>
module attributes {stable_mosaic.version = 11 : i64} {
  func.func @kernel(%arg0: i32, %arg1: memref<1x64x128xf32, #tpu.memory_space<vmem>>, %arg2: memref<1x64x128xf32, #tpu.memory_space<vmem>>, %arg3: memref<128x128xf32, #tpu.memory_space<vmem>>, %arg4: memref<1x128xf32, #tpu.memory_space<vmem>>, %arg5: memref<1x128xf32, #tpu.memory_space<vmem>>, %arg6: memref<256x128xf32, #tpu.memory_space<vmem>>, %arg7: memref<1x128xf32, #tpu.memory_space<vmem>>, %arg8: memref<1152x128xf32, #tpu.memory_space<vmem>>, %arg9: memref<1x128xf32, #tpu.memory_space<vmem>>, %arg10: memref<1152x128xf32, #tpu.memory_space<vmem>>, %arg11: memref<1x128xf32, #tpu.memory_space<vmem>>, %arg12: memref<1280x256xf32, #tpu.memory_space<vmem>>, %arg13: memref<1x256xf32, #tpu.memory_space<vmem>>, %arg14: memref<1280x128xf32, #tpu.memory_space<vmem>>, %arg15: memref<1x128xf32, #tpu.memory_space<vmem>>, %arg16: memref<1280x256xf32, #tpu.memory_space<vmem>>, %arg17: memref<1x256xf32, #tpu.memory_space<vmem>>, %arg18: memref<1280x128xf32, #tpu.memory_space<vmem>>, %arg19: memref<1x128xf32, #tpu.memory_space<vmem>>, %arg20: memref<1x64x128xf32, #tpu.memory_space<vmem>>) attributes {dimension_semantics = [#tpu.dimension_semantics<parallel>], iteration_bounds = array<i64: 2>, scalar_prefetch = 0 : i64, scratch_operands = 0 : i64, tpu.core_type = #tpu.core_type<tc>, window_params = [{transform_indices = @transform_0, window_bounds = array<i64: 1, 64, 128>}, {transform_indices = @transform_1, window_bounds = array<i64: 1, 64, 128>}, {pipeline_mode = #tpu.pipeline_mode<synchronous>, transform_indices = @transform_2, window_bounds = array<i64: 128, 128>}, {pipeline_mode = #tpu.pipeline_mode<synchronous>, transform_indices = @transform_3, window_bounds = array<i64: 1, 128>}, {pipeline_mode = #tpu.pipeline_mode<synchronous>, transform_indices = @transform_4, window_bounds = array<i64: 1, 128>}, {pipeline_mode = #tpu.pipeline_mode<synchronous>, transform_indices = @transform_5, window_bounds = array<i64: 256, 128>}, {pipeline_mode = #tpu.pipeline_mode<synchronous>, transform_indices = @transform_6, window_bounds = array<i64: 1, 128>}, {pipeline_mode = #tpu.pipeline_mode<synchronous>, transform_indices = @transform_7, window_bounds = array<i64: 1152, 128>}, {pipeline_mode = #tpu.pipeline_mode<synchronous>, transform_indices = @transform_8, window_bounds = array<i64: 1, 128>}, {pipeline_mode = #tpu.pipeline_mode<synchronous>, transform_indices = @transform_9, window_bounds = array<i64: 1152, 128>}, {pipeline_mode = #tpu.pipeline_mode<synchronous>, transform_indices = @transform_10, window_bounds = array<i64: 1, 128>}, {pipeline_mode = #tpu.pipeline_mode<synchronous>, transform_indices = @transform_11, window_bounds = array<i64: 1280, 256>}, {pipeline_mode = #tpu.pipeline_mode<synchronous>, transform_indices = @transform_12, window_bounds = array<i64: 1, 256>}, {pipeline_mode = #tpu.pipeline_mode<synchronous>, transform_indices = @transform_13, window_bounds = array<i64: 1280, 128>}, {pipeline_mode = #tpu.pipeline_mode<synchronous>, transform_indices = @transform_14, window_bounds = array<i64: 1, 128>}, {pipeline_mode = #tpu.pipeline_mode<synchronous>, transform_indices = @transform_15, window_bounds = array<i64: 1280, 256>}, {pipeline_mode = #tpu.pipeline_mode<synchronous>, transform_indices = @transform_16, window_bounds = array<i64: 1, 256>}, {pipeline_mode = #tpu.pipeline_mode<synchronous>, transform_indices = @transform_17, window_bounds = array<i64: 1280, 128>}, {pipeline_mode = #tpu.pipeline_mode<synchronous>, transform_indices = @transform_18, window_bounds = array<i64: 1, 128>}, {transform_indices = @transform_19, window_bounds = array<i64: 1, 64, 128>}]} {
    %0 = tpu.iota {dimensions = array<i32: 0>} : vector<64x1xi32>
    %1 = arith.sitofp %0 : vector<64x1xi32> to vector<64x1xf32>
    %cst = arith.constant 5.000000e-01 : f32
    %2 = vector.broadcast %cst : f32 to vector<64x1xf32>
    %3 = arith.addf %1, %2 : vector<64x1xf32>
    %cst_0 = arith.constant 1.250000e-01 : f32
    %4 = vector.broadcast %cst_0 : f32 to vector<64x1xf32>
    %5 = arith.mulf %3, %4 : vector<64x1xf32>
    %6 = math.floor %5 : vector<64x1xf32>
    %cst_1 = arith.constant 8.000000e+00 : f32
    %7 = vector.broadcast %cst_1 : f32 to vector<64x1xf32>
    %8 = arith.mulf %6, %7 : vector<64x1xf32>
    %9 = arith.subf %1, %8 : vector<64x1xf32>
    %cst_2 = arith.constant -1.000000e+00 : f32
    %10 = vector.broadcast %cst_2 : f32 to vector<64x1xf32>
    %11 = arith.addf %6, %10 : vector<64x1xf32>
    %cst_3 = arith.constant 0.000000e+00 : f32
    %12 = vector.broadcast %cst_3 : f32 to vector<64x1xf32>
    %13 = arith.cmpf oge, %11, %12 : vector<64x1xf32>
    %cst_4 = arith.constant -1.000000e+00 : f32
    %14 = vector.broadcast %cst_4 : f32 to vector<64x1xf32>
    %15 = arith.addf %6, %14 : vector<64x1xf32>
    %cst_5 = arith.constant 8.000000e+00 : f32
    %16 = vector.broadcast %cst_5 : f32 to vector<64x1xf32>
    %17 = arith.cmpf olt, %15, %16 : vector<64x1xf32>
    %18 = arith.andi %13, %17 : vector<64x1xi1>
    %cst_6 = arith.constant -1.000000e+00 : f32
    %19 = vector.broadcast %cst_6 : f32 to vector<64x1xf32>
    %20 = arith.addf %9, %19 : vector<64x1xf32>
    %cst_7 = arith.constant 0.000000e+00 : f32
    %21 = vector.broadcast %cst_7 : f32 to vector<64x1xf32>
    %22 = arith.cmpf oge, %20, %21 : vector<64x1xf32>
    %cst_8 = arith.constant -1.000000e+00 : f32
    %23 = vector.broadcast %cst_8 : f32 to vector<64x1xf32>
    %24 = arith.addf %9, %23 : vector<64x1xf32>
    %cst_9 = arith.constant 8.000000e+00 : f32
    %25 = vector.broadcast %cst_9 : f32 to vector<64x1xf32>
    %26 = arith.cmpf olt, %24, %25 : vector<64x1xf32>
    %27 = arith.andi %22, %26 : vector<64x1xi1>
    %28 = arith.andi %18, %27 : vector<64x1xi1>
    %29 = arith.extui %28 : vector<64x1xi1> to vector<64x1xi32>
    %30 = arith.sitofp %29 : vector<64x1xi32> to vector<64x1xf32>
    %cst_10 = arith.constant -1.000000e+00 : f32
    %31 = vector.broadcast %cst_10 : f32 to vector<64x1xf32>
    %32 = arith.addf %6, %31 : vector<64x1xf32>
    %cst_11 = arith.constant 0.000000e+00 : f32
    %33 = vector.broadcast %cst_11 : f32 to vector<64x1xf32>
    %34 = arith.cmpf oge, %32, %33 : vector<64x1xf32>
    %cst_12 = arith.constant -1.000000e+00 : f32
    %35 = vector.broadcast %cst_12 : f32 to vector<64x1xf32>
    %36 = arith.addf %6, %35 : vector<64x1xf32>
    %cst_13 = arith.constant 8.000000e+00 : f32
    %37 = vector.broadcast %cst_13 : f32 to vector<64x1xf32>
    %38 = arith.cmpf olt, %36, %37 : vector<64x1xf32>
    %39 = arith.andi %34, %38 : vector<64x1xi1>
    %40 = arith.extui %39 : vector<64x1xi1> to vector<64x1xi32>
    %41 = arith.sitofp %40 : vector<64x1xi32> to vector<64x1xf32>
    %cst_14 = arith.constant -1.000000e+00 : f32
    %42 = vector.broadcast %cst_14 : f32 to vector<64x1xf32>
    %43 = arith.addf %6, %42 : vector<64x1xf32>
    %cst_15 = arith.constant 0.000000e+00 : f32
    %44 = vector.broadcast %cst_15 : f32 to vector<64x1xf32>
    %45 = arith.cmpf oge, %43, %44 : vector<64x1xf32>
    %cst_16 = arith.constant -1.000000e+00 : f32
    %46 = vector.broadcast %cst_16 : f32 to vector<64x1xf32>
    %47 = arith.addf %6, %46 : vector<64x1xf32>
    %cst_17 = arith.constant 8.000000e+00 : f32
    %48 = vector.broadcast %cst_17 : f32 to vector<64x1xf32>
    %49 = arith.cmpf olt, %47, %48 : vector<64x1xf32>
    %50 = arith.andi %45, %49 : vector<64x1xi1>
    %cst_18 = arith.constant 1.000000e+00 : f32
    %51 = vector.broadcast %cst_18 : f32 to vector<64x1xf32>
    %52 = arith.addf %9, %51 : vector<64x1xf32>
    %cst_19 = arith.constant 0.000000e+00 : f32
    %53 = vector.broadcast %cst_19 : f32 to vector<64x1xf32>
    %54 = arith.cmpf oge, %52, %53 : vector<64x1xf32>
    %cst_20 = arith.constant 1.000000e+00 : f32
    %55 = vector.broadcast %cst_20 : f32 to vector<64x1xf32>
    %56 = arith.addf %9, %55 : vector<64x1xf32>
    %cst_21 = arith.constant 8.000000e+00 : f32
    %57 = vector.broadcast %cst_21 : f32 to vector<64x1xf32>
    %58 = arith.cmpf olt, %56, %57 : vector<64x1xf32>
    %59 = arith.andi %54, %58 : vector<64x1xi1>
    %60 = arith.andi %50, %59 : vector<64x1xi1>
    %61 = arith.extui %60 : vector<64x1xi1> to vector<64x1xi32>
    %62 = arith.sitofp %61 : vector<64x1xi32> to vector<64x1xf32>
    %cst_22 = arith.constant -1.000000e+00 : f32
    %63 = vector.broadcast %cst_22 : f32 to vector<64x1xf32>
    %64 = arith.addf %9, %63 : vector<64x1xf32>
    %cst_23 = arith.constant 0.000000e+00 : f32
    %65 = vector.broadcast %cst_23 : f32 to vector<64x1xf32>
    %66 = arith.cmpf oge, %64, %65 : vector<64x1xf32>
    %cst_24 = arith.constant -1.000000e+00 : f32
    %67 = vector.broadcast %cst_24 : f32 to vector<64x1xf32>
    %68 = arith.addf %9, %67 : vector<64x1xf32>
    %cst_25 = arith.constant 8.000000e+00 : f32
    %69 = vector.broadcast %cst_25 : f32 to vector<64x1xf32>
    %70 = arith.cmpf olt, %68, %69 : vector<64x1xf32>
    %71 = arith.andi %66, %70 : vector<64x1xi1>
    %72 = arith.extui %71 : vector<64x1xi1> to vector<64x1xi32>
    %73 = arith.sitofp %72 : vector<64x1xi32> to vector<64x1xf32>
    %cst_26 = arith.constant 1.000000e+00 : f32
    %74 = vector.broadcast %cst_26 : f32 to vector<64x1xf32>
    %75 = arith.addf %9, %74 : vector<64x1xf32>
    %cst_27 = arith.constant 0.000000e+00 : f32
    %76 = vector.broadcast %cst_27 : f32 to vector<64x1xf32>
    %77 = arith.cmpf oge, %75, %76 : vector<64x1xf32>
    %cst_28 = arith.constant 1.000000e+00 : f32
    %78 = vector.broadcast %cst_28 : f32 to vector<64x1xf32>
    %79 = arith.addf %9, %78 : vector<64x1xf32>
    %cst_29 = arith.constant 8.000000e+00 : f32
    %80 = vector.broadcast %cst_29 : f32 to vector<64x1xf32>
    %81 = arith.cmpf olt, %79, %80 : vector<64x1xf32>
    %82 = arith.andi %77, %81 : vector<64x1xi1>
    %83 = arith.extui %82 : vector<64x1xi1> to vector<64x1xi32>
    %84 = arith.sitofp %83 : vector<64x1xi32> to vector<64x1xf32>
    %cst_30 = arith.constant 1.000000e+00 : f32
    %85 = vector.broadcast %cst_30 : f32 to vector<64x1xf32>
    %86 = arith.addf %6, %85 : vector<64x1xf32>
    %cst_31 = arith.constant 0.000000e+00 : f32
    %87 = vector.broadcast %cst_31 : f32 to vector<64x1xf32>
    %88 = arith.cmpf oge, %86, %87 : vector<64x1xf32>
    %cst_32 = arith.constant 1.000000e+00 : f32
    %89 = vector.broadcast %cst_32 : f32 to vector<64x1xf32>
    %90 = arith.addf %6, %89 : vector<64x1xf32>
    %cst_33 = arith.constant 8.000000e+00 : f32
    %91 = vector.broadcast %cst_33 : f32 to vector<64x1xf32>
    %92 = arith.cmpf olt, %90, %91 : vector<64x1xf32>
    %93 = arith.andi %88, %92 : vector<64x1xi1>
    %cst_34 = arith.constant -1.000000e+00 : f32
    %94 = vector.broadcast %cst_34 : f32 to vector<64x1xf32>
    %95 = arith.addf %9, %94 : vector<64x1xf32>
    %cst_35 = arith.constant 0.000000e+00 : f32
    %96 = vector.broadcast %cst_35 : f32 to vector<64x1xf32>
    %97 = arith.cmpf oge, %95, %96 : vector<64x1xf32>
    %cst_36 = arith.constant -1.000000e+00 : f32
    %98 = vector.broadcast %cst_36 : f32 to vector<64x1xf32>
    %99 = arith.addf %9, %98 : vector<64x1xf32>
    %cst_37 = arith.constant 8.000000e+00 : f32
    %100 = vector.broadcast %cst_37 : f32 to vector<64x1xf32>
    %101 = arith.cmpf olt, %99, %100 : vector<64x1xf32>
    %102 = arith.andi %97, %101 : vector<64x1xi1>
    %103 = arith.andi %93, %102 : vector<64x1xi1>
    %104 = arith.extui %103 : vector<64x1xi1> to vector<64x1xi32>
    %105 = arith.sitofp %104 : vector<64x1xi32> to vector<64x1xf32>
    %cst_38 = arith.constant 1.000000e+00 : f32
    %106 = vector.broadcast %cst_38 : f32 to vector<64x1xf32>
    %107 = arith.addf %6, %106 : vector<64x1xf32>
    %cst_39 = arith.constant 0.000000e+00 : f32
    %108 = vector.broadcast %cst_39 : f32 to vector<64x1xf32>
    %109 = arith.cmpf oge, %107, %108 : vector<64x1xf32>
    %cst_40 = arith.constant 1.000000e+00 : f32
    %110 = vector.broadcast %cst_40 : f32 to vector<64x1xf32>
    %111 = arith.addf %6, %110 : vector<64x1xf32>
    %cst_41 = arith.constant 8.000000e+00 : f32
    %112 = vector.broadcast %cst_41 : f32 to vector<64x1xf32>
    %113 = arith.cmpf olt, %111, %112 : vector<64x1xf32>
    %114 = arith.andi %109, %113 : vector<64x1xi1>
    %115 = arith.extui %114 : vector<64x1xi1> to vector<64x1xi32>
    %116 = arith.sitofp %115 : vector<64x1xi32> to vector<64x1xf32>
    %cst_42 = arith.constant 1.000000e+00 : f32
    %117 = vector.broadcast %cst_42 : f32 to vector<64x1xf32>
    %118 = arith.addf %6, %117 : vector<64x1xf32>
    %cst_43 = arith.constant 0.000000e+00 : f32
    %119 = vector.broadcast %cst_43 : f32 to vector<64x1xf32>
    %120 = arith.cmpf oge, %118, %119 : vector<64x1xf32>
    %cst_44 = arith.constant 1.000000e+00 : f32
    %121 = vector.broadcast %cst_44 : f32 to vector<64x1xf32>
    %122 = arith.addf %6, %121 : vector<64x1xf32>
    %cst_45 = arith.constant 8.000000e+00 : f32
    %123 = vector.broadcast %cst_45 : f32 to vector<64x1xf32>
    %124 = arith.cmpf olt, %122, %123 : vector<64x1xf32>
    %125 = arith.andi %120, %124 : vector<64x1xi1>
    %cst_46 = arith.constant 1.000000e+00 : f32
    %126 = vector.broadcast %cst_46 : f32 to vector<64x1xf32>
    %127 = arith.addf %9, %126 : vector<64x1xf32>
    %cst_47 = arith.constant 0.000000e+00 : f32
    %128 = vector.broadcast %cst_47 : f32 to vector<64x1xf32>
    %129 = arith.cmpf oge, %127, %128 : vector<64x1xf32>
    %cst_48 = arith.constant 1.000000e+00 : f32
    %130 = vector.broadcast %cst_48 : f32 to vector<64x1xf32>
    %131 = arith.addf %9, %130 : vector<64x1xf32>
    %cst_49 = arith.constant 8.000000e+00 : f32
    %132 = vector.broadcast %cst_49 : f32 to vector<64x1xf32>
    %133 = arith.cmpf olt, %131, %132 : vector<64x1xf32>
    %134 = arith.andi %129, %133 : vector<64x1xi1>
    %135 = arith.andi %125, %134 : vector<64x1xi1>
    %136 = arith.extui %135 : vector<64x1xi1> to vector<64x1xi32>
    %137 = arith.sitofp %136 : vector<64x1xi32> to vector<64x1xf32>
    %cst_50 = arith.constant -2.000000e+00 : f32
    %138 = vector.broadcast %cst_50 : f32 to vector<64x1xf32>
    %139 = arith.addf %9, %138 : vector<64x1xf32>
    %cst_51 = arith.constant 0.000000e+00 : f32
    %140 = vector.broadcast %cst_51 : f32 to vector<64x1xf32>
    %141 = arith.cmpf oge, %139, %140 : vector<64x1xf32>
    %cst_52 = arith.constant -2.000000e+00 : f32
    %142 = vector.broadcast %cst_52 : f32 to vector<64x1xf32>
    %143 = arith.addf %9, %142 : vector<64x1xf32>
    %cst_53 = arith.constant 8.000000e+00 : f32
    %144 = vector.broadcast %cst_53 : f32 to vector<64x1xf32>
    %145 = arith.cmpf olt, %143, %144 : vector<64x1xf32>
    %146 = arith.andi %141, %145 : vector<64x1xi1>
    %147 = arith.extui %146 : vector<64x1xi1> to vector<64x1xi32>
    %148 = arith.sitofp %147 : vector<64x1xi32> to vector<64x1xf32>
    %cst_54 = arith.constant -1.000000e+00 : f32
    %149 = vector.broadcast %cst_54 : f32 to vector<64x1xf32>
    %150 = arith.addf %9, %149 : vector<64x1xf32>
    %cst_55 = arith.constant 0.000000e+00 : f32
    %151 = vector.broadcast %cst_55 : f32 to vector<64x1xf32>
    %152 = arith.cmpf oge, %150, %151 : vector<64x1xf32>
    %cst_56 = arith.constant -1.000000e+00 : f32
    %153 = vector.broadcast %cst_56 : f32 to vector<64x1xf32>
    %154 = arith.addf %9, %153 : vector<64x1xf32>
    %cst_57 = arith.constant 8.000000e+00 : f32
    %155 = vector.broadcast %cst_57 : f32 to vector<64x1xf32>
    %156 = arith.cmpf olt, %154, %155 : vector<64x1xf32>
    %157 = arith.andi %152, %156 : vector<64x1xi1>
    %158 = arith.extui %157 : vector<64x1xi1> to vector<64x1xi32>
    %159 = arith.sitofp %158 : vector<64x1xi32> to vector<64x1xf32>
    %cst_58 = arith.constant 1.000000e+00 : f32
    %160 = vector.broadcast %cst_58 : f32 to vector<64x1xf32>
    %161 = arith.addf %9, %160 : vector<64x1xf32>
    %cst_59 = arith.constant 0.000000e+00 : f32
    %162 = vector.broadcast %cst_59 : f32 to vector<64x1xf32>
    %163 = arith.cmpf oge, %161, %162 : vector<64x1xf32>
    %cst_60 = arith.constant 1.000000e+00 : f32
    %164 = vector.broadcast %cst_60 : f32 to vector<64x1xf32>
    %165 = arith.addf %9, %164 : vector<64x1xf32>
    %cst_61 = arith.constant 8.000000e+00 : f32
    %166 = vector.broadcast %cst_61 : f32 to vector<64x1xf32>
    %167 = arith.cmpf olt, %165, %166 : vector<64x1xf32>
    %168 = arith.andi %163, %167 : vector<64x1xi1>
    %169 = arith.extui %168 : vector<64x1xi1> to vector<64x1xi32>
    %170 = arith.sitofp %169 : vector<64x1xi32> to vector<64x1xf32>
    %cst_62 = arith.constant 2.000000e+00 : f32
    %171 = vector.broadcast %cst_62 : f32 to vector<64x1xf32>
    %172 = arith.addf %9, %171 : vector<64x1xf32>
    %cst_63 = arith.constant 0.000000e+00 : f32
    %173 = vector.broadcast %cst_63 : f32 to vector<64x1xf32>
    %174 = arith.cmpf oge, %172, %173 : vector<64x1xf32>
    %cst_64 = arith.constant 2.000000e+00 : f32
    %175 = vector.broadcast %cst_64 : f32 to vector<64x1xf32>
    %176 = arith.addf %9, %175 : vector<64x1xf32>
    %cst_65 = arith.constant 8.000000e+00 : f32
    %177 = vector.broadcast %cst_65 : f32 to vector<64x1xf32>
    %178 = arith.cmpf olt, %176, %177 : vector<64x1xf32>
    %179 = arith.andi %174, %178 : vector<64x1xi1>
    %180 = arith.extui %179 : vector<64x1xi1> to vector<64x1xi32>
    %181 = arith.sitofp %180 : vector<64x1xi32> to vector<64x1xf32>
    %cst_66 = arith.constant -2.000000e+00 : f32
    %182 = vector.broadcast %cst_66 : f32 to vector<64x1xf32>
    %183 = arith.addf %6, %182 : vector<64x1xf32>
    %cst_67 = arith.constant 0.000000e+00 : f32
    %184 = vector.broadcast %cst_67 : f32 to vector<64x1xf32>
    %185 = arith.cmpf oge, %183, %184 : vector<64x1xf32>
    %cst_68 = arith.constant -2.000000e+00 : f32
    %186 = vector.broadcast %cst_68 : f32 to vector<64x1xf32>
    %187 = arith.addf %6, %186 : vector<64x1xf32>
    %cst_69 = arith.constant 8.000000e+00 : f32
    %188 = vector.broadcast %cst_69 : f32 to vector<64x1xf32>
    %189 = arith.cmpf olt, %187, %188 : vector<64x1xf32>
    %190 = arith.andi %185, %189 : vector<64x1xi1>
    %191 = arith.extui %190 : vector<64x1xi1> to vector<64x1xi32>
    %192 = arith.sitofp %191 : vector<64x1xi32> to vector<64x1xf32>
    %cst_70 = arith.constant -1.000000e+00 : f32
    %193 = vector.broadcast %cst_70 : f32 to vector<64x1xf32>
    %194 = arith.addf %6, %193 : vector<64x1xf32>
    %cst_71 = arith.constant 0.000000e+00 : f32
    %195 = vector.broadcast %cst_71 : f32 to vector<64x1xf32>
    %196 = arith.cmpf oge, %194, %195 : vector<64x1xf32>
    %cst_72 = arith.constant -1.000000e+00 : f32
    %197 = vector.broadcast %cst_72 : f32 to vector<64x1xf32>
    %198 = arith.addf %6, %197 : vector<64x1xf32>
    %cst_73 = arith.constant 8.000000e+00 : f32
    %199 = vector.broadcast %cst_73 : f32 to vector<64x1xf32>
    %200 = arith.cmpf olt, %198, %199 : vector<64x1xf32>
    %201 = arith.andi %196, %200 : vector<64x1xi1>
    %202 = arith.extui %201 : vector<64x1xi1> to vector<64x1xi32>
    %203 = arith.sitofp %202 : vector<64x1xi32> to vector<64x1xf32>
    %cst_74 = arith.constant 1.000000e+00 : f32
    %204 = vector.broadcast %cst_74 : f32 to vector<64x1xf32>
    %205 = arith.addf %6, %204 : vector<64x1xf32>
    %cst_75 = arith.constant 0.000000e+00 : f32
    %206 = vector.broadcast %cst_75 : f32 to vector<64x1xf32>
    %207 = arith.cmpf oge, %205, %206 : vector<64x1xf32>
    %cst_76 = arith.constant 1.000000e+00 : f32
    %208 = vector.broadcast %cst_76 : f32 to vector<64x1xf32>
    %209 = arith.addf %6, %208 : vector<64x1xf32>
    %cst_77 = arith.constant 8.000000e+00 : f32
    %210 = vector.broadcast %cst_77 : f32 to vector<64x1xf32>
    %211 = arith.cmpf olt, %209, %210 : vector<64x1xf32>
    %212 = arith.andi %207, %211 : vector<64x1xi1>
    %213 = arith.extui %212 : vector<64x1xi1> to vector<64x1xi32>
    %214 = arith.sitofp %213 : vector<64x1xi32> to vector<64x1xf32>
    %cst_78 = arith.constant 2.000000e+00 : f32
    %215 = vector.broadcast %cst_78 : f32 to vector<64x1xf32>
    %216 = arith.addf %6, %215 : vector<64x1xf32>
    %cst_79 = arith.constant 0.000000e+00 : f32
    %217 = vector.broadcast %cst_79 : f32 to vector<64x1xf32>
    %218 = arith.cmpf oge, %216, %217 : vector<64x1xf32>
    %cst_80 = arith.constant 2.000000e+00 : f32
    %219 = vector.broadcast %cst_80 : f32 to vector<64x1xf32>
    %220 = arith.addf %6, %219 : vector<64x1xf32>
    %cst_81 = arith.constant 8.000000e+00 : f32
    %221 = vector.broadcast %cst_81 : f32 to vector<64x1xf32>
    %222 = arith.cmpf olt, %220, %221 : vector<64x1xf32>
    %223 = arith.andi %218, %222 : vector<64x1xi1>
    %224 = arith.extui %223 : vector<64x1xi1> to vector<64x1xi32>
    %225 = arith.sitofp %224 : vector<64x1xi32> to vector<64x1xf32>
    %c0 = arith.constant 0 : index
    %c0_82 = arith.constant 0 : index
    %c0_83 = arith.constant 0 : index
    %226 = vector.load %arg2[%c0, %c0_82, %c0_83] : memref<1x64x128xf32, #tpu.memory_space<vmem>>, vector<1x64x128xf32>
    %227 = vector.shape_cast %226 : vector<1x64x128xf32> to vector<64x128xf32>
    %c0_84 = arith.constant 0 : index
    %c0_85 = arith.constant 0 : index
    %228 = vector.load %arg3[%c0_84, %c0_85] : memref<128x128xf32, #tpu.memory_space<vmem>>, vector<128x128xf32>
    %cst_86 = arith.constant dense<0.000000e+00> : vector<64x128xf32>
    %229 = tpu.matmul %227, %228, %cst_86 {dimension_numbers = #tpu.dot_dimension_numbers<[1], [0], [0], [1], [0, 0, 1, 1], [], []>} : vector<64x128xf32>, vector<128x128xf32>, vector<64x128xf32> -> vector<64x128xf32>
    %cst_87 = arith.constant dense<0.000000e+00> : vector<64xf32>
    %230 = vector.multi_reduction <add>, %229, %cst_87 [1] : vector<64x128xf32> to vector<64xf32>
    %231 = vector.shape_cast %230 : vector<64xf32> to vector<64x1xf32>
    %cst_88 = arith.constant 1.280000e+02 : f32
    %232 = vector.broadcast %cst_88 : f32 to vector<64x1xf32>
    %233 = arith.divf %231, %232 : vector<64x1xf32>
    %234 = vector.broadcast %233 : vector<64x1xf32> to vector<64x128xf32>
    %235 = arith.subf %229, %234 : vector<64x128xf32>
    %236 = arith.mulf %235, %235 : vector<64x128xf32>
    %cst_89 = arith.constant dense<0.000000e+00> : vector<64xf32>
    %237 = vector.multi_reduction <add>, %236, %cst_89 [1] : vector<64x128xf32> to vector<64xf32>
    %238 = vector.shape_cast %237 : vector<64xf32> to vector<64x1xf32>
    %cst_90 = arith.constant 1.280000e+02 : f32
    %239 = vector.broadcast %cst_90 : f32 to vector<64x1xf32>
    %240 = arith.divf %238, %239 : vector<64x1xf32>
    %cst_91 = arith.constant 9.99999974E-6 : f32
    %241 = vector.broadcast %cst_91 : f32 to vector<64x1xf32>
    %242 = arith.addf %240, %241 : vector<64x1xf32>
    %243 = math.rsqrt %242 : vector<64x1xf32>
    %244 = vector.broadcast %243 : vector<64x1xf32> to vector<64x128xf32>
    %245 = arith.mulf %235, %244 : vector<64x128xf32>
    %c0_92 = arith.constant 0 : index
    %c0_93 = arith.constant 0 : index
    %246 = vector.load %arg4[%c0_92, %c0_93] : memref<1x128xf32, #tpu.memory_space<vmem>>, vector<1x128xf32>
    %247 = vector.broadcast %246 : vector<1x128xf32> to vector<64x128xf32>
    %248 = arith.mulf %245, %247 : vector<64x128xf32>
    %c0_94 = arith.constant 0 : index
    %c0_95 = arith.constant 0 : index
    %249 = vector.load %arg5[%c0_94, %c0_95] : memref<1x128xf32, #tpu.memory_space<vmem>>, vector<1x128xf32>
    %250 = vector.broadcast %249 : vector<1x128xf32> to vector<64x128xf32>
    %251 = arith.addf %248, %250 : vector<64x128xf32>
    %c0_96 = arith.constant 0 : index
    %c0_97 = arith.constant 0 : index
    %c0_98 = arith.constant 0 : index
    %252 = vector.load %arg1[%c0_96, %c0_97, %c0_98] : memref<1x64x128xf32, #tpu.memory_space<vmem>>, vector<1x64x128xf32>
    %253 = vector.shape_cast %252 : vector<1x64x128xf32> to vector<64x128xf32>
    %254 = tpu.concatenate %253, %251 in 1 : vector<64x128xf32>, vector<64x128xf32> -> vector<64x256xf32>
    %c0_99 = arith.constant 0 : index
    %c0_100 = arith.constant 0 : index
    %255 = vector.load %arg6[%c0_99, %c0_100] : memref<256x128xf32, #tpu.memory_space<vmem>>, vector<256x128xf32>
    %cst_101 = arith.constant dense<0.000000e+00> : vector<64x128xf32>
    %256 = tpu.matmul %254, %255, %cst_101 {dimension_numbers = #tpu.dot_dimension_numbers<[1], [0], [0], [1], [0, 0, 1, 1], [], []>} : vector<64x256xf32>, vector<256x128xf32>, vector<64x128xf32> -> vector<64x128xf32>
    %c0_102 = arith.constant 0 : index
    %c0_103 = arith.constant 0 : index
    %257 = vector.load %arg7[%c0_102, %c0_103] : memref<1x128xf32, #tpu.memory_space<vmem>>, vector<1x128xf32>
    %258 = vector.broadcast %257 : vector<1x128xf32> to vector<64x128xf32>
    %259 = arith.addf %256, %258 : vector<64x128xf32>
    %cst_104 = arith.constant 5.000000e-01 : f32
    %260 = vector.broadcast %cst_104 : f32 to vector<64x128xf32>
    %261 = arith.mulf %260, %259 : vector<64x128xf32>
    %cst_105 = arith.constant 4.471500e-02 : f32
    %262 = vector.broadcast %cst_105 : f32 to vector<64x128xf32>
    %263 = arith.mulf %262, %259 : vector<64x128xf32>
    %264 = arith.mulf %263, %259 : vector<64x128xf32>
    %265 = arith.mulf %264, %259 : vector<64x128xf32>
    %266 = arith.addf %259, %265 : vector<64x128xf32>
    %cst_106 = arith.constant 0.797884583 : f32
    %267 = vector.broadcast %cst_106 : f32 to vector<64x128xf32>
    %268 = arith.mulf %267, %266 : vector<64x128xf32>
    %269 = math.tanh %268 : vector<64x128xf32>
    %cst_107 = arith.constant 1.000000e+00 : f32
    %270 = vector.broadcast %cst_107 : f32 to vector<64x128xf32>
    %271 = arith.addf %270, %269 : vector<64x128xf32>
    %272 = arith.mulf %261, %271 : vector<64x128xf32>
    %c9_i32 = arith.constant 9 : i32
    %273 = tpu.dynamic_rotate %272 by %c9_i32 dim 0 : vector<64x128xf32>, i32 -> vector<64x128xf32>
    %274 = vector.broadcast %30 : vector<64x1xf32> to vector<64x128xf32>
    %275 = arith.mulf %273, %274 : vector<64x128xf32>
    %c8_i32 = arith.constant 8 : i32
    %276 = tpu.dynamic_rotate %272 by %c8_i32 dim 0 : vector<64x128xf32>, i32 -> vector<64x128xf32>
    %277 = vector.broadcast %41 : vector<64x1xf32> to vector<64x128xf32>
    %278 = arith.mulf %276, %277 : vector<64x128xf32>
    %c7_i32 = arith.constant 7 : i32
    %279 = tpu.dynamic_rotate %272 by %c7_i32 dim 0 : vector<64x128xf32>, i32 -> vector<64x128xf32>
    %280 = vector.broadcast %62 : vector<64x1xf32> to vector<64x128xf32>
    %281 = arith.mulf %279, %280 : vector<64x128xf32>
    %c1_i32 = arith.constant 1 : i32
    %282 = tpu.dynamic_rotate %272 by %c1_i32 dim 0 : vector<64x128xf32>, i32 -> vector<64x128xf32>
    %283 = vector.broadcast %73 : vector<64x1xf32> to vector<64x128xf32>
    %284 = arith.mulf %282, %283 : vector<64x128xf32>
    %c63_i32 = arith.constant 63 : i32
    %285 = tpu.dynamic_rotate %272 by %c63_i32 dim 0 : vector<64x128xf32>, i32 -> vector<64x128xf32>
    %286 = vector.broadcast %84 : vector<64x1xf32> to vector<64x128xf32>
    %287 = arith.mulf %285, %286 : vector<64x128xf32>
    %c57_i32 = arith.constant 57 : i32
    %288 = tpu.dynamic_rotate %272 by %c57_i32 dim 0 : vector<64x128xf32>, i32 -> vector<64x128xf32>
    %289 = vector.broadcast %105 : vector<64x1xf32> to vector<64x128xf32>
    %290 = arith.mulf %288, %289 : vector<64x128xf32>
    %c56_i32 = arith.constant 56 : i32
    %291 = tpu.dynamic_rotate %272 by %c56_i32 dim 0 : vector<64x128xf32>, i32 -> vector<64x128xf32>
    %292 = vector.broadcast %116 : vector<64x1xf32> to vector<64x128xf32>
    %293 = arith.mulf %291, %292 : vector<64x128xf32>
    %c55_i32 = arith.constant 55 : i32
    %294 = tpu.dynamic_rotate %272 by %c55_i32 dim 0 : vector<64x128xf32>, i32 -> vector<64x128xf32>
    %295 = vector.broadcast %137 : vector<64x1xf32> to vector<64x128xf32>
    %296 = arith.mulf %294, %295 : vector<64x128xf32>
    %297 = tpu.concatenate %275, %278, %281, %284, %272, %287, %290, %293, %296 in 1 : vector<64x128xf32>, vector<64x128xf32>, vector<64x128xf32>, vector<64x128xf32>, vector<64x128xf32>, vector<64x128xf32>, vector<64x128xf32>, vector<64x128xf32>, vector<64x128xf32> -> vector<64x1152xf32>
    %c0_108 = arith.constant 0 : index
    %c0_109 = arith.constant 0 : index
    %298 = vector.load %arg8[%c0_108, %c0_109] : memref<1152x128xf32, #tpu.memory_space<vmem>>, vector<1152x128xf32>
    %cst_110 = arith.constant dense<0.000000e+00> : vector<64x128xf32>
    %299 = tpu.matmul %297, %298, %cst_110 {dimension_numbers = #tpu.dot_dimension_numbers<[1], [0], [0], [1], [0, 0, 1, 1], [], []>} : vector<64x1152xf32>, vector<1152x128xf32>, vector<64x128xf32> -> vector<64x128xf32>
    %c0_111 = arith.constant 0 : index
    %c0_112 = arith.constant 0 : index
    %300 = vector.load %arg9[%c0_111, %c0_112] : memref<1x128xf32, #tpu.memory_space<vmem>>, vector<1x128xf32>
    %301 = vector.broadcast %300 : vector<1x128xf32> to vector<64x128xf32>
    %302 = arith.addf %299, %301 : vector<64x128xf32>
    %cst_113 = arith.constant 5.000000e-01 : f32
    %303 = vector.broadcast %cst_113 : f32 to vector<64x128xf32>
    %304 = arith.mulf %303, %302 : vector<64x128xf32>
    %cst_114 = arith.constant 4.471500e-02 : f32
    %305 = vector.broadcast %cst_114 : f32 to vector<64x128xf32>
    %306 = arith.mulf %305, %302 : vector<64x128xf32>
    %307 = arith.mulf %306, %302 : vector<64x128xf32>
    %308 = arith.mulf %307, %302 : vector<64x128xf32>
    %309 = arith.addf %302, %308 : vector<64x128xf32>
    %cst_115 = arith.constant 0.797884583 : f32
    %310 = vector.broadcast %cst_115 : f32 to vector<64x128xf32>
    %311 = arith.mulf %310, %309 : vector<64x128xf32>
    %312 = math.tanh %311 : vector<64x128xf32>
    %cst_116 = arith.constant 1.000000e+00 : f32
    %313 = vector.broadcast %cst_116 : f32 to vector<64x128xf32>
    %314 = arith.addf %313, %312 : vector<64x128xf32>
    %315 = arith.mulf %304, %314 : vector<64x128xf32>
    %c9_i32_117 = arith.constant 9 : i32
    %316 = tpu.dynamic_rotate %315 by %c9_i32_117 dim 0 : vector<64x128xf32>, i32 -> vector<64x128xf32>
    %317 = vector.broadcast %30 : vector<64x1xf32> to vector<64x128xf32>
    %318 = arith.mulf %316, %317 : vector<64x128xf32>
    %c8_i32_118 = arith.constant 8 : i32
    %319 = tpu.dynamic_rotate %315 by %c8_i32_118 dim 0 : vector<64x128xf32>, i32 -> vector<64x128xf32>
    %320 = vector.broadcast %41 : vector<64x1xf32> to vector<64x128xf32>
    %321 = arith.mulf %319, %320 : vector<64x128xf32>
    %c7_i32_119 = arith.constant 7 : i32
    %322 = tpu.dynamic_rotate %315 by %c7_i32_119 dim 0 : vector<64x128xf32>, i32 -> vector<64x128xf32>
    %323 = vector.broadcast %62 : vector<64x1xf32> to vector<64x128xf32>
    %324 = arith.mulf %322, %323 : vector<64x128xf32>
    %c1_i32_120 = arith.constant 1 : i32
    %325 = tpu.dynamic_rotate %315 by %c1_i32_120 dim 0 : vector<64x128xf32>, i32 -> vector<64x128xf32>
    %326 = vector.broadcast %73 : vector<64x1xf32> to vector<64x128xf32>
    %327 = arith.mulf %325, %326 : vector<64x128xf32>
    %c63_i32_121 = arith.constant 63 : i32
    %328 = tpu.dynamic_rotate %315 by %c63_i32_121 dim 0 : vector<64x128xf32>, i32 -> vector<64x128xf32>
    %329 = vector.broadcast %84 : vector<64x1xf32> to vector<64x128xf32>
    %330 = arith.mulf %328, %329 : vector<64x128xf32>
    %c57_i32_122 = arith.constant 57 : i32
    %331 = tpu.dynamic_rotate %315 by %c57_i32_122 dim 0 : vector<64x128xf32>, i32 -> vector<64x128xf32>
    %332 = vector.broadcast %105 : vector<64x1xf32> to vector<64x128xf32>
    %333 = arith.mulf %331, %332 : vector<64x128xf32>
    %c56_i32_123 = arith.constant 56 : i32
    %334 = tpu.dynamic_rotate %315 by %c56_i32_123 dim 0 : vector<64x128xf32>, i32 -> vector<64x128xf32>
    %335 = vector.broadcast %116 : vector<64x1xf32> to vector<64x128xf32>
    %336 = arith.mulf %334, %335 : vector<64x128xf32>
    %c55_i32_124 = arith.constant 55 : i32
    %337 = tpu.dynamic_rotate %315 by %c55_i32_124 dim 0 : vector<64x128xf32>, i32 -> vector<64x128xf32>
    %338 = vector.broadcast %137 : vector<64x1xf32> to vector<64x128xf32>
    %339 = arith.mulf %337, %338 : vector<64x128xf32>
    %340 = tpu.concatenate %318, %321, %324, %327, %315, %330, %333, %336, %339 in 1 : vector<64x128xf32>, vector<64x128xf32>, vector<64x128xf32>, vector<64x128xf32>, vector<64x128xf32>, vector<64x128xf32>, vector<64x128xf32>, vector<64x128xf32>, vector<64x128xf32> -> vector<64x1152xf32>
    %c0_125 = arith.constant 0 : index
    %c0_126 = arith.constant 0 : index
    %341 = vector.load %arg10[%c0_125, %c0_126] : memref<1152x128xf32, #tpu.memory_space<vmem>>, vector<1152x128xf32>
    %cst_127 = arith.constant dense<0.000000e+00> : vector<64x128xf32>
    %342 = tpu.matmul %340, %341, %cst_127 {dimension_numbers = #tpu.dot_dimension_numbers<[1], [0], [0], [1], [0, 0, 1, 1], [], []>} : vector<64x1152xf32>, vector<1152x128xf32>, vector<64x128xf32> -> vector<64x128xf32>
    %c0_128 = arith.constant 0 : index
    %c0_129 = arith.constant 0 : index
    %343 = vector.load %arg11[%c0_128, %c0_129] : memref<1x128xf32, #tpu.memory_space<vmem>>, vector<1x128xf32>
    %344 = vector.broadcast %343 : vector<1x128xf32> to vector<64x128xf32>
    %345 = arith.addf %342, %344 : vector<64x128xf32>
    %cst_130 = arith.constant 5.000000e-01 : f32
    %346 = vector.broadcast %cst_130 : f32 to vector<64x128xf32>
    %347 = arith.mulf %346, %345 : vector<64x128xf32>
    %cst_131 = arith.constant 4.471500e-02 : f32
    %348 = vector.broadcast %cst_131 : f32 to vector<64x128xf32>
    %349 = arith.mulf %348, %345 : vector<64x128xf32>
    %350 = arith.mulf %349, %345 : vector<64x128xf32>
    %351 = arith.mulf %350, %345 : vector<64x128xf32>
    %352 = arith.addf %345, %351 : vector<64x128xf32>
    %cst_132 = arith.constant 0.797884583 : f32
    %353 = vector.broadcast %cst_132 : f32 to vector<64x128xf32>
    %354 = arith.mulf %353, %352 : vector<64x128xf32>
    %355 = math.tanh %354 : vector<64x128xf32>
    %cst_133 = arith.constant 1.000000e+00 : f32
    %356 = vector.broadcast %cst_133 : f32 to vector<64x128xf32>
    %357 = arith.addf %356, %355 : vector<64x128xf32>
    %358 = arith.mulf %347, %357 : vector<64x128xf32>
    %c2_i32 = arith.constant 2 : i32
    %359 = tpu.dynamic_rotate %358 by %c2_i32 dim 0 : vector<64x128xf32>, i32 -> vector<64x128xf32>
    %360 = vector.broadcast %148 : vector<64x1xf32> to vector<64x128xf32>
    %361 = arith.mulf %359, %360 : vector<64x128xf32>
    %c1_i32_134 = arith.constant 1 : i32
    %362 = tpu.dynamic_rotate %358 by %c1_i32_134 dim 0 : vector<64x128xf32>, i32 -> vector<64x128xf32>
    %363 = vector.broadcast %159 : vector<64x1xf32> to vector<64x128xf32>
    %364 = arith.mulf %362, %363 : vector<64x128xf32>
    %c63_i32_135 = arith.constant 63 : i32
    %365 = tpu.dynamic_rotate %358 by %c63_i32_135 dim 0 : vector<64x128xf32>, i32 -> vector<64x128xf32>
    %366 = vector.broadcast %170 : vector<64x1xf32> to vector<64x128xf32>
    %367 = arith.mulf %365, %366 : vector<64x128xf32>
    %c62_i32 = arith.constant 62 : i32
    %368 = tpu.dynamic_rotate %358 by %c62_i32 dim 0 : vector<64x128xf32>, i32 -> vector<64x128xf32>
    %369 = vector.broadcast %181 : vector<64x1xf32> to vector<64x128xf32>
    %370 = arith.mulf %368, %369 : vector<64x128xf32>
    %371 = tpu.concatenate %361, %364, %358, %367, %370 in 1 : vector<64x128xf32>, vector<64x128xf32>, vector<64x128xf32>, vector<64x128xf32>, vector<64x128xf32> -> vector<64x640xf32>
    %c2_i32_136 = arith.constant 2 : i32
    %372 = tpu.dynamic_rotate %253 by %c2_i32_136 dim 0 : vector<64x128xf32>, i32 -> vector<64x128xf32>
    %373 = vector.broadcast %148 : vector<64x1xf32> to vector<64x128xf32>
    %374 = arith.mulf %372, %373 : vector<64x128xf32>
    %c1_i32_137 = arith.constant 1 : i32
    %375 = tpu.dynamic_rotate %253 by %c1_i32_137 dim 0 : vector<64x128xf32>, i32 -> vector<64x128xf32>
    %376 = vector.broadcast %159 : vector<64x1xf32> to vector<64x128xf32>
    %377 = arith.mulf %375, %376 : vector<64x128xf32>
    %c63_i32_138 = arith.constant 63 : i32
    %378 = tpu.dynamic_rotate %253 by %c63_i32_138 dim 0 : vector<64x128xf32>, i32 -> vector<64x128xf32>
    %379 = vector.broadcast %170 : vector<64x1xf32> to vector<64x128xf32>
    %380 = arith.mulf %378, %379 : vector<64x128xf32>
    %c62_i32_139 = arith.constant 62 : i32
    %381 = tpu.dynamic_rotate %253 by %c62_i32_139 dim 0 : vector<64x128xf32>, i32 -> vector<64x128xf32>
    %382 = vector.broadcast %181 : vector<64x1xf32> to vector<64x128xf32>
    %383 = arith.mulf %381, %382 : vector<64x128xf32>
    %384 = tpu.concatenate %374, %377, %253, %380, %383 in 1 : vector<64x128xf32>, vector<64x128xf32>, vector<64x128xf32>, vector<64x128xf32>, vector<64x128xf32> -> vector<64x640xf32>
    %385 = tpu.concatenate %384, %371 in 1 : vector<64x640xf32>, vector<64x640xf32> -> vector<64x1280xf32>
    %c0_140 = arith.constant 0 : index
    %c0_141 = arith.constant 0 : index
    %386 = vector.load %arg12[%c0_140, %c0_141] : memref<1280x256xf32, #tpu.memory_space<vmem>>, vector<1280x256xf32>
    %cst_142 = arith.constant dense<0.000000e+00> : vector<64x256xf32>
    %387 = tpu.matmul %385, %386, %cst_142 {dimension_numbers = #tpu.dot_dimension_numbers<[1], [0], [0], [1], [0, 0, 1, 1], [], []>} : vector<64x1280xf32>, vector<1280x256xf32>, vector<64x256xf32> -> vector<64x256xf32>
    %c0_143 = arith.constant 0 : index
    %c0_144 = arith.constant 0 : index
    %388 = vector.load %arg13[%c0_143, %c0_144] : memref<1x256xf32, #tpu.memory_space<vmem>>, vector<1x256xf32>
    %389 = vector.broadcast %388 : vector<1x256xf32> to vector<64x256xf32>
    %390 = arith.addf %387, %389 : vector<64x256xf32>
    %cst_145 = arith.constant 5.000000e-01 : f32
    %391 = vector.broadcast %cst_145 : f32 to vector<64x256xf32>
    %392 = arith.mulf %391, %390 : vector<64x256xf32>
    %393 = math.tanh %392 : vector<64x256xf32>
    %cst_146 = arith.constant 1.000000e+00 : f32
    %394 = vector.broadcast %cst_146 : f32 to vector<64x256xf32>
    %395 = arith.addf %393, %394 : vector<64x256xf32>
    %cst_147 = arith.constant 5.000000e-01 : f32
    %396 = vector.broadcast %cst_147 : f32 to vector<64x256xf32>
    %397 = arith.mulf %396, %395 : vector<64x256xf32>
    %398 = vector.extract_strided_slice %397 {offsets = [0, 0], sizes = [64, 128], strides = [1, 1]} : vector<64x256xf32> to vector<64x128xf32>
    %399 = vector.extract_strided_slice %397 {offsets = [0, 128], sizes = [64, 128], strides = [1, 1]} : vector<64x256xf32> to vector<64x128xf32>
    %400 = arith.mulf %399, %253 : vector<64x128xf32>
    %c2_i32_148 = arith.constant 2 : i32
    %401 = tpu.dynamic_rotate %400 by %c2_i32_148 dim 0 : vector<64x128xf32>, i32 -> vector<64x128xf32>
    %402 = vector.broadcast %148 : vector<64x1xf32> to vector<64x128xf32>
    %403 = arith.mulf %401, %402 : vector<64x128xf32>
    %c1_i32_149 = arith.constant 1 : i32
    %404 = tpu.dynamic_rotate %400 by %c1_i32_149 dim 0 : vector<64x128xf32>, i32 -> vector<64x128xf32>
    %405 = vector.broadcast %159 : vector<64x1xf32> to vector<64x128xf32>
    %406 = arith.mulf %404, %405 : vector<64x128xf32>
    %c63_i32_150 = arith.constant 63 : i32
    %407 = tpu.dynamic_rotate %400 by %c63_i32_150 dim 0 : vector<64x128xf32>, i32 -> vector<64x128xf32>
    %408 = vector.broadcast %170 : vector<64x1xf32> to vector<64x128xf32>
    %409 = arith.mulf %407, %408 : vector<64x128xf32>
    %c62_i32_151 = arith.constant 62 : i32
    %410 = tpu.dynamic_rotate %400 by %c62_i32_151 dim 0 : vector<64x128xf32>, i32 -> vector<64x128xf32>
    %411 = vector.broadcast %181 : vector<64x1xf32> to vector<64x128xf32>
    %412 = arith.mulf %410, %411 : vector<64x128xf32>
    %413 = tpu.concatenate %403, %406, %400, %409, %412 in 1 : vector<64x128xf32>, vector<64x128xf32>, vector<64x128xf32>, vector<64x128xf32>, vector<64x128xf32> -> vector<64x640xf32>
    %414 = tpu.concatenate %413, %371 in 1 : vector<64x640xf32>, vector<64x640xf32> -> vector<64x1280xf32>
    %c0_152 = arith.constant 0 : index
    %c0_153 = arith.constant 0 : index
    %415 = vector.load %arg14[%c0_152, %c0_153] : memref<1280x128xf32, #tpu.memory_space<vmem>>, vector<1280x128xf32>
    %cst_154 = arith.constant dense<0.000000e+00> : vector<64x128xf32>
    %416 = tpu.matmul %414, %415, %cst_154 {dimension_numbers = #tpu.dot_dimension_numbers<[1], [0], [0], [1], [0, 0, 1, 1], [], []>} : vector<64x1280xf32>, vector<1280x128xf32>, vector<64x128xf32> -> vector<64x128xf32>
    %c0_155 = arith.constant 0 : index
    %c0_156 = arith.constant 0 : index
    %417 = vector.load %arg15[%c0_155, %c0_156] : memref<1x128xf32, #tpu.memory_space<vmem>>, vector<1x128xf32>
    %418 = vector.broadcast %417 : vector<1x128xf32> to vector<64x128xf32>
    %419 = arith.addf %416, %418 : vector<64x128xf32>
    %420 = math.tanh %419 : vector<64x128xf32>
    %cst_157 = arith.constant 1.000000e+00 : f32
    %421 = vector.broadcast %cst_157 : f32 to vector<64x128xf32>
    %422 = arith.subf %421, %398 : vector<64x128xf32>
    %423 = arith.mulf %422, %253 : vector<64x128xf32>
    %424 = arith.mulf %398, %420 : vector<64x128xf32>
    %425 = arith.addf %423, %424 : vector<64x128xf32>
    %c16_i32 = arith.constant 16 : i32
    %426 = tpu.dynamic_rotate %358 by %c16_i32 dim 0 : vector<64x128xf32>, i32 -> vector<64x128xf32>
    %427 = vector.broadcast %192 : vector<64x1xf32> to vector<64x128xf32>
    %428 = arith.mulf %426, %427 : vector<64x128xf32>
    %c8_i32_158 = arith.constant 8 : i32
    %429 = tpu.dynamic_rotate %358 by %c8_i32_158 dim 0 : vector<64x128xf32>, i32 -> vector<64x128xf32>
    %430 = vector.broadcast %203 : vector<64x1xf32> to vector<64x128xf32>
    %431 = arith.mulf %429, %430 : vector<64x128xf32>
    %c56_i32_159 = arith.constant 56 : i32
    %432 = tpu.dynamic_rotate %358 by %c56_i32_159 dim 0 : vector<64x128xf32>, i32 -> vector<64x128xf32>
    %433 = vector.broadcast %214 : vector<64x1xf32> to vector<64x128xf32>
    %434 = arith.mulf %432, %433 : vector<64x128xf32>
    %c48_i32 = arith.constant 48 : i32
    %435 = tpu.dynamic_rotate %358 by %c48_i32 dim 0 : vector<64x128xf32>, i32 -> vector<64x128xf32>
    %436 = vector.broadcast %225 : vector<64x1xf32> to vector<64x128xf32>
    %437 = arith.mulf %435, %436 : vector<64x128xf32>
    %438 = tpu.concatenate %428, %431, %358, %434, %437 in 1 : vector<64x128xf32>, vector<64x128xf32>, vector<64x128xf32>, vector<64x128xf32>, vector<64x128xf32> -> vector<64x640xf32>
    %c16_i32_160 = arith.constant 16 : i32
    %439 = tpu.dynamic_rotate %425 by %c16_i32_160 dim 0 : vector<64x128xf32>, i32 -> vector<64x128xf32>
    %440 = vector.broadcast %192 : vector<64x1xf32> to vector<64x128xf32>
    %441 = arith.mulf %439, %440 : vector<64x128xf32>
    %c8_i32_161 = arith.constant 8 : i32
    %442 = tpu.dynamic_rotate %425 by %c8_i32_161 dim 0 : vector<64x128xf32>, i32 -> vector<64x128xf32>
    %443 = vector.broadcast %203 : vector<64x1xf32> to vector<64x128xf32>
    %444 = arith.mulf %442, %443 : vector<64x128xf32>
    %c56_i32_162 = arith.constant 56 : i32
    %445 = tpu.dynamic_rotate %425 by %c56_i32_162 dim 0 : vector<64x128xf32>, i32 -> vector<64x128xf32>
    %446 = vector.broadcast %214 : vector<64x1xf32> to vector<64x128xf32>
    %447 = arith.mulf %445, %446 : vector<64x128xf32>
    %c48_i32_163 = arith.constant 48 : i32
    %448 = tpu.dynamic_rotate %425 by %c48_i32_163 dim 0 : vector<64x128xf32>, i32 -> vector<64x128xf32>
    %449 = vector.broadcast %225 : vector<64x1xf32> to vector<64x128xf32>
    %450 = arith.mulf %448, %449 : vector<64x128xf32>
    %451 = tpu.concatenate %441, %444, %425, %447, %450 in 1 : vector<64x128xf32>, vector<64x128xf32>, vector<64x128xf32>, vector<64x128xf32>, vector<64x128xf32> -> vector<64x640xf32>
    %452 = tpu.concatenate %451, %438 in 1 : vector<64x640xf32>, vector<64x640xf32> -> vector<64x1280xf32>
    %c0_164 = arith.constant 0 : index
    %c0_165 = arith.constant 0 : index
    %453 = vector.load %arg16[%c0_164, %c0_165] : memref<1280x256xf32, #tpu.memory_space<vmem>>, vector<1280x256xf32>
    %cst_166 = arith.constant dense<0.000000e+00> : vector<64x256xf32>
    %454 = tpu.matmul %452, %453, %cst_166 {dimension_numbers = #tpu.dot_dimension_numbers<[1], [0], [0], [1], [0, 0, 1, 1], [], []>} : vector<64x1280xf32>, vector<1280x256xf32>, vector<64x256xf32> -> vector<64x256xf32>
    %c0_167 = arith.constant 0 : index
    %c0_168 = arith.constant 0 : index
    %455 = vector.load %arg17[%c0_167, %c0_168] : memref<1x256xf32, #tpu.memory_space<vmem>>, vector<1x256xf32>
    %456 = vector.broadcast %455 : vector<1x256xf32> to vector<64x256xf32>
    %457 = arith.addf %454, %456 : vector<64x256xf32>
    %cst_169 = arith.constant 5.000000e-01 : f32
    %458 = vector.broadcast %cst_169 : f32 to vector<64x256xf32>
    %459 = arith.mulf %458, %457 : vector<64x256xf32>
    %460 = math.tanh %459 : vector<64x256xf32>
    %cst_170 = arith.constant 1.000000e+00 : f32
    %461 = vector.broadcast %cst_170 : f32 to vector<64x256xf32>
    %462 = arith.addf %460, %461 : vector<64x256xf32>
    %cst_171 = arith.constant 5.000000e-01 : f32
    %463 = vector.broadcast %cst_171 : f32 to vector<64x256xf32>
    %464 = arith.mulf %463, %462 : vector<64x256xf32>
    %465 = vector.extract_strided_slice %464 {offsets = [0, 0], sizes = [64, 128], strides = [1, 1]} : vector<64x256xf32> to vector<64x128xf32>
    %466 = vector.extract_strided_slice %464 {offsets = [0, 128], sizes = [64, 128], strides = [1, 1]} : vector<64x256xf32> to vector<64x128xf32>
    %467 = arith.mulf %466, %425 : vector<64x128xf32>
    %c16_i32_172 = arith.constant 16 : i32
    %468 = tpu.dynamic_rotate %467 by %c16_i32_172 dim 0 : vector<64x128xf32>, i32 -> vector<64x128xf32>
    %469 = vector.broadcast %192 : vector<64x1xf32> to vector<64x128xf32>
    %470 = arith.mulf %468, %469 : vector<64x128xf32>
    %c8_i32_173 = arith.constant 8 : i32
    %471 = tpu.dynamic_rotate %467 by %c8_i32_173 dim 0 : vector<64x128xf32>, i32 -> vector<64x128xf32>
    %472 = vector.broadcast %203 : vector<64x1xf32> to vector<64x128xf32>
    %473 = arith.mulf %471, %472 : vector<64x128xf32>
    %c56_i32_174 = arith.constant 56 : i32
    %474 = tpu.dynamic_rotate %467 by %c56_i32_174 dim 0 : vector<64x128xf32>, i32 -> vector<64x128xf32>
    %475 = vector.broadcast %214 : vector<64x1xf32> to vector<64x128xf32>
    %476 = arith.mulf %474, %475 : vector<64x128xf32>
    %c48_i32_175 = arith.constant 48 : i32
    %477 = tpu.dynamic_rotate %467 by %c48_i32_175 dim 0 : vector<64x128xf32>, i32 -> vector<64x128xf32>
    %478 = vector.broadcast %225 : vector<64x1xf32> to vector<64x128xf32>
    %479 = arith.mulf %477, %478 : vector<64x128xf32>
    %480 = tpu.concatenate %470, %473, %467, %476, %479 in 1 : vector<64x128xf32>, vector<64x128xf32>, vector<64x128xf32>, vector<64x128xf32>, vector<64x128xf32> -> vector<64x640xf32>
    %481 = tpu.concatenate %480, %438 in 1 : vector<64x640xf32>, vector<64x640xf32> -> vector<64x1280xf32>
    %c0_176 = arith.constant 0 : index
    %c0_177 = arith.constant 0 : index
    %482 = vector.load %arg18[%c0_176, %c0_177] : memref<1280x128xf32, #tpu.memory_space<vmem>>, vector<1280x128xf32>
    %cst_178 = arith.constant dense<0.000000e+00> : vector<64x128xf32>
    %483 = tpu.matmul %481, %482, %cst_178 {dimension_numbers = #tpu.dot_dimension_numbers<[1], [0], [0], [1], [0, 0, 1, 1], [], []>} : vector<64x1280xf32>, vector<1280x128xf32>, vector<64x128xf32> -> vector<64x128xf32>
    %c0_179 = arith.constant 0 : index
    %c0_180 = arith.constant 0 : index
    %484 = vector.load %arg19[%c0_179, %c0_180] : memref<1x128xf32, #tpu.memory_space<vmem>>, vector<1x128xf32>
    %485 = vector.broadcast %484 : vector<1x128xf32> to vector<64x128xf32>
    %486 = arith.addf %483, %485 : vector<64x128xf32>
    %487 = math.tanh %486 : vector<64x128xf32>
    %cst_181 = arith.constant 1.000000e+00 : f32
    %488 = vector.broadcast %cst_181 : f32 to vector<64x128xf32>
    %489 = arith.subf %488, %465 : vector<64x128xf32>
    %490 = arith.mulf %489, %425 : vector<64x128xf32>
    %491 = arith.mulf %465, %487 : vector<64x128xf32>
    %492 = arith.addf %490, %491 : vector<64x128xf32>
    %c0_182 = arith.constant 0 : index
    %c0_183 = arith.constant 0 : index
    %c0_184 = arith.constant 0 : index
    %493 = vector.load %arg20[%c0_182, %c0_183, %c0_184] : memref<1x64x128xf32, #tpu.memory_space<vmem>>, vector<1x64x128xf32>
    %494 = vector.shape_cast %493 : vector<1x64x128xf32> to vector<64x128xf32>
    %495 = vector.shape_cast %492 : vector<64x128xf32> to vector<1x64x128xf32>
    tpu.vector_store %arg20[%c0_182, %c0_183, %c0_184], %495 {strides = array<i32>} : memref<1x64x128xf32, #tpu.memory_space<vmem>>, vector<1x64x128xf32>,
    return
  }
  func.func @transform_0(%arg0: i32) -> (i32, i32, i32) {
    %c0_i32 = arith.constant 0 : i32
    %c0_i32_0 = arith.constant 0 : i32
    %c0_i32_1 = arith.constant 0 : i32
    return %arg0, %c0_i32, %c0_i32_0 : i32, i32, i32
  }
  func.func @transform_1(%arg0: i32) -> (i32, i32, i32) {
    %c0_i32 = arith.constant 0 : i32
    %c0_i32_0 = arith.constant 0 : i32
    %c0_i32_1 = arith.constant 0 : i32
    return %arg0, %c0_i32, %c0_i32_0 : i32, i32, i32
  }
  func.func @transform_2(%arg0: i32) -> (i32, i32) {
    %c0_i32 = arith.constant 0 : i32
    %c0_i32_0 = arith.constant 0 : i32
    %c0_i32_1 = arith.constant 0 : i32
    return %c0_i32, %c0_i32_0 : i32, i32
  }
  func.func @transform_3(%arg0: i32) -> (i32, i32) {
    %c0_i32 = arith.constant 0 : i32
    %c0_i32_0 = arith.constant 0 : i32
    %c0_i32_1 = arith.constant 0 : i32
    return %c0_i32, %c0_i32_0 : i32, i32
  }
  func.func @transform_4(%arg0: i32) -> (i32, i32) {
    %c0_i32 = arith.constant 0 : i32
    %c0_i32_0 = arith.constant 0 : i32
    %c0_i32_1 = arith.constant 0 : i32
    return %c0_i32, %c0_i32_0 : i32, i32
  }
  func.func @transform_5(%arg0: i32) -> (i32, i32) {
    %c0_i32 = arith.constant 0 : i32
    %c0_i32_0 = arith.constant 0 : i32
    %c0_i32_1 = arith.constant 0 : i32
    return %c0_i32, %c0_i32_0 : i32, i32
  }
  func.func @transform_6(%arg0: i32) -> (i32, i32) {
    %c0_i32 = arith.constant 0 : i32
    %c0_i32_0 = arith.constant 0 : i32
    %c0_i32_1 = arith.constant 0 : i32
    return %c0_i32, %c0_i32_0 : i32, i32
  }
  func.func @transform_7(%arg0: i32) -> (i32, i32) {
    %c0_i32 = arith.constant 0 : i32
    %c0_i32_0 = arith.constant 0 : i32
    %c0_i32_1 = arith.constant 0 : i32
    return %c0_i32, %c0_i32_0 : i32, i32
  }
  func.func @transform_8(%arg0: i32) -> (i32, i32) {
    %c0_i32 = arith.constant 0 : i32
    %c0_i32_0 = arith.constant 0 : i32
    %c0_i32_1 = arith.constant 0 : i32
    return %c0_i32, %c0_i32_0 : i32, i32
  }
  func.func @transform_9(%arg0: i32) -> (i32, i32) {
    %c0_i32 = arith.constant 0 : i32
    %c0_i32_0 = arith.constant 0 : i32
    %c0_i32_1 = arith.constant 0 : i32
    return %c0_i32, %c0_i32_0 : i32, i32
  }
  func.func @transform_10(%arg0: i32) -> (i32, i32) {
    %c0_i32 = arith.constant 0 : i32
    %c0_i32_0 = arith.constant 0 : i32
    %c0_i32_1 = arith.constant 0 : i32
    return %c0_i32, %c0_i32_0 : i32, i32
  }
  func.func @transform_11(%arg0: i32) -> (i32, i32) {
    %c0_i32 = arith.constant 0 : i32
    %c0_i32_0 = arith.constant 0 : i32
    %c0_i32_1 = arith.constant 0 : i32
    return %c0_i32, %c0_i32_0 : i32, i32
  }
  func.func @transform_12(%arg0: i32) -> (i32, i32) {
    %c0_i32 = arith.constant 0 : i32
    %c0_i32_0 = arith.constant 0 : i32
    %c0_i32_1 = arith.constant 0 : i32
    return %c0_i32, %c0_i32_0 : i32, i32
  }
  func.func @transform_13(%arg0: i32) -> (i32, i32) {
    %c0_i32 = arith.constant 0 : i32
    %c0_i32_0 = arith.constant 0 : i32
    %c0_i32_1 = arith.constant 0 : i32
    return %c0_i32, %c0_i32_0 : i32, i32
  }
  func.func @transform_14(%arg0: i32) -> (i32, i32) {
    %c0_i32 = arith.constant 0 : i32
    %c0_i32_0 = arith.constant 0 : i32
    %c0_i32_1 = arith.constant 0 : i32
    return %c0_i32, %c0_i32_0 : i32, i32
  }
  func.func @transform_15(%arg0: i32) -> (i32, i32) {
    %c0_i32 = arith.constant 0 : i32
    %c0_i32_0 = arith.constant 0 : i32
    %c0_i32_1 = arith.constant 0 : i32
    return %c0_i32, %c0_i32_0 : i32, i32
  }
  func.func @transform_16(%arg0: i32) -> (i32, i32) {
    %c0_i32 = arith.constant 0 : i32
    %c0_i32_0 = arith.constant 0 : i32
    %c0_i32_1 = arith.constant 0 : i32
    return %c0_i32, %c0_i32_0 : i32, i32
  }
  func.func @transform_17(%arg0: i32) -> (i32, i32) {
    %c0_i32 = arith.constant 0 : i32
    %c0_i32_0 = arith.constant 0 : i32
    %c0_i32_1 = arith.constant 0 : i32
    return %c0_i32, %c0_i32_0 : i32, i32
  }
  func.func @transform_18(%arg0: i32) -> (i32, i32) {
    %c0_i32 = arith.constant 0 : i32
    %c0_i32_0 = arith.constant 0 : i32
    %c0_i32_1 = arith.constant 0 : i32
    return %c0_i32, %c0_i32_0 : i32, i32
  }
  func.func @transform_19(%arg0: i32) -> (i32, i32, i32) {
    %c0_i32 = arith.constant 0 : i32
    %c0_i32_0 = arith.constant 0 : i32
    %c0_i32_1 = arith.constant 0 : i32
    return %arg0, %c0_i32, %c0_i32_0 : i32, i32, i32
  }
}

</mosaic_0001>

<bundles_post_ra>
// kernel: att_up_forward.1
= control target key start
LH: loop header
LB: loop body
LE: loop exit
PB: predicated region body
PF: predicated region fallthrough
CT: control target
= control target key end

     0   :  { %s17688_s0 = inlined_call_operand.vmem [shape: f32[2,64,128], index: 0, kind: input, shape index: {}]   ;;  %s17689_s1 = inlined_call_operand.vmem [shape: f32[2,64,128], index: 1, kind: input, shape index: {}]   ;;  %s17690_s2 = inlined_call_operand.vmem [shape: f32[128,128], index: 2, kind: input, shape index: {}]   ;;  %s17691_s3 = inlined_call_operand.vmem [shape: f32[1,128], index: 3, kind: input, shape index: {}]   ;;  %s17692_s4 = inlined_call_operand.vmem [shape: f32[1,128], index: 4, kind: input, shape index: {}]   ;;  %s17693_s5 = inlined_call_operand.vmem [shape: f32[256,128], index: 5, kind: input, shape index: {}]   ;;  %s17694_s6 = inlined_call_operand.vmem [shape: f32[1,128], index: 6, kind: input, shape index: {}]   ;;  %s17695_s7 = inlined_call_operand.vmem [shape: f32[1152,128], index: 7, kind: input, shape index: {}]   ;;  %s17696_s8 = inlined_call_operand.vmem [shape: f32[1,128], index: 8, kind: input, shape index: {}]   ;;  %s17697_s9 = inlined_call_operand.vmem [shape: f32[1152,128], index: 9, kind: input, shape index: {}]   ;;  %s17698_s10 = inlined_call_operand.vmem [shape: f32[1,128], index: 10, kind: input, shape index: {}]   ;;  %s17699_s11 = inlined_call_operand.vmem [shape: f32[1280,256], index: 11, kind: input, shape index: {}]   ;;  %s17700_s12 = inlined_call_operand.vmem [shape: f32[1,256], index: 12, kind: input, shape index: {}]   ;;  %s17701_s13 = inlined_call_operand.vmem [shape: f32[1280,128], index: 13, kind: input, shape index: {}]   ;;  %s17702_s14 = inlined_call_operand.vmem [shape: f32[1,128], index: 14, kind: input, shape index: {}]   ;;  %s17703_s15 = inlined_call_operand.vmem [shape: f32[1280,256], index: 15, kind: input, shape index: {}]   ;;  %s17704_s16 = inlined_call_operand.vmem [shape: f32[1,256], index: 16, kind: input, shape index: {}]   ;;  %s17705_s17 = inlined_call_operand.vmem [shape: f32[1280,128], index: 17, kind: input, shape index: {}]   ;;  %s17706_s18 = inlined_call_operand.vmem [shape: f32[1,128], index: 18, kind: input, shape index: {}]   ;;  %s17707_s19 = inlined_call_operand.hbm [shape: f32[2,64,128], index: 19, kind: output, shape index: {}]  }
   0x1   :  { %17980 = sst [smem:[#allocation94_spill]] %s17688_s0 }
   0x2   :  { %17981 = sst [smem:[#allocation95_spill]] %s17689_s1 }
   0x3   :  { %17982 = sst [smem:[#allocation96_spill]] %s17690_s2 }
   0x4   :  { %17983 = sst [smem:[#allocation97_spill]] %s17691_s3 }
   0x5   :  { %17984 = sst [smem:[#allocation98_spill]] %s17707_s19 }
   0x6   :  { %24 = vsyncpa [#allocation3], 0 }
   0x7   :  { %26 = vsyncpa [#allocation3 + $0x1], 0  ;;  %s10500_s0 = smov 0   ;;  %s10502_s30 = smov 0  }
   0x8   :  { %s10504_s20 = smov 0   ;;  %s10506_s21 = smov 0  }
   0x9 LB: > { %17985 = sst [smem:[#allocation5_spill]] %s10382_s0  ;;  %s10521_s1 = sadd.s32 4294967295, %s10394_s21   ;;  %s10394_s21 = sphi %s10506_s21, %s18611_s21   ;;  %s10390_s20 = sphi %s10504_s20, %s18613_s20   ;;  %s10386_s30 = sphi %s10502_s30, %s18615_s30   ;;  %s10382_s0 = sphi %s10500_s0, %s18614_s0  }
   0xa   : > { %17986 = sst [smem:[#allocation6_spill]] %s10390_s20  ;;  %s7204_s22 = sadd.s32 4294967294, %s10394_s21  }
   0xb   : > { %17987 = sst [smem:[#allocation7_spill]] %s10394_s21  ;;  %s10525_s2 = sadd.s32 1, %s10394_s21  }
   0xc   : > { %17988 = sst [smem:[#allocation8_spill]] %s10525_s2  ;;  %s448_s23 = sadd.s32 1, %s10390_s20 }
   0xd   : > { %s445_s24 = ssub.s32 %s10394_s21, %s10525_s2  ;;  %p458_p0 = scmp.ne.s32.totalorder %s10390_s20, %s10386_s30 }
   0xe   : > { %p446_p1 = scmp.eq.s32.totalorder %s445_s24, 0  ;;  %p459_p2 = scmp.eq.s32.totalorder %s10521_s1, 1 }
   0xf   : > { %p464_p3 = scmp.ne.s32.totalorder %s10386_s30, %s10382_s0  ;;  %p465_p4 = scmp.eq.s32.totalorder %s7204_s22, 1 }
  0x10   : > { %s10536_s25 = scalar_select %p446_p1, %s10390_s20, %s448_s23  }
  0x11   : > { %p10538_p5 = por %p459_p2, %p458_p0  ;;  %p10542_p6 = por %p465_p4, %p464_p3 }
  0x12   : > { %17989 = sst [smem:[#allocation9_spill]] %s10536_s25  ;;  %p7207_p7 = scmp.ge.s32.totalorder %s10394_s21, 1 }
  0x13   : > { %s17991_s26 = scalar_select %p10542_p6, 1, 0 }
  0x14   : > { %p550_p8 = scmp.lt.s32.totalorder %s10394_s21, 3 }
  0x15   : > { %17992 = sst [smem:[#allocation10_spill]] %s17991_s26 }
  0x16   : > { %p551_p9 = pnand %p7207_p7, %p550_p8 }
  0x18   : > { %554 = sbr.rel (%p551_p9) target bundleno = 3234 (0xca2), region = 96 }
  0x1f   : > { %s17993_s29 = sld [smem:[#allocation96_spill]]  ;;  %p611_p10 = scmp.lt.s32.totalorder %s10521_s1, 1  ;;  %v1430_v40 = vld [vmem:[%s17693_s5 + $0x80] sm:$0xff]  ;;  %v1431_v41 = vld [vmem:[%s17693_s5 + $0x88] sm:$0xff]  ;;  %v1432_v45 = vld [vmem:[%s17693_s5 + $0x90] sm:$0xff] }
  0x20   : > { %s17994_s23 = sld [smem:[#allocation95_spill]]  ;;  %v1414_v42 = vld [vmem:[%s17693_s5] sm:$0xff]  ;;  %v8624_v43 = vpack.c.bf16 %v1431_v41, %v1430_v40  ;;  %v1415_v44 = vld [vmem:[%s17693_s5 + $0x8] sm:$0xff]  ;;  %v1433_v46 = vld [vmem:[%s17693_s5 + $0x98] sm:$0xff]  ;;  %s17997_s28 = sld [smem:[#allocation94_spill]] }
  0x21   : > { %s10568_s22 = scalar_select %p611_p10, %s10521_s1, 1  ;;  %v8626_v47 = vpack.c.bf16 %v1415_v44, %v1414_v42  ;;  %v8628_v48 = vpack.c.bf16 %v1433_v46, %v1432_v45  ;;  %v1416_v49 = vld [vmem:[%s17693_s5 + $0x10] sm:$0xff]  ;;  %v1417_v50 = vld [vmem:[%s17693_s5 + $0x18] sm:$0xff]  ;;  %v1434_v51 = vld [vmem:[%s17693_s5 + $0xa0] sm:$0xff] }
  0x22   : > { %8625 = vmatprep.subr.bf16.mxu1 %v8624_v43  ;;  %v1435_v52 = vld [vmem:[%s17693_s5 + $0xa8] sm:$0xff]  ;;  %v8630_v53 = vpack.c.bf16 %v1417_v50, %v1416_v49  ;;  %v1418_v55 = vld [vmem:[%s17693_s5 + $0x20] sm:$0xff]  ;;  %v1424_v41 = vld [vmem:[%s17693_s5 + $0x50] sm:$0xff]  ;;  %s608_s27 = sand.u32 1, %s10386_s30   ;;  %s18607_s2 = sld [smem:[#allocation98_spill]] }
  0x23   : > { %s17716_s25 = sshll.u32 %s10568_s22, 6  ;;  %8627 = vmatpush3.bf16.msra.mxu1 %v8626_v47  ;;  %v8632_v54 = vpack.c.bf16 %v1435_v52, %v1434_v51  ;;  %v1419_v56 = vld [vmem:[%s17693_s5 + $0x28] sm:$0xff]  ;;  %v1425_v42 = vld [vmem:[%s17693_s5 + $0x58] sm:$0xff]  ;;  %v1442_v44 = vld [vmem:[%s17693_s5 + $0xe0] sm:$0xff]  ;;  %s17996_s0 = sshll.u32 %s10568_s22, 6 }
  0x24   : > { %8629 = vmatprep.subr.bf16.mxu1 %v8628_v48  ;;  %v8634_v57 = vpack.c.bf16 %v1419_v56, %v1418_v55  ;;  %v8646_v43 = vpack.c.bf16 %v1425_v42, %v1424_v41  ;;  %v1443_v45 = vld [vmem:[%s17693_s5 + $0xe8] sm:$0xff]  ;;  %v1426_v47 = vld [vmem:[%s17693_s5 + $0x60] sm:$0xff]  ;;  %v1444_v50 = vld [vmem:[%s17693_s5 + $0xf0] sm:$0xff]  ;;  %s10397_s26 = smov [#allocation2]  }
  0x25   : > { %v1166_v0 = vld [vmem:[%s17993_s29] sm:$0xff]  ;;  %v1167_v1 = vld [vmem:[%s17993_s29 + $0x8] sm:$0xff]  ;;  %v1168_v2 = vld [vmem:[%s17993_s29 + $0x10] sm:$0xff]  ;;  %v8648_v46 = vpack.c.bf16 %v1443_v45, %v1442_v44 }
  0x26   : > { %v8592_v3 = vpack.c.bf16 %v1167_v1, %v1166_v0  ;;  %v1169_v4 = vld [vmem:[%s17993_s29 + $0x18] sm:$0xff]  ;;  %v1170_v6 = vld [vmem:[%s17993_s29 + $0x20] sm:$0xff]  ;;  %v1171_v7 = vld [vmem:[%s17993_s29 + $0x28] sm:$0xff]  ;;  %s10576_s24 = scalar_lea.vmem %s17994_s23, %s17716_s25  ;;  %s10757_s20 = scalar_lea.vmem %s17997_s28, %s17996_s0 }
  0x27   : > { %v8596_v5 = vpack.c.bf16 %v1169_v4, %v1168_v2  ;;  %v8600_v8 = vpack.c.bf16 %v1171_v7, %v1170_v6  ;;  %v1172_v9 = vld [vmem:[%s17993_s29 + $0x30] sm:$0xff]  ;;  %v1173_v10 = vld [vmem:[%s17993_s29 + $0x38] sm:$0xff]  ;;  %v1158_v11 = vld [vmem:[%s10576_s24] sm:$0xff]  ;;  %8631 = vmatpush3.bf16.msra.mxu1 %v8630_v53  ;;  %s7323_s0 = sshll.u32 %s10521_s1, 10  ;;  %s17647_s1 = scalar_lea.sflag [#allocation3], %s608_s27 }
  0x28   : > { %8593 = vmatprep.subr.bf16.mxu0 %v8592_v3  ;;  %8492 = vmatprep.mubr.f32.mxu0 %v1158_v11  ;;  %v8604_v12 = vpack.c.bf16 %v1173_v10, %v1172_v9  ;;  %v1174_v13 = vld [vmem:[%s17993_s29 + $0x40] sm:$0xff]  ;;  %v1175_v14 = vld [vmem:[%s17993_s29 + $0x48] sm:$0xff]  ;;  %v1176_v16 = vld [vmem:[%s17993_s29 + $0x50] sm:$0xff]  ;;  %s17640_s23 = scalar_lea.hbm %s18607_s2, %s7323_s0  ;;  %s10336_s25 = sshll.u32 %s10397_s26, 4  ;;  %s10337_s25 = int_to_ptr.vmem [resolvable:$false] %s10336_s25 }
  0x29   : > { %8595 = vmatpush3.bf16.msra.mxu0 %v8592_v3  ;;  %v8608_v15 = vpack.c.bf16 %v1175_v14, %v1174_v13  ;;  %v1177_v17 = vld [vmem:[%s17993_s29 + $0x58] sm:$0xff]  ;;  %v1178_v19 = vld [vmem:[%s17993_s29 + $0x60] sm:$0xff]  ;;  %v1179_v20 = vld [vmem:[%s17993_s29 + $0x68] sm:$0xff]  ;;  %8633 = vmatprep.subr.bf16.mxu1 %v8632_v54 }
  0x2a   : > { %8597 = vmatprep.subr.bf16.mxu0 %v8596_v5  ;;  %v8612_v18 = vpack.c.bf16 %v1177_v17, %v1176_v16  ;;  %v8616_v21 = vpack.c.bf16 %v1179_v20, %v1178_v19  ;;  %v1180_v22 = vld [vmem:[%s17993_s29 + $0x70] sm:$0xff]  ;;  %v1181_v23 = vld [vmem:[%s17993_s29 + $0x78] sm:$0xff]  ;;  %v1159_v25 = vld [vmem:[%s10576_s24 + $0x8] sm:$0xff] }
  0x2b   : > { %v8620_v24 = vpack.c.bf16 %v1181_v23, %v1180_v22  ;;  %v1160_v26 = vld [vmem:[%s10576_s24 + $0x10] sm:$0xff]  ;;  %v1161_v27 = vld [vmem:[%s10576_s24 + $0x18] sm:$0xff]  ;;  %v1162_v28 = vld [vmem:[%s10576_s24 + $0x20] sm:$0xff]  ;;  %8635 = vmatpush3.bf16.msra.mxu1 %v8634_v57 }
  0x2c   : > { %v1163_v29 = vld [vmem:[%s10576_s24 + $0x28] sm:$0xff]  ;;  %v1164_v30 = vld [vmem:[%s10576_s24 + $0x30] sm:$0xff]  ;;  %v1165_v31 = vld [vmem:[%s10576_s24 + $0x38] sm:$0xff]  ;;  %s17995_s24 = sld [smem:[#allocation97_spill]] }
  0x2d   : > { %8599 = vmatpush3.bf16.msra.mxu0 %v8596_v5  ;;  %v1427_v48 = vld [vmem:[%s17693_s5 + $0x68] sm:$0xff]  ;;  %v1445_v51 = vld [vmem:[%s17693_s5 + $0xf8] sm:$0xff]  ;;  %v1428_v53 = vld [vmem:[%s17693_s5 + $0x70] sm:$0xff] }
  0x2e   : > { %8601 = vmatprep.subr.bf16.mxu0 %v8600_v8  ;;  %v8650_v49 = vpack.c.bf16 %v1427_v48, %v1426_v47  ;;  %v8652_v52 = vpack.c.bf16 %v1445_v51, %v1444_v50  ;;  %v1429_v54 = vld [vmem:[%s17693_s5 + $0x78] sm:$0xff]  ;;  %v1410_v51 = vld [vmem:[%s10757_s20 + $0x20] sm:$0xff] }
  0x2f   : > { %v8654_v55 = vpack.c.bf16 %v1429_v54, %v1428_v53 }
  0x31   : > { %8603 = vmatpush3.bf16.msra.mxu0 %v8600_v8 }
  0x32   : > { %8605 = vmatprep.subr.bf16.mxu0 %v8604_v12 }
  0x35   : > { %8607 = vmatpush3.bf16.msra.mxu0 %v8604_v12 }
  0x36   : > { %8609 = vmatprep.subr.bf16.mxu0 %v8608_v15 }
  0x39   : > { %8611 = vmatpush3.bf16.msra.mxu0 %v8608_v15 }
  0x3a   : > { %8613 = vmatprep.subr.bf16.mxu0 %v8612_v18 }
  0x3d   : > { %8615 = vmatpush3.bf16.msra.mxu0 %v8612_v18 }
  0x3e   : > { %8617 = vmatprep.subr.bf16.mxu0 %v8616_v21 }
  0x41   : > { %8619 = vmatpush3.bf16.msra.mxu0 %v8616_v21 }
  0x42   : > { %8621 = vmatprep.subr.bf16.mxu0 %v8620_v24 }
  0x45   : > { %8623 = vmatpush3.bf16.msra.mxu0 %v8620_v24 }
  0x48   : > { %8493 = vmatmul.mubr.f32.vlgmr.msra.gmra.mrb[0].mxu0 %v1159_v25  ;;  %v1436_v25 = vld [vmem:[%s17693_s5 + $0xb0] sm:$0xff] }
  0x49   : > { %8495 = vmatprep.mubr.f32.mxu0 %v1160_v26  ;;  %v1437_v26 = vld [vmem:[%s17693_s5 + $0xb8] sm:$0xff] }
  0x4c   : > { %8496 = vmatmul.mubr.f32.gmra.mrb[2].mxu0 %v1161_v27 }
  0x4d   : > { %8498 = vmatprep.mubr.f32.mxu0 %v1162_v28  ;;  %v8636_v28 = vpack.c.bf16 %v1437_v26, %v1436_v25  ;;  %v7310_v26 = vld [vmem:[%s17692_s4] ss:$0 sm:$0xff] }
  0x4f   : > { %8637 = vmatprep.subr.bf16.mxu1 %v8636_v28 }
  0x50   : > { %8499 = vmatmul.mubr.f32.gmra.mrb[4].mxu0 %v1163_v29  ;;  %v1420_v29 = vld [vmem:[%s17693_s5 + $0x30] sm:$0xff] }
  0x51   : > { %8501 = vmatprep.mubr.f32.mxu0 %v1164_v30  ;;  %v1421_v30 = vld [vmem:[%s17693_s5 + $0x38] sm:$0xff] }
  0x54   : > { %8502 = vmatmul.mubr.f32.gmra.mrb[6].mxu0 %v1165_v31  ;;  %v8638_v31 = vpack.c.bf16 %v1421_v30, %v1420_v29 }
  0x56   : > { %8639 = vmatpush3.bf16.msra.mxu1 %v8638_v31 }
 0x11b   : > { %v8494_v32 = vpop.f32.mrb[0].mxu0 }
 0x11c   : > { %v1248_v33 = vpop.f32.mrb[1].mxu0 }
 0x11d   : > { %1287 = vadd.xlane.f32.xlu0 %v1248_v33 }
 0x11f   : > { %v8497_v34 = vpop.f32.mrb[2].mxu0 }
 0x120   : > { %v1258_v35 = vpop.f32.mrb[3].mxu0 }
 0x121   : > { %1289 = vadd.xlane.f32.xlu0 %v8494_v32  ;;  %1291 = vadd.xlane.f32.xlu1 %v1258_v35 }
 0x123   : > { %v8500_v36 = vpop.f32.mrb[4].mxu0 }
 0x124   : > { %v1268_v37 = vpop.f32.mrb[5].mxu0 }
 0x125   : > { %1293 = vadd.xlane.f32.xlu1 %v8497_v34  ;;  %1295 = vadd.xlane.f32.xlu0 %v1268_v37 }
 0x127   : > { %v10616_v38 = vpop.f32.mrb[6].mxu0 }
 0x128   : > { %v1278_v39 = vpop.f32.mrb[7].mxu0 }
 0x129   : > { %1297 = vadd.xlane.f32.xlu1 %v8500_v36  ;;  %1299 = vadd.xlane.f32.xlu0 %v1278_v39 }
 0x12d   : > { %1301 = vadd.xlane.f32.xlu1 %v10616_v38 }
 0x1aa   : > { %v1288_v58 = vpop.xlane.xlu0 %1287 }
 0x1ab   : > { %v1304_v59 = vmul.f32 0.0078125, %v1288_v58 }
 0x1ad   : > { %v10655_v60 = vsub.f32 %v1248_v33, %v1304_v59  ;;  %v1439_v33 = vld [vmem:[%s17693_s5 + $0xc8] sm:$0xff] }
 0x1ae   : > { %v1290_v61 = vpop.xlane.xlu0 %1289  ;;  %v1292_v62 = vpop.xlane.xlu1 %1291 }
 0x1af   : > { %v1305_v63 = vmul.f32 0.0078125, %v1290_v61  ;;  %v1306_v0 = vmul.f32 0.0078125, %v1292_v62  ;;  %v1320_v1 = vmul.f32 %v10655_v60, %v10655_v60 }
 0x1b1   : > { %v10659_v2 = vsub.f32 %v8494_v32, %v1305_v63  ;;  %v10661_v3 = vsub.f32 %v1258_v35, %v1306_v0  ;;  %1328 = vadd.xlane.f32.xlu0 %v1320_v1  ;;  %v1438_v32 = vld [vmem:[%s17693_s5 + $0xc0] sm:$0xff] }
 0x1b2   : > { %v1294_v4 = vpop.xlane.xlu1 %1293  ;;  %v1296_v5 = vpop.xlane.xlu0 %1295  ;;  %v1422_v35 = vld [vmem:[%s17693_s5 + $0x40] sm:$0xff] }
 0x1b3   : > { %v1307_v6 = vmul.f32 0.0078125, %v1294_v4  ;;  %v1308_v7 = vmul.f32 0.0078125, %v1296_v5  ;;  %v1321_v8 = vmul.f32 %v10659_v2, %v10659_v2  ;;  %v1322_v9 = vmul.f32 %v10661_v3, %v10661_v3 }
 0x1b5   : > { %v10667_v10 = vsub.f32 %v8497_v34, %v1307_v6  ;;  %v10669_v11 = vsub.f32 %v1268_v37, %v1308_v7  ;;  %1330 = vadd.xlane.f32.xlu1 %v1321_v8  ;;  %1332 = vadd.xlane.f32.xlu0 %v1322_v9  ;;  %v8640_v34 = vpack.c.bf16 %v1439_v33, %v1438_v32 }
 0x1b6   : > { %v1298_v12 = vpop.xlane.xlu1 %1297  ;;  %v1300_v13 = vpop.xlane.xlu0 %1299 }
 0x1b7   : > { %v1309_v14 = vmul.f32 0.0078125, %v1298_v12  ;;  %v1310_v15 = vmul.f32 0.0078125, %v1300_v13  ;;  %v1323_v16 = vmul.f32 %v10667_v10, %v10667_v10  ;;  %v1324_v17 = vmul.f32 %v10669_v11, %v10669_v11  ;;  %8641 = vmatprep.subr.bf16.mxu1 %v8640_v34 }
 0x1b9   : > { %v10675_v18 = vsub.f32 %v8500_v36, %v1309_v14  ;;  %v10677_v19 = vsub.f32 %v1278_v39, %v1310_v15  ;;  %1334 = vadd.xlane.f32.xlu1 %v1323_v16  ;;  %1336 = vadd.xlane.f32.xlu0 %v1324_v17  ;;  %v1423_v36 = vld [vmem:[%s17693_s5 + $0x48] sm:$0xff]  ;;  %v1441_v39 = vld [vmem:[%s17693_s5 + $0xd8] sm:$0xff] }
 0x1ba   : > { %v1302_v20 = vpop.xlane.xlu1 %1301  ;;  %v8642_v37 = vpack.c.bf16 %v1423_v36, %v1422_v35 }
 0x1bb   : > { %v1311_v21 = vmul.f32 0.0078125, %v1302_v20  ;;  %v1325_v22 = vmul.f32 %v10675_v18, %v10675_v18  ;;  %v1326_v23 = vmul.f32 %v10677_v19, %v10677_v19  ;;  %v7309_v20 = vld [vmem:[%s17995_s24] ss:$0 sm:$0xff]  ;;  %s7208_s24 = sshll.u32 %s608_s27, 6 }
 0x1bc   : > { %8643 = vmatpush3.bf16.msra.mxu1 %v8642_v37 }
 0x1bd   : > { %v10684_v24 = vsub.f32 %v10616_v38, %v1311_v21  ;;  %1338 = vadd.xlane.f32.xlu1 %v1325_v22  ;;  %1340 = vadd.xlane.f32.xlu0 %v1326_v23  ;;  %v1440_v38 = vld [vmem:[%s17693_s5 + $0xd0] sm:$0xff] }
 0x1be   : > { %v8644_v40 = vpack.c.bf16 %v1441_v39, %v1440_v38  ;;  %v1407_v39 = vld [vmem:[%s10757_s20 + $0x8] sm:$0xff] }
 0x1bf   : > { %v1327_v27 = vmul.f32 %v10684_v24, %v10684_v24 }
 0x1c0   : > { %8645 = vmatprep.subr.bf16.mxu1 %v8644_v40 }
 0x1c1   : > { %1342 = vadd.xlane.f32.xlu1 %v1327_v27  ;;  %8647 = vmatpush3.bf16.msra.mxu1 %v8646_v43 }
 0x1c2   : > { %8649 = vmatprep.subr.bf16.mxu1 %v8648_v46 }
 0x1c5   : > { %8651 = vmatpush3.bf16.msra.mxu1 %v8650_v49 }
 0x1c6   : > { %8653 = vmatprep.subr.bf16.mxu1 %v8652_v52 }
 0x1c9   : > { %8655 = vmatpush3.bf16.msra.mxu1 %v8654_v55 }
 0x23e   : > { %v1329_v56 = vpop.xlane.xlu0 %1328 }
 0x23f   : > { %v1344_v57 = vmul.f32 0.0078125, %v1329_v56 }
 0x241   : > { %v1352_v58 = vadd.f32 1e-05, %v1344_v57  ;;  %v1412_v57 = vld [vmem:[%s10757_s20 + $0x30] sm:$0xff] }
 0x242   : > { %v1331_v59 = vpop.xlane.xlu1 %1330  ;;  %v1333_v61 = vpop.xlane.xlu0 %1332 }
 0x243   : > { %10138 = vrsqrt.f32 %v1352_v58  ;;  %v1345_v62 = vmul.f32 0.0078125, %v1331_v59  ;;  %v1346_v63 = vmul.f32 0.0078125, %v1333_v61  ;;  %v1744_v59 = vld [vmem:[%s17695_s7 + $0x80] sm:$0xff] }
 0x245   : > { %v1353_v0 = vadd.f32 1e-05, %v1345_v62  ;;  %v1354_v1 = vadd.f32 1e-05, %v1346_v63  ;;  %v1728_v62 = vld [vmem:[%s17695_s7] sm:$0xff]  ;;  %v1729_v63 = vld [vmem:[%s17695_s7 + $0x8] sm:$0xff] }
 0x246   : > { %v1335_v4 = vpop.xlane.xlu1 %1334  ;;  %v1337_v5 = vpop.xlane.xlu0 %1336 }
 0x247   : > { %10140 = vrsqrt.f32 %v1353_v0  ;;  %v1347_v6 = vmul.f32 0.0078125, %v1335_v4  ;;  %v1348_v7 = vmul.f32 0.0078125, %v1337_v5  ;;  %v1776_v0 = vld [vmem:[%s17695_s7 + $0x180] sm:$0xff]  ;;  %v1777_v4 = vld [vmem:[%s17695_s7 + $0x188] sm:$0xff] }
 0x248   : > { %10142 = vrsqrt.f32 %v1354_v1  ;;  %v8658_v1 = vpack.c.bf16 %v1729_v63, %v1728_v62  ;;  %v1760_v5 = vld [vmem:[%s17695_s7 + $0x100] sm:$0xff]  ;;  %v1787_v62 = vld [vmem:[%s17695_s7 + $0x1d8] sm:$0xff]  ;;  %v1770_v63 = vld [vmem:[%s17695_s7 + $0x150] sm:$0xff] }
 0x249   : > { %v1355_v8 = vadd.f32 1e-05, %v1347_v6  ;;  %v1356_v9 = vadd.f32 1e-05, %v1348_v7  ;;  %v1761_v6 = vld [vmem:[%s17695_s7 + $0x108] sm:$0xff]  ;;  %v8688_v7 = vpack.c.bf16 %v1777_v4, %v1776_v0  ;;  %v1771_v0 = vld [vmem:[%s17695_s7 + $0x158] sm:$0xff] }
 0x24a   : > { %v1339_v12 = vpop.xlane.xlu1 %1338  ;;  %v1341_v13 = vpop.xlane.xlu0 %1340  ;;  %v8710_v4 = vpack.c.bf16 %v1771_v0, %v1770_v63 }
 0x24b   : > { %10144 = vrsqrt.f32 %v1355_v8  ;;  %v1349_v14 = vmul.f32 0.0078125, %v1339_v12  ;;  %v1350_v15 = vmul.f32 0.0078125, %v1341_v13  ;;  %v8690_v8 = vpack.c.bf16 %v1761_v6, %v1760_v5  ;;  %v1747_v12 = vld [vmem:[%s17695_s7 + $0x98] sm:$0xff]  ;;  %8689 = vmatprep.subr.bf16.mxu1 %v8688_v7  ;;  %v1756_v5 = vld [vmem:[%s17695_s7 + $0xe0] sm:$0xff]  ;;  %v1757_v6 = vld [vmem:[%s17695_s7 + $0xe8] sm:$0xff] }
 0x24c   : > { %10146 = vrsqrt.f32 %v1356_v9  ;;  %v1746_v9 = vld [vmem:[%s17695_s7 + $0x90] sm:$0xff]  ;;  %v1740_v7 = vld [vmem:[%s17695_s7 + $0x60] sm:$0xff] }
 0x24d   : > { %v10139_v16 = vpop.eup %10138  ;;  %v1357_v17 = vadd.f32 1e-05, %v1349_v14  ;;  %v1358_v23 = vadd.f32 1e-05, %v1350_v15  ;;  %v8660_v13 = vpack.c.bf16 %v1747_v12, %v1746_v9  ;;  %v1730_v14 = vld [vmem:[%s17695_s7 + $0x10] sm:$0xff]  ;;  %v1731_v15 = vld [vmem:[%s17695_s7 + $0x18] sm:$0xff] }
 0x24e   : > { %v1343_v21 = vpop.xlane.xlu1 %1342  ;;  %v1368_v22 = vmul.f32 %v10139_v16, %v10655_v60  ;;  %v1406_v60 = vld [vmem:[%s10757_s20] sm:$0xff]  ;;  %v1778_v16 = vld [vmem:[%s17695_s7 + $0x190] sm:$0xff]  ;;  %v1741_v9 = vld [vmem:[%s17695_s7 + $0x68] sm:$0xff] }
 0x24f   : > { %10148 = vrsqrt.f32 %v1357_v17  ;;  %v1351_v25 = vmul.f32 0.0078125, %v1343_v21  ;;  %v8662_v17 = vpack.c.bf16 %v1731_v15, %v1730_v14  ;;  %v1762_v21 = vld [vmem:[%s17695_s7 + $0x110] sm:$0xff]  ;;  %v1788_v12 = vld [vmem:[%s17695_s7 + $0x1e0] sm:$0xff]  ;;  %v8682_v14 = vpack.c.bf16 %v1741_v9, %v1740_v7 }
 0x250   : > { %v1383_v27 = vmul.f32 %v7309_v20, %v1368_v22  ;;  %10150 = vrsqrt.f32 %v1358_v23  ;;  %v1763_v22 = vld [vmem:[%s17695_s7 + $0x118] sm:$0xff] }
 0x251   : > { %v10141_v28 = vpop.eup %10140  ;;  %v1359_v32 = vadd.f32 1e-05, %v1351_v25  ;;  %v8694_v25 = vpack.c.bf16 %v1763_v22, %v1762_v21  ;;  %v1759_v22 = vld [vmem:[%s17695_s7 + $0xf8] sm:$0xff] }
 0x252   : > { %v10143_v29 = vpop.eup %10142  ;;  %v1398_v30 = vadd.f32 %v7310_v26, %v1383_v27  ;;  %v1369_v31 = vmul.f32 %v10141_v28, %v10659_v2  ;;  %v1749_v27 = vld [vmem:[%s17695_s7 + $0xa8] sm:$0xff] }
 0x253   : > { %v1370_v33 = vmul.f32 %v10143_v29, %v10661_v3  ;;  %10152 = vrsqrt.f32 %v1359_v32  ;;  %v1408_v3 = vld [vmem:[%s10757_s20 + $0x10] sm:$0xff]  ;;  %v1732_v29 = vld [vmem:[%s17695_s7 + $0x20] sm:$0xff]  ;;  %v1781_v32 = vld [vmem:[%s17695_s7 + $0x1a8] sm:$0xff] }
 0x254   : > { %1517 = vmatprep.mubr.f32.mxu1 %v1398_v30  ;;  %v1384_v34 = vmul.f32 %v7309_v20, %v1369_v31  ;;  %v1733_v30 = vld [vmem:[%s17695_s7 + $0x28] sm:$0xff] }
 0x255   : > { %v10145_v35 = vpop.eup %10144  ;;  %1518 = vmatmul.mubr.f32.vlgmr.msra.gmra.mrb[0].mxu1 %v1406_v60  ;;  %v1385_v36 = vmul.f32 %v7309_v20, %v1370_v33  ;;  %v1780_v60 = vld [vmem:[%s17695_s7 + $0x1a0] sm:$0xff]  ;;  %v8666_v31 = vpack.c.bf16 %v1733_v30, %v1732_v29  ;;  %v1791_v29 = vld [vmem:[%s17695_s7 + $0x1f8] sm:$0xff] }
 0x256   : > { %v10147_v37 = vpop.eup %10146  ;;  %v1399_v38 = vadd.f32 %v7310_v26, %v1384_v34  ;;  %v1371_v40 = vmul.f32 %v10145_v35, %v10667_v10  ;;  %v1409_v10 = vld [vmem:[%s10757_s20 + $0x18] sm:$0xff]  ;;  %8691 = vmatpush3.bf16.msra.mxu1 %v8690_v8  ;;  %v1764_v33 = vld [vmem:[%s17695_s7 + $0x120] sm:$0xff]  ;;  %v1765_v34 = vld [vmem:[%s17695_s7 + $0x128] sm:$0xff]  ;;  %v8696_v35 = vpack.c.bf16 %v1781_v32, %v1780_v60  ;;  %v8680_v8 = vpack.c.bf16 %v1757_v6, %v1756_v5 }
 0x257   : > { %v1400_v41 = vadd.f32 %v7310_v26, %v1385_v36  ;;  %v1372_v42 = vmul.f32 %v10147_v37, %v10669_v11  ;;  %v8698_v36 = vpack.c.bf16 %v1765_v34, %v1764_v33  ;;  %v1750_v37 = vld [vmem:[%s17695_s7 + $0xb0] sm:$0xff]  ;;  %v1808_v33 = vld [vmem:[%s17695_s7 + $0x280] sm:$0xff]  ;;  %v1809_v34 = vld [vmem:[%s17695_s7 + $0x288] sm:$0xff] }
 0x258   : > { %1522 = vmatprep.mubr.f32.mxu1 %v1399_v38  ;;  %v1386_v2 = vmul.f32 %v7309_v20, %v1371_v40  ;;  %v1751_v38 = vld [vmem:[%s17695_s7 + $0xb8] sm:$0xff]  ;;  %v1734_v40 = vld [vmem:[%s17695_s7 + $0x30] sm:$0xff] }
 0x259   : > { %v10149_v43 = vpop.eup %10148  ;;  %1523 = vmatmul.mubr.f32.gmra.mrb[2].mxu1 %v1407_v39  ;;  %v1387_v45 = vmul.f32 %v7309_v20, %v1372_v42  ;;  %v8668_v39 = vpack.c.bf16 %v1751_v38, %v1750_v37  ;;  %v1774_v60 = vld [vmem:[%s17695_s7 + $0x170] sm:$0xff]  ;;  %v1841_v37 = vld [vmem:[%s17695_s7 + $0x388] sm:$0xff] }
 0x25a   : > { %1527 = vmatprep.mubr.f32.mxu1 %v1400_v41  ;;  %v1401_v44 = vadd.f32 %v7310_v26, %v1386_v2  ;;  %v1373_v46 = vmul.f32 %v10149_v43, %v10675_v18  ;;  %v10151_v47 = vpop.eup %10150  ;;  %v1411_v18 = vld [vmem:[%s10757_s20 + $0x28] sm:$0xff]  ;;  %v1735_v41 = vld [vmem:[%s17695_s7 + $0x38] sm:$0xff]  ;;  %v1782_v2 = vld [vmem:[%s17695_s7 + $0x1b0] sm:$0xff] }
 0x25b   : > { %v1402_v48 = vadd.f32 %v7310_v26, %v1387_v45  ;;  %v1374_v50 = vmul.f32 %v10151_v47, %v10677_v19  ;;  %v1413_v19 = vld [vmem:[%s10757_s20 + $0x38] sm:$0xff]  ;;  %v8670_v42 = vpack.c.bf16 %v1735_v41, %v1734_v40  ;;  %v1752_v47 = vld [vmem:[%s17695_s7 + $0xc0] sm:$0xff] }
 0x25c   : > { %v1388_v49 = vmul.f32 %v7309_v20, %v1373_v46  ;;  %v1783_v43 = vld [vmem:[%s17695_s7 + $0x1b8] sm:$0xff] }
 0x25d   : > { %1528 = vmatmul.mubr.f32.gmra.mrb[4].mxu1 %v1408_v3  ;;  %v10153_v11 = vpop.eup %10152  ;;  %v1389_v53 = vmul.f32 %v7309_v20, %v1374_v50  ;;  %v1766_v3 = vld [vmem:[%s17695_s7 + $0x130] sm:$0xff]  ;;  %v8700_v45 = vpack.c.bf16 %v1783_v43, %v1782_v2  ;;  %v1737_v50 = vld [vmem:[%s17695_s7 + $0x48] sm:$0xff]  ;;  %v10990_v43 = vld [vmem:[%s17694_s6] ss:$0 sm:$0xff] }
 0x25e   : > { %1532 = vmatprep.mubr.f32.mxu1 %v1401_v44  ;;  %v1403_v52 = vadd.f32 %v7310_v26, %v1388_v49  ;;  %v1375_v54 = vmul.f32 %v10153_v11, %v10684_v24  ;;  %v1745_v24 = vld [vmem:[%s17695_s7 + $0x88] sm:$0xff]  ;;  %v1767_v44 = vld [vmem:[%s17695_s7 + $0x138] sm:$0xff]  ;;  %v1736_v49 = vld [vmem:[%s17695_s7 + $0x40] sm:$0xff] }
 0x25f   : > { %v1404_v55 = vadd.f32 %v7310_v26, %v1389_v53  ;;  %v8656_v61 = vpack.c.bf16 %v1745_v24, %v1744_v59  ;;  %v8702_v46 = vpack.c.bf16 %v1767_v44, %v1766_v3  ;;  %v1784_v11 = vld [vmem:[%s17695_s7 + $0x1c0] sm:$0xff]  ;;  %v1739_v59 = vld [vmem:[%s17695_s7 + $0x58] sm:$0xff]  ;;  %v1786_v24 = vld [vmem:[%s17695_s7 + $0x1d0] sm:$0xff] }
 0x260   : > { %v1390_v56 = vmul.f32 %v7309_v20, %v1375_v54  ;;  %v1779_v20 = vld [vmem:[%s17695_s7 + $0x198] sm:$0xff]  ;;  %v1768_v53 = vld [vmem:[%s17695_s7 + $0x140] sm:$0xff]  ;;  %v1769_v54 = vld [vmem:[%s17695_s7 + $0x148] sm:$0xff] }
 0x261   : > { %1533 = vmatmul.mubr.f32.gmra.mrb[6].mxu1 %v1409_v10  ;;  %8657 = vmatprep.subr.bf16.mxu0 %v8656_v61  ;;  %v8692_v23 = vpack.c.bf16 %v1779_v20, %v1778_v16  ;;  %v1753_v10 = vld [vmem:[%s17695_s7 + $0xc8] sm:$0xff]  ;;  %v1772_v16 = vld [vmem:[%s17695_s7 + $0x160] sm:$0xff]  ;;  %v1758_v20 = vld [vmem:[%s17695_s7 + $0xf0] sm:$0xff] }
 0x262   : > { %1537 = vmatprep.mubr.f32.mxu1 %v1402_v48  ;;  %v1405_v58 = vadd.f32 %v7310_v26, %v1390_v56  ;;  %8659 = vmatpush3.bf16.msra.mxu0 %v8658_v1  ;;  %v1748_v26 = vld [vmem:[%s17695_s7 + $0xa0] sm:$0xff]  ;;  %v8672_v48 = vpack.c.bf16 %v1753_v10, %v1752_v47  ;;  %v1754_v56 = vld [vmem:[%s17695_s7 + $0xd0] sm:$0xff]  ;;  %v8708_v1 = vpack.c.bf16 %v1787_v62, %v1786_v24 }
 0x263   : > { %8661 = vmatprep.subr.bf16.mxu0 %v8660_v13  ;;  %8693 = vmatprep.subr.bf16.mxu1 %v8692_v23  ;;  %v8664_v28 = vpack.c.bf16 %v1749_v27, %v1748_v26  ;;  %v1789_v13 = vld [vmem:[%s17695_s7 + $0x1e8] sm:$0xff]  ;;  %v1742_v23 = vld [vmem:[%s17695_s7 + $0x70] sm:$0xff]  ;;  %v8684_v26 = vpack.c.bf16 %v1759_v22, %v1758_v20 }
 0x264   : > { %8695 = vmatpush3.bf16.msra.mxu1 %v8694_v25  ;;  %v8712_v15 = vpack.c.bf16 %v1789_v13, %v1788_v12  ;;  %v1743_v25 = vld [vmem:[%s17695_s7 + $0x78] sm:$0xff] }
 0x265   : > { %1538 = vmatmul.mubr.f32.gmra.mrb[8].mxu1 %v1410_v51  ;;  %8697 = vmatprep.subr.bf16.mxu1 %v8696_v35  ;;  %v8674_v51 = vpack.c.bf16 %v1737_v50, %v1736_v49  ;;  %v8686_v27 = vpack.c.bf16 %v1743_v25, %v1742_v23  ;;  %v8720_v35 = vpack.c.bf16 %v1809_v34, %v1808_v33 }
 0x266   : > { %1542 = vmatprep.mubr.f32.mxu1 %v1403_v52  ;;  %8663 = vmatpush3.bf16.msra.mxu0 %v8662_v17  ;;  %v1785_v52 = vld [vmem:[%s17695_s7 + $0x1c8] sm:$0xff] }
 0x267   : > { %8665 = vmatprep.subr.bf16.mxu0 %v8664_v28  ;;  %v1773_v17 = vld [vmem:[%s17695_s7 + $0x168] sm:$0xff]  ;;  %v1790_v28 = vld [vmem:[%s17695_s7 + $0x1f0] sm:$0xff] }
 0x268   : > { %8699 = vmatpush3.bf16.msra.mxu1 %v8698_v36  ;;  %v8714_v21 = vpack.c.bf16 %v1773_v17, %v1772_v16  ;;  %v8716_v30 = vpack.c.bf16 %v1791_v29, %v1790_v28  ;;  %v1840_v36 = vld [vmem:[%s17695_s7 + $0x380] sm:$0xff] }
 0x269   : > { %1543 = vmatmul.mubr.f32.gmra.mrb[10].mxu1 %v1411_v18  ;;  %8701 = vmatprep.subr.bf16.mxu1 %v8700_v45  ;;  %v8704_v18 = vpack.c.bf16 %v1785_v52, %v1784_v11  ;;  %v8752_v38 = vpack.c.bf16 %v1841_v37, %v1840_v36 }
 0x26a   : > { %1547 = vmatprep.mubr.f32.mxu1 %v1404_v55  ;;  %8667 = vmatpush3.bf16.msra.mxu0 %v8666_v31  ;;  %v8706_v55 = vpack.c.bf16 %v1769_v54, %v1768_v53  ;;  %v1775_v31 = vld [vmem:[%s17695_s7 + $0x178] sm:$0xff] }
 0x26b   : > { %8669 = vmatprep.subr.bf16.mxu0 %v8668_v39  ;;  %v8718_v32 = vpack.c.bf16 %v1775_v31, %v1774_v60  ;;  %v621_v39 = vlaneseq }
 0x26c   : > { %8703 = vmatpush3.bf16.msra.mxu1 %v8702_v46 }
 0x26d   : > { %1548 = vmatmul.mubr.f32.gmra.mrb[12].mxu1 %v1412_v57  ;;  %v1755_v57 = vld [vmem:[%s17695_s7 + $0xd8] sm:$0xff]  ;;  %8705 = vmatprep.subr.bf16.mxu1 %v8704_v18  ;;  %v10981_v40 = vshrl.u32 %v621_v39, 7 }
 0x26e   : > { %1552 = vmatprep.mubr.f32.mxu1 %v1405_v58  ;;  %8671 = vmatpush3.bf16.msra.mxu0 %v8670_v42  ;;  %v8676_v58 = vpack.c.bf16 %v1755_v57, %v1754_v56 }
 0x26f   : > { %8673 = vmatprep.subr.bf16.mxu0 %v8672_v48  ;;  %17998 = vst [vmem:[#allocation11_spill] sm:$0xff] %v10981_v40  ;;  %v10984_v41 = vadd.s32 8, %v10981_v40  ;;  %v10993_v45 = vadd.s32 16, %v10981_v40  ;;  %v630_v46 = vcvt.s32.f32 %v10981_v40  ;;  %v11002_v50 = vadd.s32 56, %v10981_v40 }
 0x270   : > { %8707 = vmatpush3.bf16.msra.mxu1 %v8706_v55  ;;  %v11025_v6 = vadd.s32 24, %v10981_v40  ;;  %vm17764_vm3 = vcmp.lt.s32.totalorder %v10981_v40, 1  ;;  %vm17765_vm4 = vcmp.lt.s32.totalorder %v10981_v40, 7 }
 0x271   : > { %1553 = vmatmul.mubr.f32.gmra.mrb[14].mxu1 %v1413_v19  ;;  %v1738_v19 = vld [vmem:[%s17695_s7 + $0x50] sm:$0xff]  ;;  %8709 = vmatprep.subr.bf16.mxu1 %v8708_v1  ;;  %v631_v2 = vcvt.s32.f32 %v10984_v41  ;;  %v632_v52 = vcvt.s32.f32 %v10993_v45  ;;  %v638_v53 = vadd.f32 0.5, %v630_v46 }
 0x272   : > { %8675 = vmatpush3.bf16.msra.mxu0 %v8674_v51  ;;  %v8678_v61 = vpack.c.bf16 %v1739_v59, %v1738_v19  ;;  %v633_v23 = vcvt.s32.f32 %v11025_v6 }
 0x273   : > { %8677 = vmatprep.subr.bf16.mxu0 %v8676_v58  ;;  %v639_v47 = vadd.f32 0.5, %v631_v2  ;;  %v17720_v58 = vcvt.s32.f32 %v11002_v50  ;;  %v646_v62 = vmul.f32 0.125, %v638_v53 }
 0x274   : > { %8711 = vmatpush3.bf16.msra.mxu1 %v8710_v4  ;;  %v641_v36 = vadd.f32 0.5, %v633_v23 }
 0x275   : > { %8713 = vmatprep.subr.bf16.mxu1 %v8712_v15  ;;  %v647_v54 = vmul.f32 0.125, %v639_v47  ;;  %v11031_v16 = vfloor.f32 %v646_v62 }
 0x276   : > { %8679 = vmatpush3.bf16.msra.mxu0 %v8678_v61  ;;  %v640_v61 = vadd.f32 0.5, %v632_v52 }
 0x277   : > { %8681 = vmatprep.subr.bf16.mxu0 %v8680_v8  ;;  %v11017_v63 = vfloor.f32 %v647_v54  ;;  %v645_v8 = vadd.f32 0.5, %v17720_v58  ;;  %18000 = vst [vmem:[#allocation13_spill] sm:$0xff] %v11031_v16 }
 0x278   : > { %8715 = vmatpush3.bf16.msra.mxu1 %v8714_v21 }
 0x279   : > { %8717 = vmatprep.subr.bf16.mxu1 %v8716_v30  ;;  %17999 = vst [vmem:[#allocation12_spill] sm:$0xff] %v11017_v63  ;;  %v679_v17 = vadd.f32 -1.0, %v11017_v63  ;;  %v663_v39 = vmul.f32 8.0, %v11017_v63 }
 0x27a   : > { %8683 = vmatpush3.bf16.msra.mxu0 %v8682_v14  ;;  %v648_v14 = vmul.f32 0.125, %v640_v61 }
 0x27b   : > { %8685 = vmatprep.subr.bf16.mxu0 %v8684_v26  ;;  %vm687_vm0 = vcmp.ge.f32.partialorder %v679_v17, 0.0  ;;  %vm695_vm1 = vcmp.lt.f32.partialorder %v679_v17, 8.0  ;;  %v11081_v61 = vsub.f32 %v631_v2, %v663_v39 }
 0x27c   : > { %8719 = vmatpush3.bf16.msra.mxu1 %v8718_v32  ;;  %v11041_v60 = vfloor.f32 %v648_v14  ;;  %v662_v32 = vmul.f32 8.0, %v11031_v16  ;;  %vm11057_vm2 = vmand %vm687_vm0, %vm695_vm1 }
 0x27d   : > { %8753 = vmatprep.subr.bf16.mxu1 %v8752_v38  ;;  %18007 = vst [vmem:[#allocation18_spill] sm:$0xff] %v11081_v61  ;;  %v11107_v45 = vadd.f32 -1.0, %v11081_v61 }
 0x27e   : > { %8687 = vmatpush3.bf16.msra.mxu0 %v8686_v27  ;;  %v653_v27 = vmul.f32 0.125, %v645_v8  ;;  %18001 = vst [vmem:[#allocation14_spill] sm:$0xff] %v11041_v60  ;;  %v11087_v8 = vadd.f32 -1.0, %v11041_v60 }
 0x27f   : > { %8721 = vmatprep.subr.bf16.mxu0 %v8720_v35  ;;  %vm719_vm5 = vcmp.ge.f32.partialorder %v11107_v45, 0.0  ;;  %vm727_vm6 = vcmp.lt.f32.partialorder %v11107_v45, 8.0 }
 0x280   : > { %v11067_v53 = vfloor.f32 %v653_v27  ;;  %vm688_vm7 = vcmp.ge.f32.partialorder %v11087_v8, 0.0  ;;  %vm696_vm8 = vcmp.lt.f32.partialorder %v11087_v8, 8.0  ;;  %vm11196_vm15 = vmand %vm719_vm5, %vm727_vm6  ;;  %v18018_v8 = vmov 0 }
 0x281   : > { %vm11234_vm5 = vmand %vm688_vm7, %vm696_vm8 }
 0x282   : > { %18005 = vst [vmem:[#allocation16_spill] sm:$0xff] %v11067_v53 }
 0x328   : > { %v7380_v42 = vpop.f32.mrb[0].mxu1 }
 0x329   : > { %v7381_v3 = vpop.f32.mrb[1].mxu1 }
 0x32a   : > { %v7382_v44 = vadd.f32 %v7381_v3, %v7380_v42  ;;  %v11054_v42 = vadd.s32 32, %v10981_v40 }
 0x32c   : > { %v10999_v10 = vadd.f32 %v7382_v44, %v10990_v43  ;;  %v7383_v48 = vpop.f32.mrb[2].mxu1  ;;  %v634_v62 = vcvt.s32.f32 %v11054_v42 }
 0x32d   : > { %v7384_v49 = vpop.f32.mrb[3].mxu1 }
 0x32e   : > { %v1566_v11 = vmul.f32 0.044715, %v10999_v10  ;;  %v7385_v51 = vadd.f32 %v7384_v49, %v7383_v48 }
 0x330   : > { %v1574_v18 = vmul.f32 %v1566_v11, %v10999_v10  ;;  %v11010_v55 = vadd.f32 %v7385_v51, %v10990_v43  ;;  %v7386_v56 = vpop.f32.mrb[4].mxu1  ;;  %v11064_v11 = vsub.f32 %v630_v46, %v662_v32  ;;  %v664_v51 = vmul.f32 8.0, %v11041_v60 }
 0x331   : > { %v7387_v57 = vpop.f32.mrb[5].mxu1 }
 0x332   : > { %v1582_v19 = vmul.f32 %v1574_v18, %v10999_v10  ;;  %v1567_v59 = vmul.f32 0.044715, %v11010_v55  ;;  %v7388_v24 = vadd.f32 %v7387_v57, %v7386_v56  ;;  %18004 = vst [vmem:[#allocation15_spill] sm:$0xff] %v11064_v11  ;;  %v649_v57 = vmul.f32 0.125, %v641_v36 }
 0x333   : > { %v11094_v41 = vsub.f32 %v632_v52, %v664_v51 }
 0x334   : > { %v1590_v0 = vadd.f32 %v1582_v19, %v10999_v10  ;;  %v1575_v1 = vmul.f32 %v1567_v59, %v11010_v55  ;;  %v11022_v4 = vadd.f32 %v7388_v24, %v10990_v43  ;;  %v7389_v5 = vpop.f32.mrb[6].mxu1  ;;  %v17724_v24 = vmov 0.0  }
 0x335   : > { %v7390_v7 = vpop.f32.mrb[7].mxu1  ;;  %v11077_v46 = vsel %vm11057_vm2, 1.0, %v17724_v24  ;;  %18008 = vst [vmem:[#allocation19_spill] sm:$0xff] %v11094_v41 }
 0x336   : > { %v1598_v9 = vmul.f32 0.7978846, %v1590_v0  ;;  %v1583_v12 = vmul.f32 %v1575_v1, %v11010_v55  ;;  %v1568_v13 = vmul.f32 0.044715, %v11022_v4  ;;  %v7391_v15 = vadd.f32 %v7390_v7, %v7389_v5  ;;  %18006 = vst [vmem:[#allocation17_spill] sm:$0xff] %v11077_v46 }
 0x338   : > { %10154 = vtanh.f32 %v1598_v9  ;;  %v1591_v20 = vadd.f32 %v1583_v12, %v11010_v55  ;;  %v1576_v21 = vmul.f32 %v1568_v13, %v11022_v4  ;;  %v7392_v22 = vpop.f32.mrb[8].mxu1  ;;  %v11038_v25 = vadd.f32 %v7391_v15, %v10990_v43 }
 0x339   : > { %v7393_v26 = vpop.f32.mrb[9].mxu1  ;;  %v11090_v13 = vadd.f32 -1.0, %v11064_v11 }
 0x33a   : > { %v1599_v28 = vmul.f32 0.7978846, %v1591_v20  ;;  %v1584_v29 = vmul.f32 %v1576_v21, %v11022_v4  ;;  %v7394_v30 = vadd.f32 %v7393_v26, %v7392_v22  ;;  %v1569_v31 = vmul.f32 0.044715, %v11038_v25 }
 0x33b   : > { %v11102_v20 = vadd.f32 1.0, %v11064_v11  ;;  %v1558_v21 = vmul.f32 0.5, %v10999_v10  ;;  %v1559_v10 = vmul.f32 0.5, %v11010_v55  ;;  %v11129_v55 = vadd.s32 40, %v10981_v40 }
 0x33c   : > { %10156 = vtanh.f32 %v1599_v28  ;;  %v1592_v33 = vadd.f32 %v1584_v29, %v11022_v4  ;;  %v11047_v34 = vadd.f32 %v7394_v30, %v10990_v43  ;;  %v7395_v35 = vpop.f32.mrb[10].mxu1  ;;  %v1577_v37 = vmul.f32 %v1569_v31, %v11038_v25 }
 0x33d   : > { %v7396_v38 = vpop.f32.mrb[11].mxu1  ;;  %v642_v29 = vadd.f32 0.5, %v634_v62  ;;  %vm718_vm9 = vcmp.ge.f32.partialorder %v11090_v13, 0.0  ;;  %vm726_vm10 = vcmp.lt.f32.partialorder %v11090_v13, 8.0  ;;  %vm790_vm12 = vcmp.ge.f32.partialorder %v11102_v20, 0.0 }
 0x33e   : > { %v1600_v3 = vmul.f32 0.7978846, %v1592_v33  ;;  %v1570_v44 = vmul.f32 0.044715, %v11047_v34  ;;  %v7397_v47 = vadd.f32 %v7396_v38, %v7395_v35  ;;  %v1585_v49 = vmul.f32 %v1577_v37, %v11038_v25 }
 0x33f   : > { %v11126_v38 = vfloor.f32 %v649_v57  ;;  %vm798_vm13 = vcmp.lt.f32.partialorder %v11102_v20, 8.0 }
 0x340   : > { %10158 = vtanh.f32 %v1600_v3  ;;  %v1578_v54 = vmul.f32 %v1570_v44, %v11047_v34  ;;  %v11071_v18 = vadd.f32 %v7397_v47, %v10990_v43  ;;  %v7398_v56 = vpop.f32.mrb[12].mxu1  ;;  %v1593_v19 = vadd.f32 %v1585_v49, %v11038_v25  ;;  %vm11316_vm7 = vmand %vm790_vm12, %vm798_vm13 }
 0x341   : > { %v7399_v59 = vpop.f32.mrb[13].mxu1  ;;  %18009 = vst [vmem:[#allocation20_spill] sm:$0xff] %v11126_v38  ;;  %v1560_v3 = vmul.f32 0.5, %v11022_v4  ;;  %v650_v49 = vmul.f32 0.125, %v642_v29 }
 0x342   : > { %v10155_v0 = vpop.eup %10154  ;;  %v1586_v1 = vmul.f32 %v1578_v54, %v11047_v34  ;;  %v1571_v5 = vmul.f32 0.044715, %v11071_v18  ;;  %v7400_v7 = vadd.f32 %v7399_v59, %v7398_v56  ;;  %v1601_v12 = vmul.f32 0.7978846, %v1593_v19 }
 0x343   : > { %v1614_v9 = vadd.f32 1.0, %v10155_v0 }
 0x344   : > { %v1594_v2 = vadd.f32 %v1586_v1, %v11047_v34  ;;  %v1579_v14 = vmul.f32 %v1571_v5, %v11071_v18  ;;  %v11099_v15 = vadd.f32 %v7400_v7, %v10990_v43  ;;  %v7401_v17 = vpop.f32.mrb[14].mxu1  ;;  %10160 = vtanh.f32 %v1601_v12 }
 0x345   : > { %v7402_v22 = vpop.f32.mrb[15].mxu1  ;;  %v11113_v30 = vmul.f32 %v1614_v9, %v1558_v21  ;;  %v17721_v5 = vcvt.s32.f32 %v11129_v55  ;;  %v783_v9 = vadd.f32 1.0, %v11081_v61 }
 0x346   : > { %v10157_v52 = vpop.eup %10156  ;;  %v1602_v26 = vmul.f32 0.7978846, %v1594_v2  ;;  %v1587_v27 = vmul.f32 %v1579_v14, %v11071_v18  ;;  %v1572_v28 = vmul.f32 0.044715, %v11099_v15  ;;  %v7403_v32 = vadd.f32 %v7402_v22, %v7401_v17 }
 0x347   : > { %v1615_v31 = vadd.f32 1.0, %v10157_v52  ;;  %v17719_v54 = vrot.slane %v11113_v30, 7  ;;  %v17718_v19 = vrot.slane %v11113_v30, 1  ;;  %v11159_v2 = vadd.f32 -1.0, %v11094_v41 }
 0x348   : > { %10162 = vtanh.f32 %v1602_v26  ;;  %v1595_v33 = vadd.f32 %v1587_v27, %v11071_v18  ;;  %v1580_v35 = vmul.f32 %v1572_v28, %v11099_v15  ;;  %v11122_v37 = vadd.f32 %v7403_v32, %v10990_v43 }
 0x349   : > { %v11119_v36 = vmul.f32 %v1615_v31, %v1559_v10  ;;  %v665_v22 = vmul.f32 8.0, %v11126_v38  ;;  %v11164_v52 = vfloor.f32 %v650_v49  ;;  %v1561_v26 = vmul.f32 0.5, %v11038_v25 }
 0x34a   : > { %v10159_v39 = vpop.eup %10158  ;;  %v1603_v44 = vmul.f32 0.7978846, %v1595_v33  ;;  %v1588_v47 = vmul.f32 %v1580_v35, %v11099_v15  ;;  %v1573_v43 = vmul.f32 0.044715, %v11122_v37  ;;  %v643_v31 = vadd.f32 0.5, %v17721_v5 }
 0x34b   : > { %v1616_v51 = vadd.f32 1.0, %v10159_v39  ;;  %v1631_v56 = vrot.slane %v11119_v36, 7  ;;  %v1664_v59 = vrot.slane %v11119_v36, 1  ;;  %18010 = vst [vmem:[#allocation21_spill] sm:$0xff] %v11164_v52  ;;  %v11178_v32 = vadd.s32 48, %v10981_v40 }
 0x34c   : > { %10164 = vtanh.f32 %v1603_v44  ;;  %v1596_v57 = vadd.f32 %v1588_v47, %v11099_v15  ;;  %v1581_v4 = vmul.f32 %v1573_v43, %v11122_v37  ;;  %vm791_vm11 = vcmp.ge.f32.partialorder %v783_v9, 0.0 }
 0x34d   : > { %v11139_v0 = vmul.f32 %v1616_v51, %v1560_v3  ;;  %v11146_v1 = vsel %vm17764_vm3, %v17719_v54, %v1631_v56  ;;  %v11156_v12 = vsel %vm17765_vm4, %v17718_v19, %v1664_v59  ;;  %v11183_v35 = vadd.f32 1.0, %v11094_v41 }
 0x34e   : > { %v1604_v7 = vmul.f32 0.7978846, %v1596_v57  ;;  %v10161_v14 = vpop.eup %10160  ;;  %v1589_v17 = vmul.f32 %v1581_v4, %v11122_v37  ;;  %v1562_v3 = vmul.f32 0.5, %v11047_v34  ;;  %vm799_vm14 = vcmp.lt.f32.partialorder %v783_v9, 8.0 }
 0x34f   : > { %v1632_v21 = vrot.slane %v11139_v0, 7  ;;  %v1617_v27 = vadd.f32 1.0, %v10161_v14  ;;  %v1665_v28 = vrot.slane %v11139_v0, 1  ;;  %v11203_v34 = vsub.f32 %v633_v23, %v665_v22  ;;  %vm11250_vm6 = vmand %vm791_vm11, %vm799_vm14 }
 0x350   : > { %10166 = vtanh.f32 %v1604_v7  ;;  %v1597_v29 = vadd.f32 %v1589_v17, %v11122_v37  ;;  %v651_v45 = vmul.f32 0.125, %v643_v31  ;;  %v678_v7 = vadd.f32 -1.0, %v11031_v16  ;;  %vm11277_vm11 = vmand %vm718_vm9, %vm726_vm10 }
 0x351   : > { %v11173_v10 = vsel %vm17764_vm3, %v1631_v56, %v1632_v21  ;;  %v11180_v33 = vmul.f32 %v1617_v27, %v1561_v26  ;;  %v11187_v39 = vsel %vm17765_vm4, %v1664_v59, %v1665_v28  ;;  %18013 = vst [vmem:[#allocation22_spill] sm:$0xff] %v11203_v34  ;;  %v666_v56 = vmul.f32 8.0, %v11164_v52  ;;  %vm815_vm8 = vmand %vm11057_vm2, %vm11250_vm6 }
 0x352   : > { %v10163_v25 = vpop.eup %10162  ;;  %v1605_v47 = vmul.f32 0.7978846, %v1597_v29  ;;  %v17717_v59 = vcvt.s32.f32 %v11178_v32  ;;  %v1563_v14 = vmul.f32 0.5, %v11071_v18  ;;  %v11225_v22 = vsel %vm11196_vm15, 1.0, %v17724_v24 }
 0x353   : > { %v1618_v44 = vadd.f32 1.0, %v10163_v25  ;;  %v1633_v51 = vrot.slane %v11180_v33, 7  ;;  %v1666_v43 = vrot.slane %v11180_v33, 1  ;;  %18014 = vst [vmem:[#allocation23_spill] sm:$0xff] %v11225_v22  ;;  %v11228_v26 = vadd.f32 -1.0, %v11126_v38  ;;  %v1825_v38 = vld [vmem:[%s17695_s7 + $0x308] sm:$0xff] }
 0x354   : > { %10168 = vtanh.f32 %v1605_v47  ;;  %v11239_v27 = vadd.f32 -1.0, %v11203_v34  ;;  %v11242_v18 = vadd.f32 1.0, %v11203_v34  ;;  %v18019_v8 = vsel %vm11250_vm6, 4294967295, %v18018_v8 }
 0x355   : > { %v11208_v57 = vmul.f32 %v1618_v44, %v1562_v3  ;;  %v11215_v6 = vsel %vm17764_vm3, %v1632_v21, %v1633_v51  ;;  %v11219_v23 = vsel %vm17765_vm4, %v1665_v28, %v1666_v43  ;;  %18020 = vst [vmem:[#allocation25_spill] sm:$0xff] %v18019_v8  ;;  %v11258_v25 = vsub.f32 %v634_v62, %v666_v56 }
 0x356   : > { %v10165_v4 = vpop.eup %10164  ;;  %v11260_v3 = vfloor.f32 %v651_v45  ;;  %v644_v44 = vadd.f32 0.5, %v17717_v59  ;;  %vm686_vm0 = vcmp.ge.f32.partialorder %v678_v7, 0.0  ;;  %vm694_vm1 = vcmp.lt.f32.partialorder %v678_v7, 8.0 }
 0x357   : > { %v1619_v17 = vadd.f32 1.0, %v10165_v4  ;;  %v1634_v28 = vrot.slane %v11208_v57, 7  ;;  %v1667_v29 = vrot.slane %v11208_v57, 1  ;;  %18021 = vst [vmem:[#allocation26_spill] sm:$0xff] %v11258_v25  ;;  %v1564_v42 = vmul.f32 0.5, %v11099_v15  ;;  %vm11303_vm14 = vmand %vm686_vm0, %vm694_vm1 }
 0x358   : > { %18022 = vst [vmem:[#allocation27_spill] sm:$0xff] %v11260_v3  ;;  %v18023_v56 = vmov 0  ;;  %vm729_vm10 = vcmp.lt.f32.partialorder %v11239_v27, 8.0  ;;  %v11296_v13 = vadd.f32 -1.0, %v11164_v52  ;;  %v652_v59 = vmul.f32 0.125, %v644_v44  ;;  %vm814_vm1 = vmand %vm11303_vm14, %vm11316_vm7  ;;  %v1810_v52 = vld [vmem:[%s17695_s7 + $0x290] sm:$0xff] }
 0x359   : > { %v11246_v31 = vmul.f32 %v1619_v17, %v1563_v14  ;;  %v11266_v9 = vsel %vm17764_vm3, %v1633_v51, %v1634_v28  ;;  %v11270_v4 = vsel %vm17765_vm4, %v1666_v43, %v1667_v29  ;;  %v18024_v56 = vsel %vm11277_vm11, 4294967295, %v18023_v56 }
 0x35a   : > { %v10167_v47 = vpop.eup %10166  ;;  %18025 = vst [vmem:[#allocation28_spill] sm:$0xff] %v18024_v56  ;;  %v11284_v51 = vsel %vm11234_vm5, 1.0, %v17724_v24  ;;  %v667_v17 = vmul.f32 8.0, %v11260_v3  ;;  %v11323_v7 = vadd.f32 -1.0, %v11258_v25  ;;  %v11336_v20 = vsel %vm815_vm8, 1.0, %v17724_v24  ;;  %vm742_vm8 = vmand %vm11303_vm14, %vm11277_vm11 }
 0x35b   : > { %18017 = vst [vmem:[#allocation24_spill] sm:$0xff] %v11246_v31  ;;  %v1620_v62 = vadd.f32 1.0, %v10167_v47  ;;  %18026 = vst [vmem:[#allocation29_spill] sm:$0xff] %v11284_v51  ;;  %v1635_v15 = vrot.slane %v11246_v31, 7  ;;  %v1668_v43 = vrot.slane %v11246_v31, 1  ;;  %vm18035_vm12 = vcmp.lt.f32.partialorder %v11159_v2, 8.0 }
 0x35c   : > { %18034 = vst [vmem:[#allocation33_spill] sm:$0xff] %v11336_v20  ;;  %vm18036_vm13 = vcmp.ge.f32.partialorder %v11159_v2, 0.0  ;;  %v18037_v19 = vmov 0  ;;  %v1565_v58 = vmul.f32 0.5, %v11122_v37  ;;  %v11354_v5 = vsel %vm11303_vm14, 1.0, %v17724_v24 }
 0x35d   : > { %v11299_v45 = vmul.f32 %v1620_v62, %v1564_v42  ;;  %v11310_v47 = vsel %vm17764_vm3, %v1634_v28, %v1635_v15  ;;  %v18030_v42 = vmov 0  ;;  %v11327_v28 = vsel %vm17765_vm4, %v1667_v29, %v1668_v43  ;;  %vm11342_vm0 = vmand %vm18036_vm13, %vm18035_vm12  ;;  %18040 = vst [vmem:[#allocation35_spill] sm:$0xff] %v11354_v5 }
 0x35e   : > { %v18031_v42 = vsel %vm11316_vm7, 4294967295, %v18030_v42  ;;  %18033 = vst [vmem:[#allocation32_spill] sm:$0xff] %v11327_v28  ;;  %v10169_v44 = vpop.eup %10168  ;;  %v18038_v19 = vsel %vm11342_vm0, 4294967295, %v18037_v19  ;;  %v11347_v29 = vadd.f32 1.0, %v11258_v25  ;;  %v669_v2 = vmul.f32 8.0, %v11067_v53  ;;  %vm744_vm12 = vmand %vm11234_vm5, %vm11342_vm0 }
 0x35f   : > { %18027 = vst [vmem:[#allocation30_spill] sm:$0xff] %v11299_v45  ;;  %18032 = vst [vmem:[#allocation31_spill] sm:$0xff] %v18031_v42  ;;  %v1636_v62 = vrot.slane %v11299_v45, 7  ;;  %v1621_v34 = vadd.f32 1.0, %v10169_v44  ;;  %v18041_v37 = vcvt.s32.f32 %v11129_v55  ;;  %v11371_v44 = vfloor.f32 %v652_v59 }
 0x360   : > { %18039 = vst [vmem:[#allocation34_spill] sm:$0xff] %v18038_v19  ;;  %v18045_v25 = vrot.slane %v11299_v45, 1  ;;  %v11392_v55 = vadd.f32 -1.0, %v11067_v53  ;;  %v18047_v59 = vmov 0.0   ;;  %vm18053_vm9 = vcmp.ge.f32.partialorder %v11183_v35, 0.0 }
 0x361   : > { %v11369_v24 = vsub.f32 %v18041_v37, %v667_v17  ;;  %18043 = vst [vmem:[#allocation37_spill] sm:$0xff] %v11371_v44  ;;  %v11375_v54 = vsel %vm17764_vm3, %v1635_v15, %v1636_v62  ;;  %v11383_v61 = vmul.f32 %v1621_v34, %v1565_v58  ;;  %v11395_v15 = vsel %vm742_vm8, 1.0, %v18047_v59  ;;  %v1792_v34 = vld [vmem:[%s17695_s7 + $0x200] sm:$0xff] }
 0x362   : > { %18044 = vst [vmem:[#allocation38_spill] sm:$0xff] %v11375_v54  ;;  %v11381_v41 = vsel %vm17765_vm4, %v1668_v43, %v18045_v25  ;;  %18048 = vst [vmem:[#allocation40_spill] sm:$0xff] %v11395_v15  ;;  %v11400_v58 = vsel %vm11277_vm11, 1.0, %v18047_v59  ;;  %v1793_v25 = vld [vmem:[%s17695_s7 + $0x208] sm:$0xff]  ;;  %v11415_v43 = vsel %vm11342_vm0, 1.0, %v18047_v59  ;;  %v11418_v17 = vadd.f32 -1.0, %v11260_v3 }
 0x363   : > { %18042 = vst [vmem:[#allocation36_spill] sm:$0xff] %v11369_v24  ;;  %18046 = vst [vmem:[#allocation39_spill] sm:$0xff] %v11381_v41  ;;  %v1655_v37 = vmul.f32 %v11354_v5, %v11383_v61  ;;  %v1637_v11 = vrot.slane %v11383_v61, 7  ;;  %v11431_v53 = vsel %vm814_vm1, 1.0, %v18047_v59  ;;  %v1811_v5 = vld [vmem:[%s17695_s7 + $0x298] sm:$0xff]  ;;  %vm18052_vm8 = vcmp.lt.f32.partialorder %v11183_v35, 8.0 }
 0x364   : > { %18049 = vst [vmem:[#allocation41_spill] sm:$0xff] %v11400_v58  ;;  %18050 = vst [vmem:[#allocation42_spill] sm:$0xff] %v11415_v43  ;;  %v18054_v14 = vmov 0  ;;  %v1824_v3 = vld [vmem:[%s17695_s7 + $0x300] sm:$0xff]  ;;  %v11460_v8 = vsel %vm744_vm12, 1.0, %v18047_v59  ;;  %vm18057_vm14 = vcmp.ge.f32.partialorder %v11239_v27, 0.0  ;;  %v18060_v42 = vcvt.s32.f32 %v11002_v50 }
 0x365   : > { %18051 = vst [vmem:[#allocation43_spill] sm:$0xff] %v11431_v53  ;;  %vm11444_vm13 = vmand %vm18053_vm9, %vm18052_vm8  ;;  %v18058_v35 = vmov 0  ;;  %v11471_v56 = vadd.f32 -1.0, %v11369_v24  ;;  %v668_v60 = vmul.f32 8.0, %v11371_v44  ;;  %1943 = vmatprep.mubr.f32.mxu0 %v1655_v37  ;;  %v11480_v19 = vsel %vm17764_vm3, %v1636_v62, %v1637_v11  ;;  %v1843_v62 = vld [vmem:[%s17695_s7 + $0x398] sm:$0xff] }
 0x366   : > { %v18055_v14 = vsel %vm11444_vm13, 4294967295, %v18054_v14  ;;  %18056 = vst [vmem:[#allocation44_spill] sm:$0xff] %v11460_v8  ;;  %vm11466_vm9 = vmand %vm18057_vm14, %vm729_vm10  ;;  %v11476_v41 = vsub.f32 %v18060_v42, %v669_v2  ;;  %v18062_v27 = vrot.slane %v11113_v30, 7  ;;  %v8722_v54 = vpack.c.bf16 %v1793_v25, %v1792_v34  ;;  %v1842_v42 = vld [vmem:[%s17695_s7 + $0x390] sm:$0xff] }
 0x367   : > { %v18059_v35 = vsel %vm11466_vm9, 4294967295, %v18058_v35  ;;  %v18063_v28 = vrot.slane %v11113_v30, 1  ;;  %v18064_v31 = vrot.slane %v11383_v61, 1  ;;  %vm18065_vm10 = vcmp.lt.f32.partialorder %v11228_v26, 8.0  ;;  %v1794_v25 = vld [vmem:[%s17695_s7 + $0x210] sm:$0xff]  ;;  %vm816_vm8 = vmand %vm11234_vm5, %vm11444_vm13 }
 0x368   : > { %18061 = vst [vmem:[#allocation45_spill] sm:$0xff] %v11476_v41  ;;  %v11486_v45 = vsel %vm17764_vm3, %v1637_v11, %v18062_v27  ;;  %vm18066_vm1 = vcmp.ge.f32.partialorder %v11228_v26, 0.0  ;;  %v8724_v34 = vpack.c.bf16 %v1811_v5, %v1810_v52  ;;  %v1795_v26 = vld [vmem:[%s17695_s7 + $0x218] sm:$0xff]  ;;  %v1656_v37 = vmul.f32 %v11077_v46, %v11113_v30  ;;  %vm18069_vm14 = vmand %vm11057_vm2, %vm11196_vm15  ;;  %v1812_v52 = vld [vmem:[%s17695_s7 + $0x2a0] sm:$0xff] }
 0x369   : > { %v11494_v50 = vsel %vm17765_vm4, %v18064_v31, %v18063_v28  ;;  %vm11506_vm12 = vmand %vm18066_vm1, %vm18065_vm10  ;;  %v1647_v31 = vmul.f32 %v11395_v15, %v11480_v19  ;;  %v1688_v28 = vmul.f32 %v11400_v58, %v11486_v45  ;;  %v8754_v27 = vpack.c.bf16 %v1825_v38, %v1824_v3  ;;  %v1813_v15 = vld [vmem:[%s17695_s7 + $0x2a8] sm:$0xff]  ;;  %v11552_v3 = vld [vmem:[%s17695_s7 + $0x310] sm:$0xff] }
 0x36a   : > { %v1680_v2 = vmul.f32 %v11431_v53, %v11494_v50  ;;  %v11534_v5 = vsel %vm18069_vm14, 1.0, %v18047_v59  ;;  %v11547_v48 = vadd.f32 -1.0, %v11371_v44  ;;  %v8756_v38 = vpack.c.bf16 %v1843_v62, %v1842_v42  ;;  %v1827_v46 = vld [vmem:[%s17695_s7 + $0x318] sm:$0xff]  ;;  %v1844_v58 = vld [vmem:[%s17695_s7 + $0x3a0] sm:$0xff] }
 0x36b   : > { %18070 = vst [vmem:[#allocation46_spill] sm:$0xff] %v11534_v5  ;;  %1944 = vmatmul.mubr.f32.vlgmr.msra.gmra.mrb[8].mxu0 %v1647_v31  ;;  %2048 = vmatprep.mubr.f32.mxu1 %v1688_v28  ;;  %vm18071_vm2 = vcmp.lt.f32.partialorder %v11242_v18, 8.0  ;;  %vm18072_vm1 = vcmp.ge.f32.partialorder %v11242_v18, 0.0  ;;  %v18073_v53 = vmov 0  ;;  %v18075_v42 = vcvt.s32.f32 %v11178_v32 }
 0x36c   : > { %vm11561_vm14 = vmand %vm18072_vm1, %vm18071_vm2  ;;  %8723 = vmatpush3.bf16.msra.mxu0 %v8722_v54  ;;  %1948 = vmatprep.mubr.f32.mxu0 %v1656_v37  ;;  %v1689_v31 = vmul.f32 %v11225_v22, %v11146_v1  ;;  %v8726_v28 = vpack.c.bf16 %v1795_v26, %v1794_v25  ;;  %v11576_v18 = vsel %vm11506_vm12, 1.0, %v18047_v59  ;;  %vm18078_vm2 = vcmp.lt.f32.partialorder %v11323_v7, 8.0  ;;  %v1796_v37 = vld [vmem:[%s17695_s7 + $0x220] sm:$0xff] }
 0x36d   : > { %v18074_v53 = vsel %vm11561_vm14, 4294967295, %v18073_v53  ;;  %v11569_v62 = vsub.f32 %v18075_v42, %v668_v60  ;;  %18077 = vst [vmem:[#allocation48_spill] sm:$0xff] %v11576_v18  ;;  %v1845_v60 = vld [vmem:[%s17695_s7 + $0x3a8] sm:$0xff]  ;;  %vm18079_vm1 = vcmp.ge.f32.partialorder %v11323_v7, 0.0  ;;  %v18080_v54 = vmov 0  ;;  %2049 = vmatmul.mubr.f32.vlgmr.msra.gmra.mrb[16].mxu1 %v1680_v2  ;;  %8725 = vmatprep.subr.bf16.mxu0 %v8724_v34 }
 0x36e   : > { %vm11588_vm3 = vmand %vm18079_vm1, %vm18078_vm2  ;;  %v11593_v32 = vadd.f32 1.0, %v11369_v24  ;;  %v1648_v25 = vmul.f32 %v11534_v5, %v11486_v45  ;;  %v8728_v26 = vpack.c.bf16 %v1813_v15, %v1812_v52  ;;  %v1797_v7 = vld [vmem:[%s17695_s7 + $0x228] sm:$0xff]  ;;  %vm18082_vm2 = vcmp.lt.f32.partialorder %v11296_v13, 8.0  ;;  %2053 = vmatprep.mubr.f32.mxu1 %v1689_v31  ;;  %8755 = vmatpush3.bf16.msra.mxu1 %v8754_v27  ;;  %v1815_v52 = vld [vmem:[%s17695_s7 + $0x2b8] sm:$0xff] }
 0x36f   : > { %18076 = vst [vmem:[#allocation47_spill] sm:$0xff] %v11569_v62  ;;  %v18081_v54 = vsel %vm11588_vm3, 4294967295, %v18080_v54  ;;  %vm18083_vm1 = vcmp.ge.f32.partialorder %v11296_v13, 0.0  ;;  %v11613_v15 = vadd.f32 -1.0, %v11476_v41  ;;  %v1657_v2 = vmul.f32 %v11284_v51, %v11119_v36  ;;  %v1814_v13 = vld [vmem:[%s17695_s7 + $0x2b0] sm:$0xff]  ;;  %8757 = vmatprep.subr.bf16.mxu1 %v8756_v38  ;;  %v1828_v31 = vld [vmem:[%s17695_s7 + $0x320] sm:$0xff] }
 0x370   : > { %vm11607_vm4 = vmand %vm18083_vm1, %vm18082_vm2  ;;  %v8758_v34 = vpack.c.bf16 %v1827_v46, %v11552_v3  ;;  %1949 = vmatmul.mubr.f32.gmra.mrb[10].mxu0 %v1648_v25  ;;  %v1681_v46 = vmul.f32 %v11336_v20, %v11156_v12  ;;  %v11638_v27 = vsel %vm816_vm8, 1.0, %v18047_v59  ;;  %v8760_v3 = vpack.c.bf16 %v1845_v60, %v1844_v58  ;;  %v1829_v25 = vld [vmem:[%s17695_s7 + $0x328] sm:$0xff]  ;;  %v1846_v24 = vld [vmem:[%s17695_s7 + $0x3b0] sm:$0xff] }
 0x371   : > { %18086 = vst [vmem:[#allocation49_spill] sm:$0xff] %v11638_v27  ;;  %v11651_v21 = vadd.f32 -1.0, %v11569_v62  ;;  %8727 = vmatpush3.bf16.msra.mxu0 %v8726_v28  ;;  %1953 = vmatprep.mubr.f32.mxu0 %v1657_v2  ;;  %v1690_v58 = vmul.f32 %v11415_v43, %v11173_v10  ;;  %v8730_v38 = vpack.c.bf16 %v1797_v7, %v1796_v37  ;;  %v11658_v60 = vsel %vm11466_vm9, 1.0, %v18047_v59  ;;  %v1847_v51 = vld [vmem:[%s17695_s7 + $0x3b8] sm:$0xff]  ;;  %v1798_v2 = vld [vmem:[%s17695_s7 + $0x230] sm:$0xff]  ;;  %v1817_v43 = vld [vmem:[%s17695_s7 + $0x2c8] sm:$0xff] }
 0x372   : > { %18087 = vst [vmem:[#allocation50_spill] sm:$0xff] %v11658_v60  ;;  %vm18088_vm5 = vcmp.lt.f32.partialorder %v11347_v29, 8.0  ;;  %vm18089_vm8 = vcmp.ge.f32.partialorder %v11347_v29, 0.0  ;;  %v18090_v28 = vmov 0  ;;  %2054 = vmatmul.mubr.f32.gmra.mrb[18].mxu1 %v1681_v46  ;;  %8729 = vmatprep.subr.bf16.mxu0 %v8728_v26  ;;  %v1649_v37 = vmul.f32 %v11460_v8, %v11146_v1  ;;  %v1799_v26 = vld [vmem:[%s17695_s7 + $0x238] sm:$0xff] }
 0x373   : > { %vm11670_vm10 = vmand %vm18089_vm8, %vm18088_vm5  ;;  %v8732_v7 = vpack.c.bf16 %v1815_v52, %v1814_v13  ;;  %vm18094_vm8 = vcmp.lt.f32.partialorder %v11471_v56, 8.0  ;;  %vm18095_vm1 = vcmp.ge.f32.partialorder %v11471_v56, 0.0  ;;  %v18096_v13 = vmov 0  ;;  %2058 = vmatprep.mubr.f32.mxu1 %v1690_v58  ;;  %8759 = vmatpush3.bf16.msra.mxu1 %v8758_v34  ;;  %v1816_v56 = vld [vmem:[%s17695_s7 + $0x2c0] sm:$0xff]  ;;  %v1839_v20 = vld [vmem:[%s17695_s7 + $0x378] sm:$0xff] }
 0x374   : > { %v18091_v28 = vsel %vm11670_vm10, 4294967295, %v18090_v28  ;;  %vm18092_vm5 = vmand %vm11506_vm12, %vm11466_vm9  ;;  %v1658_v52 = vmul.f32 %v11576_v18, %v11139_v0  ;;  %v8762_v46 = vpack.c.bf16 %v1829_v25, %v1828_v31  ;;  %v11707_v8 = vsel %vm11607_vm4, 1.0, %v18047_v59  ;;  %1954 = vmatmul.mubr.f32.gmra.mrb[12].mxu0 %v1649_v37  ;;  %8761 = vmatprep.subr.bf16.mxu1 %v8760_v3  ;;  %v1830_v18 = vld [vmem:[%s17695_s7 + $0x330] sm:$0xff]  ;;  %v1848_v37 = vld [vmem:[%s17695_s7 + $0x3c0] sm:$0xff] }
 0x375   : > { %v11685_v29 = vsel %vm18092_vm5, 1.0, %v18047_v59  ;;  %vm11697_vm0 = vmand %vm18095_vm1, %vm18094_vm8  ;;  %18098 = vst [vmem:[#allocation52_spill] sm:$0xff] %v11707_v8  ;;  %vm18099_vm1 = vcmp.lt.f32.partialorder %v11418_v17, 8.0  ;;  %vm18100_vm5 = vcmp.ge.f32.partialorder %v11418_v17, 0.0  ;;  %v11724_v31 = vadd.f32 1.0, %v11569_v62  ;;  %v1831_v17 = vld [vmem:[%s17695_s7 + $0x338] sm:$0xff]  ;;  %8731 = vmatpush3.bf16.msra.mxu0 %v8730_v38 }
 0x376   : > { %18093 = vst [vmem:[#allocation51_spill] sm:$0xff] %v11685_v29  ;;  %v18097_v13 = vsel %vm11697_vm0, 4294967295, %v18096_v13  ;;  %vm11719_vm8 = vmand %vm18100_vm5, %vm18099_vm1  ;;  %v1682_v25 = vmul.f32 %v11638_v27, %v11187_v39  ;;  %v8764_v58 = vpack.c.bf16 %v1847_v51, %v1846_v24  ;;  %vm732_vm2 = vcmp.lt.f32.partialorder %v11651_v21, 8.0  ;;  %1958 = vmatprep.mubr.f32.mxu0 %v1658_v52  ;;  %v1849_v38 = vld [vmem:[%s17695_s7 + $0x3c8] sm:$0xff]  ;;  %8733 = vmatprep.subr.bf16.mxu0 %v8732_v7  ;;  %v1800_v52 = vld [vmem:[%s17695_s7 + $0x240] sm:$0xff] }
 0x377   : > { %v1691_v24 = vmul.f32 %v11658_v60, %v11215_v6  ;;  %v8734_v51 = vpack.c.bf16 %v1799_v26, %v1798_v2  ;;  %vm18103_vm9 = vmand %vm11506_vm12, %vm11561_vm14  ;;  %v1650_v11 = vmul.f32 %v11685_v29, %v11173_v10  ;;  %v11766_v2 = vsel %vm11588_vm3, 1.0, %v18047_v59  ;;  %v1801_v62 = vld [vmem:[%s17695_s7 + $0x248] sm:$0xff]  ;;  %8763 = vmatpush3.bf16.msra.mxu1 %v8762_v46  ;;  %v1818_v29 = vld [vmem:[%s17695_s7 + $0x2d0] sm:$0xff] }
 0x378   : > { %v11748_v3 = vsel %vm18103_vm9, 1.0, %v18047_v59  ;;  %2059 = vmatmul.mubr.f32.gmra.mrb[20].mxu1 %v1682_v25  ;;  %18105 = vst [vmem:[#allocation54_spill] sm:$0xff] %v11766_v2  ;;  %v8736_v26 = vpack.c.bf16 %v1817_v43, %v1816_v56  ;;  %vm18106_vm9 = vcmp.lt.f32.partialorder %v11593_v32, 8.0  ;;  %vm18107_vm12 = vcmp.ge.f32.partialorder %v11593_v32, 0.0  ;;  %vm18110_vm5 = vmand %vm11607_vm4, %vm11588_vm3  ;;  %v1819_v46 = vld [vmem:[%s17695_s7 + $0x2d8] sm:$0xff]  ;;  %8765 = vmatprep.subr.bf16.mxu1 %v8764_v58  ;;  %v1838_v27 = vld [vmem:[%s17695_s7 + $0x370] sm:$0xff] }
 0x379   : > { %18104 = vst [vmem:[#allocation53_spill] sm:$0xff] %v11748_v3  ;;  %vm11778_vm1 = vmand %vm18107_vm12, %vm18106_vm9  ;;  %v18108_v7 = vmov 0  ;;  %v11783_v25 = vadd.f32 1.0, %v11476_v41  ;;  %2063 = vmatprep.mubr.f32.mxu1 %v1691_v24  ;;  %v1659_v43 = vmul.f32 %v11707_v8, %v11180_v33  ;;  %v8766_v56 = vpack.c.bf16 %v1831_v17, %v1830_v18  ;;  %1959 = vmatmul.mubr.f32.gmra.mrb[14].mxu0 %v1650_v11  ;;  %v1833_v8 = vld [vmem:[%s17695_s7 + $0x348] sm:$0xff]  ;;  %v1855_v58 = vld [vmem:[%s17695_s7 + $0x3f8] sm:$0xff] }
 0x37a   : > { %v18109_v7 = vsel %vm11778_vm1, 4294967295, %v18108_v7  ;;  %v11793_v32 = vsel %vm18110_vm5, 1.0, %v18047_v59  ;;  %vm18112_vm9 = vcmp.ge.f32.partialorder %v11651_v21, 0.0  ;;  %v18113_v18 = vmov 0  ;;  %v1832_v21 = vld [vmem:[%s17695_s7 + $0x340] sm:$0xff]  ;;  %8735 = vmatpush3.bf16.msra.mxu0 %v8734_v51  ;;  %vm18120_vm14 = vmand %vm11607_vm4, %vm11670_vm10  ;;  %v18157_v5 = vld [vmem:[#allocation14_spill] sm:$0xff] }
 0x37b   : > { %18111 = vst [vmem:[#allocation55_spill] sm:$0xff] %v11793_v32  ;;  %vm11805_vm12 = vmand %vm18112_vm9, %vm732_vm2  ;;  %v1683_v17 = vmul.f32 %v11748_v3, %v11219_v23  ;;  %v11815_v24 = vsel %vm11719_vm8, 1.0, %v18047_v59  ;;  %v8768_v41 = vpack.c.bf16 %v1849_v38, %v1848_v37  ;;  %vm18116_vm2 = vcmp.lt.f32.partialorder %v11547_v48, 8.0  ;;  %1963 = vmatprep.mubr.f32.mxu0 %v1659_v43  ;;  %8737 = vmatprep.subr.bf16.mxu0 %v8736_v26  ;;  %v1802_v43 = vld [vmem:[%s17695_s7 + $0x250] sm:$0xff]  ;;  %v1837_v3 = vld [vmem:[%s17695_s7 + $0x368] sm:$0xff] }
 0x37c   : > { %v18114_v18 = vsel %vm11805_vm12, 4294967295, %v18113_v18  ;;  %18115 = vst [vmem:[#allocation56_spill] sm:$0xff] %v11815_v24  ;;  %vm18117_vm5 = vcmp.ge.f32.partialorder %v11547_v48, 0.0  ;;  %vm804_vm3 = vcmp.lt.f32.partialorder %v11724_v31, 8.0  ;;  %v1692_v37 = vmul.f32 %v11766_v2, %v11266_v9  ;;  %v1850_v48 = vld [vmem:[%s17695_s7 + $0x3d0] sm:$0xff]  ;;  %v1803_v2 = vld [vmem:[%s17695_s7 + $0x258] sm:$0xff]  ;;  %8767 = vmatpush3.bf16.msra.mxu1 %v8766_v56 }
 0x37d   : > { %vm11827_vm9 = vmand %vm18117_vm5, %vm18116_vm2  ;;  %v8738_v38 = vpack.c.bf16 %v1801_v62, %v1800_v52  ;;  %v11840_v11 = vsel %vm18120_vm14, 1.0, %v18047_v59  ;;  %v1851_v62 = vld [vmem:[%s17695_s7 + $0x3d8] sm:$0xff]  ;;  %2064 = vmatmul.mubr.f32.gmra.mrb[22].mxu1 %v1683_v17  ;;  %v1651_v42 = vmul.f32 %v11793_v32, %v11215_v6  ;;  %v11858_v51 = vsel %vm11697_vm0, 1.0, %v18047_v59  ;;  %v1820_v32 = vld [vmem:[%s17695_s7 + $0x2e0] sm:$0xff]  ;;  %8769 = vmatprep.subr.bf16.mxu1 %v8768_v41 }
 0x37e   : > { %18121 = vst [vmem:[#allocation57_spill] sm:$0xff] %v11840_v11  ;;  %vm819_vm2 = vmand %vm11719_vm8, %vm11778_vm1  ;;  %v8740_v52 = vpack.c.bf16 %v1819_v46, %v1818_v29  ;;  %v11872_v26 = vadd.f32 1.0, %v11031_v16  ;;  %2068 = vmatprep.mubr.f32.mxu1 %v1692_v37  ;;  %v1660_v29 = vmul.f32 %v11815_v24, %v11208_v57  ;;  %v8770_v46 = vpack.c.bf16 %v1833_v8, %v1832_v21  ;;  %v1821_v56 = vld [vmem:[%s17695_s7 + $0x2e8] sm:$0xff] }
 0x37f   : > { %18122 = vst [vmem:[#allocation58_spill] sm:$0xff] %v11858_v51  ;;  %vm18123_vm5 = vmand %vm11719_vm8, %vm11697_vm0  ;;  %vm18125_vm4 = vcmp.ge.f32.partialorder %v11724_v31, 0.0  ;;  %v18126_v8 = vmov 0  ;;  %v11899_v21 = vadd.f32 1.0, %v11017_v63  ;;  %1964 = vmatmul.mubr.f32.gmra.mrb[16].mxu0 %v1651_v42  ;;  %v1684_v37 = vmul.f32 %v11840_v11, %v11270_v4  ;;  %v1834_v31 = vld [vmem:[%s17695_s7 + $0x350] sm:$0xff]  ;;  %v1835_v63 = vld [vmem:[%s17695_s7 + $0x358] sm:$0xff] }
 0x380   : > { %v11882_v17 = vsel %vm18123_vm5, 1.0, %v18047_v59  ;;  %vm11894_vm14 = vmand %vm18125_vm4, %vm804_vm3  ;;  %v11906_v16 = vsel %vm11827_vm9, 1.0, %v18047_v59  ;;  %v8772_v24 = vpack.c.bf16 %v1851_v62, %v1850_v48  ;;  %vm18129_vm3 = vcmp.lt.f32.partialorder %v11392_v55, 8.0  ;;  %8739 = vmatpush3.bf16.msra.mxu0 %v8738_v38  ;;  %1968 = vmatprep.mubr.f32.mxu0 %v1660_v29  ;;  %v1853_v38 = vld [vmem:[%s17695_s7 + $0x3e8] sm:$0xff]  ;;  %v1836_v11 = vld [vmem:[%s17695_s7 + $0x360] sm:$0xff] }
 0x381   : > { %18124 = vst [vmem:[#allocation59_spill] sm:$0xff] %v11882_v17  ;;  %v18127_v8 = vsel %vm11894_vm14, 4294967295, %v18126_v8  ;;  %18128 = vst [vmem:[#allocation60_spill] sm:$0xff] %v11906_v16  ;;  %vm18130_vm5 = vcmp.ge.f32.partialorder %v11392_v55, 0.0  ;;  %v1693_v48 = vmul.f32 %v11858_v51, %v11310_v47  ;;  %v8742_v62 = vpack.c.bf16 %v1803_v2, %v1802_v43  ;;  %v1852_v55 = vld [vmem:[%s17695_s7 + $0x3e0] sm:$0xff]  ;;  %2069 = vmatmul.mubr.f32.gmra.mrb[24].mxu1 %v1684_v37  ;;  %v1805_v51 = vld [vmem:[%s17695_s7 + $0x268] sm:$0xff] }
 0x382   : > { %vm11918_vm4 = vmand %vm18130_vm5, %vm18129_vm3  ;;  %v11930_v42 = vsel %vm819_vm2, 1.0, %v18047_v59  ;;  %vm18134_vm3 = vcmp.lt.f32.partialorder %v11613_v15, 8.0  ;;  %vm18135_vm5 = vcmp.ge.f32.partialorder %v11613_v15, 0.0  ;;  %8741 = vmatprep.subr.bf16.mxu0 %v8740_v52  ;;  %v1652_v34 = vmul.f32 %v11882_v17, %v11266_v9  ;;  %v1804_v15 = vld [vmem:[%s17695_s7 + $0x260] sm:$0xff]  ;;  %8771 = vmatpush3.bf16.msra.mxu1 %v8770_v46  ;;  %v1822_v17 = vld [vmem:[%s17695_s7 + $0x2f0] sm:$0xff] }
 0x383   : > { %18133 = vst [vmem:[#allocation61_spill] sm:$0xff] %v11930_v42  ;;  %vm11942_vm0 = vmand %vm18135_vm5, %vm18134_vm3  ;;  %v11952_v43 = vsel %vm11805_vm12, 1.0, %v18047_v59  ;;  %v8744_v29 = vpack.c.bf16 %v1821_v56, %v1820_v32  ;;  %vm805_vm3 = vcmp.lt.f32.partialorder %v11783_v25, 8.0  ;;  %2073 = vmatprep.mubr.f32.mxu1 %v1693_v48  ;;  %v18139_v32 = vld [vmem:[#allocation24_spill] sm:$0xff]  ;;  %v8774_v56 = vpack.c.bf16 %v1835_v63, %v1834_v31  ;;  %v1823_v46 = vld [vmem:[%s17695_s7 + $0x2f8] sm:$0xff]  ;;  %8773 = vmatprep.subr.bf16.mxu1 %v8772_v24 }
 0x384   : > { %18138 = vst [vmem:[#allocation62_spill] sm:$0xff] %v11952_v43  ;;  %vm820_vm2 = vmand %vm11827_vm9, %vm11894_vm14  ;;  %v1661_v52 = vmul.f32 %v11906_v16, %v18139_v32  ;;  %1969 = vmatmul.mubr.f32.gmra.mrb[18].mxu0 %v1652_v34  ;;  %v18142_v63 = vld [vmem:[#allocation32_spill] sm:$0xff]  ;;  %v11988_v48 = vsel %vm11918_vm4, 1.0, %v18047_v59  ;;  %v8776_v16 = vpack.c.bf16 %v1853_v38, %v1852_v55  ;;  %v18144_v24 = vld [vmem:[#allocation38_spill] sm:$0xff]  ;;  %vm18146_vm5 = vcmp.ge.f32.partialorder %v11783_v25, 0.0 }
 0x385   : > { %vm18140_vm8 = vmand %vm11827_vm9, %vm11805_vm12  ;;  %v1685_v31 = vmul.f32 %v11930_v42, %v18142_v63  ;;  %18143 = vst [vmem:[#allocation32_spill] sm:$0xff] %v11988_v48  ;;  %8743 = vmatpush3.bf16.msra.mxu0 %v8742_v62  ;;  %v1694_v34 = vmul.f32 %v11952_v43, %v18144_v24  ;;  %v8746_v42 = vpack.c.bf16 %v1805_v51, %v1804_v15  ;;  %v12008_v55 = vsel %vm820_vm2, 1.0, %v18047_v59  ;;  %v1854_v51 = vld [vmem:[%s17695_s7 + $0x3f0] sm:$0xff]  ;;  %v1807_v43 = vld [vmem:[%s17695_s7 + $0x278] sm:$0xff] }
 0x386   : > { %v11974_v37 = vsel %vm18140_vm8, 1.0, %v18047_v59  ;;  %1973 = vmatprep.mubr.f32.mxu0 %v1661_v52  ;;  %18145 = vst [vmem:[#allocation38_spill] sm:$0xff] %v12008_v55  ;;  %vm12014_vm12 = vmand %vm18146_vm5, %vm805_vm3  ;;  %8745 = vmatprep.subr.bf16.mxu0 %v8744_v29  ;;  %v12030_v25 = vsel %vm11942_vm0, 1.0, %v18047_v59  ;;  %v8748_v15 = vpack.c.bf16 %v1823_v46, %v1822_v17  ;;  %v1806_v52 = vld [vmem:[%s17695_s7 + $0x270] sm:$0xff]  ;;  %vm18149_vm3 = vcmp.lt.f32.partialorder %v11872_v26, 8.0  ;;  %v18153_v17 = vld [vmem:[#allocation30_spill] sm:$0xff] }
 0x387   : > { %18141 = vst [vmem:[#allocation24_spill] sm:$0xff] %v11974_v37  ;;  %2074 = vmatmul.mubr.f32.gmra.mrb[26].mxu1 %v1685_v31  ;;  %v1653_v62 = vmul.f32 %v11974_v37, %v11310_v47  ;;  %vm18150_vm5 = vcmp.ge.f32.partialorder %v11872_v26, 0.0  ;;  %vm887_vm8 = vcmp.lt.f32.partialorder %v11899_v21, 8.0  ;;  %v1662_v46 = vmul.f32 %v11988_v48, %v18153_v17  ;;  %vm18154_vm2 = vmand %vm11918_vm4, %vm11942_vm0  ;;  %v1856_v26 = vld [vmem:[%s17695_s7 + $0x400] sm:$0xff] }
 0x388   : > { %vm12046_vm9 = vmand %vm18150_vm5, %vm18149_vm3  ;;  %2078 = vmatprep.mubr.f32.mxu1 %v1694_v34  ;;  %8775 = vmatpush3.bf16.msra.mxu1 %v8774_v56  ;;  %v8778_v31 = vpack.c.bf16 %v1837_v3, %v1836_v11  ;;  %v12059_v37 = vsel %vm18154_vm2, 1.0, %v18047_v59  ;;  %v1857_v56 = vld [vmem:[%s17695_s7 + $0x408] sm:$0xff]  ;;  %v18155_v34 = vld [vmem:[#allocation39_spill] sm:$0xff]  ;;  %v12072_v48 = vsel %vm11316_vm7, 1.0, %v18047_v59  ;;  %v8780_v60 = vpack.c.bf16 %v1855_v58, %v1854_v51 }
 0x389   : > { %1974 = vmatmul.mubr.f32.gmra.mrb[20].mxu0 %v1653_v62  ;;  %v1686_v3 = vmul.f32 %v12008_v55, %v18155_v34  ;;  %8777 = vmatprep.subr.bf16.mxu1 %v8776_v16  ;;  %v872_v62 = vadd.f32 1.0, %v18157_v5  ;;  %v1695_v16 = vmul.f32 %v12030_v25, %v11480_v19  ;;  %v8750_v55 = vpack.c.bf16 %v1807_v43, %v1806_v52  ;;  %vm18158_vm2 = vmand %vm11918_vm4, %vm12014_vm12  ;;  %v2588_v38 = vld [vmem:[%s17697_s9 + $0x80] sm:$0xff] }
 0x38a   : > { %8747 = vmatpush3.bf16.msra.mxu0 %v8746_v42  ;;  %1978 = vmatprep.mubr.f32.mxu0 %v1662_v46  ;;  %v12089_v51 = vsel %vm18158_vm2, 1.0, %v18047_v59  ;;  %v18159_v58 = vrot.slane %v11383_v61, 1  ;;  %v18160_v22 = vrot.slane %v18153_v17, 1  ;;  %vm18161_vm3 = vcmp.lt.s32.totalorder %v10981_v40, 7  ;;  %vm902_vm5 = vmand %vm12046_vm9, %vm11277_vm11 }
 0x38b   : > { %2079 = vmatmul.mubr.f32.gmra.mrb[28].mxu1 %v1686_v3  ;;  %8749 = vmatprep.subr.bf16.mxu0 %v8748_v15  ;;  %v1654_v41 = vmul.f32 %v12059_v37, %v18144_v24  ;;  %v12108_v43 = vsel %vm12046_vm9, 1.0, %v18047_v59  ;;  %v8784_v52 = vpack.c.bf16 %v1857_v56, %v1856_v26  ;;  %vm18164_vm4 = vcmp.ge.f32.partialorder %v11899_v21, 0.0  ;;  %v1858_v26 = vld [vmem:[%s17695_s7 + $0x410] sm:$0xff]  ;;  %v1859_v21 = vld [vmem:[%s17695_s7 + $0x418] sm:$0xff] }
 0x38c   : > { %v12097_v42 = vsel %vm18161_vm3, %v18160_v22, %v18159_v58  ;;  %18163 = vst [vmem:[#allocation30_spill] sm:$0xff] %v12108_v43  ;;  %vm12114_vm2 = vmand %vm18164_vm4, %vm887_vm8  ;;  %2083 = vmatprep.mubr.f32.mxu1 %v1695_v16  ;;  %8779 = vmatpush3.bf16.msra.mxu1 %v8778_v31  ;;  %v1696_v15 = vmul.f32 %v12072_v48, %v11156_v12  ;;  %v12123_v5 = vsel %vm11250_vm6, 1.0, %v18047_v59  ;;  %vm880_vm8 = vcmp.ge.f32.partialorder %v872_v62, 0.0 }
 0x38d   : > { %v8782_v3 = vpack.c.bf16 %v1839_v20, %v1838_v27  ;;  %1979 = vmatmul.mubr.f32.gmra.mrb[22].mxu0 %v1654_v41  ;;  %v1687_v31 = vmul.f32 %v12089_v51, %v12097_v42  ;;  %8781 = vmatprep.subr.bf16.mxu1 %v8780_v60  ;;  %vm888_vm3 = vcmp.lt.f32.partialorder %v872_v62, 8.0  ;;  %v18168_v20 = vld [vmem:[#allocation20_spill] sm:$0xff]  ;;  %v12140_v56 = vsel %vm902_vm5, 1.0, %v18047_v59  ;;  %v18173_v62 = vld [vmem:[#allocation21_spill] sm:$0xff] }
 0x38e   : > { %v873_v27 = vadd.f32 1.0, %v18168_v20  ;;  %8751 = vmatpush3.bf16.msra.mxu0 %v8750_v55  ;;  %2153 = vmatprep.mubr.f32.mxu0 %v1696_v15  ;;  %v1712_v16 = vmul.f32 %v12108_v43, %v11119_v36  ;;  %v12147_v60 = vsel %vm12114_vm2, 1.0, %v18047_v59  ;;  %v8788_v41 = vpack.c.bf16 %v1859_v21, %v1858_v26  ;;  %vm12162_vm5 = vmand %vm880_vm8, %vm888_vm3  ;;  %v1860_v26 = vld [vmem:[%s17695_s7 + $0x420] sm:$0xff] }
 0x38f   : > { %2084 = vmatmul.mubr.f32.gmra.mrb[30].mxu1 %v1687_v31  ;;  %8785 = vmatprep.subr.bf16.mxu0 %v8784_v52  ;;  %18169 = vst [vmem:[#allocation39_spill] sm:$0xff] %v12147_v60  ;;  %v1697_v55 = vmul.f32 %v12123_v5, %v11187_v39  ;;  %v12158_v46 = vsel %vm11444_vm13, 1.0, %v18047_v59  ;;  %v18171_v15 = vmov 0  ;;  %v1704_v21 = vmul.f32 %v12140_v56, %v11146_v1  ;;  %vm18174_vm8 = vmand %vm12114_vm2, %vm11196_vm15 }
 0x390   : > { %8783 = vmatpush3.bf16.msra.mxu1 %v8782_v3  ;;  %2258 = vmatprep.mubr.f32.mxu1 %v1712_v16  ;;  %18170 = vst [vmem:[#allocation31_spill] sm:$0xff] %v12158_v46  ;;  %v18172_v15 = vsel %vm12162_vm5, 4294967295, %v18171_v15  ;;  %v1861_v3 = vld [vmem:[%s17695_s7 + $0x428] sm:$0xff]  ;;  %vm889_vm11 = vcmp.lt.f32.partialorder %v873_v27, 8.0  ;;  %v874_v31 = vadd.f32 1.0, %v18173_v62  ;;  %v1713_v16 = vmul.f32 %v12147_v60, %v11139_v0 }
 0x391   : > { %2154 = vmatmul.mubr.f32.vlgmr.msra.gmra.mrb[24].mxu0 %v11113_v30  ;;  %v12184_v20 = vsel %vm18174_vm8, 1.0, %v18047_v59  ;;  %v12189_v1 = vsel %vm12162_vm5, 1.0, %v18047_v59  ;;  %v1698_v49 = vmul.f32 %v12158_v46, %v11219_v23  ;;  %vm18178_vm15 = vnez %v18074_v53  ;;  %v2621_v62 = vld [vmem:[%s17697_s9 + $0x188] sm:$0xff] }
 0x392   : > { %8787 = vmatpush3.bf16.msra.mxu0 %v8784_v52  ;;  %2158 = vmatprep.mubr.f32.mxu0 %v1697_v55  ;;  %18175 = vst [vmem:[#allocation28_spill] sm:$0xff] %v12189_v1  ;;  %v8792_v52 = vpack.c.bf16 %v1861_v3, %v1860_v26  ;;  %v18176_v55 = vld [vmem:[#allocation34_spill] sm:$0xff]  ;;  %vm18179_vm8 = vcmp.ge.f32.partialorder %v873_v27, 0.0  ;;  %v1862_v26 = vld [vmem:[%s17695_s7 + $0x430] sm:$0xff]  ;;  %v18182_v27 = vld [vmem:[#allocation27_spill] sm:$0xff]  ;;  %v1714_v46 = vmul.f32 %v12189_v1, %v11180_v33 }
 0x393   : > { %2259 = vmatmul.mubr.f32.vlgmr.msra.gmra.mrb[32].mxu1 %v1704_v21  ;;  %8789 = vmatprep.subr.bf16.mxu0 %v8788_v41  ;;  %vm18177_vm3 = vnez %v18176_v55  ;;  %v12200_v21 = vsel %vm18178_vm15, 1.0, %v18047_v59  ;;  %vm12203_vm13 = vmand %vm18179_vm8, %vm889_vm11  ;;  %v1863_v3 = vld [vmem:[%s17695_s7 + $0x438] sm:$0xff]  ;;  %vm890_vm15 = vcmp.lt.f32.partialorder %v874_v31, 8.0  ;;  %v875_v55 = vadd.f32 1.0, %v18182_v27 }
 0x394   : > { %vm904_vm4 = vmand %vm12162_vm5, %vm18177_vm3  ;;  %2263 = vmatprep.mubr.f32.mxu1 %v1713_v16  ;;  %v1705_v16 = vmul.f32 %v12184_v20, %v11173_v10  ;;  %vm882_vm3 = vcmp.ge.f32.partialorder %v874_v31, 0.0  ;;  %v8796_v10 = vpack.c.bf16 %v1863_v3, %v1862_v26  ;;  %vm18184_vm11 = vnez %v18059_v35  ;;  %v1865_v26 = vld [vmem:[%s17695_s7 + $0x448] sm:$0xff] }
 0x395   : > { %2159 = vmatmul.mubr.f32.gmra.mrb[26].mxu0 %v11119_v36  ;;  %v12220_v60 = vsel %vm904_vm4, 1.0, %v18047_v59  ;;  %v12225_v36 = vsel %vm12203_vm13, 1.0, %v18047_v59  ;;  %vm905_vm8 = vmand %vm12203_vm13, %vm18184_vm11  ;;  %v876_v35 = vadd.f32 1.0, %v11371_v44  ;;  %v12250_v3 = vsel %vm11670_vm10, 1.0, %v18047_v59 }
 0x396   : > { %8791 = vmatpush3.bf16.msra.mxu0 %v8788_v41  ;;  %2163 = vmatprep.mubr.f32.mxu0 %v1698_v49  ;;  %18183 = vst [vmem:[#allocation25_spill] sm:$0xff] %v12225_v36  ;;  %v1699_v41 = vmul.f32 %v12200_v21, %v11270_v4  ;;  %vm12233_vm5 = vmand %vm882_vm3, %vm890_vm15  ;;  %v1864_v49 = vld [vmem:[%s17695_s7 + $0x440] sm:$0xff]  ;;  %vm883_vm4 = vcmp.ge.f32.partialorder %v875_v55, 0.0  ;;  %vm891_vm15 = vcmp.lt.f32.partialorder %v875_v55, 8.0  ;;  %v12255_v27 = vsel %vm905_vm8, 1.0, %v18047_v59 }
 0x397   : > { %2264 = vmatmul.mubr.f32.gmra.mrb[34].mxu1 %v1705_v16  ;;  %8793 = vmatprep.subr.bf16.mxu0 %v8792_v52  ;;  %18187 = vst [vmem:[#allocation34_spill] sm:$0xff] %v12250_v3  ;;  %v1715_v16 = vmul.f32 %v12225_v36, %v11208_v57  ;;  %vm18189_vm3 = vnez %v18081_v54  ;;  %vm12268_vm10 = vmand %vm883_vm4, %vm891_vm15  ;;  %v18192_v54 = vld [vmem:[#allocation16_spill] sm:$0xff]  ;;  %vm884_vm8 = vcmp.ge.f32.partialorder %v876_v35, 0.0  ;;  %vm892_vm4 = vcmp.lt.f32.partialorder %v876_v35, 8.0  ;;  %v2604_v35 = vld [vmem:[%s17697_s9 + $0x100] sm:$0xff] }
 0x398   : > { %2268 = vmatprep.mubr.f32.mxu1 %v1714_v46  ;;  %v1706_v46 = vmul.f32 %v12220_v60, %v11215_v6  ;;  %v8800_v6 = vpack.c.bf16 %v1865_v26, %v1864_v49  ;;  %vm906_vm11 = vmand %vm12233_vm5, %vm18189_vm3  ;;  %v1867_v49 = vld [vmem:[%s17695_s7 + $0x458] sm:$0xff]  ;;  %v877_v26 = vadd.f32 1.0, %v18192_v54  ;;  %vm18195_vm15 = vnez %v18097_v13 }
 0x399   : > { %2164 = vmatmul.mubr.f32.gmra.mrb[28].mxu0 %v11139_v0  ;;  %v12260_v0 = vsel %vm12233_vm5, 1.0, %v18047_v59  ;;  %vm907_vm3 = vmand %vm12268_vm10, %vm18195_vm15  ;;  %v12319_v13 = vsel %vm11894_vm14, 1.0, %v18047_v59 }
 0x39a   : > { %8795 = vmatpush3.bf16.msra.mxu0 %v8792_v52  ;;  %2168 = vmatprep.mubr.f32.mxu0 %v1699_v41  ;;  %18188 = vst [vmem:[#allocation63_spill] sm:$0xff] %v12260_v0  ;;  %v1700_v52 = vmul.f32 %v12250_v3, %v18142_v63  ;;  %v1866_v41 = vld [vmem:[%s17695_s7 + $0x450] sm:$0xff]  ;;  %v1716_v44 = vmul.f32 %v12260_v0, %v18139_v32  ;;  %v12290_v3 = vsel %vm906_vm11, 1.0, %v18047_v59  ;;  %18198 = vst [vmem:[#allocation66_spill] sm:$0xff] %v12319_v13 }
 0x39b   : > { %2269 = vmatmul.mubr.f32.gmra.mrb[36].mxu1 %v1706_v46  ;;  %8797 = vmatprep.subr.bf16.mxu0 %v8796_v10  ;;  %v1707_v46 = vmul.f32 %v12255_v27, %v11266_v9  ;;  %v8804_v9 = vpack.c.bf16 %v1867_v49, %v1866_v41  ;;  %v1869_v41 = vld [vmem:[%s17695_s7 + $0x468] sm:$0xff]  ;;  %vm885_vm11 = vcmp.ge.f32.partialorder %v877_v26, 0.0 }
 0x39c   : > { %2273 = vmatprep.mubr.f32.mxu1 %v1715_v16  ;;  %v12285_v16 = vsel %vm11778_vm1, 1.0, %v18047_v59  ;;  %vm12303_vm1 = vmand %vm884_vm8, %vm892_vm4  ;;  %vm893_vm8 = vcmp.lt.f32.partialorder %v877_v26, 8.0  ;;  %vm18200_vm4 = vnez %v18114_v18 }
 0x39d   : > { %2169 = vmatmul.mubr.f32.gmra.mrb[30].mxu0 %v11180_v33  ;;  %18193 = vst [vmem:[#allocation64_spill] sm:$0xff] %v12285_v16  ;;  %v12295_v33 = vsel %vm12268_vm10, 1.0, %v18047_v59  ;;  %vm908_vm15 = vmand %vm12303_vm1, %vm18200_vm4  ;;  %vm18213_vm4 = vnez %v18091_v28 }
 0x39e   : > { %8799 = vmatpush3.bf16.msra.mxu0 %v8796_v10  ;;  %2173 = vmatprep.mubr.f32.mxu0 %v1700_v52  ;;  %18194 = vst [vmem:[#allocation65_spill] sm:$0xff] %v12295_v33  ;;  %v1701_v10 = vmul.f32 %v12285_v16, %v18155_v34  ;;  %v1868_v52 = vld [vmem:[%s17695_s7 + $0x460] sm:$0xff]  ;;  %v1717_v49 = vmul.f32 %v12295_v33, %v18153_v17  ;;  %vm12337_vm14 = vmand %vm885_vm11, %vm893_vm8 }
 0x39f   : > { %2274 = vmatmul.mubr.f32.gmra.mrb[38].mxu1 %v1707_v46  ;;  %8801 = vmatprep.subr.bf16.mxu0 %v8800_v6  ;;  %v12324_v46 = vsel %vm907_vm3, 1.0, %v18047_v59  ;;  %vm942_vm3 = vmand %vm12046_vm9, %vm11316_vm7 }
 0x3a0   : > { %2278 = vmatprep.mubr.f32.mxu1 %v1716_v44  ;;  %v1708_v44 = vmul.f32 %v12290_v3, %v11310_v47  ;;  %v8808_v47 = vpack.c.bf16 %v1869_v41, %v1868_v52  ;;  %v1871_v52 = vld [vmem:[%s17695_s7 + $0x478] sm:$0xff]  ;;  %v1709_v18 = vmul.f32 %v12324_v46, %v18144_v24  ;;  %v12353_v41 = vsel %vm12014_vm12, 1.0, %v18047_v59  ;;  %vm909_vm11 = vmand %vm12337_vm14, %vm11942_vm0 }
 0x3a1   : > { %2174 = vmatmul.mubr.f32.gmra.mrb[32].mxu0 %v11208_v57  ;;  %v12329_v57 = vsel %vm12303_vm1, 1.0, %v18047_v59  ;;  %18203 = vst [vmem:[#allocation68_spill] sm:$0xff] %v12353_v41  ;;  %v1703_v11 = vmul.f32 %v12353_v41, %v11494_v50  ;;  %vm943_vm7 = vmand %vm12114_vm2, %vm11250_vm6  ;;  %vm18208_vm0 = vnez %v18055_v14  ;;  %vm18209_vm6 = vnez %v18172_v15  ;;  %v2572_v15 = vld [vmem:[%s17697_s9] sm:$0xff] }
 0x3a2   : > { %8803 = vmatpush3.bf16.msra.mxu0 %v8800_v6  ;;  %2178 = vmatprep.mubr.f32.mxu0 %v1701_v10  ;;  %18199 = vst [vmem:[#allocation67_spill] sm:$0xff] %v12329_v57  ;;  %v1702_v6 = vmul.f32 %v12319_v13, %v12097_v42  ;;  %v1870_v10 = vld [vmem:[%s17695_s7 + $0x470] sm:$0xff]  ;;  %vm944_vm9 = vmand %vm18209_vm6, %vm18208_vm0  ;;  %vm18212_vm2 = vnez %v18074_v53  ;;  %v2688_v41 = vld [vmem:[%s17697_s9 + $0x3a0] sm:$0xff] }
 0x3a3   : > { %2279 = vmatmul.mubr.f32.gmra.mrb[40].mxu1 %v1708_v44  ;;  %8805 = vmatprep.subr.bf16.mxu0 %v8804_v9  ;;  %v1718_v44 = vmul.f32 %v12329_v57, %v11383_v61  ;;  %v8812_v24 = vpack.c.bf16 %v1871_v52, %v1870_v10  ;;  %v12403_v22 = vsel %vm944_vm9, 1.0, %v18047_v59  ;;  %vm945_vm8 = vmand %vm12203_vm13, %vm18212_vm2  ;;  %vm18216_vm13 = vnez %v18109_v7  ;;  %v2590_v10 = vld [vmem:[%s17697_s9 + $0x90] sm:$0xff]  ;;  %v2591_v52 = vld [vmem:[%s17697_s9 + $0x98] sm:$0xff] }
 0x3a4   : > { %2283 = vmatprep.mubr.f32.mxu1 %v1717_v49  ;;  %v12358_v49 = vsel %vm908_vm15, 1.0, %v18047_v59  ;;  %18211 = vst [vmem:[#allocation74_spill] sm:$0xff] %v12403_v22  ;;  %vm946_vm15 = vmand %vm12233_vm5, %vm18213_vm4  ;;  %vm18217_vm5 = vnez %v18127_v8 }
 0x3a5   : > { %2179 = vmatmul.mubr.f32.gmra.mrb[34].mxu0 %v18139_v32  ;;  %18204 = vst [vmem:[#allocation69_spill] sm:$0xff] %v12358_v49  ;;  %v12367_v32 = vsel %vm12337_vm14, 1.0, %v18047_v59  ;;  %v1710_v29 = vmul.f32 %v12358_v49, %v11480_v19  ;;  %v12395_v19 = vsel %vm943_vm7, 1.0, %v18047_v59  ;;  %v12421_v53 = vsel %vm946_vm15, 1.0, %v18047_v59  ;;  %v18245_v49 = vld [vmem:[#allocation33_spill] sm:$0xff] }
 0x3a6   : > { %8807 = vmatpush3.bf16.msra.mxu0 %v8804_v9  ;;  %2183 = vmatprep.mubr.f32.mxu0 %v1702_v6  ;;  %18205 = vst [vmem:[#allocation70_spill] sm:$0xff] %v12367_v32  ;;  %v12383_v9 = vsel %vm942_vm3, 1.0, %v18047_v59  ;;  %v1719_v2 = vmul.f32 %v12367_v32, %v11113_v30  ;;  %v12388_v6 = vsel %vm909_vm11, 1.0, %v18047_v59  ;;  %18210 = vst [vmem:[#allocation73_spill] sm:$0xff] %v12395_v19 }
 0x3a7   : > { %2284 = vmatmul.mubr.f32.gmra.mrb[42].mxu1 %v1709_v18  ;;  %8809 = vmatprep.subr.bf16.mxu0 %v8808_v47  ;;  %18206 = vst [vmem:[#allocation71_spill] sm:$0xff] %v12383_v9  ;;  %18207 = vst [vmem:[#allocation72_spill] sm:$0xff] %v12388_v6  ;;  %v1711_v30 = vmul.f32 %v12388_v6, %v11486_v45  ;;  %v12418_v45 = vsel %vm945_vm8, 1.0, %v18047_v59  ;;  %v2622_v18 = vld [vmem:[%s17697_s9 + $0x190] sm:$0xff] }
 0x3a8   : > { %2288 = vmatprep.mubr.f32.mxu1 %v1718_v44  ;;  %18214 = vst [vmem:[#allocation75_spill] sm:$0xff] %v12418_v45  ;;  %18215 = vst [vmem:[#allocation76_spill] sm:$0xff] %v12421_v53  ;;  %v8820_v44 = vpack.c.bf16 %v2591_v52, %v2590_v10  ;;  %v2579_v10 = vld [vmem:[%s17697_s9 + $0x38] sm:$0xff]  ;;  %v2638_v6 = vld [vmem:[%s17697_s9 + $0x210] sm:$0xff] }
 0x3a9   : > { %2184 = vmatmul.mubr.f32.gmra.mrb[36].mxu0 %v18153_v17  ;;  %v1720_v17 = vmul.f32 %v12383_v9, %v11187_v39  ;;  %v1722_v39 = vmul.f32 %v12403_v22, %v11270_v4  ;;  %vm947_vm3 = vmand %vm12268_vm10, %vm18216_vm13  ;;  %v1724_v4 = vmul.f32 %v12421_v53, %v18155_v34  ;;  %v2627_v52 = vld [vmem:[%s17697_s9 + $0x1b8] sm:$0xff] }
 0x3aa   : > { %8811 = vmatpush3.bf16.msra.mxu0 %v8808_v47  ;;  %2188 = vmatprep.mubr.f32.mxu0 %v1703_v11  ;;  %vm948_vm11 = vmand %vm12303_vm1, %vm18217_vm5  ;;  %v12436_v14 = vsel %vm947_vm3, 1.0, %v18047_v59  ;;  %v2605_v47 = vld [vmem:[%s17697_s9 + $0x108] sm:$0xff]  ;;  %v2575_v11 = vld [vmem:[%s17697_s9 + $0x18] sm:$0xff]  ;;  %vm18221_vm1 = vcmp.lt.s32.totalorder %v10981_v40, 1 }
 0x3ab   : > { %2289 = vmatmul.mubr.f32.gmra.mrb[44].mxu1 %v1710_v29  ;;  %8813 = vmatprep.subr.bf16.mxu0 %v8812_v24  ;;  %18218 = vst [vmem:[#allocation77_spill] sm:$0xff] %v12436_v14  ;;  %v12439_v28 = vsel %vm948_vm11, 1.0, %v18047_v59  ;;  %vm949_vm10 = vmand %vm12337_vm14, %vm12014_vm12  ;;  %v1725_v7 = vmul.f32 %v12436_v14, %v12097_v42  ;;  %v2589_v42 = vld [vmem:[%s17697_s9 + $0x88] sm:$0xff]  ;;  %v8850_v26 = vpack.c.bf16 %v2605_v47, %v2604_v35  ;;  %v2623_v29 = vld [vmem:[%s17697_s9 + $0x198] sm:$0xff]  ;;  %vm18222_vm12 = vcmp.lt.s32.totalorder %v10981_v40, 7 }
 0x3ac   : > { %2293 = vmatprep.mubr.f32.mxu1 %v1719_v2  ;;  %18219 = vst [vmem:[#allocation78_spill] sm:$0xff] %v12439_v28  ;;  %v1726_v8 = vmul.f32 %v12439_v28, %v11494_v50  ;;  %v2620_v50 = vld [vmem:[%s17697_s9 + $0x180] sm:$0xff]  ;;  %v8816_v58 = vpack.c.bf16 %v2589_v42, %v2588_v38  ;;  %v2577_v38 = vld [vmem:[%s17697_s9 + $0x28] sm:$0xff]  ;;  %v2626_v35 = vld [vmem:[%s17697_s9 + $0x1b0] sm:$0xff] }
 0x3ad   : > { %2189 = vmatmul.mubr.f32.gmra.mrb[38].mxu0 %v11383_v61  ;;  %v1721_v61 = vmul.f32 %v12395_v19, %v11219_v23  ;;  %v1723_v23 = vmul.f32 %v12418_v45, %v18142_v63  ;;  %v12450_v63 = vsel %vm949_vm10, 1.0, %v18047_v59  ;;  %v8848_v55 = vpack.c.bf16 %v2621_v62, %v2620_v50  ;;  %v2625_v42 = vld [vmem:[%s17697_s9 + $0x1a8] sm:$0xff]  ;;  %vm18223_vm14 = vmmov %vm18221_vm1  ;;  %v2686_v45 = vld [vmem:[%s17697_s9 + $0x390] sm:$0xff] }
 0x3ae   : > { %8815 = vmatpush3.bf16.msra.mxu0 %v8812_v24  ;;  %8536 = vmatprep.mubr.f32.mxu0 %v1720_v17  ;;  %18220 = vst [vmem:[#allocation79_spill] sm:$0xff] %v12450_v63  ;;  %v1727_v34 = vmul.f32 %v12450_v63, %v11156_v12  ;;  %v2573_v12 = vld [vmem:[%s17697_s9 + $0x8] sm:$0xff]  ;;  %v2574_v24 = vld [vmem:[%s17697_s9 + $0x10] sm:$0xff]  ;;  %v8852_v17 = vpack.c.bf16 %v2623_v29, %v2622_v18  ;;  %vm18224_vm7 = vmmov %vm18222_vm12 }
 0x3af   : > { %2294 = vmatmul.mubr.f32.gmra.mrb[46].mxu1 %v1711_v30  ;;  %v8818_v31 = vpack.c.bf16 %v2573_v12, %v2572_v15  ;;  %8817 = vmatprep.subr.bf16.mxu1 %v8816_v58  ;;  %v8822_v2 = vpack.c.bf16 %v2575_v11, %v2574_v24  ;;  %v2606_v30 = vld [vmem:[%s17697_s9 + $0x110] sm:$0xff]  ;;  %v2608_v15 = vld [vmem:[%s17697_s9 + $0x120] sm:$0xff]  ;;  %v2609_v12 = vld [vmem:[%s17697_s9 + $0x128] sm:$0xff] }
 0x3b0   : > { %8849 = vmatprep.subr.bf16.mxu0 %v8848_v55  ;;  %v8858_v62 = vpack.c.bf16 %v2609_v12, %v2608_v15  ;;  %v2595_v55 = vld [vmem:[%s17697_s9 + $0xb8] sm:$0xff]  ;;  %v2610_v24 = vld [vmem:[%s17697_s9 + $0x130] sm:$0xff]  ;;  %vm18225_vm0 = vmmov %vm18221_vm1 }
 0x3b1   : > { %8537 = vmatmul.mubr.f32.vlgmr.msra.gmra.mrb[40].mxu0 %v1721_v61  ;;  %8819 = vmatpush3.bf16.msra.mxu1 %v8818_v31  ;;  %v2607_v61 = vld [vmem:[%s17697_s9 + $0x118] sm:$0xff]  ;;  %v2594_v31 = vld [vmem:[%s17697_s9 + $0xb0] sm:$0xff]  ;;  %vm18226_vm6 = vmmov %vm18224_vm7 }
 0x3b2   : > { %8539 = vmatprep.mubr.f32.mxu0 %v1722_v39  ;;  %8851 = vmatpush3.bf16.msra.mxu0 %v8850_v26  ;;  %v8854_v39 = vpack.c.bf16 %v2607_v61, %v2606_v30  ;;  %v8828_v47 = vpack.c.bf16 %v2595_v55, %v2594_v31  ;;  %v2578_v26 = vld [vmem:[%s17697_s9 + $0x30] sm:$0xff]  ;;  %v2611_v11 = vld [vmem:[%s17697_s9 + $0x138] sm:$0xff]  ;;  %v2628_v30 = vld [vmem:[%s17697_s9 + $0x1c0] sm:$0xff] }
 0x3b3   : > { %8821 = vmatprep.subr.bf16.mxu1 %v8820_v44  ;;  %8853 = vmatprep.subr.bf16.mxu0 %v8852_v17  ;;  %v8830_v18 = vpack.c.bf16 %v2579_v10, %v2578_v26  ;;  %v8860_v44 = vpack.c.bf16 %v2627_v52, %v2626_v35  ;;  %v8862_v29 = vpack.c.bf16 %v2611_v11, %v2610_v24  ;;  %v2597_v17 = vld [vmem:[%s17697_s9 + $0xc8] sm:$0xff]  ;;  %v2630_v15 = vld [vmem:[%s17697_s9 + $0x1d0] sm:$0xff]  ;;  %v2583_v31 = vld [vmem:[%s17697_s9 + $0x58] sm:$0xff] }
 0x3b4   : > { %v2631_v55 = vld [vmem:[%s17697_s9 + $0x1d8] sm:$0xff]  ;;  %v2614_v26 = vld [vmem:[%s17697_s9 + $0x150] sm:$0xff]  ;;  %v2600_v52 = vld [vmem:[%s17697_s9 + $0xe0] sm:$0xff] }
 0x3b5   : > { %8540 = vmatmul.mubr.f32.gmra.mrb[42].mxu0 %v1723_v23  ;;  %8823 = vmatpush3.bf16.msra.mxu1 %v8822_v2  ;;  %v2592_v23 = vld [vmem:[%s17697_s9 + $0xa0] sm:$0xff]  ;;  %v2615_v10 = vld [vmem:[%s17697_s9 + $0x158] sm:$0xff]  ;;  %v2585_v11 = vld [vmem:[%s17697_s9 + $0x68] sm:$0xff] }
 0x3b6   : > { %8542 = vmatprep.mubr.f32.mxu0 %v1724_v4  ;;  %v2593_v4 = vld [vmem:[%s17697_s9 + $0xa8] sm:$0xff]  ;;  %8855 = vmatpush3.bf16.msra.mxu0 %v8854_v39  ;;  %v2596_v2 = vld [vmem:[%s17697_s9 + $0xc0] sm:$0xff]  ;;  %vm18228_vm9 = vmmov %vm18225_vm0 }
 0x3b7   : > { %v8832_v61 = vpack.c.bf16 %v2597_v17, %v2596_v2  ;;  %v2580_v39 = vld [vmem:[%s17697_s9 + $0x40] sm:$0xff]  ;;  %vm18229_vm2 = vmmov %vm18226_vm6 }
 0x3b8   : > { %v2584_v24 = vld [vmem:[%s17697_s9 + $0x60] sm:$0xff]  ;;  %vm18230_vm8 = vmmov %vm18225_vm0 }
 0x3b9   : > { %8543 = vmatmul.mubr.f32.gmra.mrb[44].mxu0 %v1725_v7  ;;  %v2624_v7 = vld [vmem:[%s17697_s9 + $0x1a0] sm:$0xff]  ;;  %v8842_v2 = vpack.c.bf16 %v2585_v11, %v2584_v24  ;;  %vm18232_vm4 = vmmov %vm18229_vm2 }
 0x3ba   : > { %8545 = vmatprep.mubr.f32.mxu0 %v1726_v8  ;;  %v8824_v8 = vpack.c.bf16 %v2593_v4, %v2592_v23  ;;  %v8856_v58 = vpack.c.bf16 %v2625_v42, %v2624_v7  ;;  %v2581_v23 = vld [vmem:[%s17697_s9 + $0x48] sm:$0xff]  ;;  %v2632_v17 = vld [vmem:[%s17697_s9 + $0x1e0] sm:$0xff]  ;;  %vm18235_vm15 = vmmov %vm18225_vm0 }
 0x3bb   : > { %v2629_v4 = vld [vmem:[%s17697_s9 + $0x1c8] sm:$0xff]  ;;  %v8834_v7 = vpack.c.bf16 %v2581_v23, %v2580_v39  ;;  %v7312_v24 = vld [vmem:[%s17696_s8] ss:$0 sm:$0xff]  ;;  %vm18238_vm13 = vmmov %vm18225_vm0 }
 0x3bc   : > { %8825 = vmatprep.subr.bf16.mxu1 %v8824_v8  ;;  %8857 = vmatprep.subr.bf16.mxu0 %v8856_v58  ;;  %v8864_v8 = vpack.c.bf16 %v2629_v4, %v2628_v30  ;;  %v2599_v58 = vld [vmem:[%s17697_s9 + $0xd8] sm:$0xff]  ;;  %v2633_v30 = vld [vmem:[%s17697_s9 + $0x1e8] sm:$0xff]  ;;  %v2602_v4 = vld [vmem:[%s17697_s9 + $0xf0] sm:$0xff] }
 0x3bd   : > { %8546 = vmatmul.mubr.f32.gmra.mrb[46].mxu0 %v1727_v34  ;;  %v2576_v34 = vld [vmem:[%s17697_s9 + $0x20] sm:$0xff]  ;;  %v8872_v39 = vpack.c.bf16 %v2633_v30, %v2632_v17  ;;  %v2617_v23 = vld [vmem:[%s17697_s9 + $0x168] sm:$0xff]  ;;  %vm18240_vm3 = vmmov %vm18225_vm0 }
 0x3be   : > { %v8826_v50 = vpack.c.bf16 %v2577_v38, %v2576_v34  ;;  %8859 = vmatpush3.bf16.msra.mxu0 %v8858_v62  ;;  %v2612_v34 = vld [vmem:[%s17697_s9 + $0x140] sm:$0xff]  ;;  %v2613_v38 = vld [vmem:[%s17697_s9 + $0x148] sm:$0xff]  ;;  %v2582_v62 = vld [vmem:[%s17697_s9 + $0x50] sm:$0xff] }
 0x3bf   : > { %8861 = vmatprep.subr.bf16.mxu0 %v8860_v44  ;;  %v8866_v42 = vpack.c.bf16 %v2613_v38, %v2612_v34  ;;  %v8838_v35 = vpack.c.bf16 %v2583_v31, %v2582_v62  ;;  %v2601_v44 = vld [vmem:[%s17697_s9 + $0xe8] sm:$0xff]  ;;  %v2586_v38 = vld [vmem:[%s17697_s9 + $0x70] sm:$0xff]  ;;  %v18236_v19 = vld [vmem:[#allocation43_spill] sm:$0xff] }
 0x3c0   : > { %8827 = vmatpush3.bf16.msra.mxu1 %v8826_v50  ;;  %v2598_v50 = vld [vmem:[%s17697_s9 + $0xd0] sm:$0xff]  ;;  %vm18242_vm5 = vmmov %vm18229_vm2 }
 0x3c1   : > { %8829 = vmatprep.subr.bf16.mxu1 %v8828_v47  ;;  %v8836_v12 = vpack.c.bf16 %v2599_v58, %v2598_v50  ;;  %v8868_v47 = vpack.c.bf16 %v2631_v55, %v2630_v15  ;;  %v2634_v50 = vld [vmem:[%s17697_s9 + $0x1f0] sm:$0xff]  ;;  %v2635_v58 = vld [vmem:[%s17697_s9 + $0x1f8] sm:$0xff]  ;;  %v2652_v55 = vld [vmem:[%s17697_s9 + $0x280] sm:$0xff] }
 0x3c2   : > { %8863 = vmatpush3.bf16.msra.mxu0 %v8862_v29  ;;  %v8840_v29 = vpack.c.bf16 %v2601_v44, %v2600_v52  ;;  %v2618_v15 = vld [vmem:[%s17697_s9 + $0x170] sm:$0xff]  ;;  %v8876_v31 = vpack.c.bf16 %v2635_v58, %v2634_v50  ;;  %v2685_v52 = vld [vmem:[%s17697_s9 + $0x388] sm:$0xff]  ;;  %vm18243_vm11 = vmmov %vm18229_vm2 }
 0x3c3   : > { %8865 = vmatprep.subr.bf16.mxu0 %v8864_v8  ;;  %vm18269_vm10 = vmmov %vm18229_vm2 }
 0x3c4   : > { %8831 = vmatpush3.bf16.msra.mxu1 %v8830_v18  ;;  %v8870_v18 = vpack.c.bf16 %v2615_v10, %v2614_v26  ;;  %v2684_v10 = vld [vmem:[%s17697_s9 + $0x380] sm:$0xff] }
 0x3c5   : > { %8833 = vmatprep.subr.bf16.mxu1 %v8832_v61  ;;  %v2616_v61 = vld [vmem:[%s17697_s9 + $0x160] sm:$0xff] }
 0x3c6   : > { %8867 = vmatpush3.bf16.msra.mxu0 %v8866_v42  ;;  %v8874_v8 = vpack.c.bf16 %v2617_v23, %v2616_v61  ;;  %v2587_v42 = vld [vmem:[%s17697_s9 + $0x78] sm:$0xff] }
 0x3c7   : > { %8869 = vmatprep.subr.bf16.mxu0 %v8868_v47  ;;  %v8846_v62 = vpack.c.bf16 %v2587_v42, %v2586_v38 }
 0x3c8   : > { %8835 = vmatpush3.bf16.msra.mxu1 %v8834_v7  ;;  %v2603_v7 = vld [vmem:[%s17697_s9 + $0xf8] sm:$0xff] }
 0x3c9   : > { %8837 = vmatprep.subr.bf16.mxu1 %v8836_v12  ;;  %v8844_v34 = vpack.c.bf16 %v2603_v7, %v2602_v4  ;;  %v2619_v12 = vld [vmem:[%s17697_s9 + $0x178] sm:$0xff] }
 0x3ca   : > { %8871 = vmatpush3.bf16.msra.mxu0 %v8870_v18  ;;  %v8878_v47 = vpack.c.bf16 %v2619_v12, %v2618_v15  ;;  %v8912_v18 = vpack.c.bf16 %v2685_v52, %v2684_v10 }
 0x3cb   : > { %8873 = vmatprep.subr.bf16.mxu0 %v8872_v39 }
 0x3cc   : > { %8839 = vmatpush3.bf16.msra.mxu1 %v8838_v35  ;;  %v2653_v35 = vld [vmem:[%s17697_s9 + $0x288] sm:$0xff] }
 0x3cd   : > { %8841 = vmatprep.subr.bf16.mxu1 %v8840_v29  ;;  %v8880_v26 = vpack.c.bf16 %v2653_v35, %v2652_v55 }
 0x3ce   : > { %8875 = vmatpush3.bf16.msra.mxu0 %v8874_v8 }
 0x3cf   : > { %8877 = vmatprep.subr.bf16.mxu0 %v8876_v31 }
 0x3d0   : > { %8843 = vmatpush3.bf16.msra.mxu1 %v8842_v2 }
 0x3d1   : > { %8845 = vmatprep.subr.bf16.mxu1 %v8844_v34 }
 0x3d2   : > { %8879 = vmatpush3.bf16.msra.mxu0 %v8878_v47 }
 0x3d3   : > { %8913 = vmatprep.subr.bf16.mxu0 %v8912_v18 }
 0x3d4   : > { %8847 = vmatpush3.bf16.msra.mxu1 %v8846_v62 }
 0x3d5   : > { %8881 = vmatprep.subr.bf16.mxu1 %v8880_v26 }
 0x43e   : > { %v7436_v44 = vpop.f32.mrb[8].mxu0 }
 0x43f   : > { %v7437_v11 = vpop.f32.mrb[9].mxu0 }
 0x440   : > { %v7438_v29 = vadd.f32 %v7437_v11, %v7436_v44  ;;  %v7492_v2 = vpop.f32.mrb[16].mxu1 }
 0x441   : > { %v7493_v17 = vpop.f32.mrb[17].mxu1 }
 0x442   : > { %v1946_v30 = vadd.f32 %v7438_v29, %v7312_v24  ;;  %v7494_v61 = vadd.f32 %v7493_v17, %v7492_v2 }
 0x443   : > { %v7439_v39 = vpop.f32.mrb[10].mxu0 }
 0x444   : > { %v7440_v23 = vpop.f32.mrb[11].mxu0  ;;  %v2051_v4 = vadd.f32 %v7494_v61, %v1946_v30 }
 0x445   : > { %v7441_v7 = vadd.f32 %v7440_v23, %v7439_v39  ;;  %v7495_v8 = vpop.f32.mrb[18].mxu1 }
 0x446   : > { %v7496_v34 = vpop.f32.mrb[19].mxu1 }
 0x447   : > { %v1951_v38 = vadd.f32 %v7441_v7, %v7312_v24  ;;  %v7497_v42 = vadd.f32 %v7496_v34, %v7495_v8  ;;  %v7442_v50 = vpop.f32.mrb[12].mxu0 }
 0x448   : > { %v7443_v58 = vpop.f32.mrb[13].mxu0 }
 0x449   : > { %v2056_v15 = vadd.f32 %v7497_v42, %v1951_v38  ;;  %v7444_v12 = vadd.f32 %v7443_v58, %v7442_v50 }
 0x44b   : > { %v7498_v62 = vpop.f32.mrb[20].mxu1  ;;  %v1956_v55 = vadd.f32 %v7444_v12, %v7312_v24 }
 0x44c   : > { %v7499_v31 = vpop.f32.mrb[21].mxu1  ;;  %v7445_v47 = vpop.f32.mrb[14].mxu0 }
 0x44d   : > { %v7500_v35 = vadd.f32 %v7499_v31, %v7498_v62  ;;  %v7446_v26 = vpop.f32.mrb[15].mxu0 }
 0x44e   : > { %v7447_v52 = vadd.f32 %v7446_v26, %v7445_v47 }
 0x44f   : > { %v2061_v10 = vadd.f32 %v7500_v35, %v1956_v55 }
 0x450   : > { %v7501_v18 = vpop.f32.mrb[22].mxu1  ;;  %v1961_v11 = vadd.f32 %v7447_v52, %v7312_v24 }
 0x451   : > { %v7502_v44 = vpop.f32.mrb[23].mxu1 }
 0x452   : > { %v7503_v29 = vadd.f32 %v7502_v44, %v7501_v18  ;;  %v7448_v2 = vpop.f32.mrb[16].mxu0 }
 0x453   : > { %v7449_v17 = vpop.f32.mrb[17].mxu0 }
 0x454   : > { %v2066_v30 = vadd.f32 %v7503_v29, %v1961_v11  ;;  %v7450_v61 = vadd.f32 %v7449_v17, %v7448_v2  ;;  %v7504_v39 = vpop.f32.mrb[24].mxu1 }
 0x455   : > { %v7505_v23 = vpop.f32.mrb[25].mxu1 }
 0x456   : > { %v1966_v7 = vadd.f32 %v7450_v61, %v7312_v24  ;;  %v7506_v8 = vadd.f32 %v7505_v23, %v7504_v39 }
 0x457   : > { %v7451_v34 = vpop.f32.mrb[18].mxu0 }
 0x458   : > { %v7452_v38 = vpop.f32.mrb[19].mxu0  ;;  %v2071_v42 = vadd.f32 %v7506_v8, %v1966_v7 }
 0x459   : > { %v7453_v50 = vadd.f32 %v7452_v38, %v7451_v34 }
 0x45a   : > { %v7507_v58 = vpop.f32.mrb[26].mxu1 }
 0x45b   : > { %v7508_v12 = vpop.f32.mrb[27].mxu1  ;;  %v1971_v62 = vadd.f32 %v7453_v50, %v7312_v24 }
 0x45c   : > { %v7509_v31 = vadd.f32 %v7508_v12, %v7507_v58  ;;  %v7454_v55 = vpop.f32.mrb[20].mxu0 }
 0x45d   : > { %v7455_v35 = vpop.f32.mrb[21].mxu0 }
 0x45e   : > { %v2076_v47 = vadd.f32 %v7509_v31, %v1971_v62  ;;  %v7456_v26 = vadd.f32 %v7455_v35, %v7454_v55  ;;  %v7510_v52 = vpop.f32.mrb[28].mxu1 }
 0x45f   : > { %v7511_v18 = vpop.f32.mrb[29].mxu1 }
 0x460   : > { %v1976_v44 = vadd.f32 %v7456_v26, %v7312_v24  ;;  %v7512_v11 = vadd.f32 %v7511_v18, %v7510_v52  ;;  %v7457_v29 = vpop.f32.mrb[22].mxu0 }
 0x461   : > { %v7458_v2 = vpop.f32.mrb[23].mxu0 }
 0x462   : > { %v2081_v17 = vadd.f32 %v7512_v11, %v1976_v44  ;;  %v7459_v61 = vadd.f32 %v7458_v2, %v7457_v29  ;;  %v7513_v39 = vpop.f32.mrb[30].mxu1 }
 0x463   : > { %v7514_v23 = vpop.f32.mrb[31].mxu1 }
 0x464   : > { %v1981_v7 = vadd.f32 %v7459_v61, %v7312_v24  ;;  %v7515_v8 = vadd.f32 %v7514_v23, %v7513_v39  ;;  %v7548_v34 = vpop.f32.mrb[24].mxu0 }
 0x465   : > { %v7549_v38 = vpop.f32.mrb[25].mxu0 }
 0x466   : > { %v2086_v50 = vadd.f32 %v7515_v8, %v1981_v7  ;;  %v7550_v58 = vadd.f32 %v7549_v38, %v7548_v34  ;;  %v7604_v12 = vpop.f32.mrb[32].mxu1 }
 0x467   : > { %v7605_v54 = vpop.f32.mrb[33].mxu1 }
 0x468   : > { %v2156_v62 = vadd.f32 %v7550_v58, %v2051_v4  ;;  %v7606_v31 = vadd.f32 %v7605_v54, %v7604_v12  ;;  %v7551_v55 = vpop.f32.mrb[26].mxu0 }
 0x469   : > { %v7552_v35 = vpop.f32.mrb[27].mxu0 }
 0x46a   : > { %v7553_v26 = vadd.f32 %v7552_v35, %v7551_v55  ;;  %v7607_v52 = vpop.f32.mrb[34].mxu1  ;;  %v2261_v18 = vadd.f32 %v7606_v31, %v2156_v62 }
 0x46b   : > { %v7608_v59 = vpop.f32.mrb[35].mxu1 }
 0x46c   : > { %v2161_v44 = vadd.f32 %v7553_v26, %v2056_v15  ;;  %v7609_v11 = vadd.f32 %v7608_v59, %v7607_v52  ;;  %v7554_v29 = vpop.f32.mrb[28].mxu0 }
 0x46d   : > { %v7555_v2 = vpop.f32.mrb[29].mxu0 }
 0x46e   : > { %v7556_v24 = vadd.f32 %v7555_v2, %v7554_v29  ;;  %v7610_v61 = vpop.f32.mrb[36].mxu1  ;;  %v2266_v39 = vadd.f32 %v7609_v11, %v2161_v44 }
 0x46f   : > { %v7611_v23 = vpop.f32.mrb[37].mxu1 }
 0x470   : > { %v2166_v7 = vadd.f32 %v7556_v24, %v2061_v10  ;;  %v7612_v8 = vadd.f32 %v7611_v23, %v7610_v61  ;;  %v7557_v34 = vpop.f32.mrb[30].mxu0 }
 0x471   : > { %v7558_v38 = vpop.f32.mrb[31].mxu0 }
 0x472   : > { %v7559_v4 = vadd.f32 %v7558_v38, %v7557_v34  ;;  %v7613_v54 = vpop.f32.mrb[38].mxu1  ;;  %v2271_v58 = vadd.f32 %v7612_v8, %v2166_v7 }
 0x473   : > { %v7614_v12 = vpop.f32.mrb[39].mxu1 }
 0x474   : > { %v2171_v55 = vadd.f32 %v7559_v4, %v2066_v30  ;;  %v7615_v35 = vadd.f32 %v7614_v12, %v7613_v54  ;;  %v7560_v62 = vpop.f32.mrb[32].mxu0 }
 0x475   : > { %v7561_v31 = vpop.f32.mrb[33].mxu0 }
 0x476   : > { %v7562_v15 = vadd.f32 %v7561_v31, %v7560_v62  ;;  %v7616_v59 = vpop.f32.mrb[40].mxu1  ;;  %v2276_v26 = vadd.f32 %v7615_v35, %v2171_v55 }
 0x477   : > { %v7617_v52 = vpop.f32.mrb[41].mxu1 }
 0x478   : > { %v2176_v29 = vadd.f32 %v7562_v15, %v2071_v42  ;;  %v7618_v2 = vadd.f32 %v7617_v52, %v7616_v59  ;;  %v7563_v44 = vpop.f32.mrb[34].mxu0 }
 0x479   : > { %v7564_v11 = vpop.f32.mrb[35].mxu0 }
 0x47a   : > { %v7565_v10 = vadd.f32 %v7564_v11, %v7563_v44  ;;  %v7619_v24 = vpop.f32.mrb[42].mxu1  ;;  %v2281_v61 = vadd.f32 %v7618_v2, %v2176_v29 }
 0x47b   : > { %v7620_v23 = vpop.f32.mrb[43].mxu1 }
 0x47c   : > { %v2181_v34 = vadd.f32 %v7565_v10, %v2076_v47  ;;  %v7621_v38 = vadd.f32 %v7620_v23, %v7619_v24  ;;  %v7566_v7 = vpop.f32.mrb[36].mxu0 }
 0x47d   : > { %v7567_v8 = vpop.f32.mrb[37].mxu0 }
 0x47e   : > { %v7568_v30 = vadd.f32 %v7567_v8, %v7566_v7  ;;  %v7622_v4 = vpop.f32.mrb[44].mxu1  ;;  %v2286_v54 = vadd.f32 %v7621_v38, %v2181_v34 }
 0x47f   : > { %v7623_v12 = vpop.f32.mrb[45].mxu1 }
 0x480   : > { %v2186_v62 = vadd.f32 %v7568_v30, %v2081_v17  ;;  %v7624_v31 = vadd.f32 %v7623_v12, %v7622_v4  ;;  %v7569_v55 = vpop.f32.mrb[38].mxu0 }
 0x481   : > { %v7570_v35 = vpop.f32.mrb[39].mxu0 }
 0x482   : > { %v7571_v42 = vadd.f32 %v7570_v35, %v7569_v55  ;;  %v7625_v15 = vpop.f32.mrb[46].mxu1  ;;  %v2291_v59 = vadd.f32 %v7624_v31, %v2186_v62 }
 0x483   : > { %v7626_v52 = vpop.f32.mrb[47].mxu1 }
 0x484   : > { %v2191_v44 = vadd.f32 %v7571_v42, %v2086_v50  ;;  %v7627_v11 = vadd.f32 %v7626_v52, %v7625_v15  ;;  %v8538_v29 = vpop.f32.mrb[40].mxu0 }
 0x485   : > { %v2371_v2 = vadd.f32 %v8538_v29, %v2266_v39  ;;  %v2365_v47 = vpop.f32.mrb[41].mxu0 }
 0x486   : > { %v12661_v10 = vadd.f32 %v2365_v47, %v2261_v18  ;;  %v2296_v24 = vadd.f32 %v7627_v11, %v2191_v44 }
 0x487   : > { %v2413_v23 = vmul.f32 0.044715, %v2371_v2 }
 0x488   : > { %v2412_v34 = vmul.f32 0.044715, %v12661_v10  ;;  %v8541_v38 = vpop.f32.mrb[42].mxu0 }
 0x489   : > { %v2421_v17 = vmul.f32 %v2413_v23, %v2371_v2  ;;  %v12664_v7 = vadd.f32 %v8541_v38, %v2276_v26  ;;  %v2375_v8 = vpop.f32.mrb[43].mxu0 }
 0x48a   : > { %v2420_v30 = vmul.f32 %v2412_v34, %v12661_v10  ;;  %v12667_v4 = vadd.f32 %v2375_v8, %v2271_v58 }
 0x48b   : > { %v2429_v50 = vmul.f32 %v2421_v17, %v2371_v2  ;;  %v2415_v12 = vmul.f32 0.044715, %v12664_v7 }
 0x48c   : > { %v2428_v39 = vmul.f32 %v2420_v30, %v12661_v10  ;;  %v2414_v18 = vmul.f32 0.044715, %v12667_v4  ;;  %v8544_v62 = vpop.f32.mrb[44].mxu0 }
 0x48d   : > { %v2437_v31 = vadd.f32 %v2429_v50, %v2371_v2  ;;  %v2423_v55 = vmul.f32 %v2415_v12, %v12664_v7  ;;  %v12673_v35 = vadd.f32 %v8544_v62, %v2286_v54  ;;  %v2385_v26 = vpop.f32.mrb[45].mxu0 }
 0x48e   : > { %v2436_v42 = vadd.f32 %v2428_v39, %v12661_v10  ;;  %v2422_v15 = vmul.f32 %v2414_v18, %v12667_v4  ;;  %v12677_v58 = vadd.f32 %v2385_v26, %v2281_v61 }
 0x48f   : > { %v2445_v52 = vmul.f32 0.7978846, %v2437_v31  ;;  %v2431_v44 = vmul.f32 %v2423_v55, %v12664_v7  ;;  %v2417_v11 = vmul.f32 0.044715, %v12673_v35 }
 0x490   : > { %v2444_v29 = vmul.f32 0.7978846, %v2436_v42  ;;  %v2430_v47 = vmul.f32 %v2422_v15, %v12667_v4  ;;  %v2416_v23 = vmul.f32 0.044715, %v12677_v58  ;;  %v8547_v34 = vpop.f32.mrb[46].mxu0 }
 0x491   : > { %10170 = vtanh.f32 %v2445_v52  ;;  %v2439_v54 = vadd.f32 %v2431_v44, %v12664_v7  ;;  %v2425_v38 = vmul.f32 %v2417_v11, %v12673_v35  ;;  %v12685_v17 = vadd.f32 %v8547_v34, %v2296_v24  ;;  %v2395_v61 = vpop.f32.mrb[47].mxu0 }
 0x492   : > { %10172 = vtanh.f32 %v2444_v29  ;;  %v2438_v8 = vadd.f32 %v2430_v47, %v12667_v4  ;;  %v2424_v30 = vmul.f32 %v2416_v23, %v12677_v58  ;;  %v12689_v50 = vadd.f32 %v2395_v61, %v2291_v59 }
 0x493   : > { %v2447_v12 = vmul.f32 0.7978846, %v2439_v54  ;;  %v2433_v39 = vmul.f32 %v2425_v38, %v12673_v35  ;;  %v2419_v18 = vmul.f32 0.044715, %v12685_v17  ;;  %v2405_v38 = vmul.f32 0.5, %v2371_v2 }
 0x494   : > { %v2446_v62 = vmul.f32 0.7978846, %v2438_v8  ;;  %v2432_v31 = vmul.f32 %v2424_v30, %v12677_v58  ;;  %v2418_v55 = vmul.f32 0.044715, %v12689_v50  ;;  %v2404_v30 = vmul.f32 0.5, %v12661_v10 }
 0x495   : > { %10174 = vtanh.f32 %v2447_v12  ;;  %v2441_v24 = vadd.f32 %v2433_v39, %v12673_v35  ;;  %v2427_v26 = vmul.f32 %v2419_v18, %v12685_v17 }
 0x496   : > { %10176 = vtanh.f32 %v2446_v62  ;;  %v2440_v42 = vadd.f32 %v2432_v31, %v12677_v58  ;;  %v2426_v59 = vmul.f32 %v2418_v55, %v12689_v50  ;;  %v2407_v55 = vmul.f32 0.5, %v12664_v7 }
 0x497   : > { %v2449_v15 = vmul.f32 0.7978846, %v2441_v24  ;;  %v2435_v52 = vmul.f32 %v2427_v26, %v12685_v17 }
 0x498   : > { %v2448_v44 = vmul.f32 0.7978846, %v2440_v42  ;;  %v2434_v11 = vmul.f32 %v2426_v59, %v12689_v50  ;;  %v2406_v42 = vmul.f32 0.5, %v12667_v4  ;;  %v2408_v4 = vmul.f32 0.5, %v12677_v58 }
 0x499   : > { %10178 = vtanh.f32 %v2449_v15  ;;  %v2443_v29 = vadd.f32 %v2435_v52, %v12685_v17 }
 0x49a   : > { %10180 = vtanh.f32 %v2448_v44  ;;  %v2442_v47 = vadd.f32 %v2434_v11, %v12689_v50 }
 0x49b   : > { %v10171_v23 = vpop.eup %10170  ;;  %v2451_v34 = vmul.f32 0.7978846, %v2443_v29 }
 0x49c   : > { %v10173_v54 = vpop.eup %10172  ;;  %v2461_v61 = vadd.f32 1.0, %v10171_v23  ;;  %v2450_v8 = vmul.f32 0.7978846, %v2442_v47 }
 0x49d   : > { %v2460_v12 = vadd.f32 1.0, %v10173_v54  ;;  %10182 = vtanh.f32 %v2451_v34 }
 0x49e   : > { %v12704_v39 = vmul.f32 %v2461_v61, %v2405_v38  ;;  %10184 = vtanh.f32 %v2450_v8 }
 0x49f   : > { %v10175_v18 = vpop.eup %10174  ;;  %v12706_v62 = vmul.f32 %v2460_v12, %v2404_v30  ;;  %v2409_v12 = vmul.f32 0.5, %v12673_v35  ;;  %v2410_v35 = vmul.f32 0.5, %v12689_v50 }
 0x4a0   : > { %v10177_v31 = vpop.eup %10176  ;;  %v2463_v24 = vadd.f32 1.0, %v10175_v18  ;;  %v2477_v26 = vrot.slane %v12704_v39, 7  ;;  %v2509_v2 = vrot.slane %v12704_v39, 1 }
 0x4a1   : > { %v2462_v59 = vadd.f32 1.0, %v10177_v31  ;;  %v2476_v10 = vrot.slane %v12706_v62, 7  ;;  %v2508_v15 = vrot.slane %v12706_v62, 1 }
 0x4a2   : > { %v12714_v52 = vmul.f32 %v2463_v24, %v2407_v55  ;;  %v2411_v24 = vmul.f32 0.5, %v12685_v17  ;;  %v2636_v17 = vld [vmem:[%s17697_s9 + $0x200] sm:$0xff] }
 0x4a3   : > { %v10179_v44 = vpop.eup %10178  ;;  %v12716_v11 = vmul.f32 %v2462_v59, %v2406_v42  ;;  %v12720_v7 = vsel %vm18221_vm1, %v2476_v10, %v2477_v26  ;;  %v12724_v29 = vsel %vm18222_vm12, %v2508_v15, %v2509_v2  ;;  %vm18276_vm1 = vmmov %vm18225_vm0 }
 0x4a4   : > { %v10181_v47 = vpop.eup %10180  ;;  %v2465_v23 = vadd.f32 1.0, %v10179_v44  ;;  %v2479_v61 = vrot.slane %v12714_v52, 7  ;;  %v2511_v8 = vrot.slane %v12714_v52, 1  ;;  %v2525_v57 = vmul.f32 %v18245_v49, %v12724_v29  ;;  %v2672_v49 = vld [vmem:[%s17697_s9 + $0x320] sm:$0xff] }
 0x4a5   : > { %v2464_v34 = vadd.f32 1.0, %v10181_v47  ;;  %v2478_v54 = vrot.slane %v12716_v11, 7  ;;  %v2510_v38 = vrot.slane %v12716_v11, 1 }
 0x4a6   : > { %v12747_v44 = vmul.f32 %v2465_v23, %v2409_v12  ;;  %v2637_v23 = vld [vmem:[%s17697_s9 + $0x208] sm:$0xff]  ;;  %v2655_v12 = vld [vmem:[%s17697_s9 + $0x298] sm:$0xff] }
 0x4a7   : > { %v10183_v30 = vpop.eup %10182  ;;  %v12732_v18 = vmul.f32 %v2464_v34, %v2408_v4  ;;  %v12736_v31 = vsel %vm18223_vm14, %v2477_v26, %v2478_v54  ;;  %v12740_v58 = vsel %vm18224_vm7, %v2509_v2, %v2510_v38  ;;  %v12745_v59 = vsel %vm18225_vm0, %v2478_v54, %v2479_v61  ;;  %v18227_v54 = vld [vmem:[#allocation35_spill] sm:$0xff] }
 0x4a8   : > { %v10185_v55 = vpop.eup %10184  ;;  %v2467_v42 = vadd.f32 1.0, %v10183_v30  ;;  %v12752_v26 = vsel %vm18226_vm6, %v2510_v38, %v2511_v8  ;;  %v2481_v63 = vrot.slane %v12747_v44, 7  ;;  %v8882_v53 = vpack.c.bf16 %v2637_v23, %v2636_v17  ;;  %v18237_v17 = vld [vmem:[#allocation40_spill] sm:$0xff]  ;;  %vm18294_vm6 = vmmov %vm18276_vm1 }
 0x4a9   : > { %v2466_v47 = vadd.f32 1.0, %v10185_v55  ;;  %v2480_v2 = vrot.slane %v12732_v18, 7  ;;  %v2512_v50 = vrot.slane %v12732_v18, 1  ;;  %v2668_v55 = vld [vmem:[%s17697_s9 + $0x300] sm:$0xff]  ;;  %v2513_v32 = vrot.slane %v12747_v44, 1 }
 0x4aa   : > { %v12754_v4 = vmul.f32 %v2467_v42, %v2411_v24  ;;  %v2669_v24 = vld [vmem:[%s17697_s9 + $0x308] sm:$0xff]  ;;  %vm3328_vm0 = vcmp.lt.s32.totalorder %v10981_v40, 2 }
 0x4ab   : > { %v12757_v34 = vmul.f32 %v2466_v47, %v2410_v35  ;;  %v12778_v42 = vsel %vm18228_vm9, %v2479_v61, %v2480_v2  ;;  %v2654_v47 = vld [vmem:[%s17697_s9 + $0x290] sm:$0xff] }
 0x4ac   : > { %v2500_v38 = vmul.f32 %v18227_v54, %v12754_v4  ;;  %v2483_v30 = vrot.slane %v12754_v4, 7  ;;  %v12789_v54 = vsel %vm18229_vm2, %v2511_v8, %v2512_v50  ;;  %v18231_v28 = vrot.slane %v12754_v4, 1  ;;  %v2687_v8 = vld [vmem:[%s17697_s9 + $0x398] sm:$0xff] }
 0x4ad   : > { %v2482_v35 = vrot.slane %v12757_v34, 7  ;;  %v8884_v9 = vpack.c.bf16 %v2655_v12, %v2654_v47  ;;  %v2670_v12 = vld [vmem:[%s17697_s9 + $0x310] sm:$0xff]  ;;  %v2671_v47 = vld [vmem:[%s17697_s9 + $0x318] sm:$0xff] }
 0x4ae   : > { %2787 = vmatprep.mubr.f32.mxu1 %v2500_v38  ;;  %v12794_v61 = vsel %vm18230_vm8, %v2483_v30, %v2476_v10  ;;  %v12800_v14 = vsel %vm18232_vm4, %v18231_v28, %v2508_v15  ;;  %v18234_v38 = vld [vmem:[#allocation41_spill] sm:$0xff]  ;;  %v8914_v15 = vpack.c.bf16 %v2669_v24, %v2668_v55  ;;  %v8916_v24 = vpack.c.bf16 %v2687_v8, %v2686_v45  ;;  %v18241_v45 = vld [vmem:[#allocation23_spill] sm:$0xff]  ;;  %vm18298_vm4 = vmmov %vm18276_vm1 }
 0x4af   : > { %18233 = vst [vmem:[#allocation80_spill] sm:$0xff] %v12800_v14  ;;  %v2532_v22 = vmul.f32 %v18234_v38, %v12794_v61  ;;  %v12812_v10 = vsel %vm18235_vm15, %v2482_v35, %v2483_v30  ;;  %v2524_v28 = vmul.f32 %v18236_v19, %v12800_v14  ;;  %v2639_v38 = vld [vmem:[%s17697_s9 + $0x218] sm:$0xff]  ;;  %v12826_v30 = vsel %vm18238_vm13, %v2480_v2, %v2481_v63  ;;  %v18239_v19 = vld [vmem:[#allocation17_spill] sm:$0xff]  ;;  %v2656_v2 = vld [vmem:[%s17697_s9 + $0x2a0] sm:$0xff] }
 0x4b0   : > { %v2492_v23 = vmul.f32 %v18237_v17, %v12812_v10  ;;  %v2501_v55 = vmul.f32 %v18239_v19, %v12706_v62  ;;  %v12842_v17 = vsel %vm18240_vm3, %v2481_v63, %v2482_v35  ;;  %v2533_v8 = vmul.f32 %v18241_v45, %v12720_v7  ;;  %v2657_v19 = vld [vmem:[%s17697_s9 + $0x2a8] sm:$0xff]  ;;  %v18244_v45 = vld [vmem:[#allocation46_spill] sm:$0xff] }
 0x4b1   : > { %2892 = vmatprep.mubr.f32.mxu0 %v2532_v22  ;;  %v17855_v22 = vrot.slane %v12757_v34, 1  ;;  %v2689_v63 = vld [vmem:[%s17697_s9 + $0x3a8] sm:$0xff]  ;;  %v12858_v35 = vsel %vm18242_vm5, %v2512_v50, %v2513_v32  ;;  %v2493_v14 = vmul.f32 %v18244_v45, %v12794_v61  ;;  %v8918_v13 = vpack.c.bf16 %v2671_v47, %v2670_v12  ;;  %v2658_v12 = vld [vmem:[%s17697_s9 + $0x2b0] sm:$0xff]  ;;  %v2691_v47 = vld [vmem:[%s17697_s9 + $0x3b8] sm:$0xff] }
 0x4b2   : > { %2788 = vmatmul.mubr.f32.vlgmr.msra.gmra.mrb[48].mxu1 %v2492_v23  ;;  %2893 = vmatmul.mubr.f32.vlgmr.msra.gmra.mrb[48].mxu0 %v2524_v28  ;;  %v8886_v28 = vpack.c.bf16 %v2639_v38, %v2638_v6  ;;  %v2641_v6 = vld [vmem:[%s17697_s9 + $0x228] sm:$0xff]  ;;  %v8888_v38 = vpack.c.bf16 %v2657_v19, %v2656_v2  ;;  %v2690_v19 = vld [vmem:[%s17697_s9 + $0x3b0] sm:$0xff]  ;;  %vm18300_vm5 = vmmov %vm18276_vm1 }
 0x4b3   : > { %8883 = vmatpush3.bf16.msra.mxu1 %v8882_v53  ;;  %2792 = vmatprep.mubr.f32.mxu1 %v2501_v55  ;;  %v12864_v23 = vsel %vm18243_vm11, %v2513_v32, %v17855_v22  ;;  %v2640_v53 = vld [vmem:[%s17697_s9 + $0x220] sm:$0xff]  ;;  %v18246_v32 = vld [vmem:[#allocation29_spill] sm:$0xff]  ;;  %v2673_v55 = vld [vmem:[%s17697_s9 + $0x328] sm:$0xff] }
 0x4b4   : > { %2897 = vmatprep.mubr.f32.mxu0 %v2533_v8  ;;  %8915 = vmatpush3.bf16.msra.mxu0 %v8914_v15  ;;  %v2502_v50 = vmul.f32 %v18246_v32, %v12704_v39  ;;  %v8920_v15 = vpack.c.bf16 %v2689_v63, %v2688_v41  ;;  %v2659_v41 = vld [vmem:[%s17697_s9 + $0x2b8] sm:$0xff]  ;;  %v8890_v2 = vpack.c.bf16 %v2641_v6, %v2640_v53  ;;  %v18249_v45 = vld [vmem:[#allocation49_spill] sm:$0xff] }
 0x4b5   : > { %8885 = vmatprep.subr.bf16.mxu1 %v8884_v9  ;;  %8917 = vmatprep.subr.bf16.mxu0 %v8916_v24  ;;  %v18247_v9 = vld [vmem:[#allocation42_spill] sm:$0xff]  ;;  %v2526_v8 = vmul.f32 %v18249_v45, %v12740_v58  ;;  %v8922_v63 = vpack.c.bf16 %v2673_v55, %v2672_v49  ;;  %v2642_v22 = vld [vmem:[%s17697_s9 + $0x230] sm:$0xff]  ;;  %v8892_v53 = vpack.c.bf16 %v2659_v41, %v2658_v12  ;;  %v2660_v55 = vld [vmem:[%s17697_s9 + $0x2c0] sm:$0xff] }
 0x4b6   : > { %2793 = vmatmul.mubr.f32.gmra.mrb[50].mxu1 %v2493_v14  ;;  %2898 = vmatmul.mubr.f32.gmra.mrb[50].mxu0 %v2525_v57  ;;  %v2534_v24 = vmul.f32 %v18247_v9, %v12736_v31  ;;  %v18248_v57 = vld [vmem:[#allocation44_spill] sm:$0xff]  ;;  %v2643_v32 = vld [vmem:[%s17697_s9 + $0x238] sm:$0xff]  ;;  %v8924_v6 = vpack.c.bf16 %v2691_v47, %v2690_v19  ;;  %v18252_v47 = vld [vmem:[#allocation51_spill] sm:$0xff] }
 0x4b7   : > { %8887 = vmatpush3.bf16.msra.mxu1 %v8886_v28  ;;  %2797 = vmatprep.mubr.f32.mxu1 %v2502_v50  ;;  %v2494_v14 = vmul.f32 %v18248_v57, %v12720_v7  ;;  %v18250_v28 = vld [vmem:[#allocation48_spill] sm:$0xff]  ;;  %v2674_v50 = vld [vmem:[%s17697_s9 + $0x330] sm:$0xff]  ;;  %v2675_v49 = vld [vmem:[%s17697_s9 + $0x338] sm:$0xff]  ;;  %v8894_v19 = vpack.c.bf16 %v2643_v32, %v2642_v22  ;;  %v2495_v57 = vmul.f32 %v18252_v47, %v12736_v31 }
 0x4b8   : > { %2902 = vmatprep.mubr.f32.mxu0 %v2534_v24  ;;  %8919 = vmatpush3.bf16.msra.mxu0 %v8918_v13  ;;  %v2503_v13 = vmul.f32 %v18250_v28, %v12716_v11  ;;  %v2661_v12 = vld [vmem:[%s17697_s9 + $0x2c8] sm:$0xff]  ;;  %v2692_v24 = vld [vmem:[%s17697_s9 + $0x3c0] sm:$0xff] }
 0x4b9   : > { %8889 = vmatprep.subr.bf16.mxu1 %v8888_v38  ;;  %8921 = vmatprep.subr.bf16.mxu0 %v8920_v15  ;;  %v18251_v38 = vld [vmem:[#allocation50_spill] sm:$0xff]  ;;  %v2693_v41 = vld [vmem:[%s17697_s9 + $0x3c8] sm:$0xff]  ;;  %v2644_v28 = vld [vmem:[%s17697_s9 + $0x240] sm:$0xff] }
 0x4ba   : > { %2798 = vmatmul.mubr.f32.gmra.mrb[52].mxu1 %v2494_v14  ;;  %2903 = vmatmul.mubr.f32.gmra.mrb[52].mxu0 %v2526_v8  ;;  %v2535_v15 = vmul.f32 %v18251_v38, %v12745_v59  ;;  %v18253_v14 = vld [vmem:[#allocation53_spill] sm:$0xff]  ;;  %v8926_v8 = vpack.c.bf16 %v2675_v49, %v2674_v50  ;;  %v2645_v38 = vld [vmem:[%s17697_s9 + $0x248] sm:$0xff] }
 0x4bb   : > { %8891 = vmatpush3.bf16.msra.mxu1 %v8890_v2  ;;  %2802 = vmatprep.mubr.f32.mxu1 %v2503_v13  ;;  %v2527_v45 = vmul.f32 %v18253_v14, %v12752_v26  ;;  %v18254_v22 = vld [vmem:[#allocation52_spill] sm:$0xff]  ;;  %v8896_v2 = vpack.c.bf16 %v2661_v12, %v2660_v55  ;;  %v2676_v13 = vld [vmem:[%s17697_s9 + $0x340] sm:$0xff]  ;;  %v2662_v49 = vld [vmem:[%s17697_s9 + $0x2d0] sm:$0xff] }
 0x4bc   : > { %2907 = vmatprep.mubr.f32.mxu0 %v2535_v15  ;;  %8923 = vmatpush3.bf16.msra.mxu0 %v8922_v63  ;;  %v2504_v32 = vmul.f32 %v18254_v22, %v12714_v52  ;;  %v8928_v63 = vpack.c.bf16 %v2693_v41, %v2692_v24  ;;  %v2677_v50 = vld [vmem:[%s17697_s9 + $0x348] sm:$0xff]  ;;  %v2663_v55 = vld [vmem:[%s17697_s9 + $0x2d8] sm:$0xff]  ;;  %v2694_v15 = vld [vmem:[%s17697_s9 + $0x3d0] sm:$0xff]  ;;  %v8898_v24 = vpack.c.bf16 %v2645_v38, %v2644_v28 }
 0x4bd   : > { %8893 = vmatprep.subr.bf16.mxu1 %v8892_v53  ;;  %8925 = vmatprep.subr.bf16.mxu0 %v8924_v6  ;;  %v18255_v53 = vld [vmem:[#allocation54_spill] sm:$0xff]  ;;  %v18256_v41 = vld [vmem:[#allocation55_spill] sm:$0xff]  ;;  %v2646_v22 = vld [vmem:[%s17697_s9 + $0x250] sm:$0xff] }
 0x4be   : > { %2803 = vmatmul.mubr.f32.gmra.mrb[54].mxu1 %v2495_v57  ;;  %2908 = vmatmul.mubr.f32.gmra.mrb[54].mxu0 %v2527_v45  ;;  %v2536_v6 = vmul.f32 %v18255_v53, %v12778_v42  ;;  %v2695_v12 = vld [vmem:[%s17697_s9 + $0x3d8] sm:$0xff]  ;;  %v2496_v47 = vmul.f32 %v18256_v41, %v12745_v59  ;;  %v18257_v57 = vld [vmem:[#allocation57_spill] sm:$0xff]  ;;  %v8930_v45 = vpack.c.bf16 %v2677_v50, %v2676_v13  ;;  %v18258_v28 = vld [vmem:[#allocation56_spill] sm:$0xff] }
 0x4bf   : > { %8895 = vmatpush3.bf16.msra.mxu1 %v8894_v19  ;;  %2807 = vmatprep.mubr.f32.mxu1 %v2504_v32  ;;  %v2528_v14 = vmul.f32 %v18257_v57, %v12789_v54  ;;  %v2647_v53 = vld [vmem:[%s17697_s9 + $0x258] sm:$0xff]  ;;  %v2505_v38 = vmul.f32 %v18258_v28, %v12732_v18  ;;  %v8900_v19 = vpack.c.bf16 %v2663_v55, %v2662_v49  ;;  %v2678_v32 = vld [vmem:[%s17697_s9 + $0x350] sm:$0xff]  ;;  %v2664_v50 = vld [vmem:[%s17697_s9 + $0x2e0] sm:$0xff] }
 0x4c0   : > { %2912 = vmatprep.mubr.f32.mxu0 %v2536_v6  ;;  %8927 = vmatpush3.bf16.msra.mxu0 %v8926_v8  ;;  %v8932_v8 = vpack.c.bf16 %v2695_v12, %v2694_v15  ;;  %v2679_v13 = vld [vmem:[%s17697_s9 + $0x358] sm:$0xff]  ;;  %v2665_v49 = vld [vmem:[%s17697_s9 + $0x2e8] sm:$0xff]  ;;  %v2696_v6 = vld [vmem:[%s17697_s9 + $0x3e0] sm:$0xff]  ;;  %v8902_v15 = vpack.c.bf16 %v2647_v53, %v2646_v22 }
 0x4c1   : > { %8897 = vmatprep.subr.bf16.mxu1 %v8896_v2  ;;  %8929 = vmatprep.subr.bf16.mxu0 %v8928_v63  ;;  %v18259_v2 = vld [vmem:[#allocation58_spill] sm:$0xff]  ;;  %v2697_v55 = vld [vmem:[%s17697_s9 + $0x3e8] sm:$0xff]  ;;  %v2648_v12 = vld [vmem:[%s17697_s9 + $0x260] sm:$0xff]  ;;  %v8934_v28 = vpack.c.bf16 %v2679_v13, %v2678_v32 }
 0x4c2   : > { %2808 = vmatmul.mubr.f32.gmra.mrb[56].mxu1 %v2496_v47  ;;  %2913 = vmatmul.mubr.f32.gmra.mrb[56].mxu0 %v2528_v14  ;;  %v2537_v63 = vmul.f32 %v18259_v2, %v12826_v30  ;;  %v18260_v41 = vld [vmem:[#allocation59_spill] sm:$0xff]  ;;  %v18261_v57 = vld [vmem:[#allocation61_spill] sm:$0xff]  ;;  %v2649_v2 = vld [vmem:[%s17697_s9 + $0x268] sm:$0xff] }
 0x4c3   : > { %8899 = vmatpush3.bf16.msra.mxu1 %v8898_v24  ;;  %2812 = vmatprep.mubr.f32.mxu1 %v2505_v38  ;;  %v2497_v47 = vmul.f32 %v18260_v41, %v12778_v42  ;;  %v2529_v14 = vmul.f32 %v18261_v57, %v12858_v35  ;;  %v2680_v22 = vld [vmem:[%s17697_s9 + $0x360] sm:$0xff]  ;;  %v2681_v53 = vld [vmem:[%s17697_s9 + $0x368] sm:$0xff]  ;;  %v8904_v38 = vpack.c.bf16 %v2665_v49, %v2664_v50  ;;  %v2666_v32 = vld [vmem:[%s17697_s9 + $0x2f0] sm:$0xff] }
 0x4c4   : > { %2917 = vmatprep.mubr.f32.mxu0 %v2537_v63  ;;  %8931 = vmatpush3.bf16.msra.mxu0 %v8930_v45  ;;  %v18262_v24 = vld [vmem:[#allocation60_spill] sm:$0xff]  ;;  %v8936_v63 = vpack.c.bf16 %v2697_v55, %v2696_v6  ;;  %v2667_v13 = vld [vmem:[%s17697_s9 + $0x2f8] sm:$0xff]  ;;  %v8906_v50 = vpack.c.bf16 %v2649_v2, %v2648_v12  ;;  %v8938_v49 = vpack.c.bf16 %v2681_v53, %v2680_v22  ;;  %v18267_v12 = vrot.slane %v12754_v4, 1 }
 0x4c5   : > { %8901 = vmatprep.subr.bf16.mxu1 %v8900_v19  ;;  %8933 = vmatprep.subr.bf16.mxu0 %v8932_v8  ;;  %v2506_v45 = vmul.f32 %v18262_v24, %v12747_v44  ;;  %v18263_v41 = vld [vmem:[#allocation62_spill] sm:$0xff]  ;;  %v2698_v19 = vld [vmem:[%s17697_s9 + $0x3f0] sm:$0xff]  ;;  %v18264_v6 = vld [vmem:[#allocation24_spill] sm:$0xff]  ;;  %v8908_v24 = vpack.c.bf16 %v2667_v13, %v2666_v32  ;;  %v18268_v22 = vrot.slane %v12757_v34, 1  ;;  %v2539_v13 = vmul.f32 %v12030_v25, %v12812_v10 }
 0x4c6   : > { %2813 = vmatmul.mubr.f32.gmra.mrb[58].mxu1 %v2497_v47  ;;  %2918 = vmatmul.mubr.f32.gmra.mrb[58].mxu0 %v2529_v14  ;;  %v2538_v57 = vmul.f32 %v18263_v41, %v12842_v17  ;;  %v2699_v8 = vld [vmem:[%s17697_s9 + $0x3f8] sm:$0xff]  ;;  %v2498_v55 = vmul.f32 %v18264_v6, %v12826_v30  ;;  %v2650_v41 = vld [vmem:[%s17697_s9 + $0x270] sm:$0xff]  ;;  %v18266_v2 = vld [vmem:[#allocation32_spill] sm:$0xff] }
 0x4c7   : > { %8903 = vmatpush3.bf16.msra.mxu1 %v8902_v15  ;;  %2817 = vmatprep.mubr.f32.mxu1 %v2506_v45  ;;  %v18265_v47 = vld [vmem:[#allocation38_spill] sm:$0xff]  ;;  %v13044_v53 = vsel %vm18269_vm10, %v18268_v22, %v18267_v12  ;;  %v8940_v45 = vpack.c.bf16 %v2699_v8, %v2698_v19  ;;  %v2682_v32 = vld [vmem:[%s17697_s9 + $0x370] sm:$0xff]  ;;  %v3515_v19 = vld [vmem:[%s17699_s11 + $0x8] sm:$0xff]  ;;  %v2540_v12 = vmul.f32 %v12072_v48, %v12724_v29 }
 0x4c8   : > { %2922 = vmatprep.mubr.f32.mxu0 %v2538_v57  ;;  %8935 = vmatpush3.bf16.msra.mxu0 %v8934_v28  ;;  %v2530_v14 = vmul.f32 %v18265_v47, %v12864_v23  ;;  %v2651_v15 = vld [vmem:[%s17697_s9 + $0x278] sm:$0xff]  ;;  %v2507_v28 = vmul.f32 %v18266_v2, %v12757_v34  ;;  %v2701_v57 = vld [vmem:[%s17697_s9 + $0x408] sm:$0xff]  ;;  %v2531_v47 = vmul.f32 %v12089_v51, %v13044_v53 }
 0x4c9   : > { %8905 = vmatprep.subr.bf16.mxu1 %v8904_v38  ;;  %8937 = vmatprep.subr.bf16.mxu0 %v8936_v63  ;;  %v2683_v38 = vld [vmem:[%s17697_s9 + $0x378] sm:$0xff]  ;;  %v2700_v63 = vld [vmem:[%s17697_s9 + $0x400] sm:$0xff]  ;;  %v8910_v6 = vpack.c.bf16 %v2651_v15, %v2650_v41  ;;  %v3519_v15 = vld [vmem:[%s17699_s11 + $0x28] sm:$0xff] }
 0x4ca   : > { %2818 = vmatmul.mubr.f32.gmra.mrb[60].mxu1 %v2498_v55  ;;  %2923 = vmatmul.mubr.f32.gmra.mrb[60].mxu0 %v2530_v14  ;;  %v3517_v8 = vld [vmem:[%s17699_s11 + $0x18] sm:$0xff]  ;;  %v2499_v55 = vmul.f32 %v12059_v37, %v12842_v17  ;;  %v8942_v14 = vpack.c.bf16 %v2683_v38, %v2682_v32  ;;  %v8944_v22 = vpack.c.bf16 %v2701_v57, %v2700_v63  ;;  %v2704_v38 = vld [vmem:[%s17697_s9 + $0x420] sm:$0xff] }
 0x4cb   : > { %8907 = vmatpush3.bf16.msra.mxu1 %v8906_v50  ;;  %2822 = vmatprep.mubr.f32.mxu1 %v2507_v28  ;;  %v2702_v50 = vld [vmem:[%s17697_s9 + $0x410] sm:$0xff]  ;;  %v8976_v41 = vpack.c.bf16 %v3517_v8, %v3515_v19  ;;  %v2556_v37 = vmul.f32 %v12108_v43, %v12704_v39  ;;  %v2703_v51 = vld [vmem:[%s17697_s9 + $0x418] sm:$0xff]  ;;  %v18270_v57 = vld [vmem:[#allocation39_spill] sm:$0xff] }
 0x4cc   : > { %2927 = vmatprep.mubr.f32.mxu0 %v2539_v13  ;;  %8939 = vmatpush3.bf16.msra.mxu0 %v8938_v49  ;;  %v3516_v49 = vld [vmem:[%s17699_s11 + $0x10] sm:$0xff]  ;;  %v3521_v28 = vld [vmem:[%s17699_s11 + $0x38] sm:$0xff]  ;;  %v8948_v32 = vpack.c.bf16 %v2703_v51, %v2702_v50  ;;  %v2541_v13 = vmul.f32 %v12123_v5, %v12740_v58  ;;  %v2557_v19 = vmul.f32 %v18270_v57, %v12716_v11  ;;  %v3518_v8 = vld [vmem:[%s17699_s11 + $0x20] sm:$0xff] }
 0x4cd   : > { %8909 = vmatprep.subr.bf16.mxu1 %v8908_v24  ;;  %8941 = vmatprep.subr.bf16.mxu0 %v8940_v45  ;;  %v3514_v24 = vld [vmem:[%s17699_s11] sm:$0xff]  ;;  %v2548_v45 = vmul.f32 %v12140_v56, %v12720_v7  ;;  %v2705_v56 = vld [vmem:[%s17697_s9 + $0x428] sm:$0xff]  ;;  %v8980_v7 = vpack.c.bf16 %v3521_v28, %v3519_v15  ;;  %v2706_v50 = vld [vmem:[%s17697_s9 + $0x430] sm:$0xff]  ;;  %v2558_v51 = vmul.f32 %v12189_v1, %v12714_v52 }
 0x4ce   : > { %2823 = vmatmul.mubr.f32.gmra.mrb[62].mxu1 %v2499_v55  ;;  %2928 = vmatmul.mubr.f32.gmra.mrb[62].mxu0 %v2531_v47  ;;  %v8978_v63 = vpack.c.bf16 %v3516_v49, %v3514_v24  ;;  %v3523_v55 = vld [vmem:[%s17699_s11 + $0x48] sm:$0xff]  ;;  %v3525_v47 = vld [vmem:[%s17699_s11 + $0x58] sm:$0xff]  ;;  %v2550_v28 = vmul.f32 %v12220_v60, %v12745_v59  ;;  %v3526_v59 = vld [vmem:[%s17699_s11 + $0x60] sm:$0xff] }
 0x4cf   : > { %8911 = vmatpush3.bf16.msra.mxu1 %v8910_v6  ;;  %2997 = vmatprep.mubr.f32.mxu1 %v2540_v12  ;;  %v3520_v6 = vld [vmem:[%s17699_s11 + $0x30] sm:$0xff]  ;;  %v8952_v12 = vpack.c.bf16 %v2705_v56, %v2704_v38  ;;  %v2707_v24 = vld [vmem:[%s17697_s9 + $0x438] sm:$0xff]  ;;  %v3527_v49 = vld [vmem:[%s17699_s11 + $0x68] sm:$0xff] }
 0x4d0   : > { %8943 = vmatpush3.bf16.msra.mxu0 %v8942_v14  ;;  %3102 = vmatprep.mubr.f32.mxu0 %v2556_v37  ;;  %v2549_v14 = vmul.f32 %v12184_v20, %v12736_v31  ;;  %v8984_v20 = vpack.c.bf16 %v3525_v47, %v3523_v55  ;;  %v3522_v31 = vld [vmem:[%s17699_s11 + $0x40] sm:$0xff]  ;;  %v3529_v15 = vld [vmem:[%s17699_s11 + $0x78] sm:$0xff]  ;;  %v3531_v56 = vld [vmem:[%s17699_s11 + $0x88] sm:$0xff] }
 0x4d1   : > { %8945 = vmatprep.subr.bf16.mxu1 %v8944_v22  ;;  %8977 = vmatprep.subr.bf16.mxu0 %v8976_v41  ;;  %v18271_v41 = vld [vmem:[#allocation31_spill] sm:$0xff]  ;;  %v8988_v60 = vpack.c.bf16 %v3529_v15, %v3527_v49  ;;  %v2710_v55 = vld [vmem:[%s17697_s9 + $0x450] sm:$0xff]  ;;  %v2545_v15 = vmul.f32 %v12285_v16, %v12864_v23 }
 0x4d2   : > { %2998 = vmatmul.mubr.f32.vlgmr.msra.gmra.mrb[64].mxu1 %v12706_v62  ;;  %v2542_v37 = vmul.f32 %v18271_v41, %v12752_v26  ;;  %v2708_v38 = vld [vmem:[%s17697_s9 + $0x440] sm:$0xff] }
 0x4d3   : > { %3103 = vmatmul.mubr.f32.vlgmr.msra.gmra.mrb[64].mxu0 %v2548_v45  ;;  %8947 = vmatpush3.bf16.msra.mxu1 %v8944_v22  ;;  %v8982_v22 = vpack.c.bf16 %v3520_v6, %v3518_v8  ;;  %v8956_v45 = vpack.c.bf16 %v2707_v24, %v2706_v50  ;;  %v2551_v8 = vmul.f32 %v12255_v27, %v12778_v42  ;;  %v3530_v42 = vld [vmem:[%s17699_s11 + $0x80] sm:$0xff] }
 0x4d4   : > { %3002 = vmatprep.mubr.f32.mxu1 %v2541_v13  ;;  %3107 = vmatprep.mubr.f32.mxu0 %v2557_v19  ;;  %v2559_v13 = vmul.f32 %v12225_v36, %v12732_v18  ;;  %v2709_v19 = vld [vmem:[%s17697_s9 + $0x448] sm:$0xff]  ;;  %v2560_v50 = vmul.f32 %v12260_v0, %v12747_v44  ;;  %v2552_v24 = vmul.f32 %v12290_v3, %v12826_v30  ;;  %v3534_v30 = vld [vmem:[%s17699_s11 + $0xa0] sm:$0xff] }
 0x4d5   : > { %8949 = vmatprep.subr.bf16.mxu1 %v8948_v32  ;;  %8979 = vmatpush1.bf16.msra.mxu0 %v8978_v63  ;;  %v2543_v63 = vmul.f32 %v12200_v21, %v12789_v54  ;;  %v8960_v6 = vpack.c.bf16 %v2709_v19, %v2708_v38  ;;  %v3541_v38 = vld [vmem:[%s17699_s11 + $0xd8] sm:$0xff] }
 0x4d6   : > { %3003 = vmatmul.mubr.f32.gmra.mrb[66].mxu1 %v12704_v39  ;;  %8981 = vmatprep.subr.bf16.mxu0 %v8980_v7  ;;  %v3524_v39 = vld [vmem:[%s17699_s11 + $0x50] sm:$0xff]  ;;  %v3533_v7 = vld [vmem:[%s17699_s11 + $0x98] sm:$0xff] }
 0x4d7   : > { %3108 = vmatmul.mubr.f32.gmra.mrb[66].mxu0 %v2549_v14  ;;  %8951 = vmatpush3.bf16.msra.mxu1 %v8948_v32  ;;  %v8986_v32 = vpack.c.bf16 %v3524_v39, %v3522_v31  ;;  %v18272_v14 = vld [vmem:[#allocation34_spill] sm:$0xff]  ;;  %v8992_v27 = vpack.c.bf16 %v3533_v7, %v3531_v56  ;;  %v2712_v31 = vld [vmem:[%s17697_s9 + $0x460] sm:$0xff]  ;;  %v2713_v39 = vld [vmem:[%s17697_s9 + $0x468] sm:$0xff] }
 0x4d8   : > { %3007 = vmatprep.mubr.f32.mxu1 %v2542_v37  ;;  %3112 = vmatprep.mubr.f32.mxu0 %v2558_v51  ;;  %v3535_v37 = vld [vmem:[%s17699_s11 + $0xa8] sm:$0xff]  ;;  %v3537_v51 = vld [vmem:[%s17699_s11 + $0xb8] sm:$0xff] }
 0x4d9   : > { %8953 = vmatprep.subr.bf16.mxu1 %v8952_v12  ;;  %8983 = vmatpush1.bf16.msra.mxu0 %v8982_v22  ;;  %v2711_v22 = vld [vmem:[%s17697_s9 + $0x458] sm:$0xff]  ;;  %v8996_v3 = vpack.c.bf16 %v3537_v51, %v3535_v37  ;;  %v18277_v51 = vld [vmem:[#allocation80_spill] sm:$0xff] }
 0x4da   : > { %3008 = vmatmul.mubr.f32.gmra.mrb[68].mxu1 %v12716_v11  ;;  %8985 = vmatprep.subr.bf16.mxu0 %v8984_v20  ;;  %v3528_v11 = vld [vmem:[%s17699_s11 + $0x70] sm:$0xff]  ;;  %v8964_v20 = vpack.c.bf16 %v2711_v22, %v2710_v55  ;;  %v2715_v19 = vld [vmem:[%s17697_s9 + $0x478] sm:$0xff] }
 0x4db   : > { %3113 = vmatmul.mubr.f32.gmra.mrb[68].mxu0 %v2550_v28  ;;  %8955 = vmatpush3.bf16.msra.mxu1 %v8952_v12  ;;  %v8990_v47 = vpack.c.bf16 %v3528_v11, %v3526_v59  ;;  %v2544_v12 = vmul.f32 %v18272_v14, %v12858_v35  ;;  %v2561_v28 = vmul.f32 %v12295_v33, %v12757_v34  ;;  %v13226_v59 = vld [vmem:[%s10757_s20] sm:$0xff]  ;;  %v13230_v56 = vld [vmem:[%s10757_s20 + $0x38] sm:$0xff] }
 0x4dc   : > { %3012 = vmatprep.mubr.f32.mxu1 %v2543_v63  ;;  %3117 = vmatprep.mubr.f32.mxu0 %v2559_v13  ;;  %v2553_v63 = vmul.f32 %v12324_v46, %v12842_v17  ;;  %v2714_v13 = vld [vmem:[%s17697_s9 + $0x470] sm:$0xff]  ;;  %v3442_v11 = vrot.slane %v13226_v59, 7  ;;  %v17857_v7 = vrot.slane %v13230_v56, 7  ;;  %v18273_v46 = vld [vmem:[#allocation66_spill] sm:$0xff] }
 0x4dd   : > { %8957 = vmatprep.subr.bf16.mxu1 %v8956_v45  ;;  %8987 = vmatpush1.bf16.msra.mxu0 %v8986_v32  ;;  %v8968_v32 = vpack.c.bf16 %v2713_v39, %v2712_v31  ;;  %v2546_v17 = vmul.f32 %v18273_v46, %v13044_v53  ;;  %v8972_v22 = vpack.c.bf16 %v2715_v19, %v2714_v13  ;;  %v18279_v31 = vld [vmem:[#allocation70_spill] sm:$0xff]  ;;  %v3546_v13 = vld [vmem:[%s17699_s11 + $0x100] sm:$0xff]  ;;  %v3548_v19 = vld [vmem:[%s17699_s11 + $0x110] sm:$0xff] }
 0x4de   : > { %3013 = vmatmul.mubr.f32.gmra.mrb[70].mxu1 %v12714_v52  ;;  %8989 = vmatprep.subr.bf16.mxu0 %v8988_v60  ;;  %v3532_v52 = vld [vmem:[%s17699_s11 + $0x90] sm:$0xff]  ;;  %v3457_v37 = vsel %vm18276_vm1, %v17857_v7, %v3442_v11  ;;  %v2563_v39 = vmul.f32 %v18279_v31, %v12706_v62  ;;  %v3549_v62 = vld [vmem:[%s17699_s11 + $0x118] sm:$0xff] }
 0x4df   : > { %3118 = vmatmul.mubr.f32.gmra.mrb[70].mxu0 %v2551_v8  ;;  %8959 = vmatpush3.bf16.msra.mxu1 %v8956_v45  ;;  %v8994_v49 = vpack.c.bf16 %v3532_v52, %v3530_v42  ;;  %v3536_v45 = vld [vmem:[%s17699_s11 + $0xb0] sm:$0xff]  ;;  %v18274_v8 = vld [vmem:[#allocation67_spill] sm:$0xff] }
 0x4e0   : > { %3017 = vmatprep.mubr.f32.mxu1 %v2544_v12  ;;  %3122 = vmatprep.mubr.f32.mxu0 %v2560_v50  ;;  %v8998_v60 = vpack.c.bf16 %v3536_v45, %v3534_v30  ;;  %v3540_v12 = vld [vmem:[%s17699_s11 + $0xd0] sm:$0xff]  ;;  %v3545_v50 = vld [vmem:[%s17699_s11 + $0xf8] sm:$0xff]  ;;  %v18281_v30 = vld [vmem:[#allocation72_spill] sm:$0xff] }
 0x4e1   : > { %8961 = vmatprep.subr.bf16.mxu1 %v8960_v6  ;;  %8991 = vmatpush1.bf16.msra.mxu0 %v8990_v47  ;;  %v3538_v47 = vld [vmem:[%s17699_s11 + $0xc0] sm:$0xff]  ;;  %v2555_v45 = vmul.f32 %v18281_v30, %v12794_v61  ;;  %v3551_v61 = vld [vmem:[%s17699_s11 + $0x128] sm:$0xff]  ;;  %v13579_v7 = vld [vmem:[%s10757_s20 + $0x30] sm:$0xff] }
 0x4e2   : > { %3018 = vmatmul.mubr.f32.gmra.mrb[72].mxu1 %v12732_v18  ;;  %8993 = vmatprep.subr.bf16.mxu0 %v8992_v27  ;;  %v3539_v18 = vld [vmem:[%s17699_s11 + $0xc8] sm:$0xff]  ;;  %v18275_v27 = vld [vmem:[#allocation69_spill] sm:$0xff]  ;;  %v9002_v52 = vpack.c.bf16 %v3540_v12, %v3538_v47  ;;  %v3550_v12 = vld [vmem:[%s17699_s11 + $0x120] sm:$0xff] }
 0x4e3   : > { %3123 = vmatmul.mubr.f32.gmra.mrb[72].mxu0 %v2552_v24  ;;  %8963 = vmatpush3.bf16.msra.mxu1 %v8960_v6  ;;  %v2562_v6 = vmul.f32 %v18274_v8, %v12754_v4  ;;  %v9000_v55 = vpack.c.bf16 %v3541_v38, %v3539_v18  ;;  %v2554_v42 = vmul.f32 %v18275_v27, %v12812_v10  ;;  %v18278_v24 = vld [vmem:[#allocation68_spill] sm:$0xff]  ;;  %v3542_v10 = vld [vmem:[%s17699_s11 + $0xe0] sm:$0xff]  ;;  %v18313_v8 = vld [vmem:[#allocation45_spill] sm:$0xff] }
 0x4e4   : > { %3022 = vmatprep.mubr.f32.mxu1 %v2545_v15  ;;  %3127 = vmatprep.mubr.f32.mxu0 %v2561_v28  ;;  %v3544_v15 = vld [vmem:[%s17699_s11 + $0xf0] sm:$0xff]  ;;  %v18282_v38 = vld [vmem:[#allocation71_spill] sm:$0xff]  ;;  %v18286_v27 = vld [vmem:[#allocation76_spill] sm:$0xff]  ;;  %v973_v33 = vadd.f32 -2.0, %v18313_v8 }
 0x4e5   : > { %8965 = vmatprep.subr.bf16.mxu1 %v8964_v20  ;;  %8995 = vmatpush1.bf16.msra.mxu0 %v8994_v49  ;;  %v18280_v28 = vld [vmem:[#allocation41_spill] sm:$0xff]  ;;  %v9006_v18 = vpack.c.bf16 %v3544_v15, %v3542_v10  ;;  %v18288_v15 = vld [vmem:[#allocation78_spill] sm:$0xff]  ;;  %v3558_v30 = vld [vmem:[%s17699_s11 + $0x160] sm:$0xff] }
 0x4e6   : > { %3023 = vmatmul.mubr.f32.gmra.mrb[74].mxu1 %v12747_v44  ;;  %8997 = vmatprep.subr.bf16.mxu0 %v8996_v3  ;;  %v3543_v44 = vld [vmem:[%s17699_s11 + $0xe8] sm:$0xff]  ;;  %v3458_v3 = vmul.f32 %v18280_v28, %v3457_v37 }
 0x4e7   : > { %3128 = vmatmul.mubr.f32.gmra.mrb[74].mxu0 %v2553_v63  ;;  %8967 = vmatpush3.bf16.msra.mxu1 %v8964_v20  ;;  %v2547_v20 = vmul.f32 %v18278_v24, %v18277_v51  ;;  %v9004_v49 = vpack.c.bf16 %v3545_v50, %v3543_v44  ;;  %v3552_v44 = vld [vmem:[%s17699_s11 + $0x130] sm:$0xff]  ;;  %v18285_v50 = vld [vmem:[#allocation75_spill] sm:$0xff] }
 0x4e8   : > { %3027 = vmatprep.mubr.f32.mxu1 %v2546_v17  ;;  %3132 = vmatprep.mubr.f32.mxu0 %v2562_v6  ;;  %v18284_v17 = vld [vmem:[#allocation74_spill] sm:$0xff] }
 0x4e9   : > { %8969 = vmatprep.subr.bf16.mxu1 %v8968_v32  ;;  %8999 = vmatpush1.bf16.msra.mxu0 %v8998_v60  ;;  %v2566_v6 = vmul.f32 %v18284_v17, %v12789_v54  ;;  %v3557_v54 = vld [vmem:[%s17699_s11 + $0x158] sm:$0xff]  ;;  %v3568_v17 = vld [vmem:[%s17699_s11 + $0x1b0] sm:$0xff] }
 0x4ea   : > { %3028 = vmatmul.mubr.f32.gmra.mrb[76].mxu1 %v12757_v34  ;;  %9001 = vmatprep.subr.bf16.mxu0 %v9000_v55  ;;  %v3547_v34 = vld [vmem:[%s17699_s11 + $0x108] sm:$0xff]  ;;  %v9010_v55 = vpack.c.bf16 %v3548_v19, %v3546_v13  ;;  %v3562_v13 = vld [vmem:[%s17699_s11 + $0x180] sm:$0xff]  ;;  %v3564_v19 = vld [vmem:[%s17699_s11 + $0x190] sm:$0xff] }
 0x4eb   : > { %3133 = vmatmul.mubr.f32.gmra.mrb[76].mxu0 %v2554_v42  ;;  %8971 = vmatpush3.bf16.msra.mxu1 %v8968_v32  ;;  %v2564_v32 = vmul.f32 %v18282_v38, %v12740_v58  ;;  %v9008_v63 = vpack.c.bf16 %v3549_v62, %v3547_v34  ;;  %v3553_v58 = vld [vmem:[%s17699_s11 + $0x138] sm:$0xff]  ;;  %v2568_v42 = vmul.f32 %v18286_v27, %v12864_v23 }
 0x4ec   : > { %3032 = vmatprep.mubr.f32.mxu1 %v2547_v20  ;;  %3137 = vmatprep.mubr.f32.mxu0 %v2563_v39  ;;  %v9012_v47 = vpack.c.bf16 %v3553_v58, %v3551_v61  ;;  %v3554_v20 = vld [vmem:[%s17699_s11 + $0x140] sm:$0xff]  ;;  %v3556_v39 = vld [vmem:[%s17699_s11 + $0x150] sm:$0xff]  ;;  %v3561_v23 = vld [vmem:[%s17699_s11 + $0x178] sm:$0xff]  ;;  %v2570_v34 = vmul.f32 %v18288_v15, %v18277_v51  ;;  %v9026_v58 = vpack.c.bf16 %v3564_v19, %v3562_v13  ;;  %v18291_v15 = vmov 0.0  }
 0x4ed   : > { %8973 = vmatprep.subr.bf16.mxu1 %v8972_v22  ;;  %9003 = vmatpush1.bf16.msra.mxu0 %v9002_v52  ;;  %v9014_v52 = vpack.c.bf16 %v3552_v44, %v3550_v12  ;;  %v9018_v62 = vpack.c.bf16 %v3556_v39, %v3554_v20  ;;  %v3565_v51 = vld [vmem:[%s17699_s11 + $0x198] sm:$0xff]  ;;  %v3567_v61 = vld [vmem:[%s17699_s11 + $0x1a8] sm:$0xff]  ;;  %v3574_v39 = vld [vmem:[%s17699_s11 + $0x1e0] sm:$0xff] }
 0x4ee   : > { %3033 = vmatmul.mubr.f32.gmra.mrb[78].mxu1 %v12754_v4  ;;  %9005 = vmatprep.subr.bf16.mxu0 %v9004_v49  ;;  %v18283_v4 = vld [vmem:[#allocation73_spill] sm:$0xff]  ;;  %v3577_v27 = vld [vmem:[%s17699_s11 + $0x1f8] sm:$0xff]  ;;  %v3587_v19 = vld [vmem:[%s17699_s11 + $0x248] sm:$0xff] }
 0x4ef   : > { %3138 = vmatmul.mubr.f32.gmra.mrb[78].mxu0 %v2555_v45  ;;  %8975 = vmatpush3.bf16.msra.mxu1 %v8972_v22  ;;  %v2565_v60 = vmul.f32 %v18283_v4, %v12752_v26  ;;  %v3555_v26 = vld [vmem:[%s17699_s11 + $0x148] sm:$0xff]  ;;  %v2567_v22 = vmul.f32 %v18285_v50, %v12858_v35  ;;  %v18287_v49 = vld [vmem:[#allocation77_spill] sm:$0xff] }
 0x4f0   : > { %8580 = vmatprep.mubr.f32.mxu1 %v2564_v32  ;;  %3910 = vmatprep.mubr.f32.mxu0 %v3458_v3  ;;  %v9016_v37 = vpack.c.bf16 %v3557_v54, %v3555_v26  ;;  %v3559_v35 = vld [vmem:[%s17699_s11 + $0x168] sm:$0xff]  ;;  %v2569_v10 = vmul.f32 %v18287_v49, %v13044_v53  ;;  %v3560_v45 = vld [vmem:[%s17699_s11 + $0x170] sm:$0xff]  ;;  %v3570_v54 = vld [vmem:[%s17699_s11 + $0x1c0] sm:$0xff] }
 0x4f1   : > { %9007 = vmatpush1.bf16.msra.mxu0 %v9006_v18  ;;  %v9020_v3 = vpack.c.bf16 %v3561_v23, %v3559_v35  ;;  %v3563_v53 = vld [vmem:[%s17699_s11 + $0x188] sm:$0xff]  ;;  %v18289_v18 = vld [vmem:[#allocation79_spill] sm:$0xff]  ;;  %v9022_v32 = vpack.c.bf16 %v3560_v45, %v3558_v30  ;;  %v3572_v50 = vld [vmem:[%s17699_s11 + $0x1d0] sm:$0xff] }
 0x4f2   : > { %8581 = vmatmul.mubr.f32.vlgmr.msra.gmra.mrb[80].mxu1 %v2565_v60  ;;  %9009 = vmatprep.subr.bf16.mxu0 %v9008_v63  ;;  %v2571_v38 = vmul.f32 %v18289_v18, %v12724_v29  ;;  %v9024_v63 = vpack.c.bf16 %v3565_v51, %v3563_v53  ;;  %v3569_v29 = vld [vmem:[%s17699_s11 + $0x1b8] sm:$0xff]  ;;  %v3566_v60 = vld [vmem:[%s17699_s11 + $0x1a0] sm:$0xff]  ;;  %v3576_v35 = vld [vmem:[%s17699_s11 + $0x1f0] sm:$0xff] }
 0x4f3   : > { %8583 = vmatprep.mubr.f32.mxu1 %v2566_v6  ;;  %v9028_v4 = vpack.c.bf16 %v3569_v29, %v3567_v61  ;;  %v3571_v6 = vld [vmem:[%s17699_s11 + $0x1c8] sm:$0xff]  ;;  %v9030_v44 = vpack.c.bf16 %v3568_v17, %v3566_v60  ;;  %v3581_v49 = vld [vmem:[%s17699_s11 + $0x218] sm:$0xff]  ;;  %v3578_v30 = vld [vmem:[%s17699_s11 + $0x200] sm:$0xff] }
 0x4f4   : > { %v3579_v23 = vld [vmem:[%s17699_s11 + $0x208] sm:$0xff]  ;;  %v3580_v45 = vld [vmem:[%s17699_s11 + $0x210] sm:$0xff]  ;;  %v3585_v51 = vld [vmem:[%s17699_s11 + $0x238] sm:$0xff] }
 0x4f5   : > { %9011 = vmatpush1.bf16.msra.mxu0 %v9010_v55  ;;  %v3573_v55 = vld [vmem:[%s17699_s11 + $0x1d8] sm:$0xff]  ;;  %v3583_v53 = vld [vmem:[%s17699_s11 + $0x228] sm:$0xff]  ;;  %v3584_v13 = vld [vmem:[%s17699_s11 + $0x230] sm:$0xff] }
 0x4f6   : > { %8584 = vmatmul.mubr.f32.gmra.mrb[82].mxu1 %v2567_v22  ;;  %9013 = vmatprep.subr.bf16.mxu0 %v9012_v47  ;;  %v18290_v47 = vld [vmem:[#allocation15_spill] sm:$0xff]  ;;  %v9032_v26 = vpack.c.bf16 %v3573_v55, %v3571_v6  ;;  %v3575_v22 = vld [vmem:[%s17699_s11 + $0x1e8] sm:$0xff]  ;;  %v3589_v61 = vld [vmem:[%s17699_s11 + $0x258] sm:$0xff] }
 0x4f7   : > { %8586 = vmatprep.mubr.f32.mxu1 %v2568_v42  ;;  %v966_v12 = vadd.f32 -2.0, %v18290_v47  ;;  %v9034_v42 = vpack.c.bf16 %v3572_v50, %v3570_v54  ;;  %v9036_v20 = vpack.c.bf16 %v3577_v27, %v3575_v22  ;;  %v3588_v60 = vld [vmem:[%s17699_s11 + $0x250] sm:$0xff]  ;;  %v3591_v17 = vld [vmem:[%s17699_s11 + $0x268] sm:$0xff]  ;;  %v3593_v6 = vld [vmem:[%s17699_s11 + $0x278] sm:$0xff] }
 0x4f8   : > { %v3595_v54 = vld [vmem:[%s17699_s11 + $0x288] sm:$0xff]  ;;  %v3597_v50 = vld [vmem:[%s17699_s11 + $0x298] sm:$0xff] }
 0x4f9   : > { %9015 = vmatpush1.bf16.msra.mxu0 %v9014_v52  ;;  %vm974_vm12 = vcmp.ge.f32.partialorder %v966_v12, 0.0  ;;  %vm982_vm14 = vcmp.lt.f32.partialorder %v966_v12, 8.0  ;;  %v3418_v52 = vrot.slane %v13226_v59, 6  ;;  %v3590_v12 = vld [vmem:[%s17699_s11 + $0x260] sm:$0xff]  ;;  %v13452_v22 = vld [vmem:[%s10757_s20 + $0x8] sm:$0xff] }
 0x4fa   : > { %8587 = vmatmul.mubr.f32.gmra.mrb[84].mxu1 %v2569_v10  ;;  %9017 = vmatprep.subr.bf16.mxu0 %v9016_v37  ;;  %v17856_v37 = vrot.slane %v13230_v56, 6  ;;  %vm990_vm7 = vmand %vm974_vm12, %vm982_vm14  ;;  %v9038_v10 = vpack.c.bf16 %v3576_v35, %v3574_v39  ;;  %v3443_v27 = vrot.slane %v13452_v22, 7  ;;  %v3419_v39 = vrot.slane %v13452_v22, 6 }
 0x4fb   : > { %8589 = vmatprep.mubr.f32.mxu1 %v2570_v34  ;;  %v13396_v34 = vsel %vm990_vm7, 1.0, %v18291_v15  ;;  %vm18303_vm12 = vmmov %vm18298_vm4  ;;  %v3467_v0 = vrot.slane %v13452_v22, 1 }
 0x4fc   : > { %18292 = vst [vmem:[#allocation43_spill] sm:$0xff] %v13396_v34 }
 0x4fd   : > { %9019 = vmatpush1.bf16.msra.mxu0 %v9018_v62  ;;  %v3433_v62 = vsel %vm3328_vm0, %v17856_v37, %v3418_v52 }
 0x4fe   : > { %8590 = vmatmul.mubr.f32.gmra.mrb[86].mxu1 %v2571_v38  ;;  %9021 = vmatprep.subr.bf16.mxu0 %v9020_v3  ;;  %v9040_v3 = vpack.c.bf16 %v3581_v49, %v3579_v23  ;;  %v3434_v18 = vmul.f32 %v13396_v34, %v3433_v62  ;;  %v9042_v38 = vpack.c.bf16 %v3580_v45, %v3578_v30  ;;  %v3594_v23 = vld [vmem:[%s17699_s11 + $0x280] sm:$0xff]  ;;  %v3596_v49 = vld [vmem:[%s17699_s11 + $0x290] sm:$0xff] }
 0x4ff   : > { %v3432_v62 = vsel %vm3328_vm0, %v3418_v52, %v3419_v39  ;;  %v18295_v30 = vld [vmem:[#allocation23_spill] sm:$0xff] }
 0x501   : > { %9023 = vmatpush1.bf16.msra.mxu0 %v9022_v32  ;;  %v9044_v32 = vpack.c.bf16 %v3585_v51, %v3583_v53  ;;  %v3599_v53 = vld [vmem:[%s17699_s11 + $0x2a8] sm:$0xff]  ;;  %v3601_v51 = vld [vmem:[%s17699_s11 + $0x2b8] sm:$0xff] }
 0x502   : > { %9025 = vmatprep.subr.bf16.mxu0 %v9024_v63  ;;  %v3582_v63 = vld [vmem:[%s17699_s11 + $0x220] sm:$0xff] }
 0x503   : > { %v9046_v29 = vpack.c.bf16 %v3584_v13, %v3582_v63  ;;  %v9058_v13 = vpack.c.bf16 %v3596_v49, %v3594_v23  ;;  %v3604_v23 = vld [vmem:[%s17699_s11 + $0x2d0] sm:$0xff] }
 0x505   : > { %9027 = vmatpush1.bf16.msra.mxu0 %v9026_v58  ;;  %v9048_v58 = vpack.c.bf16 %v3589_v61, %v3587_v19  ;;  %v3598_v61 = vld [vmem:[%s17699_s11 + $0x2a0] sm:$0xff] }
 0x506   : > { %9029 = vmatprep.subr.bf16.mxu0 %v9028_v4  ;;  %v3586_v4 = vld [vmem:[%s17699_s11 + $0x240] sm:$0xff] }
 0x507   : > { %v9050_v55 = vpack.c.bf16 %v3588_v60, %v3586_v4  ;;  %v9060_v60 = vpack.c.bf16 %v3601_v51, %v3599_v53  ;;  %v3607_v53 = vld [vmem:[%s17699_s11 + $0x2e8] sm:$0xff]  ;;  %v3609_v51 = vld [vmem:[%s17699_s11 + $0x2f8] sm:$0xff] }
 0x509   : > { %9031 = vmatpush1.bf16.msra.mxu0 %v9030_v44  ;;  %v3592_v44 = vld [vmem:[%s17699_s11 + $0x270] sm:$0xff] }
 0x50a   : > { %9033 = vmatprep.subr.bf16.mxu0 %v9032_v26  ;;  %v9052_v26 = vpack.c.bf16 %v3593_v6, %v3591_v17  ;;  %v9054_v35 = vpack.c.bf16 %v3592_v44, %v3590_v12  ;;  %v3603_v6 = vld [vmem:[%s17699_s11 + $0x2c8] sm:$0xff]  ;;  %v13507_v44 = vld [vmem:[%s10757_s20 + $0x18] sm:$0xff] }
 0x50d   : > { %9035 = vmatpush1.bf16.msra.mxu0 %v9034_v42  ;;  %v18293_v42 = vld [vmem:[#allocation18_spill] sm:$0xff] }
 0x50e   : > { %9037 = vmatprep.subr.bf16.mxu0 %v9036_v20  ;;  %v967_v20 = vadd.f32 -2.0, %v18293_v42 }
 0x510   : > { %vm975_vm9 = vcmp.ge.f32.partialorder %v967_v20, 0.0  ;;  %vm983_vm2 = vcmp.lt.f32.partialorder %v967_v20, 8.0 }
 0x511   : > { %9039 = vmatpush1.bf16.msra.mxu0 %v9038_v10  ;;  %v3456_v10 = vsel %vm18294_vm6, %v3442_v11, %v3443_v27  ;;  %vm991_vm8 = vmand %vm975_vm9, %vm983_vm2 }
 0x512   : > { %9041 = vmatprep.subr.bf16.mxu0 %v9040_v3  ;;  %v9056_v3 = vpack.c.bf16 %v3597_v50, %v3595_v54  ;;  %v3459_v45 = vmul.f32 %v18295_v30, %v3456_v10  ;;  %v13477_v11 = vsel %vm991_vm8, 1.0, %v18291_v15  ;;  %v18299_v54 = vld [vmem:[#allocation22_spill] sm:$0xff]  ;;  %vm18306_vm9 = vmmov %vm18298_vm4 }
 0x513   : > { %18296 = vst [vmem:[#allocation40_spill] sm:$0xff] %v13477_v11  ;;  %v3435_v19 = vmul.f32 %v13477_v11, %v3432_v62  ;;  %v969_v50 = vadd.f32 -2.0, %v18299_v54 }
 0x514   : > { %3911 = vmatmul.mubr.f32.vlgmr.msra.gmra.mrb[80].mxu0 %v3434_v18  ;;  %v13480_v18 = vld [vmem:[%s10757_s20 + $0x10] sm:$0xff] }
 0x515   : > { %9043 = vmatpush1.bf16.msra.mxu0 %v9042_v38  ;;  %v3444_v52 = vrot.slane %v13480_v18, 7  ;;  %v18297_v38 = vld [vmem:[#allocation19_spill] sm:$0xff]  ;;  %v3420_v63 = vrot.slane %v13480_v18, 6  ;;  %3916 = vmatprep.mubr.f32.mxu0 %v3459_v45  ;;  %vm977_vm11 = vcmp.ge.f32.partialorder %v969_v50, 0.0  ;;  %vm985_vm10 = vcmp.lt.f32.partialorder %v969_v50, 8.0  ;;  %v18304_v50 = vld [vmem:[#allocation54_spill] sm:$0xff] }
 0x516   : > { %9045 = vmatprep.subr.bf16.mxu0 %v9044_v32  ;;  %v968_v32 = vadd.f32 -2.0, %v18297_v38  ;;  %vm993_vm1 = vmand %vm977_vm11, %vm985_vm10  ;;  %vm981_vm10 = vcmp.ge.f32.partialorder %v973_v33, 0.0 }
 0x517   : > { %v3431_v4 = vsel %vm3328_vm0, %v3419_v39, %v3420_v63  ;;  %vm18312_vm11 = vmmov %vm18306_vm9 }
 0x518   : > { %vm976_vm15 = vcmp.ge.f32.partialorder %v968_v32, 0.0  ;;  %vm984_vm13 = vcmp.lt.f32.partialorder %v968_v32, 8.0  ;;  %3917 = vmatmul.mubr.f32.gmra.mrb[82].mxu0 %v3435_v19  ;;  %v13534_v32 = vld [vmem:[%s10757_s20 + $0x20] sm:$0xff] }
 0x519   : > { %9047 = vmatpush1.bf16.msra.mxu0 %v9046_v29  ;;  %v3600_v29 = vld [vmem:[%s17699_s11 + $0x2b0] sm:$0xff]  ;;  %vm992_vm3 = vmand %vm976_vm15, %vm984_vm13 }
 0x51a   : > { %9049 = vmatprep.subr.bf16.mxu0 %v9048_v58  ;;  %v3455_v58 = vsel %vm18298_vm4, %v3443_v27, %v3444_v52  ;;  %v13504_v12 = vsel %vm992_vm3, 1.0, %v18291_v15  ;;  %v3421_v27 = vrot.slane %v13507_v44, 6  ;;  %v9062_v20 = vpack.c.bf16 %v3600_v29, %v3598_v61  ;;  %vm18309_vm15 = vmmov %vm18300_vm5 }
 0x51b   : > { %v3460_v17 = vmul.f32 %v18247_v9, %v3455_v58  ;;  %v3436_v39 = vmul.f32 %v13504_v12, %v3431_v4  ;;  %v3422_v61 = vrot.slane %v13534_v32, 6  ;;  %v3606_v4 = vld [vmem:[%s17699_s11 + $0x2e0] sm:$0xff] }
 0x51c   : > { %v3430_v10 = vsel %vm3328_vm0, %v3420_v63, %v3421_v27  ;;  %v3446_v63 = vrot.slane %v13534_v32, 7 }
 0x51d   : > { %9051 = vmatpush1.bf16.msra.mxu0 %v9050_v55  ;;  %v3605_v55 = vld [vmem:[%s17699_s11 + $0x2d8] sm:$0xff]  ;;  %3922 = vmatprep.mubr.f32.mxu0 %v3460_v17 }
 0x51e   : > { %9053 = vmatprep.subr.bf16.mxu0 %v9052_v26  ;;  %v3445_v26 = vrot.slane %v13507_v44, 7  ;;  %v9064_v62 = vpack.c.bf16 %v3605_v55, %v3603_v6  ;;  %3923 = vmatmul.mubr.f32.gmra.mrb[84].mxu0 %v3436_v39  ;;  %v3429_v6 = vsel %vm3328_vm0, %v3421_v27, %v3422_v61  ;;  %v9068_v55 = vpack.c.bf16 %v3609_v51, %v3607_v53  ;;  %v13552_v39 = vld [vmem:[%s10757_s20 + $0x28] sm:$0xff]  ;;  %v3610_v53 = vld [vmem:[%s17699_s11 + $0x300] sm:$0xff]  ;;  %v3612_v51 = vld [vmem:[%s17699_s11 + $0x310] sm:$0xff] }
 0x520   : > { %v3454_v49 = vsel %vm18300_vm5, %v3444_v52, %v3445_v26  ;;  %v13531_v52 = vsel %vm993_vm1, 1.0, %v18291_v15  ;;  %v3453_v17 = vsel %vm18303_vm12, %v3445_v26, %v3446_v63  ;;  %v3613_v26 = vld [vmem:[%s17699_s11 + $0x318] sm:$0xff]  ;;  %vm989_vm1 = vcmp.lt.f32.partialorder %v973_v33, 8.0  ;;  %v3618_v33 = vld [vmem:[%s17699_s11 + $0x340] sm:$0xff] }
 0x521   : > { %9055 = vmatpush1.bf16.msra.mxu0 %v9054_v35  ;;  %v3602_v35 = vld [vmem:[%s17699_s11 + $0x2c0] sm:$0xff]  ;;  %v3437_v58 = vmul.f32 %v13531_v52, %v3430_v10  ;;  %vm997_vm12 = vmand %vm981_vm10, %vm989_vm1 }
 0x522   : > { %9057 = vmatprep.subr.bf16.mxu0 %v9056_v3  ;;  %v18301_v3 = vld [vmem:[#allocation50_spill] sm:$0xff]  ;;  %v9066_v29 = vpack.c.bf16 %v3604_v23, %v3602_v35  ;;  %v3447_v35 = vrot.slane %v13552_v39, 7  ;;  %v3611_v23 = vld [vmem:[%s17699_s11 + $0x308] sm:$0xff] }
 0x523   : > { %v3461_v45 = vmul.f32 %v18301_v3, %v3454_v49  ;;  %v18305_v49 = vld [vmem:[#allocation36_spill] sm:$0xff] }
 0x524   : > { %v971_v10 = vadd.f32 -2.0, %v18305_v49 }
 0x525   : > { %9059 = vmatpush1.bf16.msra.mxu0 %v9058_v13  ;;  %v18302_v13 = vld [vmem:[#allocation26_spill] sm:$0xff]  ;;  %3928 = vmatprep.mubr.f32.mxu0 %v3461_v45 }
 0x526   : > { %9061 = vmatprep.subr.bf16.mxu0 %v9060_v60  ;;  %v970_v19 = vadd.f32 -2.0, %v18302_v13  ;;  %v3608_v60 = vld [vmem:[%s17699_s11 + $0x2f0] sm:$0xff]  ;;  %3929 = vmatmul.mubr.f32.gmra.mrb[86].mxu0 %v3437_v58  ;;  %v3452_v58 = vsel %vm18306_vm9, %v3446_v63, %v3447_v35  ;;  %vm979_vm2 = vcmp.ge.f32.partialorder %v971_v10, 0.0  ;;  %vm987_vm8 = vcmp.lt.f32.partialorder %v971_v10, 8.0  ;;  %v3615_v10 = vld [vmem:[%s17699_s11 + $0x328] sm:$0xff] }
 0x527   : > { %v9070_v45 = vpack.c.bf16 %v3608_v60, %v3606_v4  ;;  %v9072_v60 = vpack.c.bf16 %v3613_v26, %v3611_v23  ;;  %vm995_vm4 = vmand %vm979_vm2, %vm987_vm8  ;;  %v3424_v63 = vrot.slane %v13579_v7, 6 }
 0x528   : > { %vm978_vm14 = vcmp.ge.f32.partialorder %v970_v19, 0.0  ;;  %vm986_vm7 = vcmp.lt.f32.partialorder %v970_v19, 8.0 }
 0x529   : > { %9063 = vmatpush1.bf16.msra.mxu0 %v9062_v20  ;;  %v3462_v20 = vmul.f32 %v18304_v50, %v3453_v17  ;;  %vm994_vm6 = vmand %vm978_vm14, %vm986_vm7  ;;  %v18307_v17 = vld [vmem:[#allocation58_spill] sm:$0xff]  ;;  %vm18315_vm14 = vcmp.lt.s32.totalorder %v10981_v40, 7 }
 0x52a   : > { %9065 = vmatprep.subr.bf16.mxu0 %v9064_v62  ;;  %v13562_v27 = vsel %vm994_vm6, 1.0, %v18291_v15  ;;  %v3423_v62 = vrot.slane %v13552_v39, 6  ;;  %v3463_v37 = vmul.f32 %v18307_v17, %v3452_v58  ;;  %v18311_v58 = vrot.slane %v13230_v56, 7  ;;  %vm18316_vm7 = vmmov %vm18315_vm14 }
 0x52b   : > { %3934 = vmatprep.mubr.f32.mxu0 %v3462_v20  ;;  %v3438_v19 = vmul.f32 %v13562_v27, %v3429_v6  ;;  %v3448_v20 = vrot.slane %v13579_v7, 7  ;;  %v18308_v6 = vld [vmem:[#allocation47_spill] sm:$0xff]  ;;  %vm18317_vm6 = vmmov %vm18316_vm7 }
 0x52c   : > { %v3428_v4 = vsel %vm3328_vm0, %v3422_v61, %v3423_v62  ;;  %v972_v31 = vadd.f32 -2.0, %v18308_v6  ;;  %v3617_v61 = vld [vmem:[%s17699_s11 + $0x338] sm:$0xff]  ;;  %vm18318_vm9 = vmmov %vm18317_vm6 }
 0x52d   : > { %9067 = vmatpush1.bf16.msra.mxu0 %v9066_v29  ;;  %v9074_v29 = vpack.c.bf16 %v3612_v51, %v3610_v53  ;;  %v3451_v26 = vsel %vm18309_vm15, %v3447_v35, %v3448_v20  ;;  %v18310_v53 = vld [vmem:[#allocation62_spill] sm:$0xff]  ;;  %v3616_v35 = vld [vmem:[%s17699_s11 + $0x330] sm:$0xff]  ;;  %vm18319_vm2 = vmmov %vm18317_vm6 }
 0x52e   : > { %9069 = vmatprep.subr.bf16.mxu0 %v9068_v55  ;;  %3935 = vmatmul.mubr.f32.gmra.mrb[88].mxu0 %v3438_v19  ;;  %v13591_v55 = vsel %vm995_vm4, 1.0, %v18291_v15  ;;  %vm980_vm13 = vcmp.ge.f32.partialorder %v972_v31, 0.0  ;;  %vm988_vm3 = vcmp.lt.f32.partialorder %v972_v31, 8.0  ;;  %v3464_v51 = vmul.f32 %v18310_v53, %v3451_v26  ;;  %v3614_v31 = vld [vmem:[%s17699_s11 + $0x320] sm:$0xff]  ;;  %vm18320_vm8 = vmmov %vm18319_vm2 }
 0x52f   : > { %3940 = vmatprep.mubr.f32.mxu0 %v3463_v37  ;;  %v3439_v23 = vmul.f32 %v13591_v55, %v3428_v4  ;;  %vm996_vm5 = vmand %vm980_vm13, %vm988_vm3  ;;  %v3427_v19 = vsel %vm3328_vm0, %v3423_v62, %v3424_v63  ;;  %v3450_v37 = vsel %vm18312_vm11, %v3448_v20, %v18311_v58  ;;  %v9076_v4 = vpack.c.bf16 %v3617_v61, %v3615_v10  ;;  %v3619_v20 = vld [vmem:[%s17699_s11 + $0x348] sm:$0xff] }
 0x530   : > { %v13611_v62 = vsel %vm996_vm5, 1.0, %v18291_v15  ;;  %v18314_v61 = vrot.slane %v13230_v56, 6  ;;  %v9078_v26 = vpack.c.bf16 %v3616_v35, %v3614_v31  ;;  %v13626_v58 = vsel %vm997_vm12, 1.0, %v18291_v15  ;;  %vm18321_vm4 = vmmov %vm18319_vm2 }
 0x531   : > { %9071 = vmatpush1.bf16.msra.mxu0 %v9070_v45  ;;  %v3465_v45 = vmul.f32 %v12030_v25, %v3450_v37  ;;  %v3440_v10 = vmul.f32 %v13611_v62, %v3427_v19  ;;  %v3466_v37 = vrot.slane %v13226_v59, 1  ;;  %v3623_v19 = vld [vmem:[%s17699_s11 + $0x368] sm:$0xff]  ;;  %vm18322_vm15 = vmmov %vm18319_vm2  ;;  %vm3401_vm5 = vcmp.lt.s32.totalorder %v10981_v40, 6 }
 0x532   : > { %9073 = vmatprep.subr.bf16.mxu0 %v9072_v60  ;;  %3941 = vmatmul.mubr.f32.gmra.mrb[90].mxu0 %v3439_v23  ;;  %v3621_v60 = vld [vmem:[%s17699_s11 + $0x358] sm:$0xff]  ;;  %v3426_v23 = vsel %vm3328_vm0, %v3424_v63, %v18314_v61  ;;  %v3620_v63 = vld [vmem:[%s17699_s11 + $0x350] sm:$0xff]  ;;  %v3627_v61 = vld [vmem:[%s17699_s11 + $0x388] sm:$0xff] }
 0x533   : > { %3946 = vmatprep.mubr.f32.mxu0 %v3464_v51  ;;  %v9080_v51 = vpack.c.bf16 %v3621_v60, %v3619_v20  ;;  %v3480_v31 = vsel %vm18315_vm14, %v3466_v37, %v3467_v0  ;;  %v9082_v20 = vpack.c.bf16 %v3620_v63, %v3618_v33  ;;  %v3626_v33 = vld [vmem:[%s17699_s11 + $0x380] sm:$0xff]  ;;  %v3628_v63 = vld [vmem:[%s17699_s11 + $0x390] sm:$0xff] }
 0x534   : > { %v3482_v35 = vmul.f32 %v12072_v48, %v3480_v31 }
 0x535   : > { %9075 = vmatpush1.bf16.msra.mxu0 %v9074_v29  ;;  %v3441_v29 = vmul.f32 %v13626_v58, %v3426_v23  ;;  %v3629_v23 = vld [vmem:[%s17699_s11 + $0x398] sm:$0xff] }
 0x536   : > { %9077 = vmatprep.subr.bf16.mxu0 %v9076_v4  ;;  %3947 = vmatmul.mubr.f32.gmra.mrb[92].mxu0 %v3440_v10  ;;  %v3625_v4 = vld [vmem:[%s17699_s11 + $0x378] sm:$0xff]  ;;  %v3622_v10 = vld [vmem:[%s17699_s11 + $0x360] sm:$0xff] }
 0x537   : > { %3952 = vmatprep.mubr.f32.mxu0 %v3465_v45  ;;  %v9084_v60 = vpack.c.bf16 %v3625_v4, %v3623_v19  ;;  %v3624_v45 = vld [vmem:[%s17699_s11 + $0x370] sm:$0xff]  ;;  %v3633_v19 = vld [vmem:[%s17699_s11 + $0x3b8] sm:$0xff]  ;;  %v9090_v4 = vpack.c.bf16 %v3628_v63, %v3626_v33 }
 0x538   : > { %v3641_v33 = vld [vmem:[%s17699_s11 + $0x3f8] sm:$0xff] }
 0x539   : > { %9079 = vmatpush1.bf16.msra.mxu0 %v9078_v26  ;;  %v9086_v26 = vpack.c.bf16 %v3624_v45, %v3622_v10  ;;  %v3637_v10 = vld [vmem:[%s17699_s11 + $0x3d8] sm:$0xff] }
 0x53a   : > { %9081 = vmatprep.subr.bf16.mxu0 %v9080_v51  ;;  %3953 = vmatmul.mubr.f32.gmra.mrb[94].mxu0 %v3441_v29  ;;  %v9088_v51 = vpack.c.bf16 %v3629_v23, %v3627_v61  ;;  %v3631_v29 = vld [vmem:[%s17699_s11 + $0x3a8] sm:$0xff]  ;;  %v3634_v23 = vld [vmem:[%s17699_s11 + $0x3c0] sm:$0xff] }
 0x53b   : > { %4023 = vmatprep.mubr.f32.mxu0 %v3482_v35  ;;  %v9092_v31 = vpack.c.bf16 %v3633_v19, %v3631_v29  ;;  %v3630_v35 = vld [vmem:[%s17699_s11 + $0x3a0] sm:$0xff] }
 0x53c   : > { %v3638_v19 = vld [vmem:[%s17699_s11 + $0x3e0] sm:$0xff] }
 0x53d   : > { %9083 = vmatpush1.bf16.msra.mxu0 %v9082_v20  ;;  %v3632_v20 = vld [vmem:[%s17699_s11 + $0x3b0] sm:$0xff] }
 0x53e   : > { %9085 = vmatprep.subr.bf16.mxu0 %v9084_v60  ;;  %v3635_v60 = vld [vmem:[%s17699_s11 + $0x3c8] sm:$0xff]  ;;  %v9094_v45 = vpack.c.bf16 %v3632_v20, %v3630_v35  ;;  %v3645_v35 = vld [vmem:[%s17699_s11 + $0x418] sm:$0xff] }
 0x53f   : > { %v9096_v61 = vpack.c.bf16 %v3637_v10, %v3635_v60  ;;  %v3642_v10 = vld [vmem:[%s17699_s11 + $0x400] sm:$0xff] }
 0x541   : > { %9087 = vmatpush1.bf16.msra.mxu0 %v9086_v26  ;;  %v3636_v26 = vld [vmem:[%s17699_s11 + $0x3d0] sm:$0xff] }
 0x542   : > { %9089 = vmatprep.subr.bf16.mxu0 %v9088_v51  ;;  %v3639_v51 = vld [vmem:[%s17699_s11 + $0x3e8] sm:$0xff]  ;;  %v9098_v63 = vpack.c.bf16 %v3636_v26, %v3634_v23  ;;  %v3649_v23 = vld [vmem:[%s17699_s11 + $0x438] sm:$0xff] }
 0x543   : > { %v9100_v29 = vpack.c.bf16 %v3641_v33, %v3639_v51  ;;  %v3646_v33 = vld [vmem:[%s17699_s11 + $0x420] sm:$0xff] }
 0x545   : > { %9091 = vmatpush1.bf16.msra.mxu0 %v9090_v4  ;;  %v3640_v4 = vld [vmem:[%s17699_s11 + $0x3f0] sm:$0xff] }
 0x546   : > { %9093 = vmatprep.subr.bf16.mxu0 %v9092_v31  ;;  %v3643_v31 = vld [vmem:[%s17699_s11 + $0x408] sm:$0xff]  ;;  %v9102_v20 = vpack.c.bf16 %v3640_v4, %v3638_v19  ;;  %v3653_v19 = vld [vmem:[%s17699_s11 + $0x458] sm:$0xff] }
 0x547   : > { %v9104_v60 = vpack.c.bf16 %v3645_v35, %v3643_v31  ;;  %v3650_v35 = vld [vmem:[%s17699_s11 + $0x440] sm:$0xff] }
 0x549   : > { %9095 = vmatpush1.bf16.msra.mxu0 %v9094_v45  ;;  %v3644_v45 = vld [vmem:[%s17699_s11 + $0x410] sm:$0xff] }
 0x54a   : > { %9097 = vmatprep.subr.bf16.mxu0 %v9096_v61  ;;  %v3647_v61 = vld [vmem:[%s17699_s11 + $0x428] sm:$0xff]  ;;  %v9106_v26 = vpack.c.bf16 %v3644_v45, %v3642_v10  ;;  %v3657_v10 = vld [vmem:[%s17699_s11 + $0x478] sm:$0xff] }
 0x54b   : > { %v9108_v51 = vpack.c.bf16 %v3649_v23, %v3647_v61  ;;  %v3654_v23 = vld [vmem:[%s17699_s11 + $0x460] sm:$0xff] }
 0x54d   : > { %9099 = vmatpush1.bf16.msra.mxu0 %v9098_v63  ;;  %v3648_v63 = vld [vmem:[%s17699_s11 + $0x430] sm:$0xff] }
 0x54e   : > { %9101 = vmatprep.subr.bf16.mxu0 %v9100_v29  ;;  %v3651_v29 = vld [vmem:[%s17699_s11 + $0x448] sm:$0xff]  ;;  %v9110_v4 = vpack.c.bf16 %v3648_v63, %v3646_v33  ;;  %v3661_v33 = vld [vmem:[%s17699_s11 + $0x498] sm:$0xff] }
 0x54f   : > { %v9112_v31 = vpack.c.bf16 %v3653_v19, %v3651_v29  ;;  %v3658_v19 = vld [vmem:[%s17699_s11 + $0x480] sm:$0xff] }
 0x551   : > { %9103 = vmatpush1.bf16.msra.mxu0 %v9102_v20  ;;  %v3652_v20 = vld [vmem:[%s17699_s11 + $0x450] sm:$0xff] }
 0x552   : > { %9105 = vmatprep.subr.bf16.mxu0 %v9104_v60  ;;  %v3655_v60 = vld [vmem:[%s17699_s11 + $0x468] sm:$0xff]  ;;  %v9114_v45 = vpack.c.bf16 %v3652_v20, %v3650_v35  ;;  %v3665_v35 = vld [vmem:[%s17699_s11 + $0x4b8] sm:$0xff] }
 0x553   : > { %v9116_v61 = vpack.c.bf16 %v3657_v10, %v3655_v60  ;;  %v3662_v10 = vld [vmem:[%s17699_s11 + $0x4a0] sm:$0xff] }
 0x554   : > { %4024 = vmatmul.mubr.f32.vlgmr.msra.gmra.mrb[80].mxu0 %v13226_v59  ;;  %v3699_v59 = vld [vmem:[%s17699_s11 + $0x5c8] sm:$0xff] }
 0x555   : > { %9107 = vmatpush1.bf16.msra.mxu0 %v9106_v26  ;;  %v3656_v26 = vld [vmem:[%s17699_s11 + $0x470] sm:$0xff] }
 0x556   : > { %9109 = vmatprep.subr.bf16.mxu0 %v9108_v51  ;;  %v3659_v51 = vld [vmem:[%s17699_s11 + $0x488] sm:$0xff]  ;;  %v9118_v63 = vpack.c.bf16 %v3656_v26, %v3654_v23  ;;  %v3669_v23 = vld [vmem:[%s17699_s11 + $0x4d8] sm:$0xff] }
 0x557   : > { %v9120_v29 = vpack.c.bf16 %v3661_v33, %v3659_v51  ;;  %v3666_v33 = vld [vmem:[%s17699_s11 + $0x4c0] sm:$0xff] }
 0x559   : > { %9111 = vmatpush1.bf16.msra.mxu0 %v9110_v4  ;;  %v3660_v4 = vld [vmem:[%s17699_s11 + $0x490] sm:$0xff] }
 0x55a   : > { %9113 = vmatprep.subr.bf16.mxu0 %v9112_v31  ;;  %v3663_v31 = vld [vmem:[%s17699_s11 + $0x4a8] sm:$0xff]  ;;  %v9122_v20 = vpack.c.bf16 %v3660_v4, %v3658_v19  ;;  %v3673_v19 = vld [vmem:[%s17699_s11 + $0x4f8] sm:$0xff] }
 0x55b   : > { %v9124_v60 = vpack.c.bf16 %v3665_v35, %v3663_v31  ;;  %v3670_v35 = vld [vmem:[%s17699_s11 + $0x4e0] sm:$0xff] }
 0x55d   : > { %9115 = vmatpush1.bf16.msra.mxu0 %v9114_v45  ;;  %v3664_v45 = vld [vmem:[%s17699_s11 + $0x4b0] sm:$0xff] }
 0x55e   : > { %9117 = vmatprep.subr.bf16.mxu0 %v9116_v61  ;;  %v3667_v61 = vld [vmem:[%s17699_s11 + $0x4c8] sm:$0xff]  ;;  %v9126_v26 = vpack.c.bf16 %v3664_v45, %v3662_v10  ;;  %v3677_v10 = vld [vmem:[%s17699_s11 + $0x518] sm:$0xff]  ;;  %v3468_v45 = vrot.slane %v13480_v18, 1 }
 0x55f   : > { %v9128_v51 = vpack.c.bf16 %v3669_v23, %v3667_v61  ;;  %v3469_v61 = vrot.slane %v13507_v44, 1  ;;  %v3470_v23 = vrot.slane %v13534_v32, 1 }
 0x561   : > { %9119 = vmatpush1.bf16.msra.mxu0 %v9118_v63  ;;  %v3668_v63 = vld [vmem:[%s17699_s11 + $0x4d0] sm:$0xff] }
 0x562   : > { %9121 = vmatprep.subr.bf16.mxu0 %v9120_v29  ;;  %v3671_v29 = vld [vmem:[%s17699_s11 + $0x4e8] sm:$0xff]  ;;  %v9130_v4 = vpack.c.bf16 %v3668_v63, %v3666_v33  ;;  %v3674_v63 = vld [vmem:[%s17699_s11 + $0x500] sm:$0xff] }
 0x563   : > { %v9132_v31 = vpack.c.bf16 %v3673_v19, %v3671_v29  ;;  %v3676_v29 = vld [vmem:[%s17699_s11 + $0x510] sm:$0xff] }
 0x565   : > { %9123 = vmatpush1.bf16.msra.mxu0 %v9122_v20  ;;  %v3672_v20 = vld [vmem:[%s17699_s11 + $0x4f0] sm:$0xff] }
 0x566   : > { %9125 = vmatprep.subr.bf16.mxu0 %v9124_v60  ;;  %v3675_v60 = vld [vmem:[%s17699_s11 + $0x508] sm:$0xff] }
 0x567   : > { %v9136_v33 = vpack.c.bf16 %v3677_v10, %v3675_v60  ;;  %v3471_v60 = vrot.slane %v13552_v39, 1  ;;  %v9138_v10 = vpack.c.bf16 %v3676_v29, %v3674_v63  ;;  %v3472_v63 = vrot.slane %v13579_v7, 1 }
 0x569   : > { %9127 = vmatpush1.bf16.msra.mxu0 %v9126_v26  ;;  %v9134_v26 = vpack.c.bf16 %v3672_v20, %v3670_v35  ;;  %v3679_v35 = vld [vmem:[%s17699_s11 + $0x528] sm:$0xff]  ;;  %v3477_v20 = vsel %vm18318_vm9, %v3469_v61, %v3470_v23 }
 0x56a   : > { %9129 = vmatprep.subr.bf16.mxu0 %v9128_v51  ;;  %v3479_v51 = vsel %vm18316_vm7, %v3467_v0, %v3468_v45  ;;  %v3681_v0 = vld [vmem:[%s17699_s11 + $0x538] sm:$0xff] }
 0x56b   : > { %v3483_v19 = vmul.f32 %v12123_v5, %v3479_v51  ;;  %v3678_v51 = vld [vmem:[%s17699_s11 + $0x520] sm:$0xff] }
 0x56d   : > { %9131 = vmatpush1.bf16.msra.mxu0 %v9130_v4  ;;  %v3478_v4 = vsel %vm18317_vm6, %v3468_v45, %v3469_v61  ;;  %4029 = vmatprep.mubr.f32.mxu0 %v3483_v19  ;;  %v9140_v45 = vpack.c.bf16 %v3681_v0, %v3679_v35  ;;  %v3683_v61 = vld [vmem:[%s17699_s11 + $0x548] sm:$0xff]  ;;  %v3682_v35 = vld [vmem:[%s17699_s11 + $0x540] sm:$0xff]  ;;  %v3684_v0 = vld [vmem:[%s17699_s11 + $0x550] sm:$0xff] }
 0x56e   : > { %9133 = vmatprep.subr.bf16.mxu0 %v9132_v31  ;;  %v3484_v31 = vmul.f32 %v18271_v41, %v3478_v4  ;;  %4030 = vmatmul.mubr.f32.gmra.mrb[82].mxu0 %v13452_v22  ;;  %v3680_v4 = vld [vmem:[%s17699_s11 + $0x530] sm:$0xff]  ;;  %v3476_v22 = vsel %vm18319_vm2, %v3470_v23, %v3471_v60  ;;  %v3687_v23 = vld [vmem:[%s17699_s11 + $0x568] sm:$0xff] }
 0x56f   : > { %v9142_v29 = vpack.c.bf16 %v3680_v4, %v3678_v51  ;;  %v3686_v4 = vld [vmem:[%s17699_s11 + $0x560] sm:$0xff] }
 0x570   : > { %4035 = vmatprep.mubr.f32.mxu0 %v3484_v31  ;;  %v3689_v31 = vld [vmem:[%s17699_s11 + $0x578] sm:$0xff] }
 0x571   : > { %9135 = vmatpush1.bf16.msra.mxu0 %v9134_v26  ;;  %v3685_v26 = vld [vmem:[%s17699_s11 + $0x558] sm:$0xff]  ;;  %v9148_v51 = vpack.c.bf16 %v3689_v31, %v3687_v23 }
 0x572   : > { %9137 = vmatprep.subr.bf16.mxu0 %v9136_v33  ;;  %v3485_v33 = vmul.f32 %v12200_v21, %v3477_v20  ;;  %v9144_v19 = vpack.c.bf16 %v3685_v26, %v3683_v61  ;;  %4036 = vmatmul.mubr.f32.gmra.mrb[84].mxu0 %v13480_v18  ;;  %v3486_v20 = vmul.f32 %v18272_v14, %v3476_v22  ;;  %v3688_v61 = vld [vmem:[%s17699_s11 + $0x570] sm:$0xff] }
 0x573   : > { %v3475_v18 = vsel %vm18320_vm8, %v3471_v60, %v3472_v63  ;;  %v3691_v60 = vld [vmem:[%s17699_s11 + $0x588] sm:$0xff] }
 0x574   : > { %4041 = vmatprep.mubr.f32.mxu0 %v3485_v33  ;;  %v3487_v26 = vmul.f32 %v12285_v16, %v3475_v18  ;;  %v9150_v33 = vpack.c.bf16 %v3688_v61, %v3686_v4  ;;  %v3696_v18 = vld [vmem:[%s17699_s11 + $0x5b0] sm:$0xff]  ;;  %v13918_v4 = vld [vmem:[%s17698_s10] ss:$0 sm:$0xff] }
 0x575   : > { %9139 = vmatpush1.bf16.msra.mxu0 %v9138_v10  ;;  %v3473_v10 = vrot.slane %v13230_v56, 1  ;;  %v3693_v56 = vld [vmem:[%s17699_s11 + $0x598] sm:$0xff] }
 0x576   : > { %9141 = vmatprep.subr.bf16.mxu0 %v9140_v45  ;;  %v9146_v45 = vpack.c.bf16 %v3684_v0, %v3682_v35  ;;  %4042 = vmatmul.mubr.f32.gmra.mrb[86].mxu0 %v13507_v44  ;;  %v9152_v22 = vpack.c.bf16 %v3693_v56, %v3691_v60  ;;  %v3695_v35 = vld [vmem:[%s17699_s11 + $0x5a8] sm:$0xff] }
 0x577   : > { %4047 = vmatprep.mubr.f32.mxu0 %v3486_v20  ;;  %v3474_v44 = vsel %vm18321_vm4, %v3472_v63, %v3473_v10  ;;  %v3697_v63 = vld [vmem:[%s17699_s11 + $0x5b8] sm:$0xff]  ;;  %v3694_v20 = vld [vmem:[%s17699_s11 + $0x5a0] sm:$0xff] }
 0x578   : > { %v3488_v0 = vmul.f32 %v18273_v46, %v3474_v44  ;;  %v9156_v31 = vpack.c.bf16 %v3697_v63, %v3695_v35  ;;  %v3700_v44 = vld [vmem:[%s17699_s11 + $0x5d0] sm:$0xff] }
 0x579   : > { %9143 = vmatpush1.bf16.msra.mxu0 %v9142_v29  ;;  %v3690_v29 = vld [vmem:[%s17699_s11 + $0x580] sm:$0xff] }
 0x57a   : > { %9145 = vmatprep.subr.bf16.mxu0 %v9144_v19  ;;  %4048 = vmatmul.mubr.f32.gmra.mrb[88].mxu0 %v13534_v32  ;;  %v3692_v19 = vld [vmem:[%s17699_s11 + $0x590] sm:$0xff]  ;;  %v3481_v32 = vsel %vm18322_vm15, %v3473_v10, %v3466_v37  ;;  %v3701_v37 = vld [vmem:[%s17699_s11 + $0x5d8] sm:$0xff] }
 0x57b   : > { %4053 = vmatprep.mubr.f32.mxu0 %v3487_v26  ;;  %v9154_v23 = vpack.c.bf16 %v3692_v19, %v3690_v29  ;;  %v3489_v10 = vmul.f32 %v18278_v24, %v3481_v32  ;;  %v9160_v56 = vpack.c.bf16 %v3701_v37, %v3699_v59  ;;  %v3698_v26 = vld [vmem:[%s17699_s11 + $0x5c0] sm:$0xff]  ;;  %v3703_v29 = vld [vmem:[%s17699_s11 + $0x5e8] sm:$0xff]  ;;  %v3704_v59 = vld [vmem:[%s17699_s11 + $0x5f0] sm:$0xff] }
 0x57d   : > { %9147 = vmatpush1.bf16.msra.mxu0 %v9146_v45 }
 0x57e   : > { %9149 = vmatprep.subr.bf16.mxu0 %v9148_v51  ;;  %4054 = vmatmul.mubr.f32.gmra.mrb[90].mxu0 %v13552_v39  ;;  %v9158_v51 = vpack.c.bf16 %v3696_v18, %v3694_v20  ;;  %v13935_v20 = vld [vmem:[%s10757_s20 + $0x38] sm:$0xff]  ;;  %v3702_v18 = vld [vmem:[%s17699_s11 + $0x5e0] sm:$0xff] }
 0x57f   : > { %4059 = vmatprep.mubr.f32.mxu0 %v3488_v0  ;;  %v9162_v0 = vpack.c.bf16 %v3700_v44, %v3698_v26  ;;  %v9166_v26 = vpack.c.bf16 %v3704_v59, %v3702_v18 }
 0x581   : > { %9151 = vmatpush1.bf16.msra.mxu0 %v9150_v33 }
 0x582   : > { %9153 = vmatprep.subr.bf16.mxu0 %v9152_v22  ;;  %4060 = vmatmul.mubr.f32.gmra.mrb[92].mxu0 %v13579_v7  ;;  %v3705_v7 = vld [vmem:[%s17699_s11 + $0x5f8] sm:$0xff] }
 0x583   : > { %4065 = vmatprep.mubr.f32.mxu0 %v3489_v10 }
 0x585   : > { %v7684_v39 = vpop.f32.mrb[48].mxu1  ;;  %v7740_v45 = vpop.f32.mrb[48].mxu0  ;;  %9155 = vmatpush1.bf16.msra.mxu0 %v9154_v23 }
 0x586   : > { %v7685_v61 = vpop.f32.mrb[49].mxu1  ;;  %v7741_v60 = vpop.f32.mrb[49].mxu0  ;;  %9157 = vmatprep.subr.bf16.mxu0 %v9156_v31  ;;  %v9164_v31 = vpack.c.bf16 %v3705_v7, %v3703_v29  ;;  %4066 = vmatmul.mubr.f32.gmra.mrb[94].mxu0 %v13935_v20 }
 0x587   : > { %v7686_v33 = vadd.f32 %v7685_v61, %v7684_v39  ;;  %v7742_v22 = vadd.f32 %v7741_v60, %v7740_v45  ;;  %v3707_v45 = vld [vmem:[%s17699_s11 + $0x608] sm:$0xff] }
 0x589   : > { %v2790_v19 = vadd.f32 %v7686_v33, %v13918_v4  ;;  %v7687_v35 = vpop.f32.mrb[50].mxu1  ;;  %v7743_v63 = vpop.f32.mrb[50].mxu0  ;;  %9159 = vmatpush1.bf16.msra.mxu0 %v9158_v51  ;;  %v3709_v51 = vld [vmem:[%s17699_s11 + $0x618] sm:$0xff] }
 0x58a   : > { %v7688_v32 = vpop.f32.mrb[51].mxu1  ;;  %v7744_v23 = vpop.f32.mrb[51].mxu0  ;;  %9161 = vmatprep.subr.bf16.mxu0 %v9160_v56 }
 0x58b   : > { %v13944_v37 = vadd.f32 %v7742_v22, %v2790_v19  ;;  %v7689_v10 = vadd.f32 %v7688_v32, %v7687_v35  ;;  %v7745_v39 = vadd.f32 %v7744_v23, %v7743_v63  ;;  %v9168_v22 = vpack.c.bf16 %v3709_v51, %v3707_v45 }
 0x58d   : > { %v2795_v61 = vadd.f32 %v7689_v10, %v13918_v4  ;;  %v7690_v60 = vpop.f32.mrb[52].mxu1  ;;  %v7746_v56 = vpop.f32.mrb[52].mxu0  ;;  %9163 = vmatpush1.bf16.msra.mxu0 %v9162_v0 }
 0x58e   : > { %v7691_v44 = vpop.f32.mrb[53].mxu1  ;;  %v7747_v33 = vpop.f32.mrb[53].mxu0  ;;  %9165 = vmatprep.subr.bf16.mxu0 %v9164_v31 }
 0x58f   : > { %v2900_v29 = vadd.f32 %v7745_v39, %v2795_v61  ;;  %v7692_v7 = vadd.f32 %v7691_v44, %v7690_v60  ;;  %v7748_v19 = vadd.f32 %v7747_v33, %v7746_v56 }
 0x591   : > { %v2800_v35 = vadd.f32 %v7692_v7, %v13918_v4  ;;  %v7693_v63 = vpop.f32.mrb[54].mxu1  ;;  %v7749_v32 = vpop.f32.mrb[54].mxu0  ;;  %9167 = vmatpush1.bf16.msra.mxu0 %v9166_v26 }
 0x592   : > { %v7694_v23 = vpop.f32.mrb[55].mxu1  ;;  %v7750_v36 = vpop.f32.mrb[55].mxu0  ;;  %9169 = vmatprep.subr.bf16.mxu0 %v9168_v22 }
 0x593   : > { %v2905_v10 = vadd.f32 %v7748_v19, %v2800_v35  ;;  %v7695_v1 = vadd.f32 %v7694_v23, %v7693_v63  ;;  %v7751_v57 = vadd.f32 %v7750_v36, %v7749_v32 }
 0x595   : > { %v2805_v0 = vadd.f32 %v7695_v1, %v13918_v4  ;;  %v7696_v18 = vpop.f32.mrb[56].mxu1  ;;  %v7752_v59 = vpop.f32.mrb[56].mxu0 }
 0x596   : > { %v7697_v31 = vpop.f32.mrb[57].mxu1  ;;  %v7753_v45 = vpop.f32.mrb[57].mxu0 }
 0x597   : > { %v2910_v39 = vadd.f32 %v7751_v57, %v2805_v0  ;;  %v7698_v51 = vadd.f32 %v7697_v31, %v7696_v18  ;;  %v7754_v61 = vadd.f32 %v7753_v45, %v7752_v59 }
 0x599   : > { %v2810_v60 = vadd.f32 %v7698_v51, %v13918_v4  ;;  %v7699_v56 = vpop.f32.mrb[58].mxu1  ;;  %v7755_v44 = vpop.f32.mrb[58].mxu0 }
 0x59a   : > { %v7700_v26 = vpop.f32.mrb[59].mxu1  ;;  %v7756_v33 = vpop.f32.mrb[59].mxu0 }
 0x59b   : > { %v2915_v7 = vadd.f32 %v7754_v61, %v2810_v60  ;;  %v7701_v22 = vadd.f32 %v7700_v26, %v7699_v56  ;;  %v7757_v19 = vadd.f32 %v7756_v33, %v7755_v44 }
 0x59d   : > { %v2815_v36 = vadd.f32 %v7701_v22, %v13918_v4  ;;  %v7702_v35 = vpop.f32.mrb[60].mxu1  ;;  %v7758_v1 = vpop.f32.mrb[60].mxu0 }
 0x59e   : > { %v7703_v63 = vpop.f32.mrb[61].mxu1  ;;  %v7759_v32 = vpop.f32.mrb[61].mxu0 }
 0x59f   : > { %v2920_v23 = vadd.f32 %v7757_v19, %v2815_v36  ;;  %v7704_v43 = vadd.f32 %v7703_v63, %v7702_v35  ;;  %v7760_v57 = vadd.f32 %v7759_v32, %v7758_v1 }
 0x5a1   : > { %v2820_v0 = vadd.f32 %v7704_v43, %v13918_v4  ;;  %v7705_v18 = vpop.f32.mrb[62].mxu1  ;;  %v7761_v59 = vpop.f32.mrb[62].mxu0 }
 0x5a2   : > { %v7706_v31 = vpop.f32.mrb[63].mxu1  ;;  %v7762_v45 = vpop.f32.mrb[63].mxu0 }
 0x5a3   : > { %v2925_v51 = vadd.f32 %v7760_v57, %v2820_v0  ;;  %v7707_v2 = vadd.f32 %v7706_v31, %v7705_v18  ;;  %v7763_v61 = vadd.f32 %v7762_v45, %v7761_v59 }
 0x5a5   : > { %v2825_v60 = vadd.f32 %v7707_v2, %v13918_v4  ;;  %v7796_v56 = vpop.f32.mrb[64].mxu1 }
 0x5a6   : > { %v7852_v44 = vpop.f32.mrb[64].mxu0  ;;  %v7797_v26 = vpop.f32.mrb[65].mxu1 }
 0x5a7   : > { %v2930_v33 = vadd.f32 %v7763_v61, %v2825_v60  ;;  %v7798_v22 = vadd.f32 %v7797_v26, %v7796_v56  ;;  %v7853_v24 = vpop.f32.mrb[65].mxu0 }
 0x5a8   : > { %v7854_v19 = vadd.f32 %v7853_v24, %v7852_v44 }
 0x5a9   : > { %v3000_v36 = vadd.f32 %v7798_v22, %v13944_v37  ;;  %v7799_v35 = vpop.f32.mrb[66].mxu1 }
 0x5aa   : > { %v7855_v43 = vpop.f32.mrb[66].mxu0  ;;  %v7800_v1 = vpop.f32.mrb[67].mxu1 }
 0x5ab   : > { %v7801_v63 = vadd.f32 %v7800_v1, %v7799_v35  ;;  %v7856_v32 = vpop.f32.mrb[67].mxu0  ;;  %v3105_v46 = vadd.f32 %v7854_v19, %v3000_v36 }
 0x5ac   : > { %v7857_v57 = vadd.f32 %v7856_v32, %v7855_v43 }
 0x5ad   : > { %v3005_v0 = vadd.f32 %v7801_v63, %v2900_v29  ;;  %v7802_v18 = vpop.f32.mrb[68].mxu1 }
 0x5ae   : > { %v7858_v59 = vpop.f32.mrb[68].mxu0  ;;  %v7803_v2 = vpop.f32.mrb[69].mxu1 }
 0x5af   : > { %v7804_v4 = vadd.f32 %v7803_v2, %v7802_v18  ;;  %v7859_v31 = vpop.f32.mrb[69].mxu0  ;;  %v3110_v45 = vadd.f32 %v7857_v57, %v3005_v0 }
 0x5b0   : > { %v7860_v61 = vadd.f32 %v7859_v31, %v7858_v59 }
 0x5b1   : > { %v3010_v60 = vadd.f32 %v7804_v4, %v2905_v10  ;;  %v7805_v56 = vpop.f32.mrb[70].mxu1 }
 0x5b2   : > { %v7861_v24 = vpop.f32.mrb[70].mxu0  ;;  %v7806_v44 = vpop.f32.mrb[71].mxu1 }
 0x5b3   : > { %v7807_v37 = vadd.f32 %v7806_v44, %v7805_v56  ;;  %v7862_v26 = vpop.f32.mrb[71].mxu0  ;;  %v3115_v22 = vadd.f32 %v7860_v61, %v3010_v60 }
 0x5b4   : > { %v7863_v16 = vadd.f32 %v7862_v26, %v7861_v24 }
 0x5b5   : > { %v3015_v35 = vadd.f32 %v7807_v37, %v2910_v39  ;;  %v7808_v1 = vpop.f32.mrb[72].mxu1 }
 0x5b6   : > { %v7864_v19 = vpop.f32.mrb[72].mxu0  ;;  %v7809_v36 = vpop.f32.mrb[73].mxu1 }
 0x5b7   : > { %v7810_v29 = vadd.f32 %v7809_v36, %v7808_v1  ;;  %v7865_v43 = vpop.f32.mrb[73].mxu0  ;;  %v3120_v63 = vadd.f32 %v7863_v16, %v3015_v35 }
 0x5b8   : > { %v7866_v32 = vadd.f32 %v7865_v43, %v7864_v19 }
 0x5b9   : > { %v3020_v18 = vadd.f32 %v7810_v29, %v2915_v7  ;;  %v7811_v2 = vpop.f32.mrb[74].mxu1 }
 0x5ba   : > { %v7867_v57 = vpop.f32.mrb[74].mxu0  ;;  %v7812_v0 = vpop.f32.mrb[75].mxu1 }
 0x5bb   : > { %v7813_v10 = vadd.f32 %v7812_v0, %v7811_v2  ;;  %v7868_v59 = vpop.f32.mrb[75].mxu0  ;;  %v3125_v4 = vadd.f32 %v7866_v32, %v3020_v18 }
 0x5bc   : > { %v7869_v31 = vadd.f32 %v7868_v59, %v7867_v57 }
 0x5bd   : > { %v3025_v56 = vadd.f32 %v7813_v10, %v2920_v23  ;;  %v7814_v44 = vpop.f32.mrb[76].mxu1 }
 0x5be   : > { %v7870_v61 = vpop.f32.mrb[76].mxu0  ;;  %v7815_v60 = vpop.f32.mrb[77].mxu1 }
 0x5bf   : > { %v7816_v39 = vadd.f32 %v7815_v60, %v7814_v44  ;;  %v7871_v24 = vpop.f32.mrb[77].mxu0  ;;  %v3130_v37 = vadd.f32 %v7869_v31, %v3025_v56 }
 0x5c0   : > { %v7872_v26 = vadd.f32 %v7871_v24, %v7870_v61 }
 0x5c1   : > { %v3030_v1 = vadd.f32 %v7816_v39, %v2925_v51  ;;  %v7817_v36 = vpop.f32.mrb[78].mxu1 }
 0x5c2   : > { %v7873_v16 = vpop.f32.mrb[78].mxu0  ;;  %v7818_v35 = vpop.f32.mrb[79].mxu1 }
 0x5c3   : > { %v7819_v7 = vadd.f32 %v7818_v35, %v7817_v36  ;;  %v7874_v19 = vpop.f32.mrb[79].mxu0  ;;  %v3135_v29 = vadd.f32 %v7872_v26, %v3030_v1 }
 0x5c4   : > { %v7875_v43 = vadd.f32 %v7874_v19, %v7873_v16 }
 0x5c5   : > { %v3035_v2 = vadd.f32 %v7819_v7, %v2930_v33  ;;  %v8582_v0 = vpop.f32.mrb[80].mxu1 }
 0x5c6   : > { %v13960_v32 = vadd.f32 %v8582_v0, %v3110_v45  ;;  %v3209_v23 = vpop.f32.mrb[81].mxu1 }
 0x5c7   : > { %v13962_v18 = vadd.f32 %v3209_v23, %v3105_v46  ;;  %v3140_v57 = vadd.f32 %v7875_v43, %v3035_v2 }
 0x5c8   : > { %v3257_v10 = vmul.f32 0.044715, %v13960_v32 }
 0x5c9   : > { %v3256_v59 = vmul.f32 0.044715, %v13962_v18  ;;  %v8585_v51 = vpop.f32.mrb[82].mxu1 }
 0x5ca   : > { %v3265_v31 = vmul.f32 %v3257_v10, %v13960_v32  ;;  %v13967_v56 = vadd.f32 %v8585_v51, %v3120_v63  ;;  %v3219_v44 = vpop.f32.mrb[83].mxu1 }
 0x5cb   : > { %v3264_v61 = vmul.f32 %v3256_v59, %v13962_v18  ;;  %v13970_v33 = vadd.f32 %v3219_v44, %v3115_v22 }
 0x5cc   : > { %v3273_v45 = vmul.f32 %v3265_v31, %v13960_v32  ;;  %v3259_v46 = vmul.f32 0.044715, %v13967_v56 }
 0x5cd   : > { %v3272_v60 = vmul.f32 %v3264_v61, %v13962_v18  ;;  %v3258_v39 = vmul.f32 0.044715, %v13970_v33  ;;  %v8588_v24 = vpop.f32.mrb[84].mxu1 }
 0x5ce   : > { %v3281_v26 = vadd.f32 %v3273_v45, %v13960_v32  ;;  %v3267_v1 = vmul.f32 %v3259_v46, %v13967_v56  ;;  %v13978_v63 = vadd.f32 %v8588_v24, %v3130_v37  ;;  %v3229_v36 = vpop.f32.mrb[85].mxu1 }
 0x5cf   : > { %v3280_v16 = vadd.f32 %v3272_v60, %v13962_v18  ;;  %v3266_v22 = vmul.f32 %v3258_v39, %v13970_v33  ;;  %v13982_v35 = vadd.f32 %v3229_v36, %v3125_v4 }
 0x5d0   : > { %v3289_v7 = vmul.f32 0.7978846, %v3281_v26  ;;  %v3261_v19 = vmul.f32 0.044715, %v13978_v63  ;;  %v3275_v2 = vmul.f32 %v3267_v1, %v13967_v56 }
 0x5d1   : > { %v3288_v43 = vmul.f32 0.7978846, %v3280_v16  ;;  %v3274_v0 = vmul.f32 %v3266_v22, %v13970_v33  ;;  %v3260_v23 = vmul.f32 0.044715, %v13982_v35  ;;  %v8591_v10 = vpop.f32.mrb[86].mxu1 }
 0x5d2   : > { %v3245_v37 = vadd.f32 %v8591_v10, %v3140_v57  ;;  %v3239_v59 = vpop.f32.mrb[87].mxu1  ;;  %10186 = vtanh.f32 %v3289_v7  ;;  %v3283_v61 = vadd.f32 %v3275_v2, %v13967_v56  ;;  %v3269_v45 = vmul.f32 %v3261_v19, %v13978_v63 }
 0x5d3   : > { %v3282_v51 = vadd.f32 %v3274_v0, %v13970_v33  ;;  %v3268_v31 = vmul.f32 %v3260_v23, %v13982_v35  ;;  %v13990_v44 = vadd.f32 %v3239_v59, %v3135_v29  ;;  %10188 = vtanh.f32 %v3288_v43 }
 0x5d4   : > { %v3263_v4 = vmul.f32 0.044715, %v3245_v37  ;;  %v3291_v26 = vmul.f32 0.7978846, %v3283_v61  ;;  %v3277_v1 = vmul.f32 %v3269_v45, %v13978_v63  ;;  %v1014_v59 = vadd.f32 2.0, %v18290_v47  ;;  %v14004_v61 = vld [vmem:[%s10757_s20] sm:$0xff] }
 0x5d5   : > { %v3290_v46 = vmul.f32 0.7978846, %v3282_v51  ;;  %v3276_v60 = vmul.f32 %v3268_v31, %v13982_v35  ;;  %v3262_v57 = vmul.f32 0.044715, %v13990_v44  ;;  %v17872_v45 = vrot.slane %v14004_v61, 2 }
 0x5d6   : > { %v3271_v39 = vmul.f32 %v3263_v4, %v3245_v37  ;;  %v3285_v19 = vadd.f32 %v3277_v1, %v13978_v63  ;;  %vm1022_vm13 = vcmp.ge.f32.partialorder %v1014_v59, 0.0  ;;  %vm1030_vm3 = vcmp.lt.f32.partialorder %v1014_v59, 8.0 }
 0x5d7   : > { %10190 = vtanh.f32 %v3290_v46  ;;  %v3284_v29 = vadd.f32 %v3276_v60, %v13982_v35  ;;  %v3270_v16 = vmul.f32 %v3262_v57, %v13990_v44  ;;  %v10308_v46 = vld [vmem:[%s10757_s20 + $0x8] sm:$0xff]  ;;  %v3248_v57 = vmul.f32 0.5, %v13962_v18  ;;  %v10309_v18 = vld [vmem:[%s10757_s20 + $0x10] sm:$0xff]  ;;  %vm1038_vm11 = vmand %vm1022_vm13, %vm1030_vm3 }
 0x5d8   : > { %v3279_v24 = vmul.f32 %v3271_v39, %v3245_v37  ;;  %10192 = vtanh.f32 %v3291_v26  ;;  %v3293_v23 = vmul.f32 0.7978846, %v3285_v19  ;;  %v3491_v60 = vrot.slane %v10308_v46, 2  ;;  %v3708_v46 = vld [vmem:[%s17699_s11 + $0x610] sm:$0xff] }
 0x5d9   : > { %v3292_v43 = vmul.f32 0.7978846, %v3284_v29  ;;  %v3278_v2 = vmul.f32 %v3270_v16, %v13990_v44  ;;  %v3249_v39 = vmul.f32 0.5, %v13960_v32 }
 0x5da   : > { %v3287_v36 = vadd.f32 %v3279_v24, %v3245_v37  ;;  %v1015_v24 = vadd.f32 2.0, %v18293_v42  ;;  %v3504_v32 = vsel %vm3401_vm5, %v17872_v45, %v3491_v60  ;;  %v3492_v42 = vrot.slane %v10309_v18, 2 }
 0x5db   : > { %v3286_v10 = vadd.f32 %v3278_v2, %v13990_v44  ;;  %v1016_v2 = vadd.f32 2.0, %v18297_v38  ;;  %v3706_v38 = vld [vmem:[%s17699_s11 + $0x600] sm:$0xff] }
 0x5dc   : > { %v3295_v22 = vmul.f32 0.7978846, %v3287_v36  ;;  %v10187_v7 = vpop.eup %10186  ;;  %vm1023_vm10 = vcmp.ge.f32.partialorder %v1015_v24, 0.0  ;;  %vm1031_vm1 = vcmp.lt.f32.partialorder %v1015_v24, 8.0  ;;  %v1017_v24 = vadd.f32 2.0, %v18299_v54 }
 0x5dd   : > { %v10189_v0 = vpop.eup %10188  ;;  %v3305_v51 = vadd.f32 1.0, %v10187_v7  ;;  %v3294_v26 = vmul.f32 0.7978846, %v3286_v10  ;;  %v3255_v7 = vmul.f32 0.5, %v3245_v37  ;;  %v14031_v37 = vsel %vm1038_vm11, 1.0, %v18291_v15  ;;  %vm14042_vm12 = vmand %vm1023_vm10, %vm1031_vm1 }
 0x5de   : > { %10194 = vtanh.f32 %v3295_v22  ;;  %v3304_v31 = vadd.f32 1.0, %v10189_v0  ;;  %v3250_v22 = vmul.f32 0.5, %v13970_v33  ;;  %v3251_v33 = vmul.f32 0.5, %v13967_v56  ;;  %18327 = vst [vmem:[#allocation49_spill] sm:$0xff] %v14031_v37 }
 0x5df   : > { %10196 = vtanh.f32 %v3292_v43  ;;  %v14011_v1 = vmul.f32 %v3305_v51, %v3249_v39  ;;  %v3503_v56 = vsel %vm3401_vm5, %v3491_v60, %v3492_v42  ;;  %vm1024_vm14 = vcmp.ge.f32.partialorder %v1016_v2, 0.0  ;;  %v3717_v39 = vld [vmem:[%s17699_s11 + $0x658] sm:$0xff] }
 0x5e0   : > { %10198 = vtanh.f32 %v3293_v23  ;;  %v14013_v29 = vmul.f32 %v3304_v31, %v3248_v57  ;;  %v10310_v57 = vld [vmem:[%s10757_s20 + $0x18] sm:$0xff]  ;;  %vm1032_vm7 = vcmp.lt.f32.partialorder %v1016_v2, 8.0  ;;  %v14071_v54 = vsel %vm14042_vm12, 1.0, %v18291_v15 }
 0x5e1   : > { %v10191_v4 = vpop.eup %10190  ;;  %18323 = vst [vmem:[#allocation46_spill] sm:$0xff] %v14011_v1  ;;  %10200 = vtanh.f32 %v3294_v26  ;;  %v3321_v59 = vrot.slane %v14011_v1, 6  ;;  %v3493_v26 = vrot.slane %v10310_v57, 2  ;;  %18332 = vst [vmem:[#allocation55_spill] sm:$0xff] %v14071_v54  ;;  %v3507_v57 = vmul.f32 %v14071_v54, %v3503_v56  ;;  %v3720_v56 = vld [vmem:[%s17699_s11 + $0x670] sm:$0xff] }
 0x5e2   : > { %v10193_v47 = vpop.eup %10192  ;;  %18324 = vst [vmem:[#allocation33_spill] sm:$0xff] %v14013_v29  ;;  %v3306_v36 = vadd.f32 1.0, %v10191_v4  ;;  %v3320_v10 = vrot.slane %v14013_v29, 6  ;;  %v3506_v4 = vmul.f32 %v14031_v37, %v3504_v32  ;;  %vm14095_vm6 = vmand %vm1024_vm14, %vm1032_vm7  ;;  %vm1025_vm9 = vcmp.ge.f32.partialorder %v1017_v24, 0.0 }
 0x5e3   : > { %v3307_v43 = vadd.f32 1.0, %v10193_v47  ;;  %vm1033_vm2 = vcmp.lt.f32.partialorder %v1017_v24, 8.0  ;;  %v3718_v24 = vld [vmem:[%s17699_s11 + $0x660] sm:$0xff] }
 0x5e4   : > { %v14023_v0 = vmul.f32 %v3306_v36, %v3250_v22  ;;  %v3711_v36 = vld [vmem:[%s17699_s11 + $0x628] sm:$0xff]  ;;  %v3335_v18 = vsel %vm3328_vm0, %v3320_v10, %v3321_v59  ;;  %vm14131_vm8 = vmand %vm1025_vm9, %vm1033_vm2  ;;  %vm18355_vm2 = vcmp.lt.s32.totalorder %v10981_v40, 1 }
 0x5e5   : > { %v14049_v47 = vmul.f32 %v3307_v43, %v3251_v33  ;;  %v9170_v43 = vpack.c.bf16 %v3708_v46, %v3706_v38  ;;  %v3502_v38 = vsel %vm3401_vm5, %v3492_v42, %v3493_v26  ;;  %v14085_v46 = vmul.f32 %v13477_v11, %v3335_v18  ;;  %v10311_v42 = vld [vmem:[%s10757_s20 + $0x20] sm:$0xff] }
 0x5e6   : > { %18325 = vst [vmem:[#allocation42_spill] sm:$0xff] %v14023_v0  ;;  %v3322_v22 = vrot.slane %v14023_v0, 6  ;;  %v1018_v11 = vadd.f32 2.0, %v18302_v13 }
 0x5e7   : > { %18330 = vst [vmem:[#allocation51_spill] sm:$0xff] %v14049_v47  ;;  %18333 = vst [vmem:[#allocation57_spill] sm:$0xff] %v14085_v46 }
 0x5e8   : > { %v10195_v16 = vpop.eup %10194  ;;  %v3334_v45 = vsel %vm3328_vm0, %v3321_v59, %v3322_v22  ;;  %v3714_v59 = vld [vmem:[%s17699_s11 + $0x640] sm:$0xff]  ;;  %vm1026_vm4 = vcmp.ge.f32.partialorder %v1018_v11, 0.0  ;;  %vm1034_vm15 = vcmp.lt.f32.partialorder %v1018_v11, 8.0  ;;  %v10313_v11 = vld [vmem:[%s10757_s20 + $0x30] sm:$0xff] }
 0x5e9   : > { %v3311_v19 = vadd.f32 1.0, %v10195_v16  ;;  %v10197_v51 = vpop.eup %10196  ;;  %v3713_v16 = vld [vmem:[%s17699_s11 + $0x638] sm:$0xff]  ;;  %vm1042_vm13 = vmand %vm1026_vm4, %vm1034_vm15 }
 0x5ea   : > { %v3308_v32 = vadd.f32 1.0, %v10197_v51  ;;  %v3252_v51 = vmul.f32 0.5, %v13982_v35  ;;  %v9172_v33 = vpack.c.bf16 %v3713_v16, %v3711_v36  ;;  %v3715_v35 = vld [vmem:[%s17699_s11 + $0x648] sm:$0xff]  ;;  %v3494_v36 = vrot.slane %v10311_v42, 2  ;;  %vm18359_vm4 = vmmov %vm18355_vm2 }
 0x5eb   : > { %v14025_v23 = vmul.f32 %v3311_v19, %v3255_v7  ;;  %v10199_v7 = vpop.eup %10198  ;;  %vm18361_vm15 = vmmov %vm18355_vm2 }
 0x5ec   : > { %v3309_v16 = vadd.f32 1.0, %v10199_v7  ;;  %v14100_v18 = vmul.f32 %v3308_v32, %v3252_v51  ;;  %v9176_v7 = vpack.c.bf16 %v3717_v39, %v3715_v35  ;;  %v3716_v32 = vld [vmem:[%s17699_s11 + $0x650] sm:$0xff]  ;;  %v3721_v51 = vld [vmem:[%s17699_s11 + $0x678] sm:$0xff] }
 0x5ed   : > { %18326 = vst [vmem:[#allocation44_spill] sm:$0xff] %v14025_v23  ;;  %v17873_v31 = vrot.slane %v14025_v23, 6 }
 0x5ee   : > { %18336 = vst [vmem:[#allocation59_spill] sm:$0xff] %v14100_v18  ;;  %v3324_v42 = vrot.slane %v14100_v18, 6 }
 0x5ef   : > { %v3336_v60 = vsel %vm3328_vm0, %v17873_v31, %v3320_v10  ;;  %v3710_v10 = vld [vmem:[%s17699_s11 + $0x620] sm:$0xff]  ;;  %v3323_v31 = vrot.slane %v14049_v47, 6 }
 0x5f0   : > { %v14066_v19 = vmul.f32 %v13396_v34, %v3336_v60  ;;  %v3712_v60 = vld [vmem:[%s17699_s11 + $0x630] sm:$0xff]  ;;  %v3253_v34 = vmul.f32 0.5, %v13978_v63  ;;  %v3719_v63 = vld [vmem:[%s17699_s11 + $0x668] sm:$0xff] }
 0x5f1   : > { %v9174_v2 = vpack.c.bf16 %v3712_v60, %v3710_v10  ;;  %v10312_v10 = vld [vmem:[%s10757_s20 + $0x28] sm:$0xff]  ;;  %v3333_v39 = vsel %vm3328_vm0, %v3322_v22, %v3323_v31  ;;  %v3254_v22 = vmul.f32 0.5, %v13990_v44  ;;  %v3725_v44 = vld [vmem:[%s17699_s11 + $0x698] sm:$0xff] }
 0x5f2   : > { %18331 = vst [vmem:[#allocation53_spill] sm:$0xff] %v14066_v19  ;;  %4136 = vmatprep.mubr.f32.mxu0 %v14066_v19  ;;  %v10201_v19 = vpop.eup %10200  ;;  %v3495_v60 = vrot.slane %v10312_v10, 2 }
 0x5f3   : > { %4137 = vmatmul.mubr.f32.vlgmr.msra.gmra.mrb[80].mxu0 %v3506_v4  ;;  %v14111_v4 = vsel %vm14095_vm6, 1.0, %v18291_v15  ;;  %v3310_v35 = vadd.f32 1.0, %v10201_v19  ;;  %v9180_v19 = vpack.c.bf16 %v3721_v51, %v3719_v63  ;;  %v3722_v51 = vld [vmem:[%s17699_s11 + $0x680] sm:$0xff] }
 0x5f4   : > { %9171 = vmatpush1.bf16.msra.mxu0 %v9170_v43  ;;  %4142 = vmatprep.mubr.f32.mxu0 %v14085_v46  ;;  %18337 = vst [vmem:[#allocation61_spill] sm:$0xff] %v14111_v4  ;;  %v14120_v43 = vmul.f32 %v13504_v12, %v3334_v45  ;;  %v3508_v13 = vmul.f32 %v14111_v4, %v3502_v38  ;;  %v4613_v46 = vld [vmem:[%s17701_s13 + $0x110] sm:$0xff] }
 0x5f5   : > { %9173 = vmatprep.subr.bf16.mxu0 %v9172_v33  ;;  %v3501_v45 = vsel %vm3401_vm5, %v3493_v26, %v3494_v36  ;;  %v14138_v38 = vmul.f32 %v3309_v16, %v3253_v34  ;;  %v9178_v34 = vpack.c.bf16 %v3716_v32, %v3714_v59  ;;  %v1019_v26 = vadd.f32 2.0, %v18305_v49  ;;  %v3723_v49 = vld [vmem:[%s17699_s11 + $0x688] sm:$0xff]  ;;  %v3724_v33 = vld [vmem:[%s17699_s11 + $0x690] sm:$0xff] }
 0x5f6   : > { %18338 = vst [vmem:[#allocation24_spill] sm:$0xff] %v14120_v43  ;;  %v14158_v16 = vmul.f32 %v13531_v52, %v3333_v39  ;;  %v9182_v59 = vpack.c.bf16 %v3720_v56, %v3718_v24  ;;  %v3332_v32 = vsel %vm3328_vm0, %v3323_v31, %v3324_v42  ;;  %v3500_v63 = vsel %vm3401_vm5, %v3494_v36, %v3495_v60  ;;  %v3727_v24 = vld [vmem:[%s17699_s11 + $0x6a8] sm:$0xff]  ;;  %v3729_v56 = vld [vmem:[%s17699_s11 + $0x6b8] sm:$0xff] }
 0x5f7   : > { %18341 = vst [vmem:[#allocation38_spill] sm:$0xff] %v14138_v38  ;;  %4143 = vmatmul.mubr.f32.gmra.mrb[82].mxu0 %v3507_v57  ;;  %v14155_v57 = vsel %vm14131_vm8, 1.0, %v18291_v15  ;;  %vm1027_vm3 = vcmp.ge.f32.partialorder %v1019_v26, 0.0  ;;  %vm1035_vm11 = vcmp.lt.f32.partialorder %v1019_v26, 8.0  ;;  %v3496_v31 = vrot.slane %v10313_v11, 2  ;;  %vm18357_vm8 = vmmov %vm18355_vm2 }
 0x5f8   : > { %9175 = vmatpush1.bf16.msra.mxu0 %v9174_v2  ;;  %4148 = vmatprep.mubr.f32.mxu0 %v14120_v43  ;;  %18342 = vst [vmem:[#allocation31_spill] sm:$0xff] %v14155_v57  ;;  %18343 = vst [vmem:[#allocation34_spill] sm:$0xff] %v14158_v16  ;;  %v3509_v2 = vmul.f32 %v14155_v57, %v3501_v45  ;;  %v3325_v45 = vrot.slane %v14138_v38, 6  ;;  %v9184_v36 = vpack.c.bf16 %v3725_v44, %v3723_v49  ;;  %v18423_v43 = vld [vmem:[#allocation43_spill] sm:$0xff] }
 0x5f9   : > { %9177 = vmatprep.subr.bf16.mxu0 %v9176_v7  ;;  %v14167_v7 = vmul.f32 %v3310_v35, %v3254_v22  ;;  %v14185_v10 = vmul.f32 %v13562_v27, %v3332_v32  ;;  %v14188_v35 = vsel %vm1042_vm13, 1.0, %v18291_v15  ;;  %v9186_v39 = vpack.c.bf16 %v3724_v33, %v3722_v51  ;;  %vm1043_vm10 = vmand %vm1027_vm3, %vm1035_vm11 }
 0x5fa   : > { %18346 = vst [vmem:[#allocation41_spill] sm:$0xff] %v14188_v35  ;;  %v3499_v49 = vsel %vm3401_vm5, %v3495_v60, %v3496_v31  ;;  %v9188_v44 = vpack.c.bf16 %v3729_v56, %v3727_v24  ;;  %v3733_v60 = vld [vmem:[%s17699_s11 + $0x6d8] sm:$0xff]  ;;  %vm18363_vm13 = vmmov %vm18355_vm2 }
 0x5fb   : > { %18344 = vst [vmem:[#allocation69_spill] sm:$0xff] %v14167_v7  ;;  %4149 = vmatmul.mubr.f32.gmra.mrb[84].mxu0 %v3508_v13  ;;  %v1020_v13 = vadd.f32 2.0, %v18308_v6  ;;  %18345 = vst [vmem:[#allocation80_spill] sm:$0xff] %v14185_v10  ;;  %v3510_v6 = vmul.f32 %v14188_v35, %v3500_v63  ;;  %v3326_v22 = vrot.slane %v14167_v7, 6  ;;  %v3737_v24 = vld [vmem:[%s17699_s11 + $0x6f8] sm:$0xff] }
 0x5fc   : > { %9179 = vmatpush1.bf16.msra.mxu0 %v9178_v34  ;;  %4154 = vmatprep.mubr.f32.mxu0 %v14158_v16  ;;  %v3331_v34 = vsel %vm3328_vm0, %v3324_v42, %v3325_v45  ;;  %v3726_v42 = vld [vmem:[%s17699_s11 + $0x6a0] sm:$0xff]  ;;  %vm18365_vm3 = vmmov %vm18355_vm2 }
 0x5fd   : > { %9181 = vmatprep.subr.bf16.mxu0 %v9180_v19  ;;  %v1021_v19 = vadd.f32 2.0, %v18313_v8  ;;  %vm1028_vm1 = vcmp.ge.f32.partialorder %v1020_v13, 0.0  ;;  %vm1036_vm12 = vcmp.lt.f32.partialorder %v1020_v13, 8.0  ;;  %v3728_v8 = vld [vmem:[%s17699_s11 + $0x6b0] sm:$0xff]  ;;  %v14213_v26 = vmul.f32 %v13591_v55, %v3331_v34  ;;  %v3730_v13 = vld [vmem:[%s17699_s11 + $0x6c0] sm:$0xff]  ;;  %vm18367_vm11 = vmmov %vm18355_vm2 }
 0x5fe   : > { %v3330_v63 = vsel %vm3328_vm0, %v3325_v45, %v3326_v22  ;;  %vm1044_vm14 = vmand %vm1028_vm1, %vm1036_vm12  ;;  %v9190_v51 = vpack.c.bf16 %v3728_v8, %v3726_v42  ;;  %v3732_v45 = vld [vmem:[%s17699_s11 + $0x6d0] sm:$0xff]  ;;  %v3734_v8 = vld [vmem:[%s17699_s11 + $0x6e0] sm:$0xff]  ;;  %vm18375_vm1 = vcmp.lt.s32.totalorder %v10981_v40, 7 }
 0x5ff   : > { %4155 = vmatmul.mubr.f32.gmra.mrb[86].mxu0 %v3509_v2  ;;  %v3497_v2 = vrot.slane %v13935_v20, 2  ;;  %18347 = vst [vmem:[#allocation72_spill] sm:$0xff] %v14213_v26  ;;  %v3731_v20 = vld [vmem:[%s17699_s11 + $0x6c8] sm:$0xff]  ;;  %vm1029_vm7 = vcmp.ge.f32.partialorder %v1021_v19, 0.0  ;;  %vm1037_vm6 = vcmp.lt.f32.partialorder %v1021_v19, 8.0  ;;  %v9194_v19 = vpack.c.bf16 %v3732_v45, %v3730_v13  ;;  %v3745_v45 = vld [vmem:[%s17699_s11 + $0x738] sm:$0xff]  ;;  %vm18379_vm12 = vmmov %vm18375_vm1 }
 0x600   : > { %9183 = vmatpush1.bf16.msra.mxu0 %v9182_v59  ;;  %4160 = vmatprep.mubr.f32.mxu0 %v14185_v10  ;;  %v14216_v59 = vsel %vm1043_vm10, 1.0, %v18291_v15  ;;  %v9192_v11 = vpack.c.bf16 %v3733_v60, %v3731_v20  ;;  %vm1045_vm9 = vmand %vm1029_vm7, %vm1037_vm6  ;;  %v3743_v13 = vld [vmem:[%s17699_s11 + $0x728] sm:$0xff] }
 0x601   : > { %9185 = vmatprep.subr.bf16.mxu0 %v9184_v36  ;;  %18348 = vst [vmem:[#allocation71_spill] sm:$0xff] %v14216_v59  ;;  %v3511_v32 = vmul.f32 %v14216_v59, %v3499_v49  ;;  %v3498_v33 = vsel %vm3401_vm5, %v3496_v31, %v3497_v2  ;;  %v14237_v36 = vmul.f32 %v13611_v62, %v3330_v63  ;;  %v3735_v31 = vld [vmem:[%s17699_s11 + $0x6e8] sm:$0xff]  ;;  %v18352_v49 = vrot.slane %v14004_v61, 2  ;;  %vm18370_vm10 = vmmov %vm18355_vm2 }
 0x602   : > { %v9196_v42 = vpack.c.bf16 %v3737_v24, %v3735_v31  ;;  %v14268_v60 = vsel %vm1045_vm9, 1.0, %v18291_v15  ;;  %v3739_v61 = vld [vmem:[%s17699_s11 + $0x708] sm:$0xff]  ;;  %v9204_v24 = vpack.c.bf16 %v3745_v45, %v3743_v13  ;;  %vm18385_vm7 = vmmov %vm18375_vm1 }
 0x603   : > { %4161 = vmatmul.mubr.f32.gmra.mrb[88].mxu0 %v3510_v6  ;;  %18349 = vst [vmem:[#allocation73_spill] sm:$0xff] %v14237_v36  ;;  %v18351_v6 = vrot.slane %v14025_v23, 6  ;;  %18354 = vst [vmem:[#allocation76_spill] sm:$0xff] %v14268_v60 }
 0x604   : > { %9187 = vmatpush1.bf16.msra.mxu0 %v9186_v39  ;;  %4166 = vmatprep.mubr.f32.mxu0 %v14213_v26  ;;  %v14240_v39 = vsel %vm1044_vm14, 1.0, %v18291_v15  ;;  %v3800_v15 = vld [vmem:[%s17699_s11 + $0x8f0] sm:$0xff]  ;;  %vm18382_vm14 = vmmov %vm18375_vm1 }
 0x605   : > { %9189 = vmatprep.subr.bf16.mxu0 %v9188_v44  ;;  %18350 = vst [vmem:[#allocation74_spill] sm:$0xff] %v14240_v39  ;;  %v3512_v56 = vmul.f32 %v14240_v39, %v3498_v33  ;;  %v3329_v34 = vsel %vm3328_vm0, %v3326_v22, %v18351_v6  ;;  %v3505_v44 = vsel %vm3401_vm5, %v3497_v2, %v18352_v49  ;;  %v3736_v22 = vld [vmem:[%s17699_s11 + $0x6f0] sm:$0xff]  ;;  %v3741_v2 = vld [vmem:[%s17699_s11 + $0x718] sm:$0xff]  ;;  %v3738_v33 = vld [vmem:[%s17699_s11 + $0x700] sm:$0xff] }
 0x606   : > { %v14265_v20 = vmul.f32 %v13626_v58, %v3329_v34  ;;  %v9198_v63 = vpack.c.bf16 %v3736_v22, %v3734_v8  ;;  %v3744_v6 = vld [vmem:[%s17699_s11 + $0x730] sm:$0xff]  ;;  %v3747_v34 = vld [vmem:[%s17699_s11 + $0x748] sm:$0xff]  ;;  %vm18388_vm6 = vmmov %vm18375_vm1 }
 0x607   : > { %4167 = vmatmul.mubr.f32.gmra.mrb[90].mxu0 %v3511_v32  ;;  %v3513_v32 = vmul.f32 %v14268_v60, %v3505_v44  ;;  %v3748_v8 = vld [vmem:[%s17699_s11 + $0x750] sm:$0xff]  ;;  %v3751_v22 = vld [vmem:[%s17699_s11 + $0x768] sm:$0xff]  ;;  %vm18391_vm9 = vmmov %vm18375_vm1 }
 0x608   : > { %9191 = vmatpush1.bf16.msra.mxu0 %v9190_v51  ;;  %4172 = vmatprep.mubr.f32.mxu0 %v14237_v36  ;;  %18353 = vst [vmem:[#allocation75_spill] sm:$0xff] %v14265_v20  ;;  %v9200_v51 = vpack.c.bf16 %v3741_v2, %v3739_v61  ;;  %v3753_v61 = vld [vmem:[%s17699_s11 + $0x778] sm:$0xff] }
 0x609   : > { %9193 = vmatprep.subr.bf16.mxu0 %v9192_v11  ;;  %v3740_v11 = vld [vmem:[%s17699_s11 + $0x710] sm:$0xff] }
 0x60a   : > { %v9202_v31 = vpack.c.bf16 %v3740_v11, %v3738_v33  ;;  %v3755_v33 = vld [vmem:[%s17699_s11 + $0x788] sm:$0xff]  ;;  %v3757_v11 = vld [vmem:[%s17699_s11 + $0x798] sm:$0xff] }
 0x60b   : > { %4173 = vmatmul.mubr.f32.gmra.mrb[92].mxu0 %v3512_v56  ;;  %v3742_v56 = vld [vmem:[%s17699_s11 + $0x720] sm:$0xff]  ;;  %v9216_v45 = vpack.c.bf16 %v3757_v11, %v3755_v33 }
 0x60c   : > { %9195 = vmatpush1.bf16.msra.mxu0 %v9194_v19  ;;  %4178 = vmatprep.mubr.f32.mxu0 %v14265_v20  ;;  %v3749_v19 = vld [vmem:[%s17699_s11 + $0x758] sm:$0xff]  ;;  %v9206_v49 = vpack.c.bf16 %v3744_v6, %v3742_v56  ;;  %v3759_v56 = vld [vmem:[%s17699_s11 + $0x7a8] sm:$0xff] }
 0x60d   : > { %9197 = vmatprep.subr.bf16.mxu0 %v9196_v42  ;;  %v9208_v44 = vpack.c.bf16 %v3749_v19, %v3747_v34  ;;  %v3746_v42 = vld [vmem:[%s17699_s11 + $0x740] sm:$0xff]  ;;  %v3761_v6 = vld [vmem:[%s17699_s11 + $0x7b8] sm:$0xff] }
 0x60e   : > { %v9210_v2 = vpack.c.bf16 %v3748_v8, %v3746_v42  ;;  %v9220_v19 = vpack.c.bf16 %v3761_v6, %v3759_v56  ;;  %v3763_v42 = vld [vmem:[%s17699_s11 + $0x7c8] sm:$0xff]  ;;  %v3765_v8 = vld [vmem:[%s17699_s11 + $0x7d8] sm:$0xff] }
 0x60f   : > { %4179 = vmatmul.mubr.f32.gmra.mrb[94].mxu0 %v3513_v32  ;;  %v9212_v32 = vpack.c.bf16 %v3753_v61, %v3751_v22  ;;  %v9224_v61 = vpack.c.bf16 %v3765_v8, %v3763_v42  ;;  %v3773_v56 = vld [vmem:[%s17699_s11 + $0x818] sm:$0xff]  ;;  %v3346_v8 = vrot.slane %v14011_v1, 7 }
 0x610   : > { %9199 = vmatpush1.bf16.msra.mxu0 %v9198_v63  ;;  %4249 = vmatprep.mubr.f32.mxu0 %v14013_v29  ;;  %v3750_v63 = vld [vmem:[%s17699_s11 + $0x760] sm:$0xff] }
 0x611   : > { %9201 = vmatprep.subr.bf16.mxu0 %v9200_v51  ;;  %v3752_v51 = vld [vmem:[%s17699_s11 + $0x770] sm:$0xff] }
 0x612   : > { %v9214_v13 = vpack.c.bf16 %v3752_v51, %v3750_v63  ;;  %v3767_v63 = vld [vmem:[%s17699_s11 + $0x7e8] sm:$0xff]  ;;  %v3769_v51 = vld [vmem:[%s17699_s11 + $0x7f8] sm:$0xff] }
 0x613   : > { %v9228_v11 = vpack.c.bf16 %v3769_v51, %v3767_v63  ;;  %v3774_v51 = vld [vmem:[%s17699_s11 + $0x820] sm:$0xff] }
 0x614   : > { %9203 = vmatpush1.bf16.msra.mxu0 %v9202_v31  ;;  %v3754_v31 = vld [vmem:[%s17699_s11 + $0x780] sm:$0xff] }
 0x615   : > { %9205 = vmatprep.subr.bf16.mxu0 %v9204_v24  ;;  %v3756_v24 = vld [vmem:[%s17699_s11 + $0x790] sm:$0xff] }
 0x616   : > { %v9218_v34 = vpack.c.bf16 %v3756_v24, %v3754_v31  ;;  %v17877_v31 = vrot.slane %v14025_v23, 7  ;;  %v3771_v24 = vld [vmem:[%s17699_s11 + $0x808] sm:$0xff] }
 0x618   : > { %9207 = vmatpush1.bf16.msra.mxu0 %v9206_v49  ;;  %v3758_v49 = vld [vmem:[%s17699_s11 + $0x7a0] sm:$0xff] }
 0x619   : > { %9209 = vmatprep.subr.bf16.mxu0 %v9208_v44  ;;  %v3760_v44 = vld [vmem:[%s17699_s11 + $0x7b0] sm:$0xff] }
 0x61a   : > { %v9222_v22 = vpack.c.bf16 %v3760_v44, %v3758_v49  ;;  %v3770_v49 = vld [vmem:[%s17699_s11 + $0x800] sm:$0xff]  ;;  %v3772_v44 = vld [vmem:[%s17699_s11 + $0x810] sm:$0xff] }
 0x61c   : > { %9211 = vmatpush1.bf16.msra.mxu0 %v9210_v2  ;;  %v3762_v2 = vld [vmem:[%s17699_s11 + $0x7c0] sm:$0xff] }
 0x61d   : > { %9213 = vmatprep.subr.bf16.mxu0 %v9212_v32  ;;  %v3764_v32 = vld [vmem:[%s17699_s11 + $0x7d0] sm:$0xff] }
 0x61e   : > { %v9226_v33 = vpack.c.bf16 %v3764_v32, %v3762_v2  ;;  %v9234_v2 = vpack.c.bf16 %v3772_v44, %v3770_v49  ;;  %v3780_v49 = vld [vmem:[%s17699_s11 + $0x850] sm:$0xff] }
 0x620   : > { %9215 = vmatpush1.bf16.msra.mxu0 %v9214_v13  ;;  %v3766_v13 = vld [vmem:[%s17699_s11 + $0x7e0] sm:$0xff] }
 0x621   : > { %9217 = vmatprep.subr.bf16.mxu0 %v9216_v45  ;;  %v3768_v45 = vld [vmem:[%s17699_s11 + $0x7f0] sm:$0xff] }
 0x622   : > { %v9230_v6 = vpack.c.bf16 %v3768_v45, %v3766_v13  ;;  %v3347_v13 = vrot.slane %v14023_v0, 7  ;;  %v3779_v45 = vld [vmem:[%s17699_s11 + $0x848] sm:$0xff] }
 0x624   : > { %9219 = vmatpush1.bf16.msra.mxu0 %v9218_v34  ;;  %v3345_v34 = vrot.slane %v14013_v29, 7  ;;  %v3358_v44 = vsel %vm18359_vm4, %v3346_v8, %v3347_v13  ;;  %vm18411_vm4 = vmmov %vm18365_vm3 }
 0x625   : > { %9221 = vmatprep.subr.bf16.mxu0 %v9220_v19  ;;  %v9232_v19 = vpack.c.bf16 %v3773_v56, %v3771_v24  ;;  %v3781_v24 = vld [vmem:[%s17699_s11 + $0x858] sm:$0xff] }
 0x626   : > { %v3360_v42 = vsel %vm18355_vm2, %v17877_v31, %v3345_v34  ;;  %v3351_v31 = vrot.slane %v14167_v7, 7  ;;  %vm18395_vm2 = vmmov %vm18375_vm1 }
 0x627   : > { %v14395_v32 = vmul.f32 %v18280_v28, %v3360_v42  ;;  %v3348_v42 = vrot.slane %v14049_v47, 7 }
 0x628   : > { %9223 = vmatpush1.bf16.msra.mxu0 %v9222_v22  ;;  %v3775_v22 = vld [vmem:[%s17699_s11 + $0x828] sm:$0xff] }
 0x629   : > { %9225 = vmatprep.subr.bf16.mxu0 %v9224_v61  ;;  %v3777_v61 = vld [vmem:[%s17699_s11 + $0x838] sm:$0xff]  ;;  %18356 = vst [vmem:[#allocation77_spill] sm:$0xff] %v14395_v32 }
 0x62a   : > { %v9236_v63 = vpack.c.bf16 %v3777_v61, %v3775_v22  ;;  %v3783_v22 = vld [vmem:[%s17699_s11 + $0x868] sm:$0xff]  ;;  %v3785_v61 = vld [vmem:[%s17699_s11 + $0x878] sm:$0xff] }
 0x62c   : > { %9227 = vmatpush1.bf16.msra.mxu0 %v9226_v33  ;;  %v3776_v33 = vld [vmem:[%s17699_s11 + $0x830] sm:$0xff] }
 0x62d   : > { %9229 = vmatprep.subr.bf16.mxu0 %v9228_v11  ;;  %v3359_v11 = vsel %vm18357_vm8, %v3345_v34, %v3346_v8  ;;  %v9238_v56 = vpack.c.bf16 %v3776_v33, %v3774_v51  ;;  %v9240_v34 = vpack.c.bf16 %v3781_v24, %v3779_v45  ;;  %v9244_v8 = vpack.c.bf16 %v3785_v61, %v3783_v22  ;;  %v3782_v51 = vld [vmem:[%s17699_s11 + $0x860] sm:$0xff]  ;;  %v3784_v33 = vld [vmem:[%s17699_s11 + $0x870] sm:$0xff]  ;;  %v3787_v24 = vld [vmem:[%s17699_s11 + $0x888] sm:$0xff] }
 0x62e   : > { %v3349_v45 = vrot.slane %v14100_v18, 7  ;;  %v3350_v61 = vrot.slane %v14138_v38, 7  ;;  %vm18400_vm8 = vmmov %vm18375_vm1 }
 0x630   : > { %9231 = vmatpush1.bf16.msra.mxu0 %v9230_v6  ;;  %v14415_v6 = vmul.f32 %v18295_v30, %v3359_v11  ;;  %v3357_v11 = vsel %vm18361_vm15, %v3347_v13, %v3348_v42  ;;  %v3356_v22 = vsel %vm18363_vm13, %v3348_v42, %v3349_v45  ;;  %vm18412_vm15 = vmmov %vm18365_vm3 }
 0x631   : > { %9233 = vmatprep.subr.bf16.mxu0 %v9232_v19  ;;  %v3778_v19 = vld [vmem:[%s17699_s11 + $0x840] sm:$0xff]  ;;  %vm18413_vm13 = vmmov %vm18365_vm3 }
 0x632   : > { %18358 = vst [vmem:[#allocation78_spill] sm:$0xff] %v14415_v6 }
 0x633   : > { %4250 = vmatmul.mubr.f32.vlgmr.msra.gmra.mrb[80].mxu0 %v14395_v32 }
 0x634   : > { %4255 = vmatprep.mubr.f32.mxu0 %v14011_v1  ;;  %9235 = vmatpush1.bf16.msra.mxu0 %v9234_v2  ;;  %v9242_v2 = vpack.c.bf16 %v3780_v49, %v3778_v19  ;;  %v14455_v19 = vmul.f32 %v18301_v3, %v3357_v11  ;;  %v3786_v49 = vld [vmem:[%s17699_s11 + $0x880] sm:$0xff] }
 0x635   : > { %9237 = vmatprep.subr.bf16.mxu0 %v9236_v63  ;;  %v14435_v63 = vmul.f32 %v18247_v9, %v3358_v44  ;;  %v3788_v44 = vld [vmem:[%s17699_s11 + $0x890] sm:$0xff]  ;;  %v3790_v11 = vld [vmem:[%s17699_s11 + $0x8a0] sm:$0xff] }
 0x636   : > { %18362 = vst [vmem:[#allocation15_spill] sm:$0xff] %v14455_v19 }
 0x637   : > { %4256 = vmatmul.mubr.f32.gmra.mrb[82].mxu0 %v14415_v6  ;;  %18360 = vst [vmem:[#allocation79_spill] sm:$0xff] %v14435_v63 }
 0x638   : > { %4261 = vmatprep.mubr.f32.mxu0 %v14023_v0  ;;  %9239 = vmatpush1.bf16.msra.mxu0 %v9238_v56  ;;  %v3789_v56 = vld [vmem:[%s17699_s11 + $0x898] sm:$0xff] }
 0x639   : > { %9241 = vmatprep.subr.bf16.mxu0 %v9240_v34  ;;  %v9246_v34 = vpack.c.bf16 %v3784_v33, %v3782_v51  ;;  %v9248_v13 = vpack.c.bf16 %v3789_v56, %v3787_v24  ;;  %v9250_v51 = vpack.c.bf16 %v3788_v44, %v3786_v49  ;;  %v14475_v33 = vmul.f32 %v18304_v50, %v3356_v22  ;;  %v3792_v24 = vld [vmem:[%s17699_s11 + $0x8b0] sm:$0xff]  ;;  %v3794_v22 = vld [vmem:[%s17699_s11 + $0x8c0] sm:$0xff] }
 0x63a   : > { %v3355_v56 = vsel %vm18365_vm3, %v3349_v45, %v3350_v61  ;;  %v9254_v49 = vpack.c.bf16 %v3792_v24, %v3790_v11  ;;  %v18369_v11 = vrot.slane %v14025_v23, 7 }
 0x63b   : > { %4262 = vmatmul.mubr.f32.gmra.mrb[84].mxu0 %v14435_v63  ;;  %18364 = vst [vmem:[#allocation18_spill] sm:$0xff] %v14475_v33  ;;  %v14495_v44 = vmul.f32 %v18307_v17, %v3355_v56  ;;  %v10318_v63 = vld [vmem:[%s10757_s20 + $0x28] sm:$0xff] }
 0x63c   : > { %4267 = vmatprep.mubr.f32.mxu0 %v14049_v47  ;;  %9243 = vmatpush1.bf16.msra.mxu0 %v9242_v2  ;;  %v3791_v2 = vld [vmem:[%s17699_s11 + $0x8a8] sm:$0xff]  ;;  %v3353_v24 = vsel %vm18370_vm10, %v3351_v31, %v18369_v11  ;;  %v3802_v11 = vld [vmem:[%s17699_s11 + $0x900] sm:$0xff]  ;;  %vm18416_vm10 = vmmov %vm18375_vm1 }
 0x63d   : > { %9245 = vmatprep.subr.bf16.mxu0 %v9244_v8  ;;  %v3793_v8 = vld [vmem:[%s17699_s11 + $0x8b8] sm:$0xff]  ;;  %18366 = vst [vmem:[#allocation23_spill] sm:$0xff] %v14495_v44 }
 0x63e   : > { %v9252_v42 = vpack.c.bf16 %v3793_v8, %v3791_v2  ;;  %v3796_v2 = vld [vmem:[%s17699_s11 + $0x8d0] sm:$0xff]  ;;  %v3354_v8 = vsel %vm18367_vm11, %v3350_v61, %v3351_v31  ;;  %vm18415_vm11 = vmmov %vm18375_vm1 }
 0x63f   : > { %4268 = vmatmul.mubr.f32.gmra.mrb[86].mxu0 %v14455_v19  ;;  %v9258_v56 = vpack.c.bf16 %v3796_v2, %v3794_v22  ;;  %v14516_v61 = vmul.f32 %v18310_v53, %v3354_v8  ;;  %v18371_v22 = vrot.slane %v14011_v1, 2  ;;  %v18372_v2 = vrot.slane %v14013_v29, 2 }
 0x640   : > { %4273 = vmatprep.mubr.f32.mxu0 %v14100_v18  ;;  %9247 = vmatpush1.bf16.msra.mxu0 %v9246_v34  ;;  %v3795_v34 = vld [vmem:[%s17699_s11 + $0x8c8] sm:$0xff] }
 0x641   : > { %9249 = vmatprep.subr.bf16.mxu0 %v9248_v13  ;;  %v3797_v13 = vld [vmem:[%s17699_s11 + $0x8d8] sm:$0xff]  ;;  %18368 = vst [vmem:[#allocation19_spill] sm:$0xff] %v14516_v61  ;;  %v3408_v8 = vsel %vm3401_vm5, %v18372_v2, %v18371_v22 }
 0x642   : > { %v9256_v45 = vpack.c.bf16 %v3797_v13, %v3795_v34  ;;  %v3798_v13 = vld [vmem:[%s17699_s11 + $0x8e0] sm:$0xff]  ;;  %v3813_v22 = vld [vmem:[%s17699_s11 + $0x958] sm:$0xff] }
 0x643   : > { %4274 = vmatmul.mubr.f32.gmra.mrb[88].mxu0 %v14475_v33  ;;  %v9262_v31 = vpack.c.bf16 %v3800_v15, %v3798_v13  ;;  %v3807_v15 = vld [vmem:[%s17699_s11 + $0x928] sm:$0xff]  ;;  %v3806_v13 = vld [vmem:[%s17699_s11 + $0x920] sm:$0xff] }
 0x644   : > { %4279 = vmatprep.mubr.f32.mxu0 %v14138_v38  ;;  %9251 = vmatpush1.bf16.msra.mxu0 %v9250_v51  ;;  %v3799_v51 = vld [vmem:[%s17699_s11 + $0x8e8] sm:$0xff] }
 0x645   : > { %9253 = vmatprep.subr.bf16.mxu0 %v9252_v42  ;;  %v3801_v42 = vld [vmem:[%s17699_s11 + $0x8f8] sm:$0xff] }
 0x646   : > { %v9260_v34 = vpack.c.bf16 %v3801_v42, %v3799_v51  ;;  %v14543_v51 = vmul.f32 %v12030_v25, %v3353_v24  ;;  %v3809_v24 = vld [vmem:[%s17699_s11 + $0x938] sm:$0xff] }
 0x647   : > { %4280 = vmatmul.mubr.f32.gmra.mrb[90].mxu0 %v14495_v44  ;;  %v14552_v44 = vmul.f32 %v14031_v37, %v3408_v8  ;;  %v3810_v8 = vld [vmem:[%s17699_s11 + $0x940] sm:$0xff]  ;;  %v4614_v37 = vld [vmem:[%s17701_s13 + $0x118] sm:$0xff] }
 0x648   : > { %4285 = vmatprep.mubr.f32.mxu0 %v14167_v7  ;;  %9255 = vmatpush1.bf16.msra.mxu0 %v9254_v49  ;;  %v3803_v49 = vld [vmem:[%s17699_s11 + $0x908] sm:$0xff]  ;;  %18373 = vst [vmem:[#allocation22_spill] sm:$0xff] %v14543_v51 }
 0x649   : > { %9257 = vmatprep.subr.bf16.mxu0 %v9256_v45  ;;  %v3805_v45 = vld [vmem:[%s17699_s11 + $0x918] sm:$0xff]  ;;  %18374 = vst [vmem:[#allocation50_spill] sm:$0xff] %v14552_v44 }
 0x64a   : > { %v9264_v42 = vpack.c.bf16 %v3805_v45, %v3803_v49  ;;  %v3808_v49 = vld [vmem:[%s17699_s11 + $0x930] sm:$0xff]  ;;  %v3811_v45 = vld [vmem:[%s17699_s11 + $0x948] sm:$0xff] }
 0x64b   : > { %4286 = vmatmul.mubr.f32.gmra.mrb[92].mxu0 %v14516_v61  ;;  %v3804_v61 = vld [vmem:[%s17699_s11 + $0x910] sm:$0xff]  ;;  %v9272_v2 = vpack.c.bf16 %v3813_v22, %v3811_v45 }
 0x64c   : > { %4291 = vmatprep.mubr.f32.mxu0 %v14025_v23  ;;  %9259 = vmatpush1.bf16.msra.mxu0 %v9258_v56  ;;  %v9266_v56 = vpack.c.bf16 %v3804_v61, %v3802_v11  ;;  %v9270_v61 = vpack.c.bf16 %v3808_v49, %v3806_v13  ;;  %v3817_v11 = vld [vmem:[%s17699_s11 + $0x978] sm:$0xff]  ;;  %v3819_v13 = vld [vmem:[%s17699_s11 + $0x988] sm:$0xff] }
 0x64d   : > { %9261 = vmatprep.subr.bf16.mxu0 %v9260_v34  ;;  %v9268_v34 = vpack.c.bf16 %v3809_v24, %v3807_v15  ;;  %v3821_v49 = vld [vmem:[%s17699_s11 + $0x998] sm:$0xff] }
 0x64e   : > { %v9280_v22 = vpack.c.bf16 %v3821_v49, %v3819_v13 }
 0x64f   : > { %4292 = vmatmul.mubr.f32.gmra.mrb[94].mxu0 %v14543_v51 }
 0x650   : > { %9263 = vmatpush1.bf16.msra.mxu0 %v9262_v31  ;;  %4362 = vmatprep.mubr.f32.mxu0 %v14552_v44  ;;  %v3812_v31 = vld [vmem:[%s17699_s11 + $0x950] sm:$0xff]  ;;  %v4604_v44 = vld [vmem:[%s17701_s13 + $0xc8] sm:$0xff] }
 0x651   : > { %9265 = vmatprep.subr.bf16.mxu0 %v9264_v42  ;;  %v3815_v42 = vld [vmem:[%s17699_s11 + $0x968] sm:$0xff]  ;;  %v9274_v15 = vpack.c.bf16 %v3812_v31, %v3810_v8  ;;  %v3825_v31 = vld [vmem:[%s17699_s11 + $0x9b8] sm:$0xff] }
 0x652   : > { %v9276_v24 = vpack.c.bf16 %v3817_v11, %v3815_v42  ;;  %v3823_v8 = vld [vmem:[%s17699_s11 + $0x9a8] sm:$0xff] }
 0x653   : > { %v9284_v11 = vpack.c.bf16 %v3825_v31, %v3823_v8 }
 0x654   : > { %9267 = vmatpush1.bf16.msra.mxu0 %v9266_v56  ;;  %v3814_v56 = vld [vmem:[%s17699_s11 + $0x960] sm:$0xff] }
 0x655   : > { %9269 = vmatprep.subr.bf16.mxu0 %v9268_v34  ;;  %v3816_v34 = vld [vmem:[%s17699_s11 + $0x970] sm:$0xff] }
 0x656   : > { %v9278_v45 = vpack.c.bf16 %v3816_v34, %v3814_v56  ;;  %v3827_v56 = vld [vmem:[%s17699_s11 + $0x9c8] sm:$0xff]  ;;  %v3829_v34 = vld [vmem:[%s17699_s11 + $0x9d8] sm:$0xff] }
 0x657   : > { %v9288_v49 = vpack.c.bf16 %v3829_v34, %v3827_v56  ;;  %v3395_v56 = vrot.slane %v14023_v0, 2 }
 0x658   : > { %9271 = vmatpush1.bf16.msra.mxu0 %v9270_v61  ;;  %v3818_v61 = vld [vmem:[%s17699_s11 + $0x980] sm:$0xff] }
 0x659   : > { %9273 = vmatprep.subr.bf16.mxu0 %v9272_v2  ;;  %v3820_v2 = vld [vmem:[%s17699_s11 + $0x990] sm:$0xff] }
 0x65a   : > { %v9282_v42 = vpack.c.bf16 %v3820_v2, %v3818_v61  ;;  %v3831_v61 = vld [vmem:[%s17699_s11 + $0x9e8] sm:$0xff]  ;;  %v3833_v2 = vld [vmem:[%s17699_s11 + $0x9f8] sm:$0xff] }
 0x65b   : > { %v9292_v31 = vpack.c.bf16 %v3833_v2, %v3831_v61  ;;  %v3396_v61 = vrot.slane %v14049_v47, 2 }
 0x65c   : > { %9275 = vmatpush1.bf16.msra.mxu0 %v9274_v15  ;;  %v3822_v15 = vld [vmem:[%s17699_s11 + $0x9a0] sm:$0xff] }
 0x65d   : > { %9277 = vmatprep.subr.bf16.mxu0 %v9276_v24  ;;  %v3824_v24 = vld [vmem:[%s17699_s11 + $0x9b0] sm:$0xff] }
 0x65e   : > { %v9286_v13 = vpack.c.bf16 %v3824_v24, %v3822_v15  ;;  %v3369_v15 = vrot.slane %v14013_v29, 1  ;;  %v3370_v24 = vrot.slane %v14011_v1, 1 }
 0x660   : > { %9279 = vmatpush1.bf16.msra.mxu0 %v9278_v45  ;;  %v3826_v45 = vld [vmem:[%s17699_s11 + $0x9c0] sm:$0xff] }
 0x661   : > { %9281 = vmatprep.subr.bf16.mxu0 %v9280_v22  ;;  %v3828_v22 = vld [vmem:[%s17699_s11 + $0x9d0] sm:$0xff] }
 0x662   : > { %v9290_v8 = vpack.c.bf16 %v3828_v22, %v3826_v45  ;;  %v18376_v45 = vrot.slane %v14011_v1, 2 }
 0x664   : > { %9283 = vmatpush1.bf16.msra.mxu0 %v9282_v42  ;;  %v3830_v42 = vld [vmem:[%s17699_s11 + $0x9e0] sm:$0xff]  ;;  %v3407_v22 = vsel %vm3401_vm5, %v18376_v45, %v3395_v56  ;;  %v3397_v45 = vrot.slane %v14100_v18, 2 }
 0x665   : > { %9285 = vmatprep.subr.bf16.mxu0 %v9284_v11  ;;  %v3832_v11 = vld [vmem:[%s17699_s11 + $0x9f0] sm:$0xff] }
 0x666   : > { %v9294_v34 = vpack.c.bf16 %v3832_v11, %v3830_v42  ;;  %v3372_v42 = vrot.slane %v14049_v47, 1  ;;  %v3406_v11 = vsel %vm3401_vm5, %v3395_v56, %v3396_v61  ;;  %v3405_v56 = vsel %vm3401_vm5, %v3396_v61, %v3397_v45 }
 0x668   : > { %9287 = vmatpush1.bf16.msra.mxu0 %v9286_v13  ;;  %v3383_v13 = vsel %vm18375_vm1, %v3369_v15, %v3370_v24  ;;  %vm18417_vm1 = vmmov %vm18365_vm3 }
 0x669   : > { %9289 = vmatprep.subr.bf16.mxu0 %v9288_v49  ;;  %v3371_v49 = vrot.slane %v14023_v0, 1  ;;  %v14652_v2 = vmul.f32 %v12072_v48, %v3383_v13  ;;  %v14669_v13 = vmul.f32 %v14111_v4, %v3406_v11  ;;  %v14683_v11 = vmul.f32 %v14155_v57, %v3405_v56 }
 0x66b   : > { %18377 = vst [vmem:[#allocation26_spill] sm:$0xff] %v14652_v2  ;;  %18381 = vst [vmem:[#allocation58_spill] sm:$0xff] %v14669_v13 }
 0x66c   : > { %9291 = vmatpush1.bf16.msra.mxu0 %v9290_v8  ;;  %v14655_v8 = vmul.f32 %v14071_v54, %v3407_v22  ;;  %v3373_v22 = vrot.slane %v14100_v18, 1  ;;  %18384 = vst [vmem:[#allocation62_spill] sm:$0xff] %v14683_v11 }
 0x66d   : > { %9293 = vmatprep.subr.bf16.mxu0 %v9292_v31  ;;  %v3382_v31 = vsel %vm18379_vm12, %v3370_v24, %v3371_v49  ;;  %v3381_v24 = vsel %vm18382_vm14, %v3371_v49, %v3372_v42  ;;  %vm18418_vm12 = vmmov %vm18395_vm2 }
 0x66e   : > { %18378 = vst [vmem:[#allocation54_spill] sm:$0xff] %v14655_v8  ;;  %v3380_v49 = vsel %vm18385_vm7, %v3372_v42, %v3373_v22  ;;  %vm18419_vm14 = vmmov %vm18417_vm1 }
 0x66f   : > { %vm18422_vm7 = vmmov %vm18417_vm1 }
 0x670   : > { %9295 = vmatpush1.bf16.msra.mxu0 %v9294_v34  ;;  %v14666_v34 = vmul.f32 %v12123_v5, %v3382_v31  ;;  %v14680_v31 = vmul.f32 %v18271_v41, %v3381_v24  ;;  %v14694_v24 = vmul.f32 %v12200_v21, %v3380_v49 }
 0x672   : > { %18380 = vst [vmem:[#allocation36_spill] sm:$0xff] %v14666_v34  ;;  %18383 = vst [vmem:[#allocation47_spill] sm:$0xff] %v14680_v31 }
 0x673   : > { %4363 = vmatmul.mubr.f32.vlgmr.msra.gmra.mrb[80].mxu0 %v14652_v2  ;;  %v3398_v2 = vrot.slane %v14138_v38, 2  ;;  %18386 = vst [vmem:[#allocation45_spill] sm:$0xff] %v14694_v24 }
 0x674   : > { %4368 = vmatprep.mubr.f32.mxu0 %v14655_v8  ;;  %v3374_v8 = vrot.slane %v14138_v38, 1 }
 0x675   : > { %v3404_v61 = vsel %vm3401_vm5, %v3397_v45, %v3398_v2 }
 0x676   : > { %v14697_v56 = vmul.f32 %v14188_v35, %v3404_v61  ;;  %v3379_v42 = vsel %vm18388_vm6, %v3373_v22, %v3374_v8  ;;  %vm18424_vm6 = vmmov %vm18395_vm2 }
 0x677   : > { %4369 = vmatmul.mubr.f32.gmra.mrb[82].mxu0 %v14666_v34  ;;  %v3399_v34 = vrot.slane %v14167_v7, 2  ;;  %v14708_v49 = vmul.f32 %v18272_v14, %v3379_v42 }
 0x678   : > { %4374 = vmatprep.mubr.f32.mxu0 %v14669_v13  ;;  %18387 = vst [vmem:[#allocation81_spill] sm:$0xff] %v14697_v56  ;;  %v3375_v13 = vrot.slane %v14167_v7, 1 }
 0x679   : > { %v3403_v45 = vsel %vm3401_vm5, %v3398_v2, %v3399_v34  ;;  %18389 = vst [vmem:[#allocation82_spill] sm:$0xff] %v14708_v49 }
 0x67a   : > { %v14711_v61 = vmul.f32 %v14216_v59, %v3403_v45  ;;  %v3378_v22 = vsel %vm18391_vm9, %v3374_v8, %v3375_v13  ;;  %v18396_v8 = vrot.slane %v14013_v29, 2  ;;  %vm18426_vm9 = vmmov %vm18395_vm2 }
 0x67b   : > { %4375 = vmatmul.mubr.f32.gmra.mrb[84].mxu0 %v14680_v31  ;;  %v3400_v31 = vrot.slane %v14025_v23, 2 }
 0x67c   : > { %4380 = vmatprep.mubr.f32.mxu0 %v14683_v11  ;;  %18390 = vst [vmem:[#allocation83_spill] sm:$0xff] %v14711_v61  ;;  %v3376_v11 = vrot.slane %v14025_v23, 1 }
 0x67d   : > { %v3402_v2 = vsel %vm3401_vm5, %v3399_v34, %v3400_v31  ;;  %v18397_v34 = vld [vmem:[#allocation66_spill] sm:$0xff] }
 0x67e   : > { %v14724_v42 = vmul.f32 %v14240_v39, %v3402_v2  ;;  %v3377_v45 = vsel %vm18395_vm2, %v3375_v13, %v3376_v11  ;;  %v3384_v2 = vsel %vm18400_vm8, %v3376_v11, %v3369_v15  ;;  %v18401_v13 = vld [vmem:[#allocation68_spill] sm:$0xff]  ;;  %v4579_v15 = vld [vmem:[%s17701_s13] sm:$0xff]  ;;  %vm18431_vm2 = vmmov %vm18417_vm1 }
 0x67f   : > { %4381 = vmatmul.mubr.f32.gmra.mrb[86].mxu0 %v14694_v24  ;;  %v18392_v24 = vld [vmem:[#allocation64_spill] sm:$0xff]  ;;  %vm18435_vm8 = vmmov %vm18424_vm6 }
 0x680   : > { %4386 = vmatprep.mubr.f32.mxu0 %v14697_v56  ;;  %v14721_v56 = vmul.f32 %v18392_v24, %v3378_v22  ;;  %18394 = vst [vmem:[#allocation84_spill] sm:$0xff] %v14724_v42 }
 0x682   : > { %18393 = vst [vmem:[#allocation64_spill] sm:$0xff] %v14721_v56 }
 0x683   : > { %4387 = vmatmul.mubr.f32.gmra.mrb[88].mxu0 %v14708_v49  ;;  %v3409_v49 = vsel %vm3401_vm5, %v3400_v31, %v18396_v8  ;;  %v4595_v31 = vld [vmem:[%s17701_s13 + $0x80] sm:$0xff] }
 0x684   : > { %4392 = vmatprep.mubr.f32.mxu0 %v14711_v61  ;;  %v14735_v61 = vmul.f32 %v18397_v34, %v3377_v45  ;;  %v14738_v22 = vmul.f32 %v14268_v60, %v3409_v49  ;;  %v4596_v49 = vld [vmem:[%s17701_s13 + $0x88] sm:$0xff]  ;;  %v10320_v60 = vld [vmem:[%s10757_s20] sm:$0xff] }
 0x685   : > { %v9296_v11 = vpack.c.bf16 %v4596_v49, %v4595_v31  ;;  %v4580_v45 = vld [vmem:[%s17701_s13 + $0x8] sm:$0xff]  ;;  %v4582_v49 = vld [vmem:[%s17701_s13 + $0x18] sm:$0xff] }
 0x686   : > { %18398 = vst [vmem:[#allocation66_spill] sm:$0xff] %v14735_v61  ;;  %18399 = vst [vmem:[#allocation85_spill] sm:$0xff] %v14738_v22  ;;  %v9298_v8 = vpack.c.bf16 %v4580_v45, %v4579_v15  ;;  %v4599_v15 = vld [vmem:[%s17701_s13 + $0xa0] sm:$0xff] }
 0x687   : > { %4393 = vmatmul.mubr.f32.gmra.mrb[90].mxu0 %v14721_v56  ;;  %v14745_v56 = vmul.f32 %v18401_v13, %v3384_v2  ;;  %9297 = vmatprep.subr.bf16.mxu1 %v9296_v11  ;;  %v4597_v2 = vld [vmem:[%s17701_s13 + $0x90] sm:$0xff]  ;;  %v4600_v11 = vld [vmem:[%s17701_s13 + $0xa8] sm:$0xff] }
 0x688   : > { %4398 = vmatprep.mubr.f32.mxu0 %v14724_v42  ;;  %9299 = vmatpush3.bf16.msra.mxu1 %v9298_v8  ;;  %v9304_v8 = vpack.c.bf16 %v4600_v11, %v4599_v15  ;;  %v4602_v42 = vld [vmem:[%s17701_s13 + $0xb8] sm:$0xff]  ;;  %v4585_v15 = vld [vmem:[%s17701_s13 + $0x30] sm:$0xff] }
 0x689   : > { %18402 = vst [vmem:[#allocation68_spill] sm:$0xff] %v14745_v56  ;;  %v4586_v11 = vld [vmem:[%s17701_s13 + $0x38] sm:$0xff] }
 0x68b   : > { %4399 = vmatmul.mubr.f32.gmra.mrb[92].mxu0 %v14735_v61  ;;  %v4583_v61 = vld [vmem:[%s17701_s13 + $0x20] sm:$0xff] }
 0x68c   : > { %4404 = vmatprep.mubr.f32.mxu0 %v14738_v22  ;;  %v4581_v22 = vld [vmem:[%s17701_s13 + $0x10] sm:$0xff] }
 0x68d   : > { %v9302_v45 = vpack.c.bf16 %v4582_v49, %v4581_v22 }
 0x68f   : > { %4405 = vmatmul.mubr.f32.gmra.mrb[94].mxu0 %v14745_v56  ;;  %v4598_v56 = vld [vmem:[%s17701_s13 + $0x98] sm:$0xff] }
 0x690   : > { %v9300_v31 = vpack.c.bf16 %v4598_v56, %v4597_v2  ;;  %v4584_v56 = vld [vmem:[%s17701_s13 + $0x28] sm:$0xff]  ;;  %v4601_v2 = vld [vmem:[%s17701_s13 + $0xb0] sm:$0xff] }
 0x691   : > { %v9306_v22 = vpack.c.bf16 %v4584_v56, %v4583_v61  ;;  %v9308_v49 = vpack.c.bf16 %v4602_v42, %v4601_v2  ;;  %v9310_v61 = vpack.c.bf16 %v4586_v11, %v4585_v15  ;;  %v4605_v56 = vld [vmem:[%s17701_s13 + $0xd0] sm:$0xff]  ;;  %v4606_v2 = vld [vmem:[%s17701_s13 + $0xd8] sm:$0xff]  ;;  %v4607_v11 = vld [vmem:[%s17701_s13 + $0xe0] sm:$0xff] }
 0x692   : > { %9301 = vmatprep.subr.bf16.mxu1 %v9300_v31  ;;  %v4603_v31 = vld [vmem:[%s17701_s13 + $0xc0] sm:$0xff]  ;;  %v4590_v15 = vld [vmem:[%s17701_s13 + $0x58] sm:$0xff] }
 0x693   : > { %9303 = vmatpush3.bf16.msra.mxu1 %v9302_v45  ;;  %v9312_v42 = vpack.c.bf16 %v4604_v44, %v4603_v31  ;;  %v4587_v45 = vld [vmem:[%s17701_s13 + $0x40] sm:$0xff]  ;;  %v9316_v44 = vpack.c.bf16 %v4606_v2, %v4605_v56  ;;  %v4608_v31 = vld [vmem:[%s17701_s13 + $0xe8] sm:$0xff]  ;;  %v4609_v56 = vld [vmem:[%s17701_s13 + $0xf0] sm:$0xff] }
 0x694   : > { %9305 = vmatprep.subr.bf16.mxu1 %v9304_v8  ;;  %v4588_v8 = vld [vmem:[%s17701_s13 + $0x48] sm:$0xff]  ;;  %v4610_v2 = vld [vmem:[%s17701_s13 + $0xf8] sm:$0xff] }
 0x697   : > { %9307 = vmatpush3.bf16.msra.mxu1 %v9306_v22  ;;  %v9314_v22 = vpack.c.bf16 %v4588_v8, %v4587_v45  ;;  %v4591_v45 = vld [vmem:[%s17701_s13 + $0x60] sm:$0xff]  ;;  %v4592_v8 = vld [vmem:[%s17701_s13 + $0x68] sm:$0xff] }
 0x698   : > { %9309 = vmatprep.subr.bf16.mxu1 %v9308_v49  ;;  %v4589_v49 = vld [vmem:[%s17701_s13 + $0x50] sm:$0xff] }
 0x69b   : > { %9311 = vmatpush3.bf16.msra.mxu1 %v9310_v61  ;;  %v9318_v61 = vpack.c.bf16 %v4590_v15, %v4589_v49  ;;  %v4593_v49 = vld [vmem:[%s17701_s13 + $0x70] sm:$0xff]  ;;  %v4594_v15 = vld [vmem:[%s17701_s13 + $0x78] sm:$0xff] }
 0x69c   : > { %9313 = vmatprep.subr.bf16.mxu1 %v9312_v42  ;;  %v9320_v42 = vpack.c.bf16 %v4608_v31, %v4607_v11  ;;  %v4627_v11 = vld [vmem:[%s17701_s13 + $0x180] sm:$0xff]  ;;  %v4628_v31 = vld [vmem:[%s17701_s13 + $0x188] sm:$0xff] }
 0x69f   : > { %9315 = vmatpush3.bf16.msra.mxu1 %v9314_v22  ;;  %v9322_v22 = vpack.c.bf16 %v4592_v8, %v4591_v45  ;;  %v17905_v8 = vsub.s32 1, %v10981_v40 }
 0x6a0   : > { %9317 = vmatprep.subr.bf16.mxu1 %v9316_v44  ;;  %v9324_v44 = vpack.c.bf16 %v4610_v2, %v4609_v56  ;;  %v3834_v56 = vld [vmem:[%s17700_s12] sm:$0x3] }
 0x6a1   : > { %v3843_v51 = vrot.slane %v3834_v56, %v17905_v8 }
 0x6a3   : > { %9319 = vmatpush3.bf16.msra.mxu1 %v9318_v61  ;;  %v9326_v61 = vpack.c.bf16 %v4594_v15, %v4593_v49 }
 0x6a4   : > { %9321 = vmatprep.subr.bf16.mxu1 %v9320_v42  ;;  %v9328_v42 = vpack.c.bf16 %v4628_v31, %v4627_v11 }
 0x6a7   : > { %9323 = vmatpush3.bf16.msra.mxu1 %v9322_v22 }
 0x6a8   : > { %9325 = vmatprep.subr.bf16.mxu1 %v9324_v44 }
 0x6ab   : > { %9327 = vmatpush3.bf16.msra.mxu1 %v9326_v61 }
 0x6ac   : > { %9329 = vmatprep.subr.bf16.mxu1 %v9328_v42 }
 0x746   : > { %v14850_v45 = vpop.f32.mrb[80].mxu0 }
 0x747   : > { %18403 = vst [vmem:[#allocation86_spill] sm:$0xff] %v14850_v45  ;;  %v4366_v2 = vpop.f32.mrb[81].mxu0 }
 0x748   : > { %v9937_v56 = vadd.f32 %v4366_v2, %v3843_v51 }
 0x74a   : > { %v14858_v23 = vpop.f32.mrb[82].mxu0 }
 0x74b   : > { %18404 = vst [vmem:[#allocation87_spill] sm:$0xff] %v14858_v23  ;;  %v4372_v22 = vpop.f32.mrb[83].mxu0 }
 0x74c   : > { %v9939_v49 = vadd.f32 %v4372_v22, %v3843_v51 }
 0x74e   : > { %v4414_v44 = vmul.f32 0.5, %v9939_v49  ;;  %v14860_v15 = vpop.f32.mrb[84].mxu0 }
 0x74f   : > { %18405 = vst [vmem:[#allocation88_spill] sm:$0xff] %v14860_v15  ;;  %v4378_v11 = vpop.f32.mrb[85].mxu0  ;;  %v4412_v15 = vmul.f32 0.5, %v9937_v56 }
 0x750   : > { %10202 = vtanh.f32 %v4414_v44  ;;  %v9941_v31 = vadd.f32 %v4378_v11, %v3843_v51 }
 0x752   : > { %v4416_v61 = vmul.f32 0.5, %v9941_v31  ;;  %v14862_v42 = vpop.f32.mrb[86].mxu0 }
 0x753   : > { %18406 = vst [vmem:[#allocation89_spill] sm:$0xff] %v14862_v42  ;;  %v4384_v45 = vpop.f32.mrb[87].mxu0 }
 0x754   : > { %10204 = vtanh.f32 %v4416_v61  ;;  %v9943_v7 = vadd.f32 %v4384_v45, %v3843_v51 }
 0x756   : > { %v4418_v38 = vmul.f32 0.5, %v9943_v7  ;;  %v14864_v33 = vpop.f32.mrb[88].mxu0 }
 0x757   : > { %18407 = vst [vmem:[#allocation90_spill] sm:$0xff] %v14864_v33  ;;  %v4390_v8 = vpop.f32.mrb[89].mxu0 }
 0x758   : > { %10206 = vtanh.f32 %v4418_v38  ;;  %v9945_v23 = vadd.f32 %v4390_v8, %v3843_v51 }
 0x75a   : > { %v10203_v22 = vpop.eup %10202  ;;  %v4420_v49 = vmul.f32 0.5, %v9945_v23  ;;  %v14866_v18 = vpop.f32.mrb[90].mxu0 }
 0x75b   : > { %18408 = vst [vmem:[#allocation91_spill] sm:$0xff] %v14866_v18  ;;  %v4396_v44 = vpop.f32.mrb[91].mxu0  ;;  %v4446_v11 = vadd.f32 1.0, %v10203_v22 }
 0x75c   : > { %10208 = vtanh.f32 %v4420_v49  ;;  %v9947_v31 = vadd.f32 %v4396_v44, %v3843_v51  ;;  %v10314_v44 = vld [vmem:[%s10757_s20 + $0x8] sm:$0xff] }
 0x75d   : > { %10210 = vtanh.f32 %v4412_v15  ;;  %v4462_v38 = vmul.f32 0.5, %v4446_v11 }
 0x75e   : > { %v10205_v42 = vpop.eup %10204  ;;  %v4422_v61 = vmul.f32 0.5, %v9947_v31  ;;  %v14868_v7 = vpop.f32.mrb[92].mxu0  ;;  %v10315_v31 = vld [vmem:[%s10757_s20 + $0x10] sm:$0xff] }
 0x75f   : > { %18409 = vst [vmem:[#allocation92_spill] sm:$0xff] %v14868_v7  ;;  %v4448_v45 = vadd.f32 1.0, %v10205_v42  ;;  %v4402_v2 = vpop.f32.mrb[93].mxu0  ;;  %v14873_v19 = vmul.f32 %v10314_v44, %v4462_v38 }
 0x760   : > { %10212 = vtanh.f32 %v4422_v61  ;;  %v9949_v8 = vadd.f32 %v4402_v2, %v3843_v51  ;;  %v10316_v2 = vld [vmem:[%s10757_s20 + $0x18] sm:$0xff] }
 0x761   : > { %v4464_v23 = vmul.f32 0.5, %v4448_v45  ;;  %v18421_v57 = vrot.slane %v14873_v19, 7 }
 0x762   : > { %v10207_v18 = vpop.eup %10206  ;;  %v4424_v56 = vmul.f32 0.5, %v9949_v8  ;;  %v14870_v33 = vpop.f32.mrb[94].mxu0 }
 0x763   : > { %18410 = vst [vmem:[#allocation93_spill] sm:$0xff] %v14870_v33  ;;  %v4450_v22 = vadd.f32 1.0, %v10207_v18  ;;  %v4408_v49 = vpop.f32.mrb[95].mxu0  ;;  %v14876_v47 = vmul.f32 %v10315_v31, %v4464_v23  ;;  %v17911_v18 = vrot.slane %v14873_v19, 7  ;;  %v17915_v33 = vrot.slane %v14873_v19, 6 }
 0x764   : > { %10214 = vtanh.f32 %v4424_v56  ;;  %v9951_v15 = vadd.f32 %v4408_v49, %v3843_v51 }
 0x765   : > { %v4466_v42 = vmul.f32 0.5, %v4450_v22  ;;  %v4509_v38 = vrot.slane %v14876_v47, 7  ;;  %v4485_v56 = vrot.slane %v14876_v47, 6 }
 0x766   : > { %v10209_v11 = vpop.eup %10208  ;;  %v4426_v61 = vmul.f32 0.5, %v9951_v15  ;;  %v10317_v15 = vld [vmem:[%s10757_s20 + $0x20] sm:$0xff] }
 0x767   : > { %v14879_v45 = vmul.f32 %v10316_v2, %v4466_v42  ;;  %v4452_v8 = vadd.f32 1.0, %v10209_v11  ;;  %v10211_v44 = vpop.eup %10210  ;;  %v14891_v31 = vsel %vm18411_vm4, %v17911_v18, %v4509_v38 }
 0x768   : > { %10216 = vtanh.f32 %v4426_v61  ;;  %v14900_v61 = vsel %vm3328_vm0, %v17915_v33, %v4485_v56  ;;  %v4444_v2 = vadd.f32 1.0, %v10211_v44 }
 0x769   : > { %v4468_v23 = vmul.f32 0.5, %v4452_v8  ;;  %v4510_v51 = vrot.slane %v14879_v45, 7  ;;  %v4486_v22 = vrot.slane %v14879_v45, 6 }
 0x76a   : > { %v10213_v49 = vpop.eup %10212  ;;  %v4460_v44 = vmul.f32 0.5, %v4444_v2 }
 0x76b   : > { %v14894_v42 = vmul.f32 %v10317_v15, %v4468_v23  ;;  %v4454_v11 = vadd.f32 1.0, %v10213_v49  ;;  %v14904_v8 = vsel %vm18412_vm15, %v4509_v38, %v4510_v51  ;;  %v14908_v18 = vsel %vm3328_vm0, %v4485_v56, %v4486_v22 }
 0x76c   : > { %v14940_v20 = vmul.f32 %v10320_v60, %v4460_v44 }
 0x76d   : > { %v4470_v7 = vmul.f32 0.5, %v4454_v11  ;;  %v4511_v23 = vrot.slane %v14894_v42, 7  ;;  %v4487_v15 = vrot.slane %v14894_v42, 6 }
 0x76e   : > { %v10215_v49 = vpop.eup %10214 }
 0x76f   : > { %v14913_v0 = vmul.f32 %v10318_v63, %v4470_v7  ;;  %v4456_v33 = vadd.f32 1.0, %v10215_v49  ;;  %v14917_v38 = vsel %vm18413_vm13, %v4510_v51, %v4511_v23  ;;  %v14921_v56 = vsel %vm3328_vm0, %v4486_v22, %v4487_v15  ;;  %v10319_v51 = vld [vmem:[%s10757_s20 + $0x30] sm:$0xff] }
 0x770   : > { %v4533_v7 = vrot.slane %v14876_v47, 1  ;;  %v4534_v49 = vrot.slane %v14879_v45, 1 }
 0x771   : > { %v4472_v11 = vmul.f32 0.5, %v4456_v33  ;;  %v4512_v6 = vrot.slane %v14913_v0, 7  ;;  %v4488_v1 = vrot.slane %v14913_v0, 6 }
 0x772   : > { %v10217_v32 = vpop.eup %10216 }
 0x773   : > { %v14929_v29 = vmul.f32 %v10319_v51, %v4472_v11  ;;  %v4458_v2 = vadd.f32 1.0, %v10217_v32  ;;  %v14933_v22 = vsel %vm18365_vm3, %v4511_v23, %v4512_v6  ;;  %v14937_v33 = vsel %vm3328_vm0, %v4487_v15, %v4488_v1  ;;  %v10321_v51 = vld [vmem:[%s10757_s20 + $0x38] sm:$0xff] }
 0x774   : > { %v18414_v11 = vrot.slane %v14873_v19, 1  ;;  %v14952_v23 = vsel %vm18416_vm10, %v4533_v7, %v4534_v49  ;;  %v4535_v15 = vrot.slane %v14894_v42, 1 }
 0x775   : > { %v4474_v63 = vmul.f32 0.5, %v4458_v2  ;;  %v17928_v39 = vrot.slane %v14929_v29, 7  ;;  %v17927_v36 = vrot.slane %v14929_v29, 6 }
 0x776   : > { %v14948_v32 = vsel %vm18415_vm11, %v18414_v11, %v4533_v7  ;;  %v4507_v7 = vrot.slane %v14940_v20, 7  ;;  %v14973_v11 = vsel %vm18418_vm12, %v4534_v49, %v4535_v15  ;;  %v4629_v49 = vld [vmem:[%s17701_s13 + $0x190] sm:$0xff] }
 0x777   : > { %v14956_v60 = vmul.f32 %v10321_v51, %v4474_v63  ;;  %v14962_v44 = vsel %vm18417_vm1, %v4512_v6, %v17928_v39  ;;  %v14968_v2 = vsel %vm3328_vm0, %v4488_v1, %v17927_v36  ;;  %v4483_v51 = vrot.slane %v14940_v20, 6  ;;  %v4611_v6 = vld [vmem:[%s17701_s13 + $0x100] sm:$0xff]  ;;  %v4612_v1 = vld [vmem:[%s17701_s13 + $0x108] sm:$0xff]  ;;  %v4630_v39 = vld [vmem:[%s17701_s13 + $0x198] sm:$0xff] }
 0x778   : > { %v4536_v36 = vrot.slane %v14913_v0, 1  ;;  %v4521_v16 = vsel %vm18422_vm7, %v4507_v7, %v18421_v57  ;;  %v9330_v59 = vpack.c.bf16 %v4612_v1, %v4611_v6  ;;  %v18425_v57 = vrot.slane %v14929_v29, 1 }
 0x779   : > { %v17938_v63 = vrot.slane %v14956_v60, 7  ;;  %v18420_v35 = vrot.slane %v14956_v60, 6  ;;  %v4556_v6 = vrot.slane %v14873_v19, 2  ;;  %v4558_v1 = vrot.slane %v14879_v45, 2 }
 0x77b   : > { %v4522_v26 = vsel %vm18419_vm14, %v17938_v63, %v4507_v7  ;;  %v4498_v10 = vsel %vm3328_vm0, %v18420_v35, %v4483_v51  ;;  %v9332_v63 = vpack.c.bf16 %v4630_v39, %v4629_v49  ;;  %v4631_v35 = vld [vmem:[%s17701_s13 + $0x1a0] sm:$0xff]  ;;  %v18427_v39 = vrot.slane %v14873_v19, 6 }
 0x77c   : > { %v4523_v4 = vmul.f32 %v18280_v28, %v4522_v26  ;;  %v4499_v54 = vmul.f32 %v18423_v43, %v4498_v10  ;;  %v4632_v28 = vld [vmem:[%s17701_s13 + $0x1a8] sm:$0xff]  ;;  %v15020_v43 = vsel %vm18424_vm6, %v4535_v15, %v4536_v36  ;;  %v15026_v10 = vsel %vm18426_vm9, %v4536_v36, %v18425_v57 }
 0x77d   : > { %v4524_v26 = vmul.f32 %v18295_v30, %v4521_v16  ;;  %v4497_v7 = vsel %vm3328_vm0, %v4483_v51, %v18427_v39  ;;  %v4557_v15 = vrot.slane %v14876_v47, 2  ;;  %v4559_v49 = vrot.slane %v14894_v42, 2  ;;  %v18428_v57 = vld [vmem:[#allocation40_spill] sm:$0xff] }
 0x77e   : > { %4810 = vmatprep.mubr.f32.mxu1 %v4523_v4  ;;  %v9334_v36 = vpack.c.bf16 %v4614_v37, %v4613_v46  ;;  %v9336_v4 = vpack.c.bf16 %v4632_v28, %v4631_v35  ;;  %v4560_v30 = vrot.slane %v14913_v0, 2  ;;  %v4561_v16 = vrot.slane %v14929_v29, 2  ;;  %v4616_v39 = vld [vmem:[%s17701_s13 + $0x128] sm:$0xff]  ;;  %v4633_v35 = vld [vmem:[%s17701_s13 + $0x1b0] sm:$0xff]  ;;  %v4634_v28 = vld [vmem:[%s17701_s13 + $0x1b8] sm:$0xff] }
 0x77f   : > { %4811 = vmatmul.mubr.f32.vlgmr.msra.gmra.mrb[88].mxu1 %v4499_v54  ;;  %v4500_v51 = vmul.f32 %v18428_v57, %v4497_v7  ;;  %v4615_v54 = vld [vmem:[%s17701_s13 + $0x120] sm:$0xff]  ;;  %v15050_v37 = vsel %vm3401_vm5, %v4556_v6, %v4557_v15  ;;  %v15054_v46 = vsel %vm3401_vm5, %v4557_v15, %v4558_v1  ;;  %v9340_v15 = vpack.c.bf16 %v4634_v28, %v4633_v35 }
 0x780   : > { %9331 = vmatpush3.bf16.msra.mxu1 %v9330_v59  ;;  %4815 = vmatprep.mubr.f32.mxu1 %v4524_v26  ;;  %v15058_v59 = vsel %vm3401_vm5, %v4558_v1, %v4559_v49  ;;  %v15070_v26 = vsel %vm3401_vm5, %v4559_v49, %v4560_v30  ;;  %v15076_v7 = vsel %vm3401_vm5, %v4560_v30, %v4561_v16  ;;  %v4617_v1 = vld [vmem:[%s17701_s13 + $0x130] sm:$0xff]  ;;  %v4618_v49 = vld [vmem:[%s17701_s13 + $0x138] sm:$0xff]  ;;  %v4639_v28 = vld [vmem:[%s17701_s13 + $0x1e0] sm:$0xff] }
 0x781   : > { %9333 = vmatprep.subr.bf16.mxu1 %v9332_v63  ;;  %v4525_v63 = vmul.f32 %v18247_v9, %v14891_v31  ;;  %v9338_v9 = vpack.c.bf16 %v4616_v39, %v4615_v54  ;;  %v4501_v31 = vmul.f32 %v13504_v12, %v14900_v61  ;;  %v4526_v30 = vmul.f32 %v18301_v3, %v14904_v8  ;;  %v4636_v12 = vld [vmem:[%s17701_s13 + $0x1c8] sm:$0xff]  ;;  %v4619_v3 = vld [vmem:[%s17701_s13 + $0x140] sm:$0xff]  ;;  %v4637_v54 = vld [vmem:[%s17701_s13 + $0x1d0] sm:$0xff] }
 0x782   : > { %v9342_v61 = vpack.c.bf16 %v4618_v49, %v4617_v1  ;;  %v4620_v8 = vld [vmem:[%s17701_s13 + $0x148] sm:$0xff]  ;;  %v4503_v39 = vmul.f32 %v13562_v27, %v14921_v56  ;;  %v4528_v35 = vmul.f32 %v18307_v17, %v14933_v22  ;;  %v4623_v17 = vld [vmem:[%s17701_s13 + $0x160] sm:$0xff]  ;;  %v4641_v1 = vld [vmem:[%s17701_s13 + $0x1f0] sm:$0xff]  ;;  %v18430_v49 = vrot.slane %v14929_v29, 7 }
 0x783   : > { %4816 = vmatmul.mubr.f32.gmra.mrb[90].mxu1 %v4500_v51  ;;  %v4527_v51 = vmul.f32 %v18304_v50, %v14917_v38  ;;  %v4621_v50 = vld [vmem:[%s17701_s13 + $0x150] sm:$0xff]  ;;  %v4622_v38 = vld [vmem:[%s17701_s13 + $0x158] sm:$0xff]  ;;  %v4640_v27 = vld [vmem:[%s17701_s13 + $0x1e8] sm:$0xff] }
 0x784   : > { %9335 = vmatpush3.bf16.msra.mxu1 %v9334_v36  ;;  %4820 = vmatprep.mubr.f32.mxu1 %v4525_v63  ;;  %v4635_v36 = vld [vmem:[%s17701_s13 + $0x1c0] sm:$0xff]  ;;  %v9350_v56 = vpack.c.bf16 %v4622_v38, %v4621_v50  ;;  %v4624_v22 = vld [vmem:[%s17701_s13 + $0x168] sm:$0xff] }
 0x785   : > { %9337 = vmatprep.subr.bf16.mxu1 %v9336_v4  ;;  %v4502_v4 = vmul.f32 %v13531_v52, %v14908_v18  ;;  %v9344_v57 = vpack.c.bf16 %v4636_v12, %v4635_v36  ;;  %v4638_v52 = vld [vmem:[%s17701_s13 + $0x1d8] sm:$0xff]  ;;  %v9346_v18 = vpack.c.bf16 %v4620_v8, %v4619_v3  ;;  %v9354_v36 = vpack.c.bf16 %v4624_v22, %v4623_v17  ;;  %v4625_v12 = vld [vmem:[%s17701_s13 + $0x170] sm:$0xff]  ;;  %v4644_v50 = vld [vmem:[%s17701_s13 + $0x208] sm:$0xff] }
 0x786   : > { %v9348_v63 = vpack.c.bf16 %v4638_v52, %v4637_v54  ;;  %v18432_v3 = vrot.slane %v14956_v60, 6  ;;  %v18433_v8 = vrot.slane %v14929_v29, 6  ;;  %v18434_v54 = vrot.slane %v14873_v19, 1  ;;  %v4664_v17 = vld [vmem:[%s17701_s13 + $0x2a8] sm:$0xff] }
 0x787   : > { %4821 = vmatmul.mubr.f32.gmra.mrb[92].mxu1 %v4501_v31  ;;  %v9352_v31 = vpack.c.bf16 %v4640_v27, %v4639_v28  ;;  %v4662_v28 = vld [vmem:[%s17701_s13 + $0x298] sm:$0xff] }
 0x788   : > { %9339 = vmatpush3.bf16.msra.mxu1 %v9338_v9  ;;  %4825 = vmatprep.mubr.f32.mxu1 %v4526_v30  ;;  %v4504_v9 = vmul.f32 %v13591_v55, %v14937_v33  ;;  %v4642_v55 = vld [vmem:[%s17701_s13 + $0x1f8] sm:$0xff]  ;;  %v18429_v33 = vrot.slane %v14956_v60, 7 }
 0x789   : > { %9341 = vmatprep.subr.bf16.mxu1 %v9340_v15  ;;  %v4529_v15 = vmul.f32 %v18310_v53, %v14962_v44  ;;  %v4505_v53 = vmul.f32 %v13611_v62, %v14968_v2  ;;  %v9356_v44 = vpack.c.bf16 %v4642_v55, %v4641_v1  ;;  %v4491_v62 = vsel %vm3328_vm0, %v18433_v8, %v18432_v3  ;;  %v4659_v2 = vld [vmem:[%s17701_s13 + $0x280] sm:$0xff]  ;;  %v4665_v55 = vld [vmem:[%s17701_s13 + $0x2b0] sm:$0xff]  ;;  %v4670_v3 = vld [vmem:[%s17701_s13 + $0x2d8] sm:$0xff] }
 0x78a   : > { %v4515_v30 = vsel %vm18431_vm2, %v18430_v49, %v18429_v33  ;;  %v4647_v1 = vld [vmem:[%s17701_s13 + $0x220] sm:$0xff]  ;;  %v4666_v33 = vld [vmem:[%s17701_s13 + $0x2b8] sm:$0xff]  ;;  %v4538_v8 = vrot.slane %v14956_v60, 1  ;;  %vm18437_vm0 = vmmov %vm18424_vm6 }
 0x78b   : > { %4826 = vmatmul.mubr.f32.gmra.mrb[94].mxu1 %v4502_v4  ;;  %v4531_v4 = vrot.slane %v14940_v20, 1  ;;  %vm18438_vm4 = vmmov %vm18437_vm0 }
 0x78c   : > { %9343 = vmatpush3.bf16.msra.mxu1 %v9342_v61  ;;  %4830 = vmatprep.mubr.f32.mxu1 %v4527_v51  ;;  %v4626_v61 = vld [vmem:[%s17701_s13 + $0x178] sm:$0xff]  ;;  %v4660_v51 = vld [vmem:[%s17701_s13 + $0x288] sm:$0xff] }
 0x78d   : > { %9345 = vmatprep.subr.bf16.mxu1 %v9344_v57  ;;  %v4530_v57 = vmul.f32 %v12030_v25, %v4515_v30  ;;  %v4545_v25 = vsel %vm18435_vm8, %v4531_v4, %v18434_v54  ;;  %v9358_v52 = vpack.c.bf16 %v4626_v61, %v4625_v12  ;;  %v9372_v30 = vpack.c.bf16 %v4666_v33, %v4665_v55  ;;  %v4672_v54 = vld [vmem:[%s17701_s13 + $0x2e8] sm:$0xff]  ;;  %v4678_v33 = vld [vmem:[%s17701_s13 + $0x318] sm:$0xff] }
 0x78e   : > { %v4547_v38 = vmul.f32 %v12072_v48, %v4545_v25  ;;  %v4646_v48 = vld [vmem:[%s17701_s13 + $0x218] sm:$0xff]  ;;  %v18436_v25 = vrot.slane %v14929_v29, 1 }
 0x78f   : > { %4831 = vmatmul.mubr.f32.gmra.mrb[96].mxu1 %v4503_v39  ;;  %v9360_v39 = vpack.c.bf16 %v4660_v51, %v4659_v2  ;;  %v4552_v51 = vmul.f32 %v18392_v24, %v15026_v10  ;;  %v4655_v10 = vld [vmem:[%s17701_s13 + $0x260] sm:$0xff] }
 0x790   : > { %9347 = vmatpush3.bf16.msra.mxu1 %v9346_v18  ;;  %4835 = vmatprep.mubr.f32.mxu1 %v4528_v35  ;;  %v4506_v18 = vmul.f32 %v13626_v58, %v4491_v62  ;;  %v4661_v35 = vld [vmem:[%s17701_s13 + $0x290] sm:$0xff] }
 0x791   : > { %9349 = vmatprep.subr.bf16.mxu1 %v9348_v63  ;;  %v4643_v63 = vld [vmem:[%s17701_s13 + $0x200] sm:$0xff]  ;;  %v9364_v27 = vpack.c.bf16 %v4662_v28, %v4661_v35  ;;  %v4657_v28 = vld [vmem:[%s17701_s13 + $0x270] sm:$0xff] }
 0x792   : > { %v9362_v58 = vpack.c.bf16 %v4644_v50, %v4643_v63  ;;  %v4673_v63 = vld [vmem:[%s17701_s13 + $0x2f0] sm:$0xff]  ;;  %v4674_v50 = vld [vmem:[%s17701_s13 + $0x2f8] sm:$0xff] }
 0x793   : > { %4836 = vmatmul.mubr.f32.gmra.mrb[98].mxu1 %v4504_v9  ;;  %v4548_v9 = vmul.f32 %v12123_v5, %v14948_v32  ;;  %v4648_v5 = vld [vmem:[%s17701_s13 + $0x228] sm:$0xff]  ;;  %v4549_v32 = vmul.f32 %v18271_v41, %v14952_v23  ;;  %v4650_v41 = vld [vmem:[%s17701_s13 + $0x238] sm:$0xff]  ;;  %v4550_v23 = vmul.f32 %v12200_v21, %v14973_v11  ;;  %v4551_v11 = vmul.f32 %v18272_v14, %v15020_v43  ;;  %v4653_v14 = vld [vmem:[%s17701_s13 + $0x250] sm:$0xff] }
 0x794   : > { %9351 = vmatpush3.bf16.msra.mxu1 %v9350_v56  ;;  %4840 = vmatprep.mubr.f32.mxu1 %v4529_v15  ;;  %v4645_v56 = vld [vmem:[%s17701_s13 + $0x210] sm:$0xff]  ;;  %v9370_v49 = vpack.c.bf16 %v4648_v5, %v4647_v1  ;;  %v4652_v21 = vld [vmem:[%s17701_s13 + $0x248] sm:$0xff]  ;;  %v4654_v43 = vld [vmem:[%s17701_s13 + $0x258] sm:$0xff] }
 0x795   : > { %9353 = vmatprep.subr.bf16.mxu1 %v9352_v31  ;;  %v4663_v31 = vld [vmem:[%s17701_s13 + $0x2a0] sm:$0xff]  ;;  %v9366_v22 = vpack.c.bf16 %v4646_v48, %v4645_v56  ;;  %v4555_v48 = vrot.slane %v14940_v20, 2  ;;  %v18439_v1 = vld [vmem:[#allocation53_spill] sm:$0xff] }
 0x796   : > { %v9368_v15 = vpack.c.bf16 %v4664_v17, %v4663_v31  ;;  %v4676_v31 = vld [vmem:[%s17701_s13 + $0x308] sm:$0xff] }
 0x797   : > { %4841 = vmatmul.mubr.f32.gmra.mrb[100].mxu1 %v4505_v53  ;;  %v4667_v53 = vld [vmem:[%s17701_s13 + $0x2c0] sm:$0xff]  ;;  %v4569_v17 = vsel %vm3401_vm5, %v4555_v48, %v4556_v6  ;;  %v4677_v6 = vld [vmem:[%s17701_s13 + $0x310] sm:$0xff] }
 0x798   : > { %9355 = vmatpush3.bf16.msra.mxu1 %v9354_v36  ;;  %4845 = vmatprep.mubr.f32.mxu1 %v4530_v57  ;;  %v4649_v36 = vld [vmem:[%s17701_s13 + $0x230] sm:$0xff]  ;;  %v4651_v57 = vld [vmem:[%s17701_s13 + $0x240] sm:$0xff] }
 0x799   : > { %9357 = vmatprep.subr.bf16.mxu1 %v9356_v44  ;;  %v4668_v44 = vld [vmem:[%s17701_s13 + $0x2c8] sm:$0xff]  ;;  %v9374_v12 = vpack.c.bf16 %v4650_v41, %v4649_v36  ;;  %v9378_v62 = vpack.c.bf16 %v4652_v21, %v4651_v57  ;;  %v18441_v36 = vld [vmem:[#allocation57_spill] sm:$0xff]  ;;  %v9398_v41 = vpack.c.bf16 %v4678_v33, %v4677_v6  ;;  %v4698_v21 = vld [vmem:[%s17701_s13 + $0x3b8] sm:$0xff] }
 0x79a   : > { %v9376_v61 = vpack.c.bf16 %v4668_v44, %v4667_v53  ;;  %v4697_v57 = vld [vmem:[%s17701_s13 + $0x3b0] sm:$0xff]  ;;  %v18453_v6 = vld [vmem:[#allocation75_spill] sm:$0xff] }
 0x79b   : > { %4846 = vmatmul.mubr.f32.gmra.mrb[102].mxu1 %v4506_v18  ;;  %v9382_v18 = vpack.c.bf16 %v4654_v43, %v4653_v14  ;;  %v4699_v14 = vld [vmem:[%s17701_s13 + $0x3c0] sm:$0xff]  ;;  %v4700_v43 = vld [vmem:[%s17701_s13 + $0x3c8] sm:$0xff] }
 0x79c   : > { %9359 = vmatpush3.bf16.msra.mxu1 %v9358_v52  ;;  %4915 = vmatprep.mubr.f32.mxu1 %v4547_v38  ;;  %v4539_v52 = vsel %vm18437_vm0, %v18436_v25, %v4538_v8  ;;  %v4546_v38 = vsel %vm18438_vm4, %v4538_v8, %v4531_v4  ;;  %v4692_v4 = vld [vmem:[%s17701_s13 + $0x388] sm:$0xff]  ;;  %v9404_v8 = vpack.c.bf16 %v4698_v21, %v4697_v57  ;;  %v4710_v57 = vld [vmem:[%s17701_s13 + $0x418] sm:$0xff]  ;;  %v4727_v21 = vld [vmem:[%s17701_s13 + $0x4a0] sm:$0xff] }
 0x79d   : > { %9361 = vmatprep.subr.bf16.mxu1 %v9360_v39  ;;  %v4656_v39 = vld [vmem:[%s17701_s13 + $0x268] sm:$0xff]  ;;  %v9408_v25 = vpack.c.bf16 %v4700_v43, %v4699_v14  ;;  %v4729_v14 = vld [vmem:[%s17701_s13 + $0x4b0] sm:$0xff]  ;;  %v4730_v43 = vld [vmem:[%s17701_s13 + $0x4b8] sm:$0xff] }
 0x79e   : > { %v9386_v35 = vpack.c.bf16 %v4656_v39, %v4655_v10  ;;  %v4702_v10 = vld [vmem:[%s17701_s13 + $0x3d8] sm:$0xff] }
 0x79f   : > { %4916 = vmatmul.mubr.f32.vlgmr.msra.gmra.mrb[104].mxu1 %v14940_v20 }
 0x7a0   : > { %9363 = vmatpush3.bf16.msra.mxu1 %v9362_v58  ;;  %4920 = vmatprep.mubr.f32.mxu1 %v4548_v9  ;;  %v4658_v58 = vld [vmem:[%s17701_s13 + $0x278] sm:$0xff] }
 0x7a1   : > { %9365 = vmatprep.subr.bf16.mxu1 %v9364_v27  ;;  %v4691_v27 = vld [vmem:[%s17701_s13 + $0x380] sm:$0xff]  ;;  %v9390_v56 = vpack.c.bf16 %v4658_v58, %v4657_v28  ;;  %v4704_v28 = vld [vmem:[%s17701_s13 + $0x3e8] sm:$0xff]  ;;  %v4562_v58 = vrot.slane %v14956_v60, 2 }
 0x7a2   : > { %v9392_v9 = vpack.c.bf16 %v4692_v4, %v4691_v27  ;;  %v18450_v27 = vld [vmem:[#allocation71_spill] sm:$0xff] }
 0x7a3   : > { %4921 = vmatmul.mubr.f32.gmra.mrb[106].mxu1 %v14873_v19  ;;  %v18440_v19 = vld [vmem:[#allocation49_spill] sm:$0xff]  ;;  %v4576_v4 = vmul.f32 %v18450_v27, %v15076_v7  ;;  %v4706_v7 = vld [vmem:[%s17701_s13 + $0x3f8] sm:$0xff] }
 0x7a4   : > { %9367 = vmatpush3.bf16.msra.mxu1 %v9366_v22  ;;  %4925 = vmatprep.mubr.f32.mxu1 %v4549_v32  ;;  %v4693_v22 = vld [vmem:[%s17701_s13 + $0x390] sm:$0xff]  ;;  %v4571_v32 = vmul.f32 %v18440_v19, %v4569_v17  ;;  %v4570_v19 = vsel %vm3401_vm5, %v4562_v58, %v4555_v48  ;;  %v4707_v48 = vld [vmem:[%s17701_s13 + $0x400] sm:$0xff]  ;;  %v4718_v27 = vld [vmem:[%s17701_s13 + $0x458] sm:$0xff] }
 0x7a5   : > { %9369 = vmatprep.subr.bf16.mxu1 %v9368_v15  ;;  %v4694_v15 = vld [vmem:[%s17701_s13 + $0x398] sm:$0xff]  ;;  %v18451_v17 = vld [vmem:[#allocation73_spill] sm:$0xff] }
 0x7a6   : > { %v9396_v55 = vpack.c.bf16 %v4694_v15, %v4693_v22  ;;  %v18452_v15 = vld [vmem:[#allocation74_spill] sm:$0xff] }
 0x7a7   : > { %4926 = vmatmul.mubr.f32.gmra.mrb[108].mxu1 %v14876_v47  ;;  %v4669_v47 = vld [vmem:[%s17701_s13 + $0x2d0] sm:$0xff] }
 0x7a8   : > { %9371 = vmatpush3.bf16.msra.mxu1 %v9370_v49  ;;  %4930 = vmatprep.mubr.f32.mxu1 %v4550_v23  ;;  %v9380_v2 = vpack.c.bf16 %v4670_v3, %v4669_v47  ;;  %v4695_v49 = vld [vmem:[%s17701_s13 + $0x3a0] sm:$0xff]  ;;  %v18444_v47 = vld [vmem:[#allocation61_spill] sm:$0xff] }
 0x7a9   : > { %9373 = vmatprep.subr.bf16.mxu1 %v9372_v30  ;;  %v4696_v30 = vld [vmem:[%s17701_s13 + $0x3a8] sm:$0xff]  ;;  %v18442_v23 = vld [vmem:[#allocation55_spill] sm:$0xff]  ;;  %v4573_v3 = vmul.f32 %v18444_v47, %v15054_v46  ;;  %v18445_v46 = vld [vmem:[#allocation34_spill] sm:$0xff] }
 0x7aa   : > { %v4572_v53 = vmul.f32 %v18442_v23, %v15050_v37  ;;  %v9400_v44 = vpack.c.bf16 %v4696_v30, %v4695_v49  ;;  %v18443_v37 = vld [vmem:[#allocation24_spill] sm:$0xff]  ;;  %v4726_v23 = vld [vmem:[%s17701_s13 + $0x498] sm:$0xff] }
 0x7ab   : > { %4931 = vmatmul.mubr.f32.gmra.mrb[110].mxu1 %v14879_v45  ;;  %v4671_v45 = vld [vmem:[%s17701_s13 + $0x2e0] sm:$0xff]  ;;  %v18454_v49 = vld [vmem:[#allocation76_spill] sm:$0xff]  ;;  %v18457_v47 = vld [vmem:[#allocation46_spill] sm:$0xff] }
 0x7ac   : > { %9375 = vmatpush3.bf16.msra.mxu1 %v9374_v12  ;;  %4935 = vmatprep.mubr.f32.mxu1 %v4551_v11  ;;  %v9384_v24 = vpack.c.bf16 %v4672_v54, %v4671_v45  ;;  %v4679_v12 = vld [vmem:[%s17701_s13 + $0x320] sm:$0xff]  ;;  %v4578_v30 = vmul.f32 %v18454_v49, %v4570_v19  ;;  %v4721_v19 = vld [vmem:[%s17701_s13 + $0x470] sm:$0xff]  ;;  %v18470_v49 = vld [vmem:[#allocation22_spill] sm:$0xff] }
 0x7ad   : > { %9377 = vmatprep.subr.bf16.mxu1 %v9376_v61  ;;  %v4680_v61 = vld [vmem:[%s17701_s13 + $0x328] sm:$0xff]  ;;  %v18446_v45 = vld [vmem:[#allocation31_spill] sm:$0xff] }
 0x7ae   : > { %v9402_v11 = vpack.c.bf16 %v4680_v61, %v4679_v12  ;;  %v4574_v54 = vmul.f32 %v18446_v45, %v15058_v59  ;;  %v18447_v59 = vld [vmem:[#allocation80_spill] sm:$0xff]  ;;  %v4709_v61 = vld [vmem:[%s17701_s13 + $0x410] sm:$0xff] }
 0x7af   : > { %4936 = vmatmul.mubr.f32.gmra.mrb[112].mxu1 %v14894_v42  ;;  %v4553_v42 = vmul.f32 %v18397_v34, %v4539_v52  ;;  %v9388_v34 = vpack.c.bf16 %v4674_v50, %v4673_v63  ;;  %v4683_v52 = vld [vmem:[%s17701_s13 + $0x340] sm:$0xff] }
 0x7b0   : > { %9379 = vmatpush3.bf16.msra.mxu1 %v9378_v62  ;;  %4940 = vmatprep.mubr.f32.mxu1 %v4552_v51  ;;  %v4681_v62 = vld [vmem:[%s17701_s13 + $0x330] sm:$0xff] }
 0x7b1   : > { %9381 = vmatprep.subr.bf16.mxu1 %v9380_v2  ;;  %v4682_v2 = vld [vmem:[%s17701_s13 + $0x338] sm:$0xff] }
 0x7b2   : > { %v9406_v51 = vpack.c.bf16 %v4682_v2, %v4681_v62  ;;  %v4711_v62 = vld [vmem:[%s17701_s13 + $0x420] sm:$0xff]  ;;  %v4712_v2 = vld [vmem:[%s17701_s13 + $0x428] sm:$0xff] }
 0x7b3   : > { %4941 = vmatmul.mubr.f32.gmra.mrb[114].mxu1 %v14913_v0  ;;  %v4554_v0 = vmul.f32 %v18401_v13, %v4546_v38  ;;  %v4675_v13 = vld [vmem:[%s17701_s13 + $0x300] sm:$0xff]  ;;  %v4685_v38 = vld [vmem:[%s17701_s13 + $0x350] sm:$0xff]  ;;  %v9434_v45 = vpack.c.bf16 %v4712_v2, %v4711_v62  ;;  %v18486_v62 = vld [vmem:[#allocation68_spill] sm:$0xff] }
 0x7b4   : > { %9383 = vmatpush3.bf16.msra.mxu1 %v9382_v18  ;;  %4945 = vmatprep.mubr.f32.mxu1 %v4553_v42  ;;  %v9394_v5 = vpack.c.bf16 %v4676_v31, %v4675_v13  ;;  %v4684_v18 = vld [vmem:[%s17701_s13 + $0x348] sm:$0xff]  ;;  %v18448_v42 = vld [vmem:[#allocation41_spill] sm:$0xff] }
 0x7b5   : > { %9385 = vmatprep.subr.bf16.mxu1 %v9384_v24  ;;  %v4701_v24 = vld [vmem:[%s17701_s13 + $0x3d0] sm:$0xff]  ;;  %v9410_v39 = vpack.c.bf16 %v4684_v18, %v4683_v52  ;;  %v4575_v63 = vmul.f32 %v18448_v42, %v15070_v26  ;;  %v18449_v26 = vld [vmem:[#allocation72_spill] sm:$0xff]  ;;  %v4714_v52 = vld [vmem:[%s17701_s13 + $0x438] sm:$0xff] }
 0x7b6   : > { %v9412_v50 = vpack.c.bf16 %v4702_v10, %v4701_v24  ;;  %v4688_v13 = vld [vmem:[%s17701_s13 + $0x368] sm:$0xff]  ;;  %v4705_v31 = vld [vmem:[%s17701_s13 + $0x3f0] sm:$0xff]  ;;  %v4731_v18 = vld [vmem:[%s17701_s13 + $0x4c0] sm:$0xff] }
 0x7b7   : > { %4946 = vmatmul.mubr.f32.gmra.mrb[116].mxu1 %v14929_v29  ;;  %v9420_v29 = vpack.c.bf16 %v4706_v7, %v4705_v31  ;;  %v4732_v24 = vld [vmem:[%s17701_s13 + $0x4c8] sm:$0xff]  ;;  %v18460_v10 = vld [vmem:[#allocation79_spill] sm:$0xff] }
 0x7b8   : > { %9387 = vmatpush3.bf16.msra.mxu1 %v9386_v35  ;;  %4950 = vmatprep.mubr.f32.mxu1 %v4554_v0  ;;  %v4686_v35 = vld [vmem:[%s17701_s13 + $0x358] sm:$0xff]  ;;  %v9440_v42 = vpack.c.bf16 %v4732_v24, %v4731_v18  ;;  %v4719_v7 = vld [vmem:[%s17701_s13 + $0x460] sm:$0xff]  ;;  %v5376_v2 = vld [vmem:[%s17703_s15 + $0x8] sm:$0xff] }
 0x7b9   : > { %9389 = vmatprep.subr.bf16.mxu1 %v9388_v34  ;;  %v4703_v34 = vld [vmem:[%s17701_s13 + $0x3e0] sm:$0xff]  ;;  %v9414_v0 = vpack.c.bf16 %v4686_v35, %v4685_v38  ;;  %v4733_v38 = vld [vmem:[%s17701_s13 + $0x4d0] sm:$0xff]  ;;  %v4734_v35 = vld [vmem:[%s17701_s13 + $0x4d8] sm:$0xff] }
 0x7ba   : > { %v5379_v18 = vld [vmem:[%s17703_s15 + $0x20] sm:$0xff] }
 0x7bb   : > { %4951 = vmatmul.mubr.f32.gmra.mrb[118].mxu1 %v14956_v60  ;;  %v4563_v60 = vsel %vm3401_vm5, %v4561_v16, %v4562_v58  ;;  %v4689_v16 = vld [vmem:[%s17701_s13 + $0x370] sm:$0xff] }
 0x7bc   : > { %9391 = vmatpush3.bf16.msra.mxu1 %v9390_v56  ;;  %5020 = vmatprep.mubr.f32.mxu1 %v18439_v1  ;;  %v9416_v56 = vpack.c.bf16 %v4704_v28, %v4703_v34  ;;  %v4577_v1 = vmul.f32 %v18452_v15, %v4563_v60  ;;  %v18462_v34 = vld [vmem:[#allocation15_spill] sm:$0xff]  ;;  %v4738_v15 = vld [vmem:[%s17701_s13 + $0x4f8] sm:$0xff] }
 0x7bd   : > { %9393 = vmatprep.subr.bf16.mxu1 %v9392_v9  ;;  %v4687_v9 = vld [vmem:[%s17701_s13 + $0x360] sm:$0xff] }
 0x7be   : > { %v9418_v22 = vpack.c.bf16 %v4688_v13, %v4687_v9  ;;  %v18463_v28 = vld [vmem:[#allocation59_spill] sm:$0xff]  ;;  %v18464_v9 = vld [vmem:[#allocation18_spill] sm:$0xff] }
 0x7bf   : > { %5021 = vmatmul.mubr.f32.vlgmr.msra.gmra.mrb[120].mxu1 %v4571_v32  ;;  %v4723_v32 = vld [vmem:[%s17701_s13 + $0x480] sm:$0xff]  ;;  %v18465_v13 = vld [vmem:[#allocation38_spill] sm:$0xff] }
 0x7c0   : > { %9395 = vmatpush3.bf16.msra.mxu1 %v9394_v5  ;;  %5025 = vmatprep.mubr.f32.mxu1 %v18441_v36  ;;  %v4690_v5 = vld [vmem:[%s17701_s13 + $0x378] sm:$0xff]  ;;  %v4708_v36 = vld [vmem:[%s17701_s13 + $0x408] sm:$0xff] }
 0x7c1   : > { %9397 = vmatprep.subr.bf16.mxu1 %v9396_v55  ;;  %v4724_v55 = vld [vmem:[%s17701_s13 + $0x488] sm:$0xff]  ;;  %v9422_v33 = vpack.c.bf16 %v4690_v5, %v4689_v16 }
 0x7c2   : > { %v9424_v20 = vpack.c.bf16 %v4724_v55, %v4723_v32  ;;  %v4722_v32 = vld [vmem:[%s17701_s13 + $0x478] sm:$0xff]  ;;  %v18468_v55 = vld [vmem:[#allocation19_spill] sm:$0xff] }
 0x7c3   : > { %5026 = vmatmul.mubr.f32.gmra.mrb[122].mxu1 %v4572_v53  ;;  %v18455_v53 = vld [vmem:[#allocation33_spill] sm:$0xff] }
 0x7c4   : > { %9399 = vmatpush3.bf16.msra.mxu1 %v9398_v41  ;;  %5030 = vmatprep.mubr.f32.mxu1 %v18443_v37  ;;  %v4725_v41 = vld [vmem:[%s17701_s13 + $0x490] sm:$0xff]  ;;  %v4728_v37 = vld [vmem:[%s17701_s13 + $0x4a8] sm:$0xff] }
 0x7c5   : > { %9401 = vmatprep.subr.bf16.mxu1 %v9400_v44  ;;  %v9426_v44 = vpack.c.bf16 %v4708_v36, %v4707_v48  ;;  %v9428_v12 = vpack.c.bf16 %v4726_v23, %v4725_v41  ;;  %v18473_v48 = vld [vmem:[#allocation54_spill] sm:$0xff]  ;;  %v18474_v36 = vld [vmem:[#allocation36_spill] sm:$0xff]  ;;  %v18476_v23 = vld [vmem:[#allocation47_spill] sm:$0xff] }
 0x7c6   : > { %v18475_v41 = vld [vmem:[#allocation58_spill] sm:$0xff] }
 0x7c7   : > { %5031 = vmatmul.mubr.f32.gmra.mrb[124].mxu1 %v4573_v3  ;;  %v9430_v3 = vpack.c.bf16 %v4710_v57, %v4709_v61  ;;  %v18479_v61 = vld [vmem:[#allocation81_spill] sm:$0xff]  ;;  %v18480_v57 = vld [vmem:[#allocation82_spill] sm:$0xff] }
 0x7c8   : > { %9403 = vmatpush3.bf16.msra.mxu1 %v9402_v11  ;;  %5035 = vmatprep.mubr.f32.mxu1 %v18445_v46  ;;  %v18456_v11 = vld [vmem:[#allocation77_spill] sm:$0xff]  ;;  %v18458_v46 = vld [vmem:[#allocation78_spill] sm:$0xff] }
 0x7c9   : > { %9405 = vmatprep.subr.bf16.mxu1 %v9404_v8  ;;  %v9432_v8 = vpack.c.bf16 %v4728_v37, %v4727_v21  ;;  %v18481_v21 = vld [vmem:[#allocation83_spill] sm:$0xff]  ;;  %v18482_v37 = vld [vmem:[#allocation64_spill] sm:$0xff] }
 0x7cb   : > { %5036 = vmatmul.mubr.f32.gmra.mrb[126].mxu1 %v4574_v54  ;;  %v9436_v54 = vpack.c.bf16 %v4730_v43, %v4729_v14  ;;  %v5378_v14 = vld [vmem:[%s17703_s15 + $0x18] sm:$0xff]  ;;  %v5375_v43 = vld [vmem:[%s17703_s15] sm:$0xff] }
 0x7cc   : > { %9407 = vmatpush3.bf16.msra.mxu1 %v9406_v51  ;;  %5040 = vmatprep.mubr.f32.mxu1 %v18447_v59  ;;  %v18459_v51 = vld [vmem:[#allocation42_spill] sm:$0xff]  ;;  %v18461_v59 = vld [vmem:[#allocation51_spill] sm:$0xff] }
 0x7cd   : > { %9409 = vmatprep.subr.bf16.mxu1 %v9408_v25  ;;  %v4713_v25 = vld [vmem:[%s17701_s13 + $0x430] sm:$0xff] }
 0x7cf   : > { %5041 = vmatmul.mubr.f32.gmra.mrb[128].mxu1 %v4575_v63  ;;  %v4715_v63 = vld [vmem:[%s17701_s13 + $0x440] sm:$0xff] }
 0x7d0   : > { %9411 = vmatpush3.bf16.msra.mxu1 %v9410_v39  ;;  %5045 = vmatprep.mubr.f32.mxu1 %v18449_v26  ;;  %v9438_v39 = vpack.c.bf16 %v4714_v52, %v4713_v25  ;;  %v9444_v26 = vpack.c.bf16 %v4734_v35, %v4733_v38  ;;  %v5380_v25 = vld [vmem:[%s17703_s15 + $0x28] sm:$0xff]  ;;  %v5382_v52 = vld [vmem:[%s17703_s15 + $0x38] sm:$0xff]  ;;  %v5385_v35 = vld [vmem:[%s17703_s15 + $0x50] sm:$0xff] }
 0x7d1   : > { %9413 = vmatprep.subr.bf16.mxu1 %v9412_v50  ;;  %v4716_v50 = vld [vmem:[%s17701_s13 + $0x448] sm:$0xff]  ;;  %v9460_v24 = vpack.c.bf16 %v5382_v52, %v5380_v25  ;;  %v5401_v52 = vld [vmem:[%s17703_s15 + $0xd0] sm:$0xff] }
 0x7d2   : > { %v9442_v58 = vpack.c.bf16 %v4716_v50, %v4715_v63  ;;  %v5386_v63 = vld [vmem:[%s17703_s15 + $0x58] sm:$0xff]  ;;  %v5383_v50 = vld [vmem:[%s17703_s15 + $0x40] sm:$0xff] }
 0x7d3   : > { %5046 = vmatmul.mubr.f32.gmra.mrb[130].mxu1 %v4576_v4  ;;  %v4735_v4 = vld [vmem:[%s17701_s13 + $0x4e0] sm:$0xff] }
 0x7d4   : > { %9415 = vmatpush3.bf16.msra.mxu1 %v9414_v0  ;;  %5050 = vmatprep.mubr.f32.mxu1 %v18451_v17  ;;  %v4717_v0 = vld [vmem:[%s17701_s13 + $0x450] sm:$0xff]  ;;  %v4720_v17 = vld [vmem:[%s17701_s13 + $0x468] sm:$0xff] }
 0x7d5   : > { %9417 = vmatprep.subr.bf16.mxu1 %v9416_v56  ;;  %v4736_v56 = vld [vmem:[%s17701_s13 + $0x4e8] sm:$0xff]  ;;  %v9446_v60 = vpack.c.bf16 %v4718_v27, %v4717_v0  ;;  %v9450_v16 = vpack.c.bf16 %v4720_v17, %v4719_v7  ;;  %v5390_v0 = vld [vmem:[%s17703_s15 + $0x78] sm:$0xff]  ;;  %v5387_v27 = vld [vmem:[%s17703_s15 + $0x60] sm:$0xff] }
 0x7d6   : > { %v9448_v31 = vpack.c.bf16 %v4736_v56, %v4735_v4 }
 0x7d7   : > { %5051 = vmatmul.mubr.f32.gmra.mrb[132].mxu1 %v4577_v1  ;;  %v18466_v1 = vld [vmem:[#allocation23_spill] sm:$0xff] }
 0x7d8   : > { %9419 = vmatpush3.bf16.msra.mxu1 %v9418_v22  ;;  %5055 = vmatprep.mubr.f32.mxu1 %v18453_v6  ;;  %v4737_v22 = vld [vmem:[%s17701_s13 + $0x4f0] sm:$0xff]  ;;  %v18469_v6 = vld [vmem:[#allocation44_spill] sm:$0xff] }
 0x7d9   : > { %9421 = vmatprep.subr.bf16.mxu1 %v9420_v29  ;;  %v18467_v29 = vld [vmem:[#allocation69_spill] sm:$0xff]  ;;  %v9452_v5 = vpack.c.bf16 %v4738_v15, %v4737_v22 }
 0x7db   : > { %5056 = vmatmul.mubr.f32.gmra.mrb[134].mxu1 %v4578_v30  ;;  %v18471_v30 = vld [vmem:[#allocation50_spill] sm:$0xff] }
 0x7dc   : > { %9423 = vmatpush3.bf16.msra.mxu1 %v9422_v33  ;;  %5125 = vmatprep.mubr.f32.mxu1 %v18455_v53  ;;  %v9454_v33 = vpack.c.bf16 %v4722_v32, %v4721_v19 }
 0x7dd   : > { %9425 = vmatprep.subr.bf16.mxu1 %v9424_v20  ;;  %v18472_v20 = vld [vmem:[#allocation26_spill] sm:$0xff] }
 0x7df   : > { %5126 = vmatmul.mubr.f32.vlgmr.msra.gmra.mrb[136].mxu1 %v18456_v11  ;;  %v18483_v11 = vld [vmem:[#allocation84_spill] sm:$0xff] }
 0x7e0   : > { %9427 = vmatpush3.bf16.msra.mxu1 %v9426_v44  ;;  %5130 = vmatprep.mubr.f32.mxu1 %v18457_v47  ;;  %v18477_v44 = vld [vmem:[#allocation62_spill] sm:$0xff] }
 0x7e1   : > { %9429 = vmatprep.subr.bf16.mxu1 %v9428_v12  ;;  %v18478_v12 = vld [vmem:[#allocation45_spill] sm:$0xff] }
 0x7e3   : > { %5131 = vmatmul.mubr.f32.gmra.mrb[138].mxu1 %v18458_v46  ;;  %v9456_v46 = vpack.c.bf16 %v5378_v14, %v5376_v2 }
 0x7e4   : > { %9431 = vmatpush3.bf16.msra.mxu1 %v9430_v3  ;;  %5135 = vmatprep.mubr.f32.mxu1 %v18459_v51  ;;  %v18484_v3 = vld [vmem:[#allocation66_spill] sm:$0xff] }
 0x7e5   : > { %9433 = vmatprep.subr.bf16.mxu1 %v9432_v8  ;;  %v18485_v8 = vld [vmem:[#allocation85_spill] sm:$0xff] }
 0x7e7   : > { %5136 = vmatmul.mubr.f32.gmra.mrb[140].mxu1 %v18460_v10  ;;  %v5381_v10 = vld [vmem:[%s17703_s15 + $0x30] sm:$0xff] }
 0x7e8   : > { %9435 = vmatpush3.bf16.msra.mxu1 %v9434_v45  ;;  %5140 = vmatprep.mubr.f32.mxu1 %v18461_v59  ;;  %v5377_v45 = vld [vmem:[%s17703_s15 + $0x10] sm:$0xff] }
 0x7e9   : > { %9437 = vmatprep.subr.bf16.mxu1 %v9436_v54  ;;  %v9458_v54 = vpack.c.bf16 %v5377_v45, %v5375_v43  ;;  %v5400_v43 = vld [vmem:[%s17703_s15 + $0xc8] sm:$0xff]  ;;  %v5399_v45 = vld [vmem:[%s17703_s15 + $0xc0] sm:$0xff] }
 0x7eb   : > { %5141 = vmatmul.mubr.f32.gmra.mrb[142].mxu1 %v18462_v34  ;;  %v9466_v34 = vpack.c.bf16 %v5385_v35, %v5383_v50  ;;  %v5403_v50 = vld [vmem:[%s17703_s15 + $0xe0] sm:$0xff] }
 0x7ec   : > { %9439 = vmatpush3.bf16.msra.mxu1 %v9438_v39  ;;  %5145 = vmatprep.mubr.f32.mxu1 %v18463_v28  ;;  %v9462_v39 = vpack.c.bf16 %v5381_v10, %v5379_v18  ;;  %v15657_v10 = vld [vmem:[%s17702_s14] ss:$0 sm:$0xff] }
 0x7ed   : > { %9441 = vmatprep.subr.bf16.mxu1 %v9440_v42  ;;  %v5384_v42 = vld [vmem:[%s17703_s15 + $0x48] sm:$0xff] }
 0x7ee   : > { %v9464_v38 = vpack.c.bf16 %v5386_v63, %v5384_v42  ;;  %v5404_v42 = vld [vmem:[%s17703_s15 + $0xe8] sm:$0xff]  ;;  %v5406_v63 = vld [vmem:[%s17703_s15 + $0xf8] sm:$0xff] }
 0x7ef   : > { %5146 = vmatmul.mubr.f32.gmra.mrb[144].mxu1 %v18464_v9  ;;  %v5389_v9 = vld [vmem:[%s17703_s15 + $0x70] sm:$0xff]  ;;  %v9484_v35 = vpack.c.bf16 %v5406_v63, %v5404_v42  ;;  %v5424_v42 = vld [vmem:[%s17703_s15 + $0x188] sm:$0xff]  ;;  %v5426_v63 = vld [vmem:[%s17703_s15 + $0x198] sm:$0xff] }
 0x7f0   : > { %9443 = vmatpush3.bf16.msra.mxu1 %v9442_v58  ;;  %5150 = vmatprep.mubr.f32.mxu1 %v18465_v13 }
 0x7f1   : > { %9445 = vmatprep.subr.bf16.mxu1 %v9444_v26  ;;  %v5388_v26 = vld [vmem:[%s17703_s15 + $0x68] sm:$0xff] }
 0x7f2   : > { %v9468_v56 = vpack.c.bf16 %v5390_v0, %v5388_v26 }
 0x7f3   : > { %5151 = vmatmul.mubr.f32.gmra.mrb[146].mxu1 %v18466_v1 }
 0x7f4   : > { %9447 = vmatpush3.bf16.msra.mxu1 %v9446_v60  ;;  %5155 = vmatprep.mubr.f32.mxu1 %v18467_v29 }
 0x7f5   : > { %9449 = vmatprep.subr.bf16.mxu1 %v9448_v31  ;;  %v9470_v31 = vpack.c.bf16 %v5389_v9, %v5387_v27  ;;  %v5407_v9 = vld [vmem:[%s17703_s15 + $0x100] sm:$0xff] }
 0x7f7   : > { %5156 = vmatmul.mubr.f32.gmra.mrb[148].mxu1 %v18468_v55 }
 0x7f8   : > { %9451 = vmatpush3.bf16.msra.mxu1 %v9450_v16  ;;  %5160 = vmatprep.mubr.f32.mxu1 %v18469_v6 }
 0x7f9   : > { %9453 = vmatprep.subr.bf16.mxu1 %v9452_v5 }
 0x7fb   : > { %5161 = vmatmul.mubr.f32.gmra.mrb[150].mxu1 %v18470_v49 }
 0x7fc   : > { %9455 = vmatpush3.bf16.msra.mxu1 %v9454_v33  ;;  %5230 = vmatprep.mubr.f32.mxu1 %v18471_v30  ;;  %v5392_v30 = vld [vmem:[%s17703_s15 + $0x88] sm:$0xff] }
 0x7fd   : > { %9457 = vmatprep.subr.bf16.mxu1 %v9456_v46  ;;  %v5402_v46 = vld [vmem:[%s17703_s15 + $0xd8] sm:$0xff] }
 0x7fe   : > { %v9480_v25 = vpack.c.bf16 %v5402_v46, %v5400_v43 }
 0x7ff   : > { %5231 = vmatmul.mubr.f32.vlgmr.msra.gmra.mrb[152].mxu1 %v18472_v20  ;;  %v5394_v20 = vld [vmem:[%s17703_s15 + $0x98] sm:$0xff] }
 0x800   : > { %5235 = vmatprep.mubr.f32.mxu1 %v18473_v48  ;;  %9459 = vmatpush1.bf16.msra.mxu1 %v9458_v54  ;;  %v5391_v48 = vld [vmem:[%s17703_s15 + $0x80] sm:$0xff] }
 0x801   : > { %9461 = vmatprep.subr.bf16.mxu1 %v9460_v24  ;;  %v9482_v24 = vpack.c.bf16 %v5401_v52, %v5399_v45  ;;  %v5420_v45 = vld [vmem:[%s17703_s15 + $0x168] sm:$0xff] }
 0x803   : > { %5236 = vmatmul.mubr.f32.gmra.mrb[154].mxu1 %v18474_v36 }
 0x804   : > { %5240 = vmatprep.mubr.f32.mxu1 %v18475_v41  ;;  %9463 = vmatpush1.bf16.msra.mxu1 %v9462_v39  ;;  %v9472_v41 = vpack.c.bf16 %v5394_v20, %v5392_v30  ;;  %v5411_v30 = vld [vmem:[%s17703_s15 + $0x120] sm:$0xff] }
 0x805   : > { %9465 = vmatprep.subr.bf16.mxu1 %v9464_v38 }
 0x807   : > { %5241 = vmatmul.mubr.f32.gmra.mrb[156].mxu1 %v18476_v23  ;;  %v5393_v23 = vld [vmem:[%s17703_s15 + $0x90] sm:$0xff] }
 0x808   : > { %5245 = vmatprep.mubr.f32.mxu1 %v18477_v44  ;;  %9467 = vmatpush1.bf16.msra.mxu1 %v9466_v34  ;;  %v5405_v34 = vld [vmem:[%s17703_s15 + $0xf0] sm:$0xff] }
 0x809   : > { %9469 = vmatprep.subr.bf16.mxu1 %v9468_v56  ;;  %v9486_v26 = vpack.c.bf16 %v5405_v34, %v5403_v50  ;;  %v5410_v56 = vld [vmem:[%s17703_s15 + $0x118] sm:$0xff]  ;;  %v5423_v34 = vld [vmem:[%s17703_s15 + $0x180] sm:$0xff] }
 0x80b   : > { %5246 = vmatmul.mubr.f32.gmra.mrb[158].mxu1 %v18478_v12  ;;  %v9474_v12 = vpack.c.bf16 %v5393_v23, %v5391_v48 }
 0x80c   : > { %5250 = vmatprep.mubr.f32.mxu1 %v18479_v61  ;;  %9471 = vmatpush1.bf16.msra.mxu1 %v9470_v31 }
 0x80d   : > { %9473 = vmatprep.subr.bf16.mxu1 %v9472_v41 }
 0x80f   : > { %5251 = vmatmul.mubr.f32.gmra.mrb[160].mxu1 %v18480_v57  ;;  %v5396_v57 = vld [vmem:[%s17703_s15 + $0xa8] sm:$0xff] }
 0x810   : > { %5255 = vmatprep.mubr.f32.mxu1 %v18481_v21  ;;  %9475 = vmatpush1.bf16.msra.mxu1 %v9474_v12  ;;  %v5398_v21 = vld [vmem:[%s17703_s15 + $0xb8] sm:$0xff] }
 0x813   : > { %5256 = vmatmul.mubr.f32.gmra.mrb[162].mxu1 %v18482_v37  ;;  %v5395_v37 = vld [vmem:[%s17703_s15 + $0xa0] sm:$0xff] }
 0x814   : > { %5260 = vmatprep.mubr.f32.mxu1 %v18483_v11 }
 0x817   : > { %5261 = vmatmul.mubr.f32.gmra.mrb[164].mxu1 %v18484_v3  ;;  %v9476_v3 = vpack.c.bf16 %v5398_v21, %v5396_v57  ;;  %v5416_v57 = vld [vmem:[%s17703_s15 + $0x148] sm:$0xff]  ;;  %v5418_v21 = vld [vmem:[%s17703_s15 + $0x158] sm:$0xff] }
 0x818   : > { %5265 = vmatprep.mubr.f32.mxu1 %v18485_v8  ;;  %v5397_v8 = vld [vmem:[%s17703_s15 + $0xb0] sm:$0xff] }
 0x819   : > { %v9478_v2 = vpack.c.bf16 %v5397_v8, %v5395_v37  ;;  %9477 = vmatprep.subr.bf16.mxu1 %v9476_v3  ;;  %v5415_v37 = vld [vmem:[%s17703_s15 + $0x140] sm:$0xff]  ;;  %v9496_v8 = vpack.c.bf16 %v5418_v21, %v5416_v57 }
 0x81b   : > { %5266 = vmatmul.mubr.f32.gmra.mrb[166].mxu1 %v18486_v62 }
 0x81c   : > { %9479 = vmatpush1.bf16.msra.mxu1 %v9478_v2 }
 0x81d   : > { %9481 = vmatprep.subr.bf16.mxu1 %v9480_v25  ;;  %v5419_v25 = vld [vmem:[%s17703_s15 + $0x160] sm:$0xff] }
 0x820   : > { %9483 = vmatpush1.bf16.msra.mxu1 %v9482_v24 }
 0x821   : > { %9485 = vmatprep.subr.bf16.mxu1 %v9484_v35  ;;  %v9504_v35 = vpack.c.bf16 %v5426_v63, %v5424_v42 }
 0x824   : > { %9487 = vmatpush1.bf16.msra.mxu1 %v9486_v26  ;;  %v5428_v26 = vld [vmem:[%s17703_s15 + $0x1a8] sm:$0xff] }
 0x852   : > { %v7932_v58 = vpop.f32.mrb[88].mxu1 }
 0x853   : > { %v7933_v4 = vpop.f32.mrb[89].mxu1 }
 0x854   : > { %v7934_v60 = vadd.f32 %v7933_v4, %v7932_v58  ;;  %v5408_v4 = vld [vmem:[%s17703_s15 + $0x108] sm:$0xff] }
 0x856   : > { %v7935_v7 = vpop.f32.mrb[90].mxu1  ;;  %v4813_v0 = vadd.f32 %v7934_v60, %v15657_v10  ;;  %v5409_v60 = vld [vmem:[%s17703_s15 + $0x110] sm:$0xff] }
 0x857   : > { %v7936_v17 = vpop.f32.mrb[91].mxu1 }
 0x858   : > { %v15606_v22 = vadd.f32 %v7936_v17, %v7935_v7  ;;  %v9488_v17 = vpack.c.bf16 %v5410_v56, %v5408_v4  ;;  %v5430_v4 = vld [vmem:[%s17703_s15 + $0x1b8] sm:$0xff] }
 0x85a   : > { %v7938_v15 = vpop.f32.mrb[92].mxu1  ;;  %9489 = vmatprep.subr.bf16.mxu1 %v9488_v17  ;;  %v9508_v17 = vpack.c.bf16 %v5430_v4, %v5428_v26 }
 0x85b   : > { %v7939_v1 = vpop.f32.mrb[93].mxu1 }
 0x85c   : > { %v15608_v16 = vadd.f32 %v7939_v1, %v7938_v15  ;;  %v9490_v1 = vpack.c.bf16 %v5409_v60, %v5407_v9  ;;  %v5427_v60 = vld [vmem:[%s17703_s15 + $0x1a0] sm:$0xff] }
 0x85e   : > { %v7941_v5 = vpop.f32.mrb[94].mxu1  ;;  %9491 = vmatpush1.bf16.msra.mxu1 %v9490_v1  ;;  %v5432_v1 = vld [vmem:[%s17703_s15 + $0x1c8] sm:$0xff] }
 0x85f   : > { %v7942_v19 = vpop.f32.mrb[95].mxu1 }
 0x860   : > { %v15610_v32 = vadd.f32 %v7942_v19, %v7941_v5  ;;  %v4818_v5 = vadd.f32 %v15606_v22, %v15657_v10  ;;  %v5413_v22 = vld [vmem:[%s17703_s15 + $0x130] sm:$0xff] }
 0x861   : > { %v9494_v23 = vpack.c.bf16 %v5413_v22, %v5411_v30  ;;  %v5431_v22 = vld [vmem:[%s17703_s15 + $0x1c0] sm:$0xff] }
 0x862   : > { %v7944_v55 = vpop.f32.mrb[96].mxu1  ;;  %v4828_v43 = vadd.f32 %v15610_v32, %v15657_v10  ;;  %v5421_v32 = vld [vmem:[%s17703_s15 + $0x170] sm:$0xff] }
 0x863   : > { %v7945_v33 = vpop.f32.mrb[97].mxu1 }
 0x864   : > { %v15612_v49 = vadd.f32 %v7945_v33, %v7944_v55  ;;  %v5412_v55 = vld [vmem:[%s17703_s15 + $0x128] sm:$0xff]  ;;  %v5414_v33 = vld [vmem:[%s17703_s15 + $0x138] sm:$0xff] }
 0x866   : > { %v7947_v36 = vpop.f32.mrb[98].mxu1 }
 0x867   : > { %v7948_v44 = vpop.f32.mrb[99].mxu1 }
 0x868   : > { %v15626_v61 = vadd.f32 %v7948_v44, %v7947_v36  ;;  %v9492_v36 = vpack.c.bf16 %v5414_v33, %v5412_v55  ;;  %v4823_v44 = vadd.f32 %v15608_v16, %v15657_v10  ;;  %v5417_v16 = vld [vmem:[%s17703_s15 + $0x150] sm:$0xff] }
 0x869   : > { %v9498_v2 = vpack.c.bf16 %v5417_v16, %v5415_v37  ;;  %v5435_v16 = vld [vmem:[%s17703_s15 + $0x1e0] sm:$0xff] }
 0x86a   : > { %v7950_v11 = vpop.f32.mrb[100].mxu1  ;;  %9493 = vmatprep.subr.bf16.mxu1 %v9492_v36 }
 0x86b   : > { %v7951_v62 = vpop.f32.mrb[101].mxu1  ;;  %9495 = vmatpush1.bf16.msra.mxu1 %v9494_v23 }
 0x86c   : > { %v15640_v14 = vadd.f32 %v7951_v62, %v7950_v11  ;;  %9497 = vmatprep.subr.bf16.mxu1 %v9496_v8 }
 0x86e   : > { %v7953_v54 = vpop.f32.mrb[102].mxu1 }
 0x86f   : > { %v7954_v18 = vpop.f32.mrb[103].mxu1  ;;  %9499 = vmatpush1.bf16.msra.mxu1 %v9498_v2 }
 0x870   : > { %v15659_v39 = vadd.f32 %v7954_v18, %v7953_v54  ;;  %v5422_v54 = vld [vmem:[%s17703_s15 + $0x178] sm:$0xff] }
 0x871   : > { %v9500_v24 = vpack.c.bf16 %v5422_v54, %v5420_v45 }
 0x872   : > { %v7988_v38 = vpop.f32.mrb[104].mxu1 }
 0x873   : > { %v7989_v58 = vpop.f32.mrb[105].mxu1  ;;  %9501 = vmatprep.subr.bf16.mxu1 %v9500_v24 }
 0x874   : > { %v7990_v27 = vadd.f32 %v7989_v58, %v7988_v38  ;;  %v9502_v38 = vpack.c.bf16 %v5421_v32, %v5419_v25  ;;  %v5425_v58 = vld [vmem:[%s17703_s15 + $0x190] sm:$0xff] }
 0x875   : > { %v9506_v56 = vpack.c.bf16 %v5425_v58, %v5423_v34 }
 0x876   : > { %v15683_v31 = vadd.f32 %v7990_v27, %v4813_v0  ;;  %v7991_v7 = vpop.f32.mrb[106].mxu1  ;;  %v4833_v0 = vadd.f32 %v15612_v49, %v15657_v10  ;;  %9503 = vmatpush1.bf16.msra.mxu1 %v9502_v38  ;;  %v5429_v49 = vld [vmem:[%s17703_s15 + $0x1b0] sm:$0xff] }
 0x877   : > { %v7992_v15 = vpop.f32.mrb[107].mxu1  ;;  %9505 = vmatprep.subr.bf16.mxu1 %v9504_v35  ;;  %v9510_v33 = vpack.c.bf16 %v5429_v49, %v5427_v60 }
 0x878   : > { %v7993_v19 = vadd.f32 %v7992_v15, %v7991_v7 }
 0x87a   : > { %v15699_v20 = vadd.f32 %v7993_v19, %v4818_v5  ;;  %v7994_v48 = vpop.f32.mrb[108].mxu1  ;;  %v5434_v5 = vld [vmem:[%s17703_s15 + $0x1d8] sm:$0xff]  ;;  %v4838_v19 = vadd.f32 %v15626_v61, %v15657_v10  ;;  %9507 = vmatpush1.bf16.msra.mxu1 %v9506_v56  ;;  %v5436_v61 = vld [vmem:[%s17703_s15 + $0x1e8] sm:$0xff] }
 0x87b   : > { %v7995_v41 = vpop.f32.mrb[109].mxu1  ;;  %9509 = vmatprep.subr.bf16.mxu1 %v9508_v17  ;;  %v9512_v36 = vpack.c.bf16 %v5434_v5, %v5432_v1 }
 0x87c   : > { %v7996_v12 = vadd.f32 %v7995_v41, %v7994_v48  ;;  %v5433_v41 = vld [vmem:[%s17703_s15 + $0x1d0] sm:$0xff] }
 0x87d   : > { %v9514_v21 = vpack.c.bf16 %v5433_v41, %v5431_v22 }
 0x87e   : > { %v15715_v11 = vadd.f32 %v7996_v12, %v4823_v44  ;;  %v7997_v3 = vpop.f32.mrb[110].mxu1  ;;  %v5438_v44 = vld [vmem:[%s17703_s15 + $0x1f8] sm:$0xff]  ;;  %v4843_v12 = vadd.f32 %v15640_v14, %v15657_v10  ;;  %9511 = vmatpush1.bf16.msra.mxu1 %v9510_v33  ;;  %v5440_v14 = vld [vmem:[%s17703_s15 + $0x208] sm:$0xff] }
 0x87f   : > { %v7998_v62 = vpop.f32.mrb[111].mxu1  ;;  %9513 = vmatprep.subr.bf16.mxu1 %v9512_v36  ;;  %v9516_v8 = vpack.c.bf16 %v5438_v44, %v5436_v61 }
 0x880   : > { %v7999_v46 = vadd.f32 %v7998_v62, %v7997_v3  ;;  %v5437_v62 = vld [vmem:[%s17703_s15 + $0x1f0] sm:$0xff] }
 0x881   : > { %v9518_v54 = vpack.c.bf16 %v5437_v62, %v5435_v16 }
 0x882   : > { %v15731_v52 = vadd.f32 %v7999_v46, %v4828_v43  ;;  %v8000_v18 = vpop.f32.mrb[112].mxu1  ;;  %v5442_v43 = vld [vmem:[%s17703_s15 + $0x218] sm:$0xff]  ;;  %v4848_v46 = vadd.f32 %v15659_v39, %v15657_v10  ;;  %9515 = vmatpush1.bf16.msra.mxu1 %v9514_v21 }
 0x883   : > { %v8001_v50 = vpop.f32.mrb[113].mxu1  ;;  %9517 = vmatprep.subr.bf16.mxu1 %v9516_v8  ;;  %v9520_v24 = vpack.c.bf16 %v5442_v43, %v5440_v14  ;;  %v18487_v43 = vld [vmem:[#allocation86_spill] sm:$0xff] }
 0x884   : > { %v8002_v27 = vadd.f32 %v8001_v50, %v8000_v18 }
 0x886   : > { %v15756_v9 = vadd.f32 %v8002_v27, %v4833_v0  ;;  %v8003_v7 = vpop.f32.mrb[114].mxu1  ;;  %9519 = vmatpush1.bf16.msra.mxu1 %v9518_v54 }
 0x887   : > { %v8004_v15 = vpop.f32.mrb[115].mxu1  ;;  %9521 = vmatprep.subr.bf16.mxu1 %v9520_v24 }
 0x888   : > { %v8005_v55 = vadd.f32 %v8004_v15, %v8003_v7 }
 0x88a   : > { %v4943_v30 = vadd.f32 %v8005_v55, %v4838_v19  ;;  %v8006_v48 = vpop.f32.mrb[116].mxu1 }
 0x88b   : > { %v8007_v23 = vpop.f32.mrb[117].mxu1 }
 0x88c   : > { %v8008_v57 = vadd.f32 %v8007_v23, %v8006_v48 }
 0x88e   : > { %v4948_v37 = vadd.f32 %v8008_v57, %v4843_v12  ;;  %v8009_v3 = vpop.f32.mrb[118].mxu1 }
 0x88f   : > { %v8010_v2 = vpop.f32.mrb[119].mxu1 }
 0x890   : > { %v8011_v45 = vadd.f32 %v8010_v2, %v8009_v3 }
 0x892   : > { %v4953_v25 = vadd.f32 %v8011_v45, %v4848_v46  ;;  %v8044_v18 = vpop.f32.mrb[120].mxu1 }
 0x893   : > { %v8045_v32 = vpop.f32.mrb[121].mxu1 }
 0x894   : > { %v8046_v42 = vadd.f32 %v8045_v32, %v8044_v18 }
 0x896   : > { %v5023_v63 = vadd.f32 %v8046_v42, %v15683_v31  ;;  %v8047_v50 = vpop.f32.mrb[122].mxu1  ;;  %v18488_v42 = vld [vmem:[#allocation87_spill] sm:$0xff] }
 0x897   : > { %v8048_v38 = vpop.f32.mrb[123].mxu1 }
 0x898   : > { %v8049_v35 = vadd.f32 %v8048_v38, %v8047_v50 }
 0x89a   : > { %v5028_v34 = vadd.f32 %v8049_v35, %v15699_v20  ;;  %v8050_v58 = vpop.f32.mrb[124].mxu1 }
 0x89b   : > { %v8051_v10 = vpop.f32.mrb[125].mxu1 }
 0x89c   : > { %v8052_v39 = vadd.f32 %v8051_v10, %v8050_v58  ;;  %v18489_v10 = vld [vmem:[#allocation88_spill] sm:$0xff] }
 0x89e   : > { %v5033_v26 = vadd.f32 %v8052_v39, %v15715_v11  ;;  %v8053_v0 = vpop.f32.mrb[126].mxu1 }
 0x89f   : > { %v8054_v27 = vpop.f32.mrb[127].mxu1 }
 0x8a0   : > { %v8055_v4 = vadd.f32 %v8054_v27, %v8053_v0 }
 0x8a2   : > { %v5038_v56 = vadd.f32 %v8055_v4, %v15731_v52  ;;  %v8056_v7 = vpop.f32.mrb[128].mxu1 }
 0x8a3   : > { %v8057_v17 = vpop.f32.mrb[129].mxu1 }
 0x8a4   : > { %v8058_v60 = vadd.f32 %v8057_v17, %v8056_v7  ;;  %v18490_v7 = vld [vmem:[#allocation89_spill] sm:$0xff] }
 0x8a6   : > { %v5043_v31 = vadd.f32 %v8058_v60, %v15756_v9  ;;  %v8059_v49 = vpop.f32.mrb[130].mxu1  ;;  %v17940_v9 = vsub.s32 0, %v10981_v40 }
 0x8a7   : > { %v8060_v15 = vpop.f32.mrb[131].mxu1 }
 0x8a8   : > { %v8061_v1 = vadd.f32 %v8060_v15, %v8059_v49 }
 0x8aa   : > { %v5048_v5 = vadd.f32 %v8061_v1, %v4943_v30  ;;  %v8062_v20 = vpop.f32.mrb[132].mxu1  ;;  %v18491_v1 = vld [vmem:[#allocation90_spill] sm:$0xff] }
 0x8ab   : > { %v8063_v19 = vpop.f32.mrb[133].mxu1 }
 0x8ac   : > { %v8064_v55 = vadd.f32 %v8063_v19, %v8062_v20 }
 0x8ae   : > { %v5053_v33 = vadd.f32 %v8064_v55, %v4948_v37  ;;  %v8065_v48 = vpop.f32.mrb[134].mxu1  ;;  %v10322_v37 = vld [vmem:[%s17700_s12] sm:$0x3] }
 0x8af   : > { %v8066_v11 = vpop.f32.mrb[135].mxu1  ;;  %v15811_v8 = vrot.slane %v10322_v37, %v17940_v9  ;;  %v5579_v9 = vld [vmem:[%s17703_s15 + $0x660] sm:$0xff] }
 0x8b0   : > { %v8067_v36 = vadd.f32 %v8066_v11, %v8065_v48 }
 0x8b1   : > { %v9936_v46 = vadd.f32 %v18487_v43, %v15811_v8  ;;  %v9940_v39 = vadd.f32 %v18489_v10, %v15811_v8  ;;  %v9942_v17 = vadd.f32 %v18490_v7, %v15811_v8  ;;  %v9944_v20 = vadd.f32 %v18491_v1, %v15811_v8 }
 0x8b2   : > { %v5058_v22 = vadd.f32 %v8067_v36, %v4953_v25  ;;  %v8100_v41 = vpop.f32.mrb[136].mxu1 }
 0x8b3   : > { %v8101_v23 = vpop.f32.mrb[137].mxu1  ;;  %v4411_v24 = vmul.f32 0.5, %v9936_v46 }
 0x8b4   : > { %v8102_v52 = vadd.f32 %v8101_v23, %v8100_v41  ;;  %v4419_v23 = vmul.f32 0.5, %v9944_v20 }
 0x8b5   : > { %10218 = vtanh.f32 %v4411_v24 }
 0x8b6   : > { %v5128_v61 = vadd.f32 %v8102_v52, %v5023_v63  ;;  %v8103_v44 = vpop.f32.mrb[138].mxu1  ;;  %v9938_v63 = vadd.f32 %v18488_v42, %v15811_v8 }
 0x8b7   : > { %v8104_v12 = vpop.f32.mrb[139].mxu1 }
 0x8b8   : > { %v8105_v57 = vadd.f32 %v8104_v12, %v8103_v44  ;;  %v4413_v58 = vmul.f32 0.5, %v9938_v63 }
 0x8ba   : > { %v5133_v21 = vadd.f32 %v8105_v57, %v5028_v34  ;;  %v8106_v3 = vpop.f32.mrb[140].mxu1  ;;  %10220 = vtanh.f32 %v4413_v58 }
 0x8bb   : > { %v8107_v30 = vpop.f32.mrb[141].mxu1 }
 0x8bc   : > { %v8108_v16 = vadd.f32 %v8107_v30, %v8106_v3 }
 0x8be   : > { %v5138_v62 = vadd.f32 %v8108_v16, %v5033_v26  ;;  %v8109_v2 = vpop.f32.mrb[142].mxu1 }
 0x8bf   : > { %v8110_v14 = vpop.f32.mrb[143].mxu1  ;;  %v10219_v19 = vpop.eup %10218 }
 0x8c0   : > { %v8111_v45 = vadd.f32 %v8110_v14, %v8109_v2  ;;  %v4443_v41 = vadd.f32 1.0, %v10219_v19 }
 0x8c2   : > { %v15815_v54 = vadd.f32 %v8111_v45, %v5038_v56  ;;  %v8112_v25 = vpop.f32.mrb[144].mxu1  ;;  %v4415_v56 = vmul.f32 0.5, %v9940_v39  ;;  %v4459_v37 = vmul.f32 0.5, %v4443_v41 }
 0x8c3   : > { %v8113_v18 = vpop.f32.mrb[145].mxu1 }
 0x8c4   : > { %v8114_v32 = vadd.f32 %v8113_v18, %v8112_v25  ;;  %10222 = vtanh.f32 %v4415_v56  ;;  %v10221_v3 = vpop.eup %10220 }
 0x8c5   : > { %v4445_v46 = vadd.f32 1.0, %v10221_v3 }
 0x8c6   : > { %v15819_v50 = vadd.f32 %v8114_v32, %v5043_v31  ;;  %v8115_v38 = vpop.f32.mrb[146].mxu1  ;;  %v18494_v32 = vld [vmem:[#allocation93_spill] sm:$0xff] }
 0x8c7   : > { %v8116_v35 = vpop.f32.mrb[147].mxu1  ;;  %v9950_v42 = vadd.f32 %v18494_v32, %v15811_v8 }
 0x8c8   : > { %v8117_v34 = vadd.f32 %v8116_v35, %v8115_v38  ;;  %v4461_v35 = vmul.f32 0.5, %v4445_v46 }
 0x8ca   : > { %v15823_v26 = vadd.f32 %v8117_v34, %v5048_v5  ;;  %v8118_v0 = vpop.f32.mrb[148].mxu1  ;;  %v4417_v5 = vmul.f32 0.5, %v9942_v17 }
 0x8cb   : > { %v8119_v27 = vpop.f32.mrb[149].mxu1 }
 0x8cc   : > { %v8120_v4 = vadd.f32 %v8119_v27, %v8118_v0  ;;  %10224 = vtanh.f32 %v4417_v5  ;;  %v10323_v0 = vld [vmem:[%s10757_s20] sm:$0xff] }
 0x8ce   : > { %v15827_v60 = vadd.f32 %v8120_v4, %v5053_v33  ;;  %v8121_v31 = vpop.f32.mrb[150].mxu1  ;;  %v18492_v33 = vld [vmem:[#allocation91_spill] sm:$0xff]  ;;  %v10223_v25 = vpop.eup %10222  ;;  %v4425_v4 = vmul.f32 0.5, %v9950_v42 }
 0x8cf   : > { %v8122_v49 = vpop.f32.mrb[151].mxu1  ;;  %v9946_v52 = vadd.f32 %v18492_v33, %v15811_v8  ;;  %v4447_v34 = vadd.f32 1.0, %v10223_v25 }
 0x8d0   : > { %v8123_v15 = vadd.f32 %v8122_v49, %v8121_v31  ;;  %v5280_v31 = vsub.f32 1.0, %v4461_v35 }
 0x8d1   : > { %v4421_v16 = vmul.f32 0.5, %v9946_v52 }
 0x8d2   : > { %v15831_v55 = vadd.f32 %v8123_v15, %v5058_v22  ;;  %v8156_v48 = vpop.f32.mrb[152].mxu1  ;;  %v18493_v22 = vld [vmem:[#allocation92_spill] sm:$0xff] }
 0x8d3   : > { %v8157_v11 = vpop.f32.mrb[153].mxu1  ;;  %v9948_v2 = vadd.f32 %v18493_v22, %v15811_v8  ;;  %v4463_v8 = vmul.f32 0.5, %v4447_v34 }
 0x8d4   : > { %v8158_v36 = vadd.f32 %v8157_v11, %v8156_v48 }
 0x8d5   : > { %v4423_v24 = vmul.f32 0.5, %v9948_v2  ;;  %v5281_v41 = vsub.f32 1.0, %v4463_v8 }
 0x8d6   : > { %v5233_v44 = vadd.f32 %v8158_v36, %v5128_v61  ;;  %v8159_v12 = vpop.f32.mrb[154].mxu1  ;;  %v5279_v61 = vsub.f32 1.0, %v4459_v37  ;;  %v10225_v10 = vpop.eup %10224 }
 0x8d7   : > { %v8160_v57 = vpop.f32.mrb[155].mxu1 }
 0x8d8   : > { %10226 = vtanh.f32 %v5233_v44  ;;  %v8161_v30 = vadd.f32 %v8160_v57, %v8159_v12  ;;  %v5287_v27 = vmul.f32 %v10323_v0, %v5279_v61 }
 0x8d9   : > { %10228 = vtanh.f32 %v4419_v23 }
 0x8da   : > { %v5238_v14 = vadd.f32 %v8161_v30, %v5133_v21  ;;  %v8162_v43 = vpop.f32.mrb[156].mxu1 }
 0x8db   : > { %v8163_v45 = vpop.f32.mrb[157].mxu1 }
 0x8dc   : > { %10230 = vtanh.f32 %v5238_v14  ;;  %v8164_v18 = vadd.f32 %v8163_v45, %v8162_v43 }
 0x8dd   : > { %10232 = vtanh.f32 %v4421_v16 }
 0x8de   : > { %v5243_v63 = vadd.f32 %v8164_v18, %v5138_v62  ;;  %v8165_v38 = vpop.f32.mrb[158].mxu1  ;;  %v4449_v62 = vadd.f32 1.0, %v10225_v10 }
 0x8df   : > { %v8166_v58 = vpop.f32.mrb[159].mxu1 }
 0x8e0   : > { %10234 = vtanh.f32 %v5243_v63  ;;  %v8167_v21 = vadd.f32 %v8166_v58, %v8165_v38  ;;  %v4465_v23 = vmul.f32 0.5, %v4449_v62 }
 0x8e1   : > { %10236 = vtanh.f32 %v4423_v24 }
 0x8e2   : > { %v10227_v39 = vpop.eup %10226  ;;  %v5248_v56 = vadd.f32 %v8167_v21, %v15815_v54  ;;  %v8168_v7 = vpop.f32.mrb[160].mxu1  ;;  %v10324_v54 = vld [vmem:[%s10757_s20 + $0x8] sm:$0xff]  ;;  %v5282_v2 = vsub.f32 1.0, %v4465_v23 }
 0x8e3   : > { %v10229_v17 = vpop.eup %10228  ;;  %v5295_v49 = vmul.f32 %v10227_v39, %v4459_v37  ;;  %v8169_v15 = vpop.f32.mrb[161].mxu1  ;;  %v5288_v36 = vmul.f32 %v10324_v54, %v5280_v31 }
 0x8e4   : > { %10238 = vtanh.f32 %v5248_v56  ;;  %v8170_v1 = vadd.f32 %v8169_v15, %v8168_v7  ;;  %v4451_v5 = vadd.f32 1.0, %v10229_v17 }
 0x8e5   : > { %v15841_v20 = vadd.f32 %v5295_v49, %v5287_v27  ;;  %10240 = vtanh.f32 %v4425_v4  ;;  %v10327_v27 = vld [vmem:[%s10757_s20 + $0x20] sm:$0xff]  ;;  %v10328_v49 = vld [vmem:[%s10757_s20 + $0x28] sm:$0xff] }
 0x8e6   : > { %v10231_v19 = vpop.eup %10230  ;;  %v5253_v48 = vadd.f32 %v8170_v1, %v15819_v50  ;;  %v8171_v11 = vpop.f32.mrb[162].mxu1  ;;  %v4467_v30 = vmul.f32 0.5, %v4451_v5  ;;  %v10325_v50 = vld [vmem:[%s10757_s20 + $0x10] sm:$0xff] }
 0x8e7   : > { %v5296_v33 = vmul.f32 %v10231_v19, %v4461_v35  ;;  %v8172_v52 = vpop.f32.mrb[163].mxu1  ;;  %v10233_v44 = vpop.eup %10232  ;;  %v5289_v22 = vmul.f32 %v10325_v50, %v5281_v41  ;;  %v5439_v50 = vld [vmem:[%s17703_s15 + $0x200] sm:$0xff] }
 0x8e8   : > { %10242 = vtanh.f32 %v5253_v48  ;;  %v8173_v12 = vadd.f32 %v8172_v52, %v8171_v11  ;;  %v4453_v14 = vadd.f32 1.0, %v10233_v44  ;;  %v5283_v24 = vsub.f32 1.0, %v4467_v30  ;;  %v18495_v11 = vld [vmem:[#allocation13_spill] sm:$0xff]  ;;  %v18496_v44 = vld [vmem:[#allocation12_spill] sm:$0xff] }
 0x8e9   : > { %v15845_v57 = vadd.f32 %v5296_v33, %v5288_v36  ;;  %v1062_v54 = vadd.f32 -2.0, %v18495_v11  ;;  %v10329_v36 = vld [vmem:[%s10757_s20 + $0x30] sm:$0xff] }
 0x8ea   : > { %v10235_v3 = vpop.eup %10234  ;;  %v5258_v37 = vadd.f32 %v8173_v12, %v15823_v26  ;;  %v8174_v16 = vpop.f32.mrb[164].mxu1  ;;  %v10326_v26 = vld [vmem:[%s10757_s20 + $0x18] sm:$0xff]  ;;  %v4469_v38 = vmul.f32 0.5, %v4453_v14  ;;  %v5291_v4 = vmul.f32 %v10327_v27, %v5283_v24  ;;  %v1063_v12 = vadd.f32 -2.0, %v18496_v44  ;;  %v5444_v14 = vld [vmem:[%s17703_s15 + $0x228] sm:$0xff] }
 0x8eb   : > { %v5297_v43 = vmul.f32 %v10235_v3, %v4463_v8  ;;  %v8175_v46 = vpop.f32.mrb[165].mxu1  ;;  %v10237_v45 = vpop.eup %10236  ;;  %v5290_v63 = vmul.f32 %v10326_v26, %v5282_v2  ;;  %vm1070_vm5 = vcmp.ge.f32.partialorder %v1062_v54, 0.0  ;;  %vm1078_vm15 = vcmp.lt.f32.partialorder %v1062_v54, 8.0 }
 0x8ec   : > { %10244 = vtanh.f32 %v5258_v37  ;;  %v8176_v25 = vadd.f32 %v8175_v46, %v8174_v16  ;;  %v4455_v35 = vadd.f32 1.0, %v10237_v45  ;;  %vm1086_vm13 = vmand %vm1070_vm5, %vm1078_vm15  ;;  %vm1071_vm3 = vcmp.ge.f32.partialorder %v1063_v12, 0.0  ;;  %v18497_v46 = vld [vmem:[#allocation14_spill] sm:$0xff] }
 0x8ed   : > { %v15849_v18 = vadd.f32 %v5297_v43, %v5289_v22  ;;  %v5441_v22 = vld [vmem:[%s17703_s15 + $0x210] sm:$0xff]  ;;  %v5446_v43 = vld [vmem:[%s17703_s15 + $0x238] sm:$0xff]  ;;  %vm1079_vm11 = vcmp.lt.f32.partialorder %v1063_v12, 8.0  ;;  %v1064_v45 = vadd.f32 -2.0, %v18497_v46  ;;  %v18499_v24 = vmov 0.0   ;;  %v18504_v12 = vld [vmem:[#allocation48_spill] sm:$0xff] }
 0x8ee   : > { %v10239_v61 = vpop.eup %10238  ;;  %v5263_v32 = vadd.f32 %v8176_v25, %v15827_v60  ;;  %v8177_v42 = vpop.f32.mrb[166].mxu1  ;;  %v5284_v60 = vsub.f32 1.0, %v4469_v38  ;;  %v4471_v7 = vmul.f32 0.5, %v4455_v35  ;;  %v18498_v25 = vld [vmem:[#allocation35_spill] sm:$0xff]  ;;  %vm1087_vm10 = vmand %vm1071_vm3, %vm1079_vm11  ;;  %v5445_v35 = vld [vmem:[%s17703_s15 + $0x230] sm:$0xff] }
 0x8ef   : > { %v5298_v34 = vmul.f32 %v10239_v61, %v4465_v23  ;;  %v8178_v58 = vpop.f32.mrb[167].mxu1  ;;  %v10241_v10 = vpop.eup %10240  ;;  %vm1072_vm1 = vcmp.ge.f32.partialorder %v1064_v45, 0.0  ;;  %vm1080_vm12 = vcmp.lt.f32.partialorder %v1064_v45, 8.0 }
 0x8f0   : > { %10246 = vtanh.f32 %v5263_v32  ;;  %v8179_v21 = vadd.f32 %v8178_v58, %v8177_v42  ;;  %v4457_v17 = vadd.f32 1.0, %v10241_v10  ;;  %v5292_v15 = vmul.f32 %v10328_v49, %v5284_v60  ;;  %v5448_v10 = vld [vmem:[%s17703_s15 + $0x248] sm:$0xff]  ;;  %vm1088_vm14 = vmand %vm1072_vm1, %vm1080_vm12 }
 0x8f1   : > { %v15853_v39 = vadd.f32 %v5298_v34, %v5290_v63  ;;  %v5285_v1 = vsub.f32 1.0, %v4471_v7  ;;  %v15886_v32 = vsel %vm1086_vm13, 1.0, %v18499_v24  ;;  %v9522_v42 = vpack.c.bf16 %v5441_v22, %v5439_v50  ;;  %v18500_v34 = vld [vmem:[#allocation17_spill] sm:$0xff] }
 0x8f2   : > { %v10243_v0 = vpop.eup %10242  ;;  %v5268_v56 = vadd.f32 %v8179_v21, %v15831_v55  ;;  %v4473_v19 = vmul.f32 0.5, %v4457_v17  ;;  %v9524_v63 = vpack.c.bf16 %v5446_v43, %v5444_v14  ;;  %v5352_v58 = vmul.f32 %v18500_v34, %v15841_v20  ;;  %v5450_v21 = vld [vmem:[%s17703_s15 + $0x258] sm:$0xff]  ;;  %v5447_v17 = vld [vmem:[%s17703_s15 + $0x240] sm:$0xff] }
 0x8f3   : > { %v5299_v31 = vmul.f32 %v10243_v0, %v4467_v30  ;;  %v5293_v41 = vmul.f32 %v10329_v36, %v5285_v1  ;;  %v10330_v30 = vld [vmem:[%s10757_s20 + $0x38] sm:$0xff]  ;;  %v18501_v0 = vld [vmem:[#allocation20_spill] sm:$0xff]  ;;  %v15926_v54 = vsel %vm1088_vm14, 1.0, %v18499_v24  ;;  %s17617_s20 = scalar_lea.vmem [#allocation2], %s7208_s24  ;;  %s10338_s24 = scalar_lea.vmem %s10337_s25, 2048 }
 0x8f4   : > { %10248 = vtanh.f32 %v5268_v56  ;;  %v5286_v23 = vsub.f32 1.0, %v4473_v19  ;;  %v1065_v27 = vadd.f32 -2.0, %v18501_v0  ;;  %v5454_v1 = vld [vmem:[%s17703_s15 + $0x278] sm:$0xff]  ;;  %v5345_v36 = vmul.f32 %v15926_v54, %v15841_v20  ;;  %s7130_s19 = sshll.u32 %s17617_s20, 4  ;;  %s17642_s19 = int_to_ptr.vmem [resolvable:$true] %s7130_s19 }
 0x8f5   : > { %v15857_v8 = vadd.f32 %v5299_v31, %v5291_v4  ;;  %v15906_v4 = vsel %vm1087_vm10, 1.0, %v18499_v24  ;;  %v5449_v31 = vld [vmem:[%s17703_s15 + $0x250] sm:$0xff]  ;;  %s10332_s22 = scalar_lea.vmem %s17642_s19, 1024  ;;  %p10339_p0 = scmp.lt.s32.totalorder %s17642_s19, %s10337_s25 }
 0x8f6   : > { %v10245_v62 = vpop.eup %10244  ;;  %v5294_v37 = vmul.f32 %v10330_v30, %v5286_v23  ;;  %vm1073_vm7 = vcmp.ge.f32.partialorder %v1065_v27, 0.0  ;;  %vm1081_vm6 = vcmp.lt.f32.partialorder %v1065_v27, 8.0  ;;  %v5451_v23 = vld [vmem:[%s17703_s15 + $0x260] sm:$0xff]  ;;  %v5456_v30 = vld [vmem:[%s17703_s15 + $0x288] sm:$0xff]  ;;  %p10333_p11 = scmp.ne.s32.totalorder %s17642_s19, %s10332_s22  ;;  %p10340_p1 = scmp.lt.s32.totalorder %s10338_s24, %s10332_s22 }
 0x8f7   : > { %v5300_v5 = vmul.f32 %v10245_v62, %v4469_v38  ;;  %v5443_v38 = vld [vmem:[%s17703_s15 + $0x220] sm:$0xff]  ;;  %v18502_v62 = vld [vmem:[#allocation29_spill] sm:$0xff]  ;;  %vm1089_vm9 = vmand %vm1073_vm7, %vm1081_vm6 }
 0x8f8   : > { %v9526_v56 = vpack.c.bf16 %v5445_v35, %v5443_v38  ;;  %v5353_v49 = vmul.f32 %v18502_v62, %v15845_v57  ;;  %v15946_v22 = vsel %vm1089_vm9, 1.0, %v18499_v24  ;;  %v5460_v38 = vld [vmem:[%s17703_s15 + $0x2a8] sm:$0xff]  ;;  %v5462_v35 = vld [vmem:[%s17703_s15 + $0x2b8] sm:$0xff]  ;;  %p10334_p12 = pnand %p10333_p11, %p10538_p5  ;;  %p10341_p2 = por %p10340_p1, %p10339_p0 }
 0x8f9   : > { %v15860_v48 = vadd.f32 %v5300_v5, %v5292_v15  ;;  %v5452_v15 = vld [vmem:[%s17703_s15 + $0x268] sm:$0xff]  ;;  %v5346_v43 = vmul.f32 %v15946_v22, %v15845_v57 }
 0x8fa   : > { %v10247_v55 = vpop.eup %10246  ;;  %p10335_p13 = pneg %p10334_p12 }
 0x8fb   : > { %v5301_v33 = vmul.f32 %v10247_v55, %v4471_v7  ;;  %v9528_v7 = vpack.c.bf16 %v5450_v21, %v5448_v10  ;;  %v9530_v55 = vpack.c.bf16 %v5449_v31, %v5447_v17  ;;  %v5461_v17 = vld [vmem:[%s17703_s15 + $0x2b0] sm:$0xff]  ;;  %v18508_v31 = vld [vmem:[#allocation56_spill] sm:$0xff] }
 0x8fc   : > { %p10342_p3 = pnand %p10341_p2, %p10335_p13 }
 0x8fd   : > { %v15864_v52 = vadd.f32 %v5301_v33, %v5293_v41  ;;  %v9532_v41 = vpack.c.bf16 %v5454_v1, %v5452_v15  ;;  %v5453_v33 = vld [vmem:[%s17703_s15 + $0x270] sm:$0xff]  ;;  %v5464_v15 = vld [vmem:[%s17703_s15 + $0x2c8] sm:$0xff]  ;;  %v5466_v1 = vld [vmem:[%s17703_s15 + $0x2d8] sm:$0xff] }
 0x8fe   : > { %v10249_v3 = vpop.eup %10248  ;;  %v9534_v14 = vpack.c.bf16 %v5453_v33, %v5451_v23  ;;  %v9544_v33 = vpack.c.bf16 %v5466_v1, %v5464_v15  ;;  %v5471_v1 = vld [vmem:[%s17703_s15 + $0x300] sm:$0xff] }
 0x8ff   : > { %v5302_v16 = vmul.f32 %v10249_v3, %v4473_v19  ;;  %v5343_v26 = vmul.f32 %v15886_v32, %v15864_v52  ;;  %v18503_v19 = vld [vmem:[#allocation21_spill] sm:$0xff]  ;;  %v5354_v3 = vmul.f32 %v18504_v12, %v15849_v18 }
 0x900   : > { %v1066_v5 = vadd.f32 -2.0, %v18503_v19 }
 0x901   : > { %v15874_v2 = vadd.f32 %v5302_v16, %v5294_v37  ;;  %v5458_v37 = vld [vmem:[%s17703_s15 + $0x298] sm:$0xff]  ;;  %v18505_v16 = vld [vmem:[#allocation27_spill] sm:$0xff] }
 0x902   : > { %vm1074_vm2 = vcmp.ge.f32.partialorder %v1066_v5, 0.0  ;;  %vm1082_vm8 = vcmp.lt.f32.partialorder %v1066_v5, 8.0  ;;  %v1067_v50 = vadd.f32 -2.0, %v18505_v16  ;;  %v9536_v45 = vpack.c.bf16 %v5458_v37, %v5456_v30  ;;  %v18509_v5 = vld [vmem:[#allocation16_spill] sm:$0xff]  ;;  %v5465_v30 = vld [vmem:[%s17703_s15 + $0x2d0] sm:$0xff] }
 0x903   : > { %v5351_v61 = vmul.f32 %v18498_v25, %v15874_v2  ;;  %v5344_v60 = vmul.f32 %v15906_v4, %v15874_v2  ;;  %vm1090_vm0 = vmand %vm1074_vm2, %vm1082_vm8  ;;  %v18510_v37 = vld [vmem:[#allocation60_spill] sm:$0xff] }
 0x904   : > { %vm1075_vm4 = vcmp.ge.f32.partialorder %v1067_v50, 0.0  ;;  %vm1083_vm5 = vcmp.lt.f32.partialorder %v1067_v50, 8.0  ;;  %v15966_v21 = vsel %vm1090_vm0, 1.0, %v18499_v24  ;;  %v5357_v50 = vmul.f32 %v18510_v37, %v15860_v48 }
 0x905   : > { %5771 = vmatprep.mubr.f32.mxu1 %v5351_v61  ;;  %v5455_v61 = vld [vmem:[%s17703_s15 + $0x280] sm:$0xff]  ;;  %vm1091_vm15 = vmand %vm1075_vm4, %vm1083_vm5 }
 0x906   : > { %5772 = vmatmul.mubr.f32.vlgmr.msra.gmra.mrb[168].mxu1 %v5343_v26  ;;  %v18506_v26 = vld [vmem:[#allocation52_spill] sm:$0xff] }
 0x907   : > { %9523 = vmatpush1.bf16.msra.mxu1 %v9522_v42  ;;  %5777 = vmatprep.mubr.f32.mxu1 %v5352_v58  ;;  %v5457_v42 = vld [vmem:[%s17703_s15 + $0x290] sm:$0xff] }
 0x908   : > { %9525 = vmatprep.subr.bf16.mxu1 %v9524_v63  ;;  %v5355_v63 = vmul.f32 %v18506_v26, %v15853_v39  ;;  %v18507_v58 = vld [vmem:[#allocation37_spill] sm:$0xff]  ;;  %v9538_v27 = vpack.c.bf16 %v5457_v42, %v5455_v61 }
 0x909   : > { %v1068_v10 = vadd.f32 -2.0, %v18507_v58 }
 0x90a   : > { %5778 = vmatmul.mubr.f32.gmra.mrb[170].mxu1 %v5344_v60  ;;  %v9540_v60 = vpack.c.bf16 %v5462_v35, %v5460_v38  ;;  %v5467_v38 = vld [vmem:[%s17703_s15 + $0x2e0] sm:$0xff]  ;;  %v5469_v35 = vld [vmem:[%s17703_s15 + $0x2f0] sm:$0xff] }
 0x90b   : > { %9527 = vmatpush1.bf16.msra.mxu1 %v9526_v56  ;;  %5783 = vmatprep.mubr.f32.mxu1 %v5353_v49  ;;  %v5347_v56 = vmul.f32 %v15966_v21, %v15849_v18  ;;  %v5356_v49 = vmul.f32 %v18508_v31, %v15857_v8  ;;  %vm1076_vm13 = vcmp.ge.f32.partialorder %v1068_v10, 0.0  ;;  %vm1084_vm3 = vcmp.lt.f32.partialorder %v1068_v10, 8.0  ;;  %v18511_v10 = vld [vmem:[#allocation32_spill] sm:$0xff] }
 0x90c   : > { %9529 = vmatprep.subr.bf16.mxu1 %v9528_v7  ;;  %v5459_v7 = vld [vmem:[%s17703_s15 + $0x2a0] sm:$0xff]  ;;  %vm1092_vm11 = vmand %vm1076_vm13, %vm1084_vm3 }
 0x90e   : > { %5784 = vmatmul.mubr.f32.gmra.mrb[172].mxu1 %v5345_v36  ;;  %v15986_v36 = vsel %vm1091_vm15, 1.0, %v18499_v24 }
 0x90f   : > { %9531 = vmatpush1.bf16.msra.mxu1 %v9530_v55  ;;  %5789 = vmatprep.mubr.f32.mxu1 %v5354_v3  ;;  %v1069_v55 = vadd.f32 -2.0, %v18509_v5  ;;  %v5348_v23 = vmul.f32 %v15986_v36, %v15853_v39  ;;  %v5463_v3 = vld [vmem:[%s17703_s15 + $0x2c0] sm:$0xff] }
 0x910   : > { %9533 = vmatprep.subr.bf16.mxu1 %v9532_v41  ;;  %v9542_v41 = vpack.c.bf16 %v5461_v17, %v5459_v7  ;;  %v9546_v61 = vpack.c.bf16 %v5465_v30, %v5463_v3  ;;  %v9550_v17 = vpack.c.bf16 %v5469_v35, %v5467_v38  ;;  %v5478_v3 = vld [vmem:[%s17703_s15 + $0x338] sm:$0xff]  ;;  %v5479_v35 = vld [vmem:[%s17703_s15 + $0x340] sm:$0xff] }
 0x911   : > { %vm1077_vm10 = vcmp.ge.f32.partialorder %v1069_v55, 0.0  ;;  %vm1085_vm1 = vcmp.lt.f32.partialorder %v1069_v55, 8.0  ;;  %v5473_v55 = vld [vmem:[%s17703_s15 + $0x310] sm:$0xff] }
 0x912   : > { %5790 = vmatmul.mubr.f32.gmra.mrb[174].mxu1 %v5346_v43  ;;  %v5470_v43 = vld [vmem:[%s17703_s15 + $0x2f8] sm:$0xff]  ;;  %vm1093_vm12 = vmand %vm1077_vm10, %vm1085_vm1  ;;  %v9554_v30 = vpack.c.bf16 %v5473_v55, %v5471_v1  ;;  %v5485_v1 = vld [vmem:[%s17703_s15 + $0x370] sm:$0xff] }
 0x913   : > { %9535 = vmatpush1.bf16.msra.mxu1 %v9534_v14  ;;  %5795 = vmatprep.mubr.f32.mxu1 %v5355_v63  ;;  %v5468_v14 = vld [vmem:[%s17703_s15 + $0x2e8] sm:$0xff]  ;;  %v16024_v7 = vsel %vm1093_vm12, 1.0, %v18499_v24 }
 0x914   : > { %9537 = vmatprep.subr.bf16.mxu1 %v9536_v45  ;;  %v16005_v45 = vsel %vm1092_vm11, 1.0, %v18499_v24  ;;  %v9548_v63 = vpack.c.bf16 %v5470_v43, %v5468_v14  ;;  %v5475_v14 = vld [vmem:[%s17703_s15 + $0x320] sm:$0xff]  ;;  %v5477_v43 = vld [vmem:[%s17703_s15 + $0x330] sm:$0xff]  ;;  %v5488_v55 = vld [vmem:[%s17703_s15 + $0x388] sm:$0xff] }
 0x915   : > { %v5349_v42 = vmul.f32 %v16005_v45, %v15857_v8 }
 0x916   : > { %5796 = vmatmul.mubr.f32.gmra.mrb[176].mxu1 %v5347_v56  ;;  %v5472_v56 = vld [vmem:[%s17703_s15 + $0x308] sm:$0xff] }
 0x917   : > { %9539 = vmatpush1.bf16.msra.mxu1 %v9538_v27  ;;  %5801 = vmatprep.mubr.f32.mxu1 %v5356_v49  ;;  %v5358_v27 = vmul.f32 %v18511_v10, %v15864_v52  ;;  %v5350_v49 = vmul.f32 %v16024_v7, %v15860_v48 }
 0x918   : > { %9541 = vmatprep.subr.bf16.mxu1 %v9540_v60  ;;  %v5474_v60 = vld [vmem:[%s17703_s15 + $0x318] sm:$0xff] }
 0x919   : > { %v9552_v15 = vpack.c.bf16 %v5474_v60, %v5472_v56  ;;  %v5484_v56 = vld [vmem:[%s17703_s15 + $0x368] sm:$0xff]  ;;  %v5486_v60 = vld [vmem:[%s17703_s15 + $0x378] sm:$0xff] }
 0x91a   : > { %5802 = vmatmul.mubr.f32.gmra.mrb[178].mxu1 %v5348_v23 }
 0x91b   : > { %9543 = vmatpush1.bf16.msra.mxu1 %v9542_v41  ;;  %5807 = vmatprep.mubr.f32.mxu1 %v5357_v50  ;;  %v18512_v41 = vld [vmem:[#allocation30_spill] sm:$0xff] }
 0x91c   : > { %9545 = vmatprep.subr.bf16.mxu1 %v9544_v33  ;;  %v5359_v23 = vmul.f32 %v18512_v41, %v15845_v57  ;;  %v5476_v33 = vld [vmem:[%s17703_s15 + $0x328] sm:$0xff] }
 0x91d   : > { %v9556_v50 = vpack.c.bf16 %v5478_v3, %v5476_v33 }
 0x91e   : > { %5808 = vmatmul.mubr.f32.gmra.mrb[180].mxu1 %v5349_v42  ;;  %v5482_v42 = vld [vmem:[%s17703_s15 + $0x358] sm:$0xff] }
 0x91f   : > { %9547 = vmatpush1.bf16.msra.mxu1 %v9546_v61  ;;  %5813 = vmatprep.mubr.f32.mxu1 %v5358_v27  ;;  %v5480_v61 = vld [vmem:[%s17703_s15 + $0x348] sm:$0xff]  ;;  %v5481_v27 = vld [vmem:[%s17703_s15 + $0x350] sm:$0xff] }
 0x920   : > { %9549 = vmatprep.subr.bf16.mxu1 %v9548_v63  ;;  %v9558_v63 = vpack.c.bf16 %v5477_v43, %v5475_v14  ;;  %v9560_v38 = vpack.c.bf16 %v5482_v42, %v5480_v61  ;;  %v5492_v14 = vld [vmem:[%s17703_s15 + $0x3a8] sm:$0xff]  ;;  %v5494_v43 = vld [vmem:[%s17703_s15 + $0x3b8] sm:$0xff] }
 0x921   : > { %v9572_v42 = vpack.c.bf16 %v5494_v43, %v5492_v14 }
 0x922   : > { %5814 = vmatmul.mubr.f32.gmra.mrb[182].mxu1 %v5350_v49  ;;  %v9564_v49 = vpack.c.bf16 %v5486_v60, %v5484_v56 }
 0x923   : > { %9551 = vmatpush1.bf16.msra.mxu1 %v9550_v17  ;;  %5884 = vmatprep.mubr.f32.mxu1 %v5359_v23  ;;  %v9562_v17 = vpack.c.bf16 %v5481_v27, %v5479_v35  ;;  %v5490_v23 = vld [vmem:[%s17703_s15 + $0x398] sm:$0xff]  ;;  %v5496_v35 = vld [vmem:[%s17703_s15 + $0x3c8] sm:$0xff] }
 0x924   : > { %9553 = vmatprep.subr.bf16.mxu1 %v9552_v15  ;;  %v5483_v15 = vld [vmem:[%s17703_s15 + $0x360] sm:$0xff]  ;;  %v9568_v3 = vpack.c.bf16 %v5490_v23, %v5488_v55  ;;  %v5498_v27 = vld [vmem:[%s17703_s15 + $0x3d8] sm:$0xff] }
 0x925   : > { %v9566_v33 = vpack.c.bf16 %v5485_v1, %v5483_v15  ;;  %v9576_v60 = vpack.c.bf16 %v5498_v27, %v5496_v35  ;;  %v5500_v15 = vld [vmem:[%s17703_s15 + $0x3e8] sm:$0xff]  ;;  %v5502_v1 = vld [vmem:[%s17703_s15 + $0x3f8] sm:$0xff] }
 0x926   : > { %v9580_v23 = vpack.c.bf16 %v5502_v1, %v5500_v15  ;;  %v5512_v15 = vld [vmem:[%s17703_s15 + $0x448] sm:$0xff]  ;;  %v5514_v1 = vld [vmem:[%s17703_s15 + $0x458] sm:$0xff] }
 0x927   : > { %9555 = vmatpush1.bf16.msra.mxu1 %v9554_v30  ;;  %v5487_v30 = vld [vmem:[%s17703_s15 + $0x380] sm:$0xff] }
 0x928   : > { %9557 = vmatprep.subr.bf16.mxu1 %v9556_v50  ;;  %v5489_v50 = vld [vmem:[%s17703_s15 + $0x390] sm:$0xff] }
 0x929   : > { %v9570_v61 = vpack.c.bf16 %v5489_v50, %v5487_v30  ;;  %v5504_v30 = vld [vmem:[%s17703_s15 + $0x408] sm:$0xff]  ;;  %v5506_v50 = vld [vmem:[%s17703_s15 + $0x418] sm:$0xff] }
 0x92a   : > { %v9584_v43 = vpack.c.bf16 %v5506_v50, %v5504_v30  ;;  %v18514_v30 = vld [vmem:[#allocation28_spill] sm:$0xff] }
 0x92b   : > { %9559 = vmatpush1.bf16.msra.mxu1 %v9558_v63  ;;  %v5491_v63 = vld [vmem:[%s17703_s15 + $0x3a0] sm:$0xff]  ;;  %v5361_v50 = vmul.f32 %v18514_v30, %v15853_v39 }
 0x92c   : > { %9561 = vmatprep.subr.bf16.mxu1 %v9560_v38  ;;  %v5493_v38 = vld [vmem:[%s17703_s15 + $0x3b0] sm:$0xff] }
 0x92d   : > { %v9574_v56 = vpack.c.bf16 %v5493_v38, %v5491_v63  ;;  %v5508_v63 = vld [vmem:[%s17703_s15 + $0x428] sm:$0xff]  ;;  %v5510_v38 = vld [vmem:[%s17703_s15 + $0x438] sm:$0xff] }
 0x92e   : > { %v9588_v27 = vpack.c.bf16 %v5510_v38, %v5508_v63  ;;  %v5515_v63 = vld [vmem:[%s17703_s15 + $0x460] sm:$0xff]  ;;  %v5517_v38 = vld [vmem:[%s17703_s15 + $0x470] sm:$0xff] }
 0x92f   : > { %9563 = vmatpush1.bf16.msra.mxu1 %v9562_v17  ;;  %v5495_v17 = vld [vmem:[%s17703_s15 + $0x3c0] sm:$0xff] }
 0x930   : > { %9565 = vmatprep.subr.bf16.mxu1 %v9564_v49  ;;  %v5497_v49 = vld [vmem:[%s17703_s15 + $0x3d0] sm:$0xff] }
 0x931   : > { %v9578_v55 = vpack.c.bf16 %v5497_v49, %v5495_v17  ;;  %v18513_v17 = vld [vmem:[#allocation39_spill] sm:$0xff] }
 0x932   : > { %v5360_v49 = vmul.f32 %v18513_v17, %v15849_v18 }
 0x933   : > { %9567 = vmatpush1.bf16.msra.mxu1 %v9566_v33  ;;  %v5499_v33 = vld [vmem:[%s17703_s15 + $0x3e0] sm:$0xff] }
 0x934   : > { %9569 = vmatprep.subr.bf16.mxu1 %v9568_v3  ;;  %v5501_v3 = vld [vmem:[%s17703_s15 + $0x3f0] sm:$0xff] }
 0x935   : > { %v9582_v14 = vpack.c.bf16 %v5501_v3, %v5499_v33  ;;  %v5511_v33 = vld [vmem:[%s17703_s15 + $0x440] sm:$0xff]  ;;  %v5513_v3 = vld [vmem:[%s17703_s15 + $0x450] sm:$0xff] }
 0x937   : > { %9571 = vmatpush1.bf16.msra.mxu1 %v9570_v61  ;;  %v5503_v61 = vld [vmem:[%s17703_s15 + $0x400] sm:$0xff] }
 0x938   : > { %9573 = vmatprep.subr.bf16.mxu1 %v9572_v42  ;;  %v5505_v42 = vld [vmem:[%s17703_s15 + $0x410] sm:$0xff] }
 0x939   : > { %v9586_v35 = vpack.c.bf16 %v5505_v42, %v5503_v61  ;;  %v9594_v61 = vpack.c.bf16 %v5513_v3, %v5511_v33  ;;  %v5524_v3 = vld [vmem:[%s17703_s15 + $0x4a8] sm:$0xff] }
 0x93b   : > { %9575 = vmatpush1.bf16.msra.mxu1 %v9574_v56  ;;  %v5507_v56 = vld [vmem:[%s17703_s15 + $0x420] sm:$0xff] }
 0x93c   : > { %9577 = vmatprep.subr.bf16.mxu1 %v9576_v60  ;;  %v5509_v60 = vld [vmem:[%s17703_s15 + $0x430] sm:$0xff] }
 0x93f   : > { %9579 = vmatpush1.bf16.msra.mxu1 %v9578_v55  ;;  %v9590_v55 = vpack.c.bf16 %v5509_v60, %v5507_v56  ;;  %v5520_v56 = vld [vmem:[%s17703_s15 + $0x488] sm:$0xff]  ;;  %v5522_v60 = vld [vmem:[%s17703_s15 + $0x498] sm:$0xff] }
 0x940   : > { %9581 = vmatprep.subr.bf16.mxu1 %v9580_v23  ;;  %v9592_v23 = vpack.c.bf16 %v5514_v1, %v5512_v15  ;;  %v9600_v15 = vpack.c.bf16 %v5522_v60, %v5520_v56  ;;  %v5519_v1 = vld [vmem:[%s17703_s15 + $0x480] sm:$0xff]  ;;  %v5530_v56 = vld [vmem:[%s17703_s15 + $0x4d8] sm:$0xff] }
 0x943   : > { %9583 = vmatpush1.bf16.msra.mxu1 %v9582_v14  ;;  %v5516_v14 = vld [vmem:[%s17703_s15 + $0x468] sm:$0xff] }
 0x944   : > { %9585 = vmatprep.subr.bf16.mxu1 %v9584_v43  ;;  %v5518_v43 = vld [vmem:[%s17703_s15 + $0x478] sm:$0xff] }
 0x945   : > { %v9596_v42 = vpack.c.bf16 %v5518_v43, %v5516_v14 }
 0x946   : > { %5885 = vmatmul.mubr.f32.vlgmr.msra.gmra.mrb[168].mxu1 %v15841_v20 }
 0x947   : > { %5890 = vmatprep.mubr.f32.mxu1 %v5360_v49  ;;  %9587 = vmatpush1.bf16.msra.mxu1 %v9586_v35  ;;  %v18515_v35 = vld [vmem:[#allocation25_spill] sm:$0xff]  ;;  %v9598_v49 = vpack.c.bf16 %v5517_v38, %v5515_v63 }
 0x948   : > { %9589 = vmatprep.subr.bf16.mxu1 %v9588_v27  ;;  %v5362_v27 = vmul.f32 %v18515_v35, %v15857_v8  ;;  %v18517_v63 = vld [vmem:[#allocation65_spill] sm:$0xff] }
 0x949   : > { %v5364_v38 = vmul.f32 %v18517_v63, %v15864_v52 }
 0x94a   : > { %5891 = vmatmul.mubr.f32.gmra.mrb[170].mxu1 %v15845_v57 }
 0x94b   : > { %5896 = vmatprep.mubr.f32.mxu1 %v5361_v50  ;;  %9591 = vmatpush1.bf16.msra.mxu1 %v9590_v55  ;;  %v5521_v55 = vld [vmem:[%s17703_s15 + $0x490] sm:$0xff]  ;;  %v5526_v50 = vld [vmem:[%s17703_s15 + $0x4b8] sm:$0xff] }
 0x94c   : > { %9593 = vmatprep.subr.bf16.mxu1 %v9592_v23  ;;  %v18516_v23 = vld [vmem:[#allocation63_spill] sm:$0xff]  ;;  %v9602_v14 = vpack.c.bf16 %v5521_v55, %v5519_v1  ;;  %v9604_v43 = vpack.c.bf16 %v5526_v50, %v5524_v3  ;;  %v5529_v1 = vld [vmem:[%s17703_s15 + $0x4d0] sm:$0xff]  ;;  %v5532_v3 = vld [vmem:[%s17703_s15 + $0x4e8] sm:$0xff] }
 0x94d   : > { %v5363_v33 = vmul.f32 %v18516_v23, %v15860_v48  ;;  %v18518_v55 = vld [vmem:[#allocation67_spill] sm:$0xff]  ;;  %v5534_v50 = vld [vmem:[%s17703_s15 + $0x4f8] sm:$0xff] }
 0x94e   : > { %5897 = vmatmul.mubr.f32.gmra.mrb[172].mxu1 %v15849_v18 }
 0x94f   : > { %5902 = vmatprep.mubr.f32.mxu1 %v5362_v27  ;;  %9595 = vmatpush1.bf16.msra.mxu1 %v9594_v61  ;;  %v5523_v61 = vld [vmem:[%s17703_s15 + $0x4a0] sm:$0xff]  ;;  %v5528_v27 = vld [vmem:[%s17703_s15 + $0x4c8] sm:$0xff] }
 0x950   : > { %9597 = vmatprep.subr.bf16.mxu1 %v9596_v42  ;;  %v5525_v42 = vld [vmem:[%s17703_s15 + $0x4b0] sm:$0xff] }
 0x951   : > { %v9606_v60 = vpack.c.bf16 %v5525_v42, %v5523_v61  ;;  %v5531_v61 = vld [vmem:[%s17703_s15 + $0x4e0] sm:$0xff]  ;;  %v5533_v42 = vld [vmem:[%s17703_s15 + $0x4f0] sm:$0xff] }
 0x952   : > { %5903 = vmatmul.mubr.f32.gmra.mrb[174].mxu1 %v15853_v39 }
 0x953   : > { %5908 = vmatprep.mubr.f32.mxu1 %v5363_v33  ;;  %9599 = vmatpush1.bf16.msra.mxu1 %v9598_v49  ;;  %v9608_v49 = vpack.c.bf16 %v5530_v56, %v5528_v27  ;;  %v5365_v33 = vmul.f32 %v18518_v55, %v15874_v2  ;;  %v5536_v56 = vld [vmem:[%s17703_s15 + $0x508] sm:$0xff] }
 0x954   : > { %9601 = vmatprep.subr.bf16.mxu1 %v9600_v15  ;;  %v5527_v15 = vld [vmem:[%s17703_s15 + $0x4c0] sm:$0xff] }
 0x956   : > { %5909 = vmatmul.mubr.f32.gmra.mrb[176].mxu1 %v15857_v8 }
 0x957   : > { %5914 = vmatprep.mubr.f32.mxu1 %v5364_v38  ;;  %9603 = vmatpush1.bf16.msra.mxu1 %v9602_v14  ;;  %v9610_v14 = vpack.c.bf16 %v5529_v1, %v5527_v15  ;;  %v18519_v38 = vld [vmem:[#allocation70_spill] sm:$0xff]  ;;  %v5535_v1 = vld [vmem:[%s17703_s15 + $0x500] sm:$0xff] }
 0x958   : > { %9605 = vmatprep.subr.bf16.mxu1 %v9604_v43  ;;  %v9612_v43 = vpack.c.bf16 %v5534_v50, %v5532_v3  ;;  %v5366_v27 = vmul.f32 %v18519_v38, %v15841_v20  ;;  %v16251_v3 = vmul.f32 %v15886_v32, %v18467_v29  ;;  %v5540_v50 = vld [vmem:[%s17703_s15 + $0x528] sm:$0xff] }
 0x95a   : > { %5915 = vmatmul.mubr.f32.gmra.mrb[178].mxu1 %v15860_v48 }
 0x95b   : > { %5920 = vmatprep.mubr.f32.mxu1 %v5365_v33  ;;  %9607 = vmatpush1.bf16.msra.mxu1 %v9606_v60  ;;  %v5538_v60 = vld [vmem:[%s17703_s15 + $0x518] sm:$0xff]  ;;  %v5537_v33 = vld [vmem:[%s17703_s15 + $0x510] sm:$0xff] }
 0x95c   : > { %9609 = vmatprep.subr.bf16.mxu1 %v9608_v49  ;;  %v9614_v49 = vpack.c.bf16 %v5533_v42, %v5531_v61  ;;  %v9616_v15 = vpack.c.bf16 %v5538_v60, %v5536_v56  ;;  %v5539_v42 = vld [vmem:[%s17703_s15 + $0x520] sm:$0xff]  ;;  %v5544_v56 = vld [vmem:[%s17703_s15 + $0x548] sm:$0xff]  ;;  %v5546_v60 = vld [vmem:[%s17703_s15 + $0x558] sm:$0xff] }
 0x95e   : > { %5921 = vmatmul.mubr.f32.gmra.mrb[180].mxu1 %v15864_v52 }
 0x95f   : > { %5926 = vmatprep.mubr.f32.mxu1 %v5366_v27  ;;  %9611 = vmatpush1.bf16.msra.mxu1 %v9610_v14  ;;  %v5542_v14 = vld [vmem:[%s17703_s15 + $0x538] sm:$0xff]  ;;  %v5541_v27 = vld [vmem:[%s17703_s15 + $0x530] sm:$0xff] }
 0x960   : > { %9613 = vmatprep.subr.bf16.mxu1 %v9612_v43  ;;  %v9618_v43 = vpack.c.bf16 %v5537_v33, %v5535_v1  ;;  %v9620_v61 = vpack.c.bf16 %v5542_v14, %v5540_v50  ;;  %v5543_v1 = vld [vmem:[%s17703_s15 + $0x540] sm:$0xff]  ;;  %v5545_v33 = vld [vmem:[%s17703_s15 + $0x550] sm:$0xff]  ;;  %v5548_v50 = vld [vmem:[%s17703_s15 + $0x568] sm:$0xff] }
 0x961   : > { %v5550_v14 = vld [vmem:[%s17703_s15 + $0x578] sm:$0xff] }
 0x962   : > { %5927 = vmatmul.mubr.f32.gmra.mrb[182].mxu1 %v15874_v2 }
 0x963   : > { %9615 = vmatpush1.bf16.msra.mxu1 %v9614_v49  ;;  %5997 = vmatprep.mubr.f32.mxu1 %v16251_v3  ;;  %v9622_v49 = vpack.c.bf16 %v5541_v27, %v5539_v42  ;;  %v5547_v42 = vld [vmem:[%s17703_s15 + $0x560] sm:$0xff]  ;;  %v5549_v27 = vld [vmem:[%s17703_s15 + $0x570] sm:$0xff] }
 0x964   : > { %9617 = vmatprep.subr.bf16.mxu1 %v9616_v15  ;;  %v9624_v15 = vpack.c.bf16 %v5546_v60, %v5544_v56  ;;  %v5552_v56 = vld [vmem:[%s17703_s15 + $0x588] sm:$0xff]  ;;  %v5554_v60 = vld [vmem:[%s17703_s15 + $0x598] sm:$0xff] }
 0x967   : > { %9619 = vmatpush1.bf16.msra.mxu1 %v9618_v43  ;;  %v9626_v43 = vpack.c.bf16 %v5545_v33, %v5543_v1  ;;  %v5551_v1 = vld [vmem:[%s17703_s15 + $0x580] sm:$0xff]  ;;  %v5553_v33 = vld [vmem:[%s17703_s15 + $0x590] sm:$0xff] }
 0x968   : > { %9621 = vmatprep.subr.bf16.mxu1 %v9620_v61  ;;  %v9628_v61 = vpack.c.bf16 %v5550_v14, %v5548_v50  ;;  %v5556_v50 = vld [vmem:[%s17703_s15 + $0x5a8] sm:$0xff]  ;;  %v5558_v14 = vld [vmem:[%s17703_s15 + $0x5b8] sm:$0xff] }
 0x96b   : > { %9623 = vmatpush1.bf16.msra.mxu1 %v9622_v49  ;;  %v9630_v49 = vpack.c.bf16 %v5549_v27, %v5547_v42  ;;  %v5555_v42 = vld [vmem:[%s17703_s15 + $0x5a0] sm:$0xff]  ;;  %v5557_v27 = vld [vmem:[%s17703_s15 + $0x5b0] sm:$0xff] }
 0x96c   : > { %9625 = vmatprep.subr.bf16.mxu1 %v9624_v15  ;;  %v9632_v15 = vpack.c.bf16 %v5554_v60, %v5552_v56  ;;  %v5560_v56 = vld [vmem:[%s17703_s15 + $0x5c8] sm:$0xff]  ;;  %v5562_v60 = vld [vmem:[%s17703_s15 + $0x5d8] sm:$0xff] }
 0x96f   : > { %9627 = vmatpush1.bf16.msra.mxu1 %v9626_v43  ;;  %v9634_v43 = vpack.c.bf16 %v5553_v33, %v5551_v1  ;;  %v5559_v1 = vld [vmem:[%s17703_s15 + $0x5c0] sm:$0xff]  ;;  %v5561_v33 = vld [vmem:[%s17703_s15 + $0x5d0] sm:$0xff] }
 0x970   : > { %9629 = vmatprep.subr.bf16.mxu1 %v9628_v61  ;;  %v9636_v61 = vpack.c.bf16 %v5558_v14, %v5556_v50  ;;  %v5564_v50 = vld [vmem:[%s17703_s15 + $0x5e8] sm:$0xff]  ;;  %v5566_v14 = vld [vmem:[%s17703_s15 + $0x5f8] sm:$0xff] }
 0x973   : > { %9631 = vmatpush1.bf16.msra.mxu1 %v9630_v49  ;;  %v9638_v49 = vpack.c.bf16 %v5557_v27, %v5555_v42  ;;  %v9644_v42 = vpack.c.bf16 %v5566_v14, %v5564_v50  ;;  %v5563_v27 = vld [vmem:[%s17703_s15 + $0x5e0] sm:$0xff]  ;;  %v5569_v50 = vld [vmem:[%s17703_s15 + $0x610] sm:$0xff]  ;;  %v5572_v14 = vld [vmem:[%s17703_s15 + $0x628] sm:$0xff] }
 0x974   : > { %9633 = vmatprep.subr.bf16.mxu1 %v9632_v15  ;;  %v9640_v15 = vpack.c.bf16 %v5562_v60, %v5560_v56  ;;  %v5565_v56 = vld [vmem:[%s17703_s15 + $0x5f0] sm:$0xff]  ;;  %v5568_v60 = vld [vmem:[%s17703_s15 + $0x608] sm:$0xff] }
 0x977   : > { %9635 = vmatpush1.bf16.msra.mxu1 %v9634_v43  ;;  %v1110_v43 = vadd.f32 2.0, %v18495_v11  ;;  %v5570_v11 = vld [vmem:[%s17703_s15 + $0x618] sm:$0xff] }
 0x978   : > { %9637 = vmatprep.subr.bf16.mxu1 %v9636_v61  ;;  %v9642_v61 = vpack.c.bf16 %v5561_v33, %v5559_v1  ;;  %v9648_v1 = vpack.c.bf16 %v5570_v11, %v5568_v60  ;;  %v5567_v33 = vld [vmem:[%s17703_s15 + $0x600] sm:$0xff]  ;;  %v5573_v11 = vld [vmem:[%s17703_s15 + $0x630] sm:$0xff] }
 0x979   : > { %vm1118_vm14 = vcmp.ge.f32.partialorder %v1110_v43, 0.0  ;;  %vm1126_vm7 = vcmp.lt.f32.partialorder %v1110_v43, 8.0  ;;  %v1112_v43 = vadd.f32 2.0, %v18497_v46  ;;  %v5571_v60 = vld [vmem:[%s17703_s15 + $0x620] sm:$0xff]  ;;  %v16373_v46 = vmul.f32 %v15906_v4, %v18469_v6 }
 0x97a   : > { %vm1134_vm6 = vmand %vm1118_vm14, %vm1126_vm7 }
 0x97b   : > { %9639 = vmatpush1.bf16.msra.mxu1 %v9638_v49  ;;  %v1111_v49 = vadd.f32 2.0, %v18496_v44  ;;  %v5574_v44 = vld [vmem:[%s17703_s15 + $0x638] sm:$0xff]  ;;  %vm1120_vm0 = vcmp.ge.f32.partialorder %v1112_v43, 0.0  ;;  %vm1128_vm4 = vcmp.lt.f32.partialorder %v1112_v43, 8.0  ;;  %v5575_v43 = vld [vmem:[%s17703_s15 + $0x640] sm:$0xff] }
 0x97c   : > { %9641 = vmatprep.subr.bf16.mxu1 %v9640_v15  ;;  %v9646_v15 = vpack.c.bf16 %v5565_v56, %v5563_v27  ;;  %v9652_v56 = vpack.c.bf16 %v5574_v44, %v5572_v14  ;;  %vm1136_vm5 = vmand %vm1120_vm0, %vm1128_vm4 }
 0x97d   : > { %vm1119_vm9 = vcmp.ge.f32.partialorder %v1111_v49, 0.0  ;;  %vm1127_vm2 = vcmp.lt.f32.partialorder %v1111_v49, 8.0  ;;  %v5576_v49 = vld [vmem:[%s17703_s15 + $0x648] sm:$0xff] }
 0x97e   : > { %vm1135_vm8 = vmand %vm1119_vm9, %vm1127_vm2 }
 0x97f   : > { %9643 = vmatpush1.bf16.msra.mxu1 %v9642_v61  ;;  %v16361_v61 = vsel %vm1134_vm6, 1.0, %v18499_v24 }
 0x980   : > { %9645 = vmatprep.subr.bf16.mxu1 %v9644_v42  ;;  %v9650_v42 = vpack.c.bf16 %v5569_v50, %v5567_v33  ;;  %v5367_v27 = vmul.f32 %v16361_v61, %v15849_v18  ;;  %v16384_v33 = vsel %vm1135_vm8, 1.0, %v18499_v24  ;;  %v9654_v50 = vpack.c.bf16 %v5573_v11, %v5571_v60 }
 0x981   : > { %v5368_v14 = vmul.f32 %v16384_v33, %v15853_v39  ;;  %v1114_v60 = vadd.f32 2.0, %v18503_v19  ;;  %v16407_v11 = vsel %vm1136_vm5, 1.0, %v18499_v24  ;;  %v5581_v19 = vld [vmem:[%s17703_s15 + $0x670] sm:$0xff] }
 0x983   : > { %9647 = vmatpush1.bf16.msra.mxu1 %v9646_v15  ;;  %v5578_v15 = vld [vmem:[%s17703_s15 + $0x658] sm:$0xff]  ;;  %vm1122_vm11 = vcmp.ge.f32.partialorder %v1114_v60, 0.0  ;;  %vm1130_vm10 = vcmp.lt.f32.partialorder %v1114_v60, 8.0 }
 0x984   : > { %9649 = vmatprep.subr.bf16.mxu1 %v9648_v1  ;;  %v1113_v1 = vadd.f32 2.0, %v18501_v0  ;;  %v9656_v44 = vpack.c.bf16 %v5578_v15, %v5576_v49  ;;  %v5577_v0 = vld [vmem:[%s17703_s15 + $0x650] sm:$0xff]  ;;  %v5369_v15 = vmul.f32 %v16407_v11, %v15857_v8  ;;  %vm1138_vm1 = vmand %vm1122_vm11, %vm1130_vm10 }
 0x985   : > { %v9658_v49 = vpack.c.bf16 %v5577_v0, %v5575_v43  ;;  %v1115_v43 = vadd.f32 2.0, %v18505_v16  ;;  %v5585_v16 = vld [vmem:[%s17703_s15 + $0x690] sm:$0xff] }
 0x986   : > { %5998 = vmatmul.mubr.f32.vlgmr.msra.gmra.mrb[168].mxu1 %v5367_v27  ;;  %vm1121_vm15 = vcmp.ge.f32.partialorder %v1113_v1, 0.0  ;;  %vm1129_vm13 = vcmp.lt.f32.partialorder %v1113_v1, 8.0  ;;  %v5580_v27 = vld [vmem:[%s17703_s15 + $0x668] sm:$0xff] }
 0x987   : > { %6003 = vmatprep.mubr.f32.mxu1 %v16373_v46  ;;  %9651 = vmatpush1.bf16.msra.mxu1 %v9650_v42  ;;  %v16396_v42 = vmul.f32 %v15926_v54, %v18455_v53  ;;  %vm1137_vm3 = vmand %vm1121_vm15, %vm1129_vm13  ;;  %vm1123_vm12 = vcmp.ge.f32.partialorder %v1115_v43, 0.0  ;;  %vm1131_vm14 = vcmp.lt.f32.partialorder %v1115_v43, 8.0 }
 0x988   : > { %9653 = vmatprep.subr.bf16.mxu1 %v9652_v56  ;;  %v5582_v56 = vld [vmem:[%s17703_s15 + $0x678] sm:$0xff]  ;;  %v16430_v0 = vsel %vm1137_vm3, 1.0, %v18499_v24  ;;  %vm1139_vm7 = vmand %vm1123_vm12, %vm1131_vm14 }
 0x989   : > { %18520 = vst [vmem:[#allocation43_spill] sm:$0xff] %v16396_v42  ;;  %v9660_v1 = vpack.c.bf16 %v5582_v56, %v5580_v27  ;;  %v9662_v27 = vpack.c.bf16 %v5581_v19, %v5579_v9  ;;  %v5370_v56 = vmul.f32 %v16430_v0, %v15860_v48  ;;  %v5588_v9 = vld [vmem:[%s17703_s15 + $0x6a8] sm:$0xff]  ;;  %v16453_v19 = vsel %vm1138_vm1, 1.0, %v18499_v24 }
 0x98a   : > { %6004 = vmatmul.mubr.f32.gmra.mrb[170].mxu1 %v5368_v14  ;;  %v5584_v14 = vld [vmem:[%s17703_s15 + $0x688] sm:$0xff] }
 0x98b   : > { %6009 = vmatprep.mubr.f32.mxu1 %v16396_v42  ;;  %9655 = vmatpush1.bf16.msra.mxu1 %v9654_v50  ;;  %v16419_v50 = vmul.f32 %v15946_v22, %v18457_v47  ;;  %v5583_v42 = vld [vmem:[%s17703_s15 + $0x680] sm:$0xff] }
 0x98c   : > { %9657 = vmatprep.subr.bf16.mxu1 %v9656_v44  ;;  %v5586_v44 = vld [vmem:[%s17703_s15 + $0x698] sm:$0xff] }
 0x98d   : > { %18521 = vst [vmem:[#allocation40_spill] sm:$0xff] %v16419_v50  ;;  %v9664_v60 = vpack.c.bf16 %v5586_v44, %v5584_v14  ;;  %v9666_v14 = vpack.c.bf16 %v5585_v16, %v5583_v42  ;;  %v5371_v44 = vmul.f32 %v16453_v19, %v15864_v52  ;;  %v5592_v42 = vld [vmem:[%s17703_s15 + $0x6c8] sm:$0xff]  ;;  %v16476_v16 = vsel %vm1139_vm7, 1.0, %v18499_v24 }
 0x98e   : > { %6010 = vmatmul.mubr.f32.gmra.mrb[172].mxu1 %v5369_v15  ;;  %v5590_v15 = vld [vmem:[%s17703_s15 + $0x6b8] sm:$0xff] }
 0x98f   : > { %6015 = vmatprep.mubr.f32.mxu1 %v16419_v50  ;;  %9659 = vmatpush1.bf16.msra.mxu1 %v9658_v49  ;;  %v16442_v49 = vmul.f32 %v15966_v21, %v18459_v51  ;;  %v9668_v43 = vpack.c.bf16 %v5590_v15, %v5588_v9  ;;  %v5587_v50 = vld [vmem:[%s17703_s15 + $0x6a0] sm:$0xff]  ;;  %v5372_v15 = vmul.f32 %v16476_v16, %v15874_v2 }
 0x990   : > { %9661 = vmatprep.subr.bf16.mxu1 %v9660_v1  ;;  %v1116_v1 = vadd.f32 2.0, %v18507_v58  ;;  %v5589_v58 = vld [vmem:[%s17703_s15 + $0x6b0] sm:$0xff] }
 0x991   : > { %18522 = vst [vmem:[#allocation53_spill] sm:$0xff] %v16442_v49  ;;  %v9670_v9 = vpack.c.bf16 %v5589_v58, %v5587_v50  ;;  %v5596_v50 = vld [vmem:[%s17703_s15 + $0x6e8] sm:$0xff] }
 0x992   : > { %6016 = vmatmul.mubr.f32.gmra.mrb[174].mxu1 %v5370_v56  ;;  %vm1124_vm6 = vcmp.ge.f32.partialorder %v1116_v1, 0.0  ;;  %vm1132_vm9 = vcmp.lt.f32.partialorder %v1116_v1, 8.0  ;;  %v5594_v56 = vld [vmem:[%s17703_s15 + $0x6d8] sm:$0xff] }
 0x993   : > { %6021 = vmatprep.mubr.f32.mxu1 %v16442_v49  ;;  %9663 = vmatpush1.bf16.msra.mxu1 %v9662_v27  ;;  %v16465_v27 = vmul.f32 %v15986_v36, %v18461_v59  ;;  %vm1140_vm2 = vmand %vm1124_vm6, %vm1132_vm9  ;;  %v9672_v1 = vpack.c.bf16 %v5594_v56, %v5592_v42  ;;  %v5591_v49 = vld [vmem:[%s17703_s15 + $0x6c0] sm:$0xff] }
 0x994   : > { %9665 = vmatprep.subr.bf16.mxu1 %v9664_v60  ;;  %v1117_v60 = vadd.f32 2.0, %v18509_v5  ;;  %v5593_v5 = vld [vmem:[%s17703_s15 + $0x6d0] sm:$0xff] }
 0x995   : > { %18523 = vst [vmem:[#allocation49_spill] sm:$0xff] %v16465_v27  ;;  %v9674_v58 = vpack.c.bf16 %v5593_v5, %v5591_v49  ;;  %v5600_v49 = vld [vmem:[%s17703_s15 + $0x708] sm:$0xff] }
 0x996   : > { %6022 = vmatmul.mubr.f32.gmra.mrb[176].mxu1 %v5371_v44  ;;  %vm1125_vm8 = vcmp.ge.f32.partialorder %v1117_v60, 0.0  ;;  %vm1133_vm0 = vcmp.lt.f32.partialorder %v1117_v60, 8.0  ;;  %v5598_v44 = vld [vmem:[%s17703_s15 + $0x6f8] sm:$0xff]  ;;  %v5595_v60 = vld [vmem:[%s17703_s15 + $0x6e0] sm:$0xff] }
 0x997   : > { %6027 = vmatprep.mubr.f32.mxu1 %v16465_v27  ;;  %9667 = vmatpush1.bf16.msra.mxu1 %v9666_v14  ;;  %v16488_v14 = vmul.f32 %v16005_v45, %v18463_v28  ;;  %vm1141_vm4 = vmand %vm1125_vm8, %vm1133_vm0  ;;  %v9676_v56 = vpack.c.bf16 %v5598_v44, %v5596_v50  ;;  %v5599_v27 = vld [vmem:[%s17703_s15 + $0x700] sm:$0xff] }
 0x998   : > { %9669 = vmatprep.subr.bf16.mxu1 %v9668_v43  ;;  %v16498_v43 = vsel %vm1140_vm2, 1.0, %v18499_v24  ;;  %v16520_v5 = vsel %vm1141_vm4, 1.0, %v18499_v24  ;;  %v5606_v24 = vld [vmem:[%s17703_s15 + $0x738] sm:$0xff] }
 0x999   : > { %18524 = vst [vmem:[#allocation57_spill] sm:$0xff] %v16488_v14  ;;  %v5373_v42 = vmul.f32 %v16498_v43, %v15841_v20  ;;  %v5374_v44 = vmul.f32 %v16520_v5, %v15845_v57 }
 0x99a   : > { %6028 = vmatmul.mubr.f32.gmra.mrb[178].mxu1 %v5372_v15  ;;  %v5597_v15 = vld [vmem:[%s17703_s15 + $0x6f0] sm:$0xff] }
 0x99b   : > { %6033 = vmatprep.mubr.f32.mxu1 %v16488_v14  ;;  %9671 = vmatpush1.bf16.msra.mxu1 %v9670_v9  ;;  %v16510_v9 = vmul.f32 %v16024_v7, %v18465_v13  ;;  %v9678_v50 = vpack.c.bf16 %v5597_v15, %v5595_v60  ;;  %v5603_v15 = vld [vmem:[%s17703_s15 + $0x720] sm:$0xff] }
 0x99c   : > { %9673 = vmatprep.subr.bf16.mxu1 %v9672_v1  ;;  %v5602_v1 = vld [vmem:[%s17703_s15 + $0x718] sm:$0xff] }
 0x99d   : > { %18525 = vst [vmem:[#allocation55_spill] sm:$0xff] %v16510_v9  ;;  %v9680_v14 = vpack.c.bf16 %v5602_v1, %v5600_v49  ;;  %v5605_v49 = vld [vmem:[%s17703_s15 + $0x730] sm:$0xff]  ;;  %v5608_v1 = vld [vmem:[%s17703_s15 + $0x748] sm:$0xff] }
 0x99e   : > { %6034 = vmatmul.mubr.f32.gmra.mrb[180].mxu1 %v5373_v42  ;;  %v5601_v42 = vld [vmem:[%s17703_s15 + $0x710] sm:$0xff] }
 0x99f   : > { %6039 = vmatprep.mubr.f32.mxu1 %v16510_v9  ;;  %9675 = vmatpush1.bf16.msra.mxu1 %v9674_v58  ;;  %v5604_v58 = vld [vmem:[%s17703_s15 + $0x728] sm:$0xff] }
 0x9a0   : > { %9677 = vmatprep.subr.bf16.mxu1 %v9676_v56  ;;  %v9682_v56 = vpack.c.bf16 %v5601_v42, %v5599_v27  ;;  %v9684_v60 = vpack.c.bf16 %v5606_v24, %v5604_v58  ;;  %v9686_v27 = vpack.c.bf16 %v5605_v49, %v5603_v15  ;;  %v5609_v42 = vld [vmem:[%s17703_s15 + $0x750] sm:$0xff]  ;;  %v5612_v58 = vld [vmem:[%s17703_s15 + $0x768] sm:$0xff]  ;;  %v5614_v24 = vld [vmem:[%s17703_s15 + $0x778] sm:$0xff] }
 0x9a1   : > { %v5611_v15 = vld [vmem:[%s17703_s15 + $0x760] sm:$0xff]  ;;  %v5613_v49 = vld [vmem:[%s17703_s15 + $0x770] sm:$0xff]  ;;  %v5672_v9 = vld [vmem:[%s17703_s15 + $0x948] sm:$0xff] }
 0x9a2   : > { %6040 = vmatmul.mubr.f32.gmra.mrb[182].mxu1 %v5374_v44  ;;  %v5607_v44 = vld [vmem:[%s17703_s15 + $0x740] sm:$0xff] }
 0x9a3   : > { %9679 = vmatpush1.bf16.msra.mxu1 %v9678_v50  ;;  %6110 = vmatprep.mubr.f32.mxu1 %v18455_v53  ;;  %v5610_v50 = vld [vmem:[%s17703_s15 + $0x758] sm:$0xff] }
 0x9a4   : > { %9681 = vmatprep.subr.bf16.mxu1 %v9680_v14  ;;  %v9688_v14 = vpack.c.bf16 %v5610_v50, %v5608_v1  ;;  %v5616_v1 = vld [vmem:[%s17703_s15 + $0x788] sm:$0xff]  ;;  %v5618_v50 = vld [vmem:[%s17703_s15 + $0x798] sm:$0xff] }
 0x9a7   : > { %9683 = vmatpush1.bf16.msra.mxu1 %v9682_v56  ;;  %v9690_v56 = vpack.c.bf16 %v5609_v42, %v5607_v44  ;;  %v5615_v44 = vld [vmem:[%s17703_s15 + $0x780] sm:$0xff]  ;;  %v5617_v42 = vld [vmem:[%s17703_s15 + $0x790] sm:$0xff] }
 0x9a8   : > { %9685 = vmatprep.subr.bf16.mxu1 %v9684_v60  ;;  %v9692_v60 = vpack.c.bf16 %v5614_v24, %v5612_v58  ;;  %v5620_v58 = vld [vmem:[%s17703_s15 + $0x7a8] sm:$0xff]  ;;  %v5622_v24 = vld [vmem:[%s17703_s15 + $0x7b8] sm:$0xff] }
 0x9ab   : > { %9687 = vmatpush1.bf16.msra.mxu1 %v9686_v27  ;;  %v9694_v27 = vpack.c.bf16 %v5613_v49, %v5611_v15  ;;  %v5619_v15 = vld [vmem:[%s17703_s15 + $0x7a0] sm:$0xff]  ;;  %v5621_v49 = vld [vmem:[%s17703_s15 + $0x7b0] sm:$0xff] }
 0x9ac   : > { %9689 = vmatprep.subr.bf16.mxu1 %v9688_v14  ;;  %v9696_v14 = vpack.c.bf16 %v5618_v50, %v5616_v1  ;;  %v5624_v1 = vld [vmem:[%s17703_s15 + $0x7c8] sm:$0xff]  ;;  %v5626_v50 = vld [vmem:[%s17703_s15 + $0x7d8] sm:$0xff] }
 0x9af   : > { %9691 = vmatpush1.bf16.msra.mxu1 %v9690_v56  ;;  %v9698_v56 = vpack.c.bf16 %v5617_v42, %v5615_v44  ;;  %v5623_v44 = vld [vmem:[%s17703_s15 + $0x7c0] sm:$0xff]  ;;  %v5625_v42 = vld [vmem:[%s17703_s15 + $0x7d0] sm:$0xff] }
 0x9b0   : > { %9693 = vmatprep.subr.bf16.mxu1 %v9692_v60  ;;  %v9700_v60 = vpack.c.bf16 %v5622_v24, %v5620_v58  ;;  %v5628_v58 = vld [vmem:[%s17703_s15 + $0x7e8] sm:$0xff]  ;;  %v5630_v24 = vld [vmem:[%s17703_s15 + $0x7f8] sm:$0xff] }
 0x9b3   : > { %9695 = vmatpush1.bf16.msra.mxu1 %v9694_v27  ;;  %v9702_v27 = vpack.c.bf16 %v5621_v49, %v5619_v15  ;;  %v5627_v15 = vld [vmem:[%s17703_s15 + $0x7e0] sm:$0xff]  ;;  %v5629_v49 = vld [vmem:[%s17703_s15 + $0x7f0] sm:$0xff] }
 0x9b4   : > { %9697 = vmatprep.subr.bf16.mxu1 %v9696_v14  ;;  %v9704_v14 = vpack.c.bf16 %v5626_v50, %v5624_v1  ;;  %v5632_v1 = vld [vmem:[%s17703_s15 + $0x808] sm:$0xff]  ;;  %v5634_v50 = vld [vmem:[%s17703_s15 + $0x818] sm:$0xff] }
 0x9b7   : > { %9699 = vmatpush1.bf16.msra.mxu1 %v9698_v56  ;;  %v9706_v56 = vpack.c.bf16 %v5625_v42, %v5623_v44  ;;  %v5631_v44 = vld [vmem:[%s17703_s15 + $0x800] sm:$0xff]  ;;  %v5633_v42 = vld [vmem:[%s17703_s15 + $0x810] sm:$0xff] }
 0x9b8   : > { %9701 = vmatprep.subr.bf16.mxu1 %v9700_v60  ;;  %v9708_v60 = vpack.c.bf16 %v5630_v24, %v5628_v58  ;;  %v5636_v58 = vld [vmem:[%s17703_s15 + $0x828] sm:$0xff]  ;;  %v5638_v24 = vld [vmem:[%s17703_s15 + $0x838] sm:$0xff] }
 0x9bb   : > { %9703 = vmatpush1.bf16.msra.mxu1 %v9702_v27  ;;  %v9710_v27 = vpack.c.bf16 %v5629_v49, %v5627_v15  ;;  %v9716_v15 = vpack.c.bf16 %v5638_v24, %v5636_v58  ;;  %v5635_v49 = vld [vmem:[%s17703_s15 + $0x820] sm:$0xff]  ;;  %v5641_v24 = vld [vmem:[%s17703_s15 + $0x850] sm:$0xff] }
 0x9bc   : > { %9705 = vmatprep.subr.bf16.mxu1 %v9704_v14  ;;  %v9712_v14 = vpack.c.bf16 %v5634_v50, %v5632_v1  ;;  %v5637_v1 = vld [vmem:[%s17703_s15 + $0x830] sm:$0xff]  ;;  %v5640_v50 = vld [vmem:[%s17703_s15 + $0x848] sm:$0xff]  ;;  %v5639_v58 = vld [vmem:[%s17703_s15 + $0x840] sm:$0xff] }
 0x9bf   : > { %9707 = vmatpush1.bf16.msra.mxu1 %v9706_v56  ;;  %v9714_v56 = vpack.c.bf16 %v5633_v42, %v5631_v44  ;;  %v16653_v44 = vmul.f32 %v18500_v34, %v18455_v53 }
 0x9c0   : > { %9709 = vmatprep.subr.bf16.mxu1 %v9708_v60  ;;  %v16635_v60 = vmul.f32 %v18498_v25, %v18469_v6 }
 0x9c1   : > { %18527 = vst [vmem:[#allocation61_spill] sm:$0xff] %v16653_v44 }
 0x9c2   : > { %18526 = vst [vmem:[#allocation24_spill] sm:$0xff] %v16635_v60 }
 0x9c3   : > { %9711 = vmatpush1.bf16.msra.mxu1 %v9710_v27  ;;  %v5642_v27 = vld [vmem:[%s17703_s15 + $0x858] sm:$0xff] }
 0x9c4   : > { %9713 = vmatprep.subr.bf16.mxu1 %v9712_v14  ;;  %v9718_v14 = vpack.c.bf16 %v5637_v1, %v5635_v49  ;;  %v9720_v42 = vpack.c.bf16 %v5642_v27, %v5640_v50  ;;  %v16671_v49 = vmul.f32 %v18502_v62, %v18457_v47  ;;  %v5643_v50 = vld [vmem:[%s17703_s15 + $0x860] sm:$0xff]  ;;  %v5645_v27 = vld [vmem:[%s17703_s15 + $0x870] sm:$0xff] }
 0x9c6   : > { %6111 = vmatmul.mubr.f32.vlgmr.msra.gmra.mrb[168].mxu1 %v16635_v60  ;;  %v5644_v60 = vld [vmem:[%s17703_s15 + $0x868] sm:$0xff]  ;;  %18528 = vst [vmem:[#allocation34_spill] sm:$0xff] %v16671_v49 }
 0x9c7   : > { %6116 = vmatprep.mubr.f32.mxu1 %v18457_v47  ;;  %9715 = vmatpush1.bf16.msra.mxu1 %v9714_v56  ;;  %v5646_v56 = vld [vmem:[%s17703_s15 + $0x878] sm:$0xff] }
 0x9c8   : > { %9717 = vmatprep.subr.bf16.mxu1 %v9716_v15  ;;  %v9722_v15 = vpack.c.bf16 %v5641_v24, %v5639_v58  ;;  %v9724_v1 = vpack.c.bf16 %v5646_v56, %v5644_v60  ;;  %v9726_v60 = vpack.c.bf16 %v5645_v27, %v5643_v50  ;;  %v5647_v24 = vld [vmem:[%s17703_s15 + $0x880] sm:$0xff]  ;;  %v5649_v56 = vld [vmem:[%s17703_s15 + $0x890] sm:$0xff] }
 0x9c9   : > { %v5651_v27 = vld [vmem:[%s17703_s15 + $0x8a0] sm:$0xff] }
 0x9ca   : > { %6117 = vmatmul.mubr.f32.gmra.mrb[170].mxu1 %v16653_v44  ;;  %v5648_v44 = vld [vmem:[%s17703_s15 + $0x888] sm:$0xff] }
 0x9cb   : > { %6122 = vmatprep.mubr.f32.mxu1 %v18459_v51  ;;  %9719 = vmatpush1.bf16.msra.mxu1 %v9718_v14  ;;  %v5650_v14 = vld [vmem:[%s17703_s15 + $0x898] sm:$0xff] }
 0x9cc   : > { %9721 = vmatprep.subr.bf16.mxu1 %v9720_v42  ;;  %v16689_v42 = vmul.f32 %v18504_v12, %v18459_v51  ;;  %v9728_v58 = vpack.c.bf16 %v5650_v14, %v5648_v44  ;;  %v9730_v44 = vpack.c.bf16 %v5649_v56, %v5647_v24  ;;  %v5653_v14 = vld [vmem:[%s17703_s15 + $0x8b0] sm:$0xff]  ;;  %v5655_v56 = vld [vmem:[%s17703_s15 + $0x8c0] sm:$0xff] }
 0x9ce   : > { %6123 = vmatmul.mubr.f32.gmra.mrb[172].mxu1 %v16671_v49  ;;  %18529 = vst [vmem:[#allocation31_spill] sm:$0xff] %v16689_v42  ;;  %v5652_v49 = vld [vmem:[%s17703_s15 + $0x8a8] sm:$0xff] }
 0x9cf   : > { %6128 = vmatprep.mubr.f32.mxu1 %v18461_v59  ;;  %9723 = vmatpush1.bf16.msra.mxu1 %v9722_v15  ;;  %v5654_v15 = vld [vmem:[%s17703_s15 + $0x8b8] sm:$0xff] }
 0x9d0   : > { %9725 = vmatprep.subr.bf16.mxu1 %v9724_v1  ;;  %v16707_v1 = vmul.f32 %v18506_v26, %v18461_v59  ;;  %v9732_v50 = vpack.c.bf16 %v5654_v15, %v5652_v49  ;;  %v9734_v49 = vpack.c.bf16 %v5653_v14, %v5651_v27  ;;  %v5657_v15 = vld [vmem:[%s17703_s15 + $0x8d0] sm:$0xff]  ;;  %v5659_v14 = vld [vmem:[%s17703_s15 + $0x8e0] sm:$0xff] }
 0x9d2   : > { %6129 = vmatmul.mubr.f32.gmra.mrb[174].mxu1 %v16689_v42  ;;  %18530 = vst [vmem:[#allocation80_spill] sm:$0xff] %v16707_v1  ;;  %v5656_v42 = vld [vmem:[%s17703_s15 + $0x8c8] sm:$0xff] }
 0x9d3   : > { %6134 = vmatprep.mubr.f32.mxu1 %v18463_v28  ;;  %9727 = vmatpush1.bf16.msra.mxu1 %v9726_v60  ;;  %v5658_v60 = vld [vmem:[%s17703_s15 + $0x8d8] sm:$0xff] }
 0x9d4   : > { %9729 = vmatprep.subr.bf16.mxu1 %v9728_v58  ;;  %v16725_v58 = vmul.f32 %v18508_v31, %v18463_v28  ;;  %v9736_v24 = vpack.c.bf16 %v5658_v60, %v5656_v42  ;;  %v9738_v42 = vpack.c.bf16 %v5657_v15, %v5655_v56  ;;  %v5661_v60 = vld [vmem:[%s17703_s15 + $0x8f0] sm:$0xff]  ;;  %v5663_v15 = vld [vmem:[%s17703_s15 + $0x900] sm:$0xff] }
 0x9d6   : > { %6135 = vmatmul.mubr.f32.gmra.mrb[176].mxu1 %v16707_v1  ;;  %18531 = vst [vmem:[#allocation41_spill] sm:$0xff] %v16725_v58  ;;  %v5660_v1 = vld [vmem:[%s17703_s15 + $0x8e8] sm:$0xff] }
 0x9d7   : > { %6140 = vmatprep.mubr.f32.mxu1 %v18465_v13  ;;  %9731 = vmatpush1.bf16.msra.mxu1 %v9730_v44  ;;  %v5662_v44 = vld [vmem:[%s17703_s15 + $0x8f8] sm:$0xff] }
 0x9d8   : > { %9733 = vmatprep.subr.bf16.mxu1 %v9732_v50  ;;  %v16743_v50 = vmul.f32 %v18510_v37, %v18465_v13  ;;  %v9740_v27 = vpack.c.bf16 %v5662_v44, %v5660_v1  ;;  %v9742_v1 = vpack.c.bf16 %v5661_v60, %v5659_v14  ;;  %v5665_v44 = vld [vmem:[%s17703_s15 + $0x910] sm:$0xff]  ;;  %v5667_v60 = vld [vmem:[%s17703_s15 + $0x920] sm:$0xff] }
 0x9da   : > { %6141 = vmatmul.mubr.f32.gmra.mrb[178].mxu1 %v16725_v58  ;;  %18532 = vst [vmem:[#allocation72_spill] sm:$0xff] %v16743_v50  ;;  %v5664_v58 = vld [vmem:[%s17703_s15 + $0x908] sm:$0xff] }
 0x9db   : > { %6146 = vmatprep.mubr.f32.mxu1 %v18467_v29  ;;  %9735 = vmatpush1.bf16.msra.mxu1 %v9734_v49  ;;  %v5666_v49 = vld [vmem:[%s17703_s15 + $0x918] sm:$0xff] }
 0x9dc   : > { %9737 = vmatprep.subr.bf16.mxu1 %v9736_v24  ;;  %v16761_v24 = vmul.f32 %v18511_v10, %v18467_v29  ;;  %v9744_v56 = vpack.c.bf16 %v5666_v49, %v5664_v58  ;;  %v5670_v58 = vld [vmem:[%s17703_s15 + $0x938] sm:$0xff]  ;;  %v5669_v49 = vld [vmem:[%s17703_s15 + $0x930] sm:$0xff] }
 0x9de   : > { %6147 = vmatmul.mubr.f32.gmra.mrb[180].mxu1 %v16743_v50  ;;  %18533 = vst [vmem:[#allocation71_spill] sm:$0xff] %v16761_v24  ;;  %v16771_v50 = vmul.f32 %v16361_v61, %v18459_v51 }
 0x9df   : > { %6152 = vmatprep.mubr.f32.mxu1 %v18469_v6  ;;  %9739 = vmatpush1.bf16.msra.mxu1 %v9738_v42  ;;  %v5668_v42 = vld [vmem:[%s17703_s15 + $0x928] sm:$0xff] }
 0x9e0   : > { %9741 = vmatprep.subr.bf16.mxu1 %v9740_v27  ;;  %18534 = vst [vmem:[#allocation73_spill] sm:$0xff] %v16771_v50  ;;  %v9746_v27 = vpack.c.bf16 %v5665_v44, %v5663_v15  ;;  %v9748_v14 = vpack.c.bf16 %v5670_v58, %v5668_v42  ;;  %v9750_v15 = vpack.c.bf16 %v5669_v49, %v5667_v60  ;;  %v5671_v44 = vld [vmem:[%s17703_s15 + $0x940] sm:$0xff]  ;;  %v5673_v42 = vld [vmem:[%s17703_s15 + $0x950] sm:$0xff]  ;;  %v5676_v58 = vld [vmem:[%s17703_s15 + $0x968] sm:$0xff] }
 0x9e1   : > { %v5677_v60 = vld [vmem:[%s17703_s15 + $0x970] sm:$0xff]  ;;  %v5680_v49 = vld [vmem:[%s17703_s15 + $0x988] sm:$0xff] }
 0x9e2   : > { %6153 = vmatmul.mubr.f32.gmra.mrb[182].mxu1 %v16761_v24 }
 0x9e3   : > { %9743 = vmatpush1.bf16.msra.mxu1 %v9742_v1  ;;  %6223 = vmatprep.mubr.f32.mxu1 %v16771_v50  ;;  %v5674_v1 = vld [vmem:[%s17703_s15 + $0x958] sm:$0xff] }
 0x9e4   : > { %9745 = vmatprep.subr.bf16.mxu1 %v9744_v56  ;;  %v9752_v56 = vpack.c.bf16 %v5674_v1, %v5672_v9  ;;  %v5678_v50 = vld [vmem:[%s17703_s15 + $0x978] sm:$0xff] }
 0x9e5   : > { %v9756_v9 = vpack.c.bf16 %v5678_v50, %v5676_v58  ;;  %v5682_v1 = vld [vmem:[%s17703_s15 + $0x998] sm:$0xff] }
 0x9e6   : > { %v9760_v50 = vpack.c.bf16 %v5682_v1, %v5680_v49  ;;  %v5686_v58 = vld [vmem:[%s17703_s15 + $0x9b8] sm:$0xff]  ;;  %v5688_v49 = vld [vmem:[%s17703_s15 + $0x9c8] sm:$0xff] }
 0x9e7   : > { %9747 = vmatpush1.bf16.msra.mxu1 %v9746_v27  ;;  %v9754_v27 = vpack.c.bf16 %v5673_v42, %v5671_v44  ;;  %v5681_v44 = vld [vmem:[%s17703_s15 + $0x990] sm:$0xff]  ;;  %v5684_v42 = vld [vmem:[%s17703_s15 + $0x9a8] sm:$0xff]  ;;  %v5690_v1 = vld [vmem:[%s17703_s15 + $0x9d8] sm:$0xff] }
 0x9e8   : > { %9749 = vmatprep.subr.bf16.mxu1 %v9748_v14  ;;  %v5675_v14 = vld [vmem:[%s17703_s15 + $0x960] sm:$0xff] }
 0x9eb   : > { %9751 = vmatpush1.bf16.msra.mxu1 %v9750_v15  ;;  %v9758_v15 = vpack.c.bf16 %v5677_v60, %v5675_v14  ;;  %v5683_v14 = vld [vmem:[%s17703_s15 + $0x9a0] sm:$0xff]  ;;  %v5685_v60 = vld [vmem:[%s17703_s15 + $0x9b0] sm:$0xff] }
 0x9ec   : > { %9753 = vmatprep.subr.bf16.mxu1 %v9752_v56  ;;  %v5679_v56 = vld [vmem:[%s17703_s15 + $0x980] sm:$0xff] }
 0x9ef   : > { %9755 = vmatpush1.bf16.msra.mxu1 %v9754_v27  ;;  %v9762_v27 = vpack.c.bf16 %v5681_v44, %v5679_v56  ;;  %v5687_v56 = vld [vmem:[%s17703_s15 + $0x9c0] sm:$0xff]  ;;  %v5689_v44 = vld [vmem:[%s17703_s15 + $0x9d0] sm:$0xff] }
 0x9f0   : > { %9757 = vmatprep.subr.bf16.mxu1 %v9756_v9  ;;  %v9764_v9 = vpack.c.bf16 %v5686_v58, %v5684_v42  ;;  %v5692_v42 = vld [vmem:[%s17703_s15 + $0x9e8] sm:$0xff]  ;;  %v5694_v58 = vld [vmem:[%s17703_s15 + $0x9f8] sm:$0xff] }
 0x9f3   : > { %9759 = vmatpush1.bf16.msra.mxu1 %v9758_v15  ;;  %v9766_v15 = vpack.c.bf16 %v5685_v60, %v5683_v14  ;;  %v5691_v14 = vld [vmem:[%s17703_s15 + $0x9e0] sm:$0xff]  ;;  %v5693_v60 = vld [vmem:[%s17703_s15 + $0x9f0] sm:$0xff] }
 0x9f4   : > { %9761 = vmatprep.subr.bf16.mxu1 %v9760_v50  ;;  %v9768_v50 = vpack.c.bf16 %v5690_v1, %v5688_v49  ;;  %v9774_v49 = vpack.c.bf16 %v5693_v60, %v5691_v14  ;;  %v16861_v1 = vmul.f32 %v18512_v41, %v18457_v47  ;;  %v16905_v14 = vmul.f32 %v16476_v16, %v18469_v6 }
 0x9f5   : > { %v16911_v60 = vmul.f32 %v18517_v63, %v18467_v29 }
 0x9f6   : > { %18535 = vst [vmem:[#allocation74_spill] sm:$0xff] %v16861_v1  ;;  %18544 = vst [vmem:[#allocation19_spill] sm:$0xff] %v16905_v14 }
 0x9f7   : > { %9763 = vmatpush1.bf16.msra.mxu1 %v9762_v27  ;;  %v9770_v27 = vpack.c.bf16 %v5689_v44, %v5687_v56  ;;  %v16875_v56 = vmul.f32 %v16407_v11, %v18463_v28  ;;  %v16881_v44 = vmul.f32 %v18514_v30, %v18461_v59  ;;  %18545 = vst [vmem:[#allocation22_spill] sm:$0xff] %v16911_v60 }
 0x9f8   : > { %9765 = vmatprep.subr.bf16.mxu1 %v9764_v9  ;;  %v9772_v9 = vpack.c.bf16 %v5694_v58, %v5692_v42  ;;  %v16885_v42 = vmul.f32 %v16430_v0, %v18465_v13  ;;  %v16891_v58 = vmul.f32 %v18515_v35, %v18463_v28 }
 0x9f9   : > { %18538 = vst [vmem:[#allocation77_spill] sm:$0xff] %v16875_v56  ;;  %18539 = vst [vmem:[#allocation78_spill] sm:$0xff] %v16881_v44 }
 0x9fa   : > { %18540 = vst [vmem:[#allocation79_spill] sm:$0xff] %v16885_v42  ;;  %18541 = vst [vmem:[#allocation15_spill] sm:$0xff] %v16891_v58 }
 0x9fb   : > { %9767 = vmatpush1.bf16.msra.mxu1 %v9766_v15  ;;  %v16865_v15 = vmul.f32 %v16384_v33, %v18461_v59 }
 0x9fc   : > { %9769 = vmatprep.subr.bf16.mxu1 %v9768_v50  ;;  %v16871_v50 = vmul.f32 %v18513_v17, %v18459_v51 }
 0x9fd   : > { %18536 = vst [vmem:[#allocation75_spill] sm:$0xff] %v16865_v15 }
 0x9fe   : > { %18537 = vst [vmem:[#allocation76_spill] sm:$0xff] %v16871_v50 }
 0x9ff   : > { %9771 = vmatpush1.bf16.msra.mxu1 %v9770_v27  ;;  %v16895_v27 = vmul.f32 %v16453_v19, %v18467_v29 }
 0xa00   : > { %9773 = vmatprep.subr.bf16.mxu1 %v9772_v9  ;;  %v16901_v9 = vmul.f32 %v18516_v23, %v18465_v13 }
 0xa01   : > { %18542 = vst [vmem:[#allocation18_spill] sm:$0xff] %v16895_v27 }
 0xa02   : > { %18543 = vst [vmem:[#allocation23_spill] sm:$0xff] %v16901_v9 }
 0xa03   : > { %9775 = vmatpush1.bf16.msra.mxu1 %v9774_v49  ;;  %v16915_v49 = vmul.f32 %v16498_v43, %v18455_v53 }
 0xa05   : > { %18546 = vst [vmem:[#allocation50_spill] sm:$0xff] %v16915_v49 }
 0xa06   : > { %6224 = vmatmul.mubr.f32.vlgmr.msra.gmra.mrb[168].mxu1 %v16861_v1  ;;  %v6403_v1 = vld [vmem:[%s17705_s17 + $0xd8] sm:$0xff] }
 0xa07   : > { %6229 = vmatprep.mubr.f32.mxu1 %v16865_v15  ;;  %v6401_v15 = vld [vmem:[%s17705_s17 + $0xc8] sm:$0xff] }
 0xa0a   : > { %6230 = vmatmul.mubr.f32.gmra.mrb[170].mxu1 %v16871_v50  ;;  %v6382_v50 = vld [vmem:[%s17705_s17 + $0x30] sm:$0xff] }
 0xa0b   : > { %6235 = vmatprep.mubr.f32.mxu1 %v16875_v56  ;;  %v6378_v56 = vld [vmem:[%s17705_s17 + $0x10] sm:$0xff] }
 0xa0e   : > { %6236 = vmatmul.mubr.f32.gmra.mrb[172].mxu1 %v16881_v44  ;;  %v6395_v44 = vld [vmem:[%s17705_s17 + $0x98] sm:$0xff] }
 0xa0f   : > { %6241 = vmatprep.mubr.f32.mxu1 %v16885_v42 }
 0xa12   : > { %6242 = vmatmul.mubr.f32.gmra.mrb[174].mxu1 %v16891_v58 }
 0xa13   : > { %6247 = vmatprep.mubr.f32.mxu1 %v16895_v27  ;;  %v16921_v27 = vmul.f32 %v18518_v55, %v18469_v6 }
 0xa15   : > { %18547 = vst [vmem:[#allocation26_spill] sm:$0xff] %v16921_v27 }
 0xa16   : > { %6248 = vmatmul.mubr.f32.gmra.mrb[176].mxu1 %v16901_v9  ;;  %v16925_v9 = vmul.f32 %v16520_v5, %v18457_v47 }
 0xa17   : > { %6253 = vmatprep.mubr.f32.mxu1 %v16905_v14  ;;  %v16931_v14 = vmul.f32 %v18519_v38, %v18455_v53 }
 0xa18   : > { %18548 = vst [vmem:[#allocation54_spill] sm:$0xff] %v16925_v9 }
 0xa19   : > { %18549 = vst [vmem:[#allocation36_spill] sm:$0xff] %v16931_v14 }
 0xa1a   : > { %6254 = vmatmul.mubr.f32.gmra.mrb[178].mxu1 %v16911_v60  ;;  %v6393_v60 = vld [vmem:[%s17705_s17 + $0x88] sm:$0xff] }
 0xa1b   : > { %6259 = vmatprep.mubr.f32.mxu1 %v16915_v49  ;;  %v6392_v49 = vld [vmem:[%s17705_s17 + $0x80] sm:$0xff] }
 0xa1c   : > { %v9776_v58 = vpack.c.bf16 %v6393_v60, %v6392_v49  ;;  %v6379_v49 = vld [vmem:[%s17705_s17 + $0x18] sm:$0xff] }
 0xa1e   : > { %6260 = vmatmul.mubr.f32.gmra.mrb[180].mxu1 %v16921_v27  ;;  %v6376_v27 = vld [vmem:[%s17705_s17] sm:$0xff]  ;;  %9777 = vmatprep.subr.bf16.mxu0 %v9776_v58  ;;  %v6397_v58 = vld [vmem:[%s17705_s17 + $0xa8] sm:$0xff] }
 0xa1f   : > { %6265 = vmatprep.mubr.f32.mxu1 %v16925_v9  ;;  %v6377_v9 = vld [vmem:[%s17705_s17 + $0x8] sm:$0xff] }
 0xa20   : > { %v9778_v42 = vpack.c.bf16 %v6377_v9, %v6376_v27  ;;  %v9782_v27 = vpack.c.bf16 %v6379_v49, %v6378_v56  ;;  %v6380_v9 = vld [vmem:[%s17705_s17 + $0x20] sm:$0xff]  ;;  %v6398_v56 = vld [vmem:[%s17705_s17 + $0xb0] sm:$0xff] }
 0xa22   : > { %6266 = vmatmul.mubr.f32.gmra.mrb[182].mxu1 %v16931_v14  ;;  %9779 = vmatpush3.bf16.msra.mxu0 %v9778_v42  ;;  %v6394_v14 = vld [vmem:[%s17705_s17 + $0x90] sm:$0xff]  ;;  %v6396_v42 = vld [vmem:[%s17705_s17 + $0xa0] sm:$0xff] }
 0xa23   : > { %v9780_v60 = vpack.c.bf16 %v6395_v44, %v6394_v14  ;;  %v9784_v44 = vpack.c.bf16 %v6397_v58, %v6396_v42  ;;  %v6381_v14 = vld [vmem:[%s17705_s17 + $0x28] sm:$0xff]  ;;  %v6383_v42 = vld [vmem:[%s17705_s17 + $0x38] sm:$0xff]  ;;  %v6400_v58 = vld [vmem:[%s17705_s17 + $0xc0] sm:$0xff] }
 0xa24   : > { %v9786_v49 = vpack.c.bf16 %v6381_v14, %v6380_v9  ;;  %v9790_v9 = vpack.c.bf16 %v6383_v42, %v6382_v50  ;;  %v9792_v14 = vpack.c.bf16 %v6401_v15, %v6400_v58  ;;  %v6404_v42 = vld [vmem:[%s17705_s17 + $0xe0] sm:$0xff]  ;;  %v6405_v58 = vld [vmem:[%s17705_s17 + $0xe8] sm:$0xff] }
 0xa25   : > { %9781 = vmatprep.subr.bf16.mxu0 %v9780_v60  ;;  %v6399_v60 = vld [vmem:[%s17705_s17 + $0xb8] sm:$0xff] }
 0xa26   : > { %9783 = vmatpush3.bf16.msra.mxu0 %v9782_v27  ;;  %v9788_v27 = vpack.c.bf16 %v6399_v60, %v6398_v56  ;;  %v6384_v56 = vld [vmem:[%s17705_s17 + $0x40] sm:$0xff]  ;;  %v6385_v60 = vld [vmem:[%s17705_s17 + $0x48] sm:$0xff] }
 0xa27   : > { %9785 = vmatprep.subr.bf16.mxu0 %v9784_v44  ;;  %v6402_v44 = vld [vmem:[%s17705_s17 + $0xd0] sm:$0xff]  ;;  %v9794_v50 = vpack.c.bf16 %v6385_v60, %v6384_v56  ;;  %v6389_v56 = vld [vmem:[%s17705_s17 + $0x68] sm:$0xff] }
 0xa28   : > { %v9796_v15 = vpack.c.bf16 %v6403_v1, %v6402_v44  ;;  %v9800_v1 = vpack.c.bf16 %v6405_v58, %v6404_v42  ;;  %v6406_v60 = vld [vmem:[%s17705_s17 + $0xf0] sm:$0xff]  ;;  %v6407_v44 = vld [vmem:[%s17705_s17 + $0xf8] sm:$0xff]  ;;  %v6424_v42 = vld [vmem:[%s17705_s17 + $0x180] sm:$0xff] }
 0xa29   : > { %v6425_v58 = vld [vmem:[%s17705_s17 + $0x188] sm:$0xff] }
 0xa2a   : > { %9787 = vmatpush3.bf16.msra.mxu0 %v9786_v49  ;;  %v6386_v49 = vld [vmem:[%s17705_s17 + $0x50] sm:$0xff] }
 0xa2b   : > { %9789 = vmatprep.subr.bf16.mxu0 %v9788_v27  ;;  %v6387_v27 = vld [vmem:[%s17705_s17 + $0x58] sm:$0xff] }
 0xa2e   : > { %9791 = vmatpush3.bf16.msra.mxu0 %v9790_v9  ;;  %v9798_v9 = vpack.c.bf16 %v6387_v27, %v6386_v49  ;;  %v6390_v49 = vld [vmem:[%s17705_s17 + $0x70] sm:$0xff]  ;;  %v6391_v27 = vld [vmem:[%s17705_s17 + $0x78] sm:$0xff] }
 0xa2f   : > { %9793 = vmatprep.subr.bf16.mxu0 %v9792_v14  ;;  %v6388_v14 = vld [vmem:[%s17705_s17 + $0x60] sm:$0xff] }
 0xa32   : > { %9795 = vmatpush3.bf16.msra.mxu0 %v9794_v50  ;;  %v9802_v50 = vpack.c.bf16 %v6389_v56, %v6388_v14 }
 0xa33   : > { %9797 = vmatprep.subr.bf16.mxu0 %v9796_v15  ;;  %v9804_v15 = vpack.c.bf16 %v6407_v44, %v6406_v60 }
 0xa36   : > { %9799 = vmatpush3.bf16.msra.mxu0 %v9798_v9  ;;  %v9806_v9 = vpack.c.bf16 %v6391_v27, %v6390_v49 }
 0xa37   : > { %9801 = vmatprep.subr.bf16.mxu0 %v9800_v1  ;;  %v9808_v1 = vpack.c.bf16 %v6425_v58, %v6424_v42 }
 0xa3a   : > { %9803 = vmatpush3.bf16.msra.mxu0 %v9802_v50  ;;  %v5695_v50 = vld [vmem:[%s17704_s16] sm:$0x3] }
 0xa3b   : > { %9805 = vmatprep.subr.bf16.mxu0 %v9804_v15  ;;  %v18554_v15 = vsub.s32 1, %v10981_v40 }
 0xa3d   : > { %v5704_v27 = vrot.slane %v5695_v50, %v18554_v15 }
 0xa3e   : > { %9807 = vmatpush3.bf16.msra.mxu0 %v9806_v9 }
 0xa3f   : > { %9809 = vmatprep.subr.bf16.mxu0 %v9808_v1 }
 0xad9   : > { %v17036_v14 = vpop.f32.mrb[168].mxu1 }
 0xada   : > { %18550 = vst [vmem:[#allocation58_spill] sm:$0xff] %v17036_v14  ;;  %v6227_v56 = vpop.f32.mrb[169].mxu1 }
 0xadb   : > { %v9953_v9 = vadd.f32 %v6227_v56, %v5704_v27 }
 0xadd   : > { %v17038_v60 = vpop.f32.mrb[170].mxu1  ;;  %v6273_v14 = vmul.f32 0.5, %v9953_v9 }
 0xade   : > { %18551 = vst [vmem:[#allocation47_spill] sm:$0xff] %v17038_v60  ;;  %v6233_v44 = vpop.f32.mrb[171].mxu1 }
 0xadf   : > { %10250 = vtanh.f32 %v6273_v14 }
 0xae1   : > { %v17040_v24 = vpop.f32.mrb[172].mxu1 }
 0xae2   : > { %18552 = vst [vmem:[#allocation62_spill] sm:$0xff] %v17040_v24  ;;  %v6239_v6 = vpop.f32.mrb[173].mxu1  ;;  %v9955_v24 = vadd.f32 %v6233_v44, %v5704_v27 }
 0xae3   : > { %v9957_v51 = vadd.f32 %v6239_v6, %v5704_v27 }
 0xae4   : > { %v6275_v59 = vmul.f32 0.5, %v9955_v24 }
 0xae5   : > { %v17042_v29 = vpop.f32.mrb[174].mxu1  ;;  %v6277_v56 = vmul.f32 0.5, %v9957_v51 }
 0xae6   : > { %18553 = vst [vmem:[#allocation45_spill] sm:$0xff] %v17042_v29  ;;  %v6245_v49 = vpop.f32.mrb[175].mxu1 }
 0xae9   : > { %v17049_v42 = vpop.f32.mrb[176].mxu1 }
 0xaea   : > { %18555 = vst [vmem:[#allocation81_spill] sm:$0xff] %v17049_v42  ;;  %v6251_v58 = vpop.f32.mrb[177].mxu1  ;;  %v9959_v42 = vadd.f32 %v6245_v49, %v5704_v27 }
 0xaeb   : > { %v9961_v9 = vadd.f32 %v6251_v58, %v5704_v27 }
 0xaec   : > { %v6279_v44 = vmul.f32 0.5, %v9959_v42 }
 0xaed   : > { %v17051_v1 = vpop.f32.mrb[178].mxu1 }
 0xaee   : > { %18556 = vst [vmem:[#allocation82_spill] sm:$0xff] %v17051_v1  ;;  %v6257_v60 = vpop.f32.mrb[179].mxu1 }
 0xaef   : > { %v9963_v24 = vadd.f32 %v6257_v60, %v5704_v27  ;;  %v6408_v60 = vld [vmem:[%s17705_s17 + $0x100] sm:$0xff] }
 0xaf1   : > { %v17053_v13 = vpop.f32.mrb[180].mxu1 }
 0xaf2   : > { %18557 = vst [vmem:[#allocation83_spill] sm:$0xff] %v17053_v13  ;;  %v6263_v29 = vpop.f32.mrb[181].mxu1  ;;  %v10251_v13 = vpop.eup %10250 }
 0xaf3   : > { %v9965_v28 = vadd.f32 %v6263_v29, %v5704_v27  ;;  %v6281_v29 = vmul.f32 0.5, %v9961_v9  ;;  %v6305_v6 = vadd.f32 1.0, %v10251_v13 }
 0xaf5   : > { %v6285_v47 = vmul.f32 0.5, %v9965_v28  ;;  %v17055_v53 = vpop.f32.mrb[182].mxu1 }
 0xaf6   : > { %18558 = vst [vmem:[#allocation64_spill] sm:$0xff] %v17055_v53  ;;  %v6269_v50 = vpop.f32.mrb[183].mxu1 }
 0xaf7   : > { %10252 = vtanh.f32 %v6285_v47  ;;  %v9967_v15 = vadd.f32 %v6269_v50, %v5704_v27  ;;  %v6283_v47 = vmul.f32 0.5, %v9963_v24 }
 0xaf8   : > { %10254 = vtanh.f32 %v6275_v59  ;;  %v6321_v59 = vmul.f32 0.5, %v6305_v6 }
 0xaf9   : > { %v6287_v1 = vmul.f32 0.5, %v9967_v15 }
 0xafa   : > { %v17067_v13 = vmul.f32 %v6321_v59, %v15841_v20 }
 0xafb   : > { %10256 = vtanh.f32 %v6287_v1 }
 0xafc   : > { %10258 = vtanh.f32 %v6277_v56  ;;  %v6426_v56 = vld [vmem:[%s17705_s17 + $0x190] sm:$0xff] }
 0xafd   : > { %10260 = vtanh.f32 %v6279_v44  ;;  %v6427_v44 = vld [vmem:[%s17705_s17 + $0x198] sm:$0xff] }
 0xafe   : > { %10262 = vtanh.f32 %v6281_v29 }
 0xaff   : > { %10264 = vtanh.f32 %v6283_v47  ;;  %v6411_v47 = vld [vmem:[%s17705_s17 + $0x118] sm:$0xff] }
 0xb01   : > { %v10253_v40 = vpop.eup %10252 }
 0xb02   : > { %v6317_v28 = vadd.f32 1.0, %v10253_v40  ;;  %v10255_v14 = vpop.eup %10254  ;;  %v6409_v40 = vld [vmem:[%s17705_s17 + $0x108] sm:$0xff] }
 0xb03   : > { %v6307_v51 = vadd.f32 1.0, %v10255_v14  ;;  %v9810_v24 = vpack.c.bf16 %v6409_v40, %v6408_v60  ;;  %v6410_v14 = vld [vmem:[%s17705_s17 + $0x110] sm:$0xff] }
 0xb04   : > { %v6333_v50 = vmul.f32 0.5, %v6317_v28  ;;  %v9812_v28 = vpack.c.bf16 %v6427_v44, %v6426_v56 }
 0xb05   : > { %v10257_v53 = vpop.eup %10256  ;;  %v6323_v27 = vmul.f32 0.5, %v6307_v51 }
 0xb06   : > { %v6319_v49 = vadd.f32 1.0, %v10257_v53  ;;  %v10259_v15 = vpop.eup %10258  ;;  %v17058_v42 = vmul.f32 %v6333_v50, %v15864_v52 }
 0xb07   : > { %v6309_v58 = vadd.f32 1.0, %v10259_v15  ;;  %v10261_v9 = vpop.eup %10260  ;;  %v17089_v50 = vmul.f32 %v6323_v27, %v15845_v57  ;;  %v6413_v27 = vld [vmem:[%s17705_s17 + $0x128] sm:$0xff] }
 0xb08   : > { %v6335_v1 = vmul.f32 0.5, %v6319_v49  ;;  %v6344_v6 = vmul.f32 %v15886_v32, %v17058_v42  ;;  %v6311_v51 = vadd.f32 1.0, %v10261_v9  ;;  %v6428_v32 = vld [vmem:[%s17705_s17 + $0x1a0] sm:$0xff]  ;;  %v6429_v49 = vld [vmem:[%s17705_s17 + $0x1a8] sm:$0xff]  ;;  %v10263_v15 = vpop.eup %10262 }
 0xb09   : > { %v6325_v59 = vmul.f32 0.5, %v6309_v58  ;;  %v9816_v40 = vpack.c.bf16 %v6429_v49, %v6428_v32  ;;  %v6313_v44 = vadd.f32 1.0, %v10263_v15  ;;  %v6354_v9 = vmul.f32 %v18502_v62, %v17089_v50  ;;  %v6414_v62 = vld [vmem:[%s17705_s17 + $0x130] sm:$0xff]  ;;  %v6433_v49 = vld [vmem:[%s17705_s17 + $0x1c8] sm:$0xff] }
 0xb0a   : > { %v17070_v53 = vmul.f32 %v6335_v1, %v15874_v2  ;;  %v9814_v1 = vpack.c.bf16 %v6411_v47, %v6410_v14  ;;  %v6327_v56 = vmul.f32 0.5, %v6311_v51  ;;  %v6415_v47 = vld [vmem:[%s17705_s17 + $0x138] sm:$0xff] }
 0xb0b   : > { %v17108_v58 = vmul.f32 %v6325_v59, %v15849_v18  ;;  %v6329_v51 = vmul.f32 0.5, %v6313_v44  ;;  %v9822_v15 = vpack.c.bf16 %v6415_v47, %v6414_v62  ;;  %v6435_v44 = vld [vmem:[%s17705_s17 + $0x1d8] sm:$0xff] }
 0xb0c   : > { %v6352_v29 = vmul.f32 %v18498_v25, %v17070_v53  ;;  %v6353_v25 = vmul.f32 %v18500_v34, %v17067_v13  ;;  %v6345_v60 = vmul.f32 %v15906_v4, %v17070_v53  ;;  %v6412_v34 = vld [vmem:[%s17705_s17 + $0x120] sm:$0xff]  ;;  %v6430_v4 = vld [vmem:[%s17705_s17 + $0x1b0] sm:$0xff]  ;;  %v17127_v59 = vmul.f32 %v6327_v56, %v15853_v39 }
 0xb0d   : > { %v6355_v32 = vmul.f32 %v18504_v12, %v17108_v58  ;;  %v6416_v12 = vld [vmem:[%s17705_s17 + $0x140] sm:$0xff] }
 0xb0e   : > { %6607 = vmatprep.mubr.f32.mxu0 %v6352_v29  ;;  %v6431_v29 = vld [vmem:[%s17705_s17 + $0x1b8] sm:$0xff]  ;;  %v6356_v56 = vmul.f32 %v18506_v26, %v17127_v59  ;;  %v6418_v26 = vld [vmem:[%s17705_s17 + $0x150] sm:$0xff]  ;;  %v6349_v47 = vmul.f32 %v15986_v36, %v17127_v59 }
 0xb0f   : > { %6608 = vmatmul.mubr.f32.vlgmr.msra.gmra.mrb[96].mxu0 %v6344_v6  ;;  %v9818_v6 = vpack.c.bf16 %v6413_v27, %v6412_v34  ;;  %v9820_v14 = vpack.c.bf16 %v6431_v29, %v6430_v4  ;;  %v17146_v34 = vmul.f32 %v6329_v51, %v15857_v8  ;;  %v6348_v4 = vmul.f32 %v15966_v21, %v17108_v58  ;;  %v6437_v21 = vld [vmem:[%s17705_s17 + $0x1e8] sm:$0xff]  ;;  %v6439_v36 = vld [vmem:[%s17705_s17 + $0x1f8] sm:$0xff] }
 0xb10   : > { %9811 = vmatpush3.bf16.msra.mxu0 %v9810_v24  ;;  %6612 = vmatprep.mubr.f32.mxu0 %v6353_v25  ;;  %v10265_v24 = vpop.eup %10264 }
 0xb11   : > { %9813 = vmatprep.subr.bf16.mxu0 %v9812_v28  ;;  %v6346_v28 = vmul.f32 %v15926_v54, %v17067_v13  ;;  %v6315_v25 = vadd.f32 1.0, %v10265_v24  ;;  %v6432_v54 = vld [vmem:[%s17705_s17 + $0x1c0] sm:$0xff]  ;;  %v6419_v24 = vld [vmem:[%s17705_s17 + $0x158] sm:$0xff] }
 0xb12   : > { %v9830_v62 = vpack.c.bf16 %v6419_v24, %v6418_v26  ;;  %v6442_v24 = vld [vmem:[%s17705_s17 + $0x210] sm:$0xff] }
 0xb13   : > { %6613 = vmatmul.mubr.f32.gmra.mrb[98].mxu0 %v6345_v60  ;;  %v9824_v60 = vpack.c.bf16 %v6433_v49, %v6432_v54  ;;  %v6331_v27 = vmul.f32 0.5, %v6315_v25  ;;  %v6421_v25 = vld [vmem:[%s17705_s17 + $0x168] sm:$0xff]  ;;  %v6438_v54 = vld [vmem:[%s17705_s17 + $0x1f0] sm:$0xff] }
 0xb14   : > { %9815 = vmatpush3.bf16.msra.mxu0 %v9814_v1  ;;  %6617 = vmatprep.mubr.f32.mxu0 %v6354_v9  ;;  %v6347_v1 = vmul.f32 %v15946_v22, %v17089_v50  ;;  %v6434_v22 = vld [vmem:[%s17705_s17 + $0x1d0] sm:$0xff] }
 0xb15   : > { %9817 = vmatprep.subr.bf16.mxu0 %v9816_v40  ;;  %v6417_v40 = vld [vmem:[%s17705_s17 + $0x148] sm:$0xff]  ;;  %v9828_v29 = vpack.c.bf16 %v6435_v44, %v6434_v22 }
 0xb16   : > { %v9826_v9 = vpack.c.bf16 %v6417_v40, %v6416_v12  ;;  %v6359_v12 = vmul.f32 %v18511_v10, %v17058_v42  ;;  %v6456_v40 = vld [vmem:[%s17705_s17 + $0x280] sm:$0xff]  ;;  %v6441_v44 = vld [vmem:[%s17705_s17 + $0x208] sm:$0xff] }
 0xb17   : > { %6618 = vmatmul.mubr.f32.gmra.mrb[100].mxu0 %v6346_v28  ;;  %v6357_v28 = vmul.f32 %v18508_v31, %v17146_v34  ;;  %v6420_v31 = vld [vmem:[%s17705_s17 + $0x160] sm:$0xff] }
 0xb18   : > { %9819 = vmatpush3.bf16.msra.mxu0 %v9818_v6  ;;  %6622 = vmatprep.mubr.f32.mxu0 %v6355_v32  ;;  %v17165_v6 = vmul.f32 %v6331_v27, %v15860_v48  ;;  %v9834_v49 = vpack.c.bf16 %v6421_v25, %v6420_v31  ;;  %v6440_v10 = vld [vmem:[%s17705_s17 + $0x200] sm:$0xff]  ;;  %v6362_v31 = vmul.f32 %v18514_v30, %v17127_v59  ;;  %v6462_v25 = vld [vmem:[%s17705_s17 + $0x2b0] sm:$0xff]  ;;  %v6447_v30 = vld [vmem:[%s17705_s17 + $0x238] sm:$0xff] }
 0xb19   : > { %9821 = vmatprep.subr.bf16.mxu0 %v9820_v14  ;;  %v6436_v14 = vld [vmem:[%s17705_s17 + $0x1e0] sm:$0xff] }
 0xb1a   : > { %v9832_v51 = vpack.c.bf16 %v6437_v21, %v6436_v14  ;;  %v6358_v32 = vmul.f32 %v18510_v37, %v17165_v6  ;;  %v6422_v37 = vld [vmem:[%s17705_s17 + $0x170] sm:$0xff]  ;;  %v6460_v14 = vld [vmem:[%s17705_s17 + $0x2a0] sm:$0xff]  ;;  %v6461_v21 = vld [vmem:[%s17705_s17 + $0x2a8] sm:$0xff] }
 0xb1b   : > { %6623 = vmatmul.mubr.f32.gmra.mrb[102].mxu0 %v6347_v1  ;;  %v9836_v1 = vpack.c.bf16 %v6439_v36, %v6438_v54 }
 0xb1c   : > { %9823 = vmatpush3.bf16.msra.mxu0 %v9822_v15  ;;  %6627 = vmatprep.mubr.f32.mxu0 %v6356_v56  ;;  %v6350_v15 = vmul.f32 %v16005_v45, %v17146_v34  ;;  %v6457_v45 = vld [vmem:[%s17705_s17 + $0x288] sm:$0xff]  ;;  %v6351_v56 = vmul.f32 %v16024_v7, %v17165_v6  ;;  %v6459_v7 = vld [vmem:[%s17705_s17 + $0x298] sm:$0xff] }
 0xb1d   : > { %9825 = vmatprep.subr.bf16.mxu0 %v9824_v60  ;;  %v6423_v60 = vld [vmem:[%s17705_s17 + $0x178] sm:$0xff]  ;;  %v9840_v22 = vpack.c.bf16 %v6457_v45, %v6456_v40  ;;  %v6448_v40 = vld [vmem:[%s17705_s17 + $0x240] sm:$0xff]  ;;  %v6364_v45 = vmul.f32 %v18516_v23, %v17165_v6 }
 0xb1e   : > { %v9838_v27 = vpack.c.bf16 %v6423_v60, %v6422_v37  ;;  %v6465_v37 = vld [vmem:[%s17705_s17 + $0x2c8] sm:$0xff]  ;;  %v6451_v23 = vld [vmem:[%s17705_s17 + $0x258] sm:$0xff] }
 0xb1f   : > { %6628 = vmatmul.mubr.f32.gmra.mrb[104].mxu0 %v6348_v4  ;;  %v6458_v4 = vld [vmem:[%s17705_s17 + $0x290] sm:$0xff] }
 0xb20   : > { %9827 = vmatpush3.bf16.msra.mxu0 %v9826_v9  ;;  %6632 = vmatprep.mubr.f32.mxu0 %v6357_v28  ;;  %v6360_v9 = vmul.f32 %v18512_v41, %v17089_v50  ;;  %v9844_v26 = vpack.c.bf16 %v6459_v7, %v6458_v4  ;;  %v6443_v41 = vld [vmem:[%s17705_s17 + $0x218] sm:$0xff]  ;;  %v6361_v28 = vmul.f32 %v18513_v17, %v17108_v58  ;;  %v6445_v17 = vld [vmem:[%s17705_s17 + $0x228] sm:$0xff]  ;;  %v6468_v4 = vld [vmem:[%s17705_s17 + $0x2e0] sm:$0xff] }
 0xb21   : > { %9829 = vmatprep.subr.bf16.mxu0 %v9828_v29  ;;  %v9842_v29 = vpack.c.bf16 %v6441_v44, %v6440_v10  ;;  %v6450_v44 = vld [vmem:[%s17705_s17 + $0x250] sm:$0xff]  ;;  %v6469_v7 = vld [vmem:[%s17705_s17 + $0x2e8] sm:$0xff] }
 0xb23   : > { %6633 = vmatmul.mubr.f32.gmra.mrb[106].mxu0 %v6349_v47  ;;  %v9848_v47 = vpack.c.bf16 %v6461_v21, %v6460_v14  ;;  %v6471_v14 = vld [vmem:[%s17705_s17 + $0x2f8] sm:$0xff] }
 0xb24   : > { %9831 = vmatpush3.bf16.msra.mxu0 %v9830_v62  ;;  %6637 = vmatprep.mubr.f32.mxu0 %v6358_v32  ;;  %v9846_v62 = vpack.c.bf16 %v6443_v41, %v6442_v24  ;;  %v6463_v32 = vld [vmem:[%s17705_s17 + $0x2b8] sm:$0xff]  ;;  %v6452_v24 = vld [vmem:[%s17705_s17 + $0x260] sm:$0xff]  ;;  %v6366_v41 = vmul.f32 %v18518_v55, %v17070_v53 }
 0xb25   : > { %9833 = vmatprep.subr.bf16.mxu0 %v9832_v51  ;;  %v6444_v51 = vld [vmem:[%s17705_s17 + $0x220] sm:$0xff]  ;;  %v9852_v36 = vpack.c.bf16 %v6463_v32, %v6462_v25  ;;  %v6455_v55 = vld [vmem:[%s17705_s17 + $0x278] sm:$0xff] }
 0xb26   : > { %v9850_v54 = vpack.c.bf16 %v6445_v17, %v6444_v51  ;;  %v6367_v51 = vmul.f32 %v18519_v38, %v17067_v13  ;;  %v6488_v17 = vld [vmem:[%s17705_s17 + $0x380] sm:$0xff]  ;;  %v6473_v38 = vld [vmem:[%s17705_s17 + $0x308] sm:$0xff] }
 0xb27   : > { %6638 = vmatmul.mubr.f32.gmra.mrb[108].mxu0 %v6350_v15  ;;  %v6363_v15 = vmul.f32 %v18515_v35, %v17146_v34  ;;  %v6449_v35 = vld [vmem:[%s17705_s17 + $0x248] sm:$0xff] }
 0xb28   : > { %9835 = vmatpush3.bf16.msra.mxu0 %v9834_v49  ;;  %6642 = vmatprep.mubr.f32.mxu0 %v6359_v12  ;;  %v6446_v49 = vld [vmem:[%s17705_s17 + $0x230] sm:$0xff] }
 0xb29   : > { %9837 = vmatprep.subr.bf16.mxu0 %v9836_v1  ;;  %v6464_v1 = vld [vmem:[%s17705_s17 + $0x2c0] sm:$0xff]  ;;  %v9854_v60 = vpack.c.bf16 %v6447_v30, %v6446_v49  ;;  %v6491_v49 = vld [vmem:[%s17705_s17 + $0x398] sm:$0xff] }
 0xb2a   : > { %v9856_v12 = vpack.c.bf16 %v6465_v37, %v6464_v1  ;;  %v6474_v37 = vld [vmem:[%s17705_s17 + $0x310] sm:$0xff] }
 0xb2b   : > { %6643 = vmatmul.mubr.f32.gmra.mrb[110].mxu0 %v6351_v56  ;;  %v6467_v56 = vld [vmem:[%s17705_s17 + $0x2d8] sm:$0xff] }
 0xb2c   : > { %9839 = vmatpush3.bf16.msra.mxu0 %v9838_v27  ;;  %6712 = vmatprep.mubr.f32.mxu0 %v6360_v9  ;;  %v6466_v27 = vld [vmem:[%s17705_s17 + $0x2d0] sm:$0xff]  ;;  %v6365_v9 = vmul.f32 %v18517_v63, %v17058_v42  ;;  %v6453_v63 = vld [vmem:[%s17705_s17 + $0x268] sm:$0xff] }
 0xb2d   : > { %9841 = vmatprep.subr.bf16.mxu0 %v9840_v22  ;;  %v9858_v22 = vpack.c.bf16 %v6449_v35, %v6448_v40  ;;  %v9860_v10 = vpack.c.bf16 %v6467_v56, %v6466_v27  ;;  %v9866_v21 = vpack.c.bf16 %v6453_v63, %v6452_v24  ;;  %v6476_v35 = vld [vmem:[%s17705_s17 + $0x320] sm:$0xff]  ;;  %v6494_v27 = vld [vmem:[%s17705_s17 + $0x3b0] sm:$0xff]  ;;  %v6370_v56 = vmul.f32 %v16407_v11, %v17146_v34  ;;  %v18560_v11 = vld [vmem:[#allocation40_spill] sm:$0xff] }
 0xb2e   : > { %v6498_v24 = vld [vmem:[%s17705_s17 + $0x3d0] sm:$0xff]  ;;  %v6499_v63 = vld [vmem:[%s17705_s17 + $0x3d8] sm:$0xff] }
 0xb2f   : > { %6713 = vmatmul.mubr.f32.vlgmr.msra.gmra.mrb[112].mxu0 %v17067_v13 }
 0xb30   : > { %9843 = vmatpush3.bf16.msra.mxu0 %v9842_v29  ;;  %6717 = vmatprep.mubr.f32.mxu0 %v6361_v28  ;;  %v9862_v29 = vpack.c.bf16 %v6451_v23, %v6450_v44  ;;  %v6470_v28 = vld [vmem:[%s17705_s17 + $0x2f0] sm:$0xff]  ;;  %v6479_v44 = vld [vmem:[%s17705_s17 + $0x338] sm:$0xff]  ;;  %v6496_v23 = vld [vmem:[%s17705_s17 + $0x3c0] sm:$0xff] }
 0xb31   : > { %9845 = vmatprep.subr.bf16.mxu0 %v9844_v26  ;;  %v9864_v26 = vpack.c.bf16 %v6469_v7, %v6468_v4  ;;  %v6371_v4 = vmul.f32 %v16430_v0, %v17165_v6  ;;  %v18561_v0 = vld [vmem:[#allocation53_spill] sm:$0xff] }
 0xb33   : > { %6718 = vmatmul.mubr.f32.gmra.mrb[114].mxu0 %v17089_v50 }
 0xb34   : > { %9847 = vmatpush3.bf16.msra.mxu0 %v9846_v62  ;;  %6722 = vmatprep.mubr.f32.mxu0 %v6362_v31  ;;  %v9868_v62 = vpack.c.bf16 %v6471_v14, %v6470_v28  ;;  %v6489_v31 = vld [vmem:[%s17705_s17 + $0x388] sm:$0xff]  ;;  %v9892_v28 = vpack.c.bf16 %v6499_v63, %v6498_v24  ;;  %v6482_v14 = vld [vmem:[%s17705_s17 + $0x350] sm:$0xff]  ;;  %v18570_v63 = vld [vmem:[#allocation34_spill] sm:$0xff] }
 0xb35   : > { %9849 = vmatprep.subr.bf16.mxu0 %v9848_v47  ;;  %v6454_v47 = vld [vmem:[%s17705_s17 + $0x270] sm:$0xff]  ;;  %v9872_v32 = vpack.c.bf16 %v6489_v31, %v6488_v17  ;;  %v6484_v17 = vld [vmem:[%s17705_s17 + $0x360] sm:$0xff]  ;;  %v6485_v31 = vld [vmem:[%s17705_s17 + $0x368] sm:$0xff] }
 0xb36   : > { %v9870_v25 = vpack.c.bf16 %v6455_v55, %v6454_v47  ;;  %v6501_v47 = vld [vmem:[%s17705_s17 + $0x3e8] sm:$0xff]  ;;  %v6373_v55 = vmul.f32 %v16476_v16, %v17070_v53  ;;  %v18563_v16 = vld [vmem:[#allocation57_spill] sm:$0xff] }
 0xb37   : > { %6723 = vmatmul.mubr.f32.gmra.mrb[116].mxu0 %v17108_v58  ;;  %v6529_v24 = vld [vmem:[%s17705_s17 + $0x4c8] sm:$0xff] }
 0xb38   : > { %9851 = vmatpush3.bf16.msra.mxu0 %v9850_v54  ;;  %6727 = vmatprep.mubr.f32.mxu0 %v6363_v15  ;;  %v6472_v54 = vld [vmem:[%s17705_s17 + $0x300] sm:$0xff]  ;;  %v6368_v15 = vmul.f32 %v16361_v61, %v17108_v58  ;;  %v6369_v58 = vmul.f32 %v16384_v33, %v17127_v59 }
 0xb39   : > { %9853 = vmatprep.subr.bf16.mxu0 %v9852_v36  ;;  %v6490_v36 = vld [vmem:[%s17705_s17 + $0x390] sm:$0xff]  ;;  %v9874_v30 = vpack.c.bf16 %v6473_v38, %v6472_v54  ;;  %v18559_v33 = vld [vmem:[#allocation43_spill] sm:$0xff]  ;;  %v6374_v54 = vmul.f32 %v16498_v43, %v17067_v13 }
 0xb3a   : > { %v9876_v1 = vpack.c.bf16 %v6491_v49, %v6490_v36  ;;  %v6486_v36 = vld [vmem:[%s17705_s17 + $0x370] sm:$0xff]  ;;  %v6487_v49 = vld [vmem:[%s17705_s17 + $0x378] sm:$0xff]  ;;  %v18564_v43 = vld [vmem:[#allocation55_spill] sm:$0xff] }
 0xb3b   : > { %6728 = vmatmul.mubr.f32.gmra.mrb[118].mxu0 %v17127_v59  ;;  %v9902_v13 = vpack.c.bf16 %v6487_v49, %v6486_v36  ;;  %v6517_v36 = vld [vmem:[%s17705_s17 + $0x468] sm:$0xff]  ;;  %v6534_v49 = vld [vmem:[%s17705_s17 + $0x4f0] sm:$0xff] }
 0xb3c   : > { %9855 = vmatpush3.bf16.msra.mxu0 %v9854_v60  ;;  %6732 = vmatprep.mubr.f32.mxu0 %v6364_v45  ;;  %v6475_v60 = vld [vmem:[%s17705_s17 + $0x318] sm:$0xff]  ;;  %v6477_v45 = vld [vmem:[%s17705_s17 + $0x328] sm:$0xff] }
 0xb3d   : > { %9857 = vmatprep.subr.bf16.mxu0 %v9856_v12  ;;  %v6492_v12 = vld [vmem:[%s17705_s17 + $0x3a0] sm:$0xff]  ;;  %v9878_v61 = vpack.c.bf16 %v6475_v60, %v6474_v37  ;;  %v9882_v59 = vpack.c.bf16 %v6477_v45, %v6476_v35  ;;  %v6507_v35 = vld [vmem:[%s17705_s17 + $0x418] sm:$0xff] }
 0xb3e   : > { %v6504_v60 = vld [vmem:[%s17705_s17 + $0x400] sm:$0xff] }
 0xb3f   : > { %6733 = vmatmul.mubr.f32.gmra.mrb[120].mxu0 %v17146_v34  ;;  %v6524_v45 = vld [vmem:[%s17705_s17 + $0x4a0] sm:$0xff] }
 0xb40   : > { %9859 = vmatpush3.bf16.msra.mxu0 %v9858_v22  ;;  %6737 = vmatprep.mubr.f32.mxu0 %v6365_v9  ;;  %v6497_v9 = vld [vmem:[%s17705_s17 + $0x3c8] sm:$0xff] }
 0xb41   : > { %9861 = vmatprep.subr.bf16.mxu0 %v9860_v10  ;;  %v6478_v10 = vld [vmem:[%s17705_s17 + $0x330] sm:$0xff]  ;;  %v9888_v7 = vpack.c.bf16 %v6497_v9, %v6496_v23  ;;  %v6527_v23 = vld [vmem:[%s17705_s17 + $0x4b8] sm:$0xff] }
 0xb42   : > { %v9886_v34 = vpack.c.bf16 %v6479_v44, %v6478_v10  ;;  %v6509_v10 = vld [vmem:[%s17705_s17 + $0x428] sm:$0xff]  ;;  %v6526_v44 = vld [vmem:[%s17705_s17 + $0x4b0] sm:$0xff] }
 0xb43   : > { %6738 = vmatmul.mubr.f32.gmra.mrb[122].mxu0 %v17165_v6  ;;  %v18568_v9 = vld [vmem:[#allocation61_spill] sm:$0xff] }
 0xb44   : > { %9863 = vmatpush3.bf16.msra.mxu0 %v9862_v29  ;;  %6742 = vmatprep.mubr.f32.mxu0 %v6366_v41  ;;  %v6480_v29 = vld [vmem:[%s17705_s17 + $0x340] sm:$0xff]  ;;  %v6372_v41 = vmul.f32 %v16453_v19, %v17058_v42  ;;  %v18562_v19 = vld [vmem:[#allocation49_spill] sm:$0xff] }
 0xb45   : > { %9865 = vmatprep.subr.bf16.mxu0 %v9864_v26  ;;  %v6481_v26 = vld [vmem:[%s17705_s17 + $0x348] sm:$0xff] }
 0xb46   : > { %v9890_v6 = vpack.c.bf16 %v6481_v26, %v6480_v29  ;;  %v6511_v29 = vld [vmem:[%s17705_s17 + $0x438] sm:$0xff]  ;;  %v6528_v26 = vld [vmem:[%s17705_s17 + $0x4c0] sm:$0xff] }
 0xb47   : > { %6743 = vmatmul.mubr.f32.gmra.mrb[124].mxu0 %v17058_v42 }
 0xb48   : > { %9867 = vmatpush3.bf16.msra.mxu0 %v9866_v21  ;;  %6747 = vmatprep.mubr.f32.mxu0 %v6367_v51  ;;  %v6483_v21 = vld [vmem:[%s17705_s17 + $0x358] sm:$0xff] }
 0xb49   : > { %9869 = vmatprep.subr.bf16.mxu0 %v9868_v62  ;;  %v6500_v62 = vld [vmem:[%s17705_s17 + $0x3e0] sm:$0xff]  ;;  %v9894_v42 = vpack.c.bf16 %v6483_v21, %v6482_v14  ;;  %v6513_v14 = vld [vmem:[%s17705_s17 + $0x448] sm:$0xff]  ;;  %v6530_v21 = vld [vmem:[%s17705_s17 + $0x4d0] sm:$0xff] }
 0xb4a   : > { %v9896_v51 = vpack.c.bf16 %v6501_v47, %v6500_v62  ;;  %v6531_v62 = vld [vmem:[%s17705_s17 + $0x4d8] sm:$0xff]  ;;  %v18572_v47 = vld [vmem:[#allocation31_spill] sm:$0xff] }
 0xb4b   : > { %6748 = vmatmul.mubr.f32.gmra.mrb[126].mxu0 %v17070_v53  ;;  %v9898_v53 = vpack.c.bf16 %v6485_v31, %v6484_v17  ;;  %v6515_v17 = vld [vmem:[%s17705_s17 + $0x458] sm:$0xff]  ;;  %v6532_v31 = vld [vmem:[%s17705_s17 + $0x4e0] sm:$0xff] }
 0xb4c   : > { %9871 = vmatpush3.bf16.msra.mxu0 %v9870_v25  ;;  %6817 = vmatprep.mubr.f32.mxu0 %v16251_v3  ;;  %v6493_v3 = vld [vmem:[%s17705_s17 + $0x3a8] sm:$0xff]  ;;  %v6502_v25 = vld [vmem:[%s17705_s17 + $0x3f0] sm:$0xff] }
 0xb4d   : > { %9873 = vmatprep.subr.bf16.mxu0 %v9872_v32  ;;  %v9880_v40 = vpack.c.bf16 %v6493_v3, %v6492_v12  ;;  %v6503_v32 = vld [vmem:[%s17705_s17 + $0x3f8] sm:$0xff]  ;;  %v6505_v12 = vld [vmem:[%s17705_s17 + $0x408] sm:$0xff]  ;;  %v6522_v3 = vld [vmem:[%s17705_s17 + $0x490] sm:$0xff] }
 0xb4e   : > { %v9900_v38 = vpack.c.bf16 %v6503_v32, %v6502_v25  ;;  %v6533_v25 = vld [vmem:[%s17705_s17 + $0x4e8] sm:$0xff] }
 0xb4f   : > { %6818 = vmatmul.mubr.f32.vlgmr.msra.gmra.mrb[128].mxu0 %v6368_v15  ;;  %v6521_v15 = vld [vmem:[%s17705_s17 + $0x488] sm:$0xff] }
 0xb50   : > { %9875 = vmatpush3.bf16.msra.mxu0 %v9874_v30  ;;  %6822 = vmatprep.mubr.f32.mxu0 %v16373_v46  ;;  %v6495_v46 = vld [vmem:[%s17705_s17 + $0x3b8] sm:$0xff]  ;;  %v6520_v30 = vld [vmem:[%s17705_s17 + $0x480] sm:$0xff]  ;;  %v18574_v32 = vld [vmem:[#allocation80_spill] sm:$0xff] }
 0xb51   : > { %9877 = vmatprep.subr.bf16.mxu0 %v9876_v1  ;;  %v9884_v22 = vpack.c.bf16 %v6495_v46, %v6494_v27  ;;  %v6375_v1 = vmul.f32 %v16520_v5, %v17089_v50  ;;  %v9904_v37 = vpack.c.bf16 %v6521_v15, %v6520_v30  ;;  %v18565_v5 = vld [vmem:[#allocation33_spill] sm:$0xff]  ;;  %v9906_v50 = vpack.c.bf16 %v6505_v12, %v6504_v60  ;;  %v6525_v27 = vld [vmem:[%s17705_s17 + $0x4a8] sm:$0xff]  ;;  %v6535_v30 = vld [vmem:[%s17705_s17 + $0x4f8] sm:$0xff] }
 0xb52   : > { %v18566_v46 = vld [vmem:[#allocation24_spill] sm:$0xff]  ;;  %v18576_v15 = vld [vmem:[#allocation41_spill] sm:$0xff]  ;;  %v6519_v60 = vld [vmem:[%s17705_s17 + $0x478] sm:$0xff] }
 0xb53   : > { %6823 = vmatmul.mubr.f32.gmra.mrb[130].mxu0 %v6369_v58  ;;  %v18578_v12 = vld [vmem:[#allocation72_spill] sm:$0xff] }
 0xb54   : > { %9879 = vmatpush3.bf16.msra.mxu0 %v9878_v61  ;;  %6827 = vmatprep.mubr.f32.mxu0 %v18559_v33  ;;  %v6523_v61 = vld [vmem:[%s17705_s17 + $0x498] sm:$0xff] }
 0xb55   : > { %9881 = vmatprep.subr.bf16.mxu0 %v9880_v40  ;;  %v9908_v58 = vpack.c.bf16 %v6523_v61, %v6522_v3  ;;  %v6506_v40 = vld [vmem:[%s17705_s17 + $0x410] sm:$0xff]  ;;  %v18567_v33 = vld [vmem:[#allocation46_spill] sm:$0xff]  ;;  %v18579_v3 = vld [vmem:[#allocation44_spill] sm:$0xff] }
 0xb57   : > { %6828 = vmatmul.mubr.f32.gmra.mrb[132].mxu0 %v6370_v56  ;;  %v9912_v56 = vpack.c.bf16 %v6525_v27, %v6524_v45  ;;  %v18585_v45 = vld [vmem:[#allocation77_spill] sm:$0xff]  ;;  %v18586_v27 = vld [vmem:[#allocation78_spill] sm:$0xff] }
 0xb58   : > { %9883 = vmatpush3.bf16.msra.mxu0 %v9882_v59  ;;  %6832 = vmatprep.mubr.f32.mxu0 %v18560_v11  ;;  %v9910_v59 = vpack.c.bf16 %v6507_v35, %v6506_v40  ;;  %v18569_v11 = vld [vmem:[#allocation42_spill] sm:$0xff]  ;;  %v18583_v40 = vld [vmem:[#allocation75_spill] sm:$0xff]  ;;  %v18584_v35 = vld [vmem:[#allocation76_spill] sm:$0xff] }
 0xb59   : > { %9885 = vmatprep.subr.bf16.mxu0 %v9884_v22  ;;  %v6508_v22 = vld [vmem:[%s17705_s17 + $0x420] sm:$0xff] }
 0xb5b   : > { %6833 = vmatmul.mubr.f32.gmra.mrb[134].mxu0 %v6371_v4  ;;  %v9916_v4 = vpack.c.bf16 %v6527_v23, %v6526_v44  ;;  %v18593_v44 = vld [vmem:[#allocation50_spill] sm:$0xff] }
 0xb5c   : > { %9887 = vmatpush3.bf16.msra.mxu0 %v9886_v34  ;;  %6837 = vmatprep.mubr.f32.mxu0 %v18561_v0  ;;  %v9914_v34 = vpack.c.bf16 %v6509_v10, %v6508_v22  ;;  %v18571_v0 = vld [vmem:[#allocation51_spill] sm:$0xff]  ;;  %v18592_v10 = vld [vmem:[#allocation22_spill] sm:$0xff] }
 0xb5d   : > { %9889 = vmatprep.subr.bf16.mxu0 %v9888_v7  ;;  %v6510_v7 = vld [vmem:[%s17705_s17 + $0x430] sm:$0xff]  ;;  %v18591_v22 = vld [vmem:[#allocation19_spill] sm:$0xff]  ;;  %v18594_v23 = vld [vmem:[#allocation26_spill] sm:$0xff] }
 0xb5f   : > { %6838 = vmatmul.mubr.f32.gmra.mrb[136].mxu0 %v6372_v41  ;;  %v9920_v41 = vpack.c.bf16 %v6529_v24, %v6528_v26 }
 0xb60   : > { %9891 = vmatpush3.bf16.msra.mxu0 %v9890_v6  ;;  %6842 = vmatprep.mubr.f32.mxu0 %v18562_v19  ;;  %v9918_v6 = vpack.c.bf16 %v6511_v29, %v6510_v7  ;;  %v18573_v19 = vld [vmem:[#allocation59_spill] sm:$0xff] }
 0xb61   : > { %9893 = vmatprep.subr.bf16.mxu0 %v9892_v28  ;;  %v6512_v28 = vld [vmem:[%s17705_s17 + $0x440] sm:$0xff] }
 0xb63   : > { %6843 = vmatmul.mubr.f32.gmra.mrb[138].mxu0 %v6373_v55  ;;  %v9924_v55 = vpack.c.bf16 %v6531_v62, %v6530_v21 }
 0xb64   : > { %9895 = vmatpush3.bf16.msra.mxu0 %v9894_v42  ;;  %6847 = vmatprep.mubr.f32.mxu0 %v18563_v16  ;;  %v9922_v42 = vpack.c.bf16 %v6513_v14, %v6512_v28  ;;  %v18575_v16 = vld [vmem:[#allocation38_spill] sm:$0xff] }
 0xb65   : > { %9897 = vmatprep.subr.bf16.mxu0 %v9896_v51  ;;  %v6514_v51 = vld [vmem:[%s17705_s17 + $0x450] sm:$0xff] }
 0xb67   : > { %6848 = vmatmul.mubr.f32.gmra.mrb[140].mxu0 %v6374_v54  ;;  %v9928_v54 = vpack.c.bf16 %v6533_v25, %v6532_v31 }
 0xb68   : > { %9899 = vmatpush3.bf16.msra.mxu0 %v9898_v53  ;;  %6852 = vmatprep.mubr.f32.mxu0 %v18564_v43  ;;  %v9926_v53 = vpack.c.bf16 %v6515_v17, %v6514_v51  ;;  %v18577_v43 = vld [vmem:[#allocation69_spill] sm:$0xff] }
 0xb69   : > { %9901 = vmatprep.subr.bf16.mxu0 %v9900_v38  ;;  %v6516_v38 = vld [vmem:[%s17705_s17 + $0x460] sm:$0xff] }
 0xb6b   : > { %6853 = vmatmul.mubr.f32.gmra.mrb[142].mxu0 %v6375_v1  ;;  %v9932_v1 = vpack.c.bf16 %v6535_v30, %v6534_v49 }
 0xb6c   : > { %9903 = vmatpush3.bf16.msra.mxu0 %v9902_v13  ;;  %6922 = vmatprep.mubr.f32.mxu0 %v18565_v5  ;;  %v9930_v13 = vpack.c.bf16 %v6517_v36, %v6516_v38  ;;  %v18580_v5 = vld [vmem:[#allocation71_spill] sm:$0xff] }
 0xb6d   : > { %9905 = vmatprep.subr.bf16.mxu0 %v9904_v37  ;;  %v6518_v37 = vld [vmem:[%s17705_s17 + $0x470] sm:$0xff] }
 0xb6e   : > { %v9934_v61 = vpack.c.bf16 %v6519_v60, %v6518_v37 }
 0xb6f   : > { %6923 = vmatmul.mubr.f32.vlgmr.msra.gmra.mrb[144].mxu0 %v18566_v46  ;;  %v18587_v46 = vld [vmem:[#allocation79_spill] sm:$0xff] }
 0xb70   : > { %9907 = vmatpush3.bf16.msra.mxu0 %v9906_v50  ;;  %6927 = vmatprep.mubr.f32.mxu0 %v18567_v33  ;;  %v18581_v50 = vld [vmem:[#allocation73_spill] sm:$0xff]  ;;  %v18588_v33 = vld [vmem:[#allocation15_spill] sm:$0xff] }
 0xb71   : > { %9909 = vmatprep.subr.bf16.mxu0 %v9908_v58  ;;  %v18582_v58 = vld [vmem:[#allocation74_spill] sm:$0xff] }
 0xb73   : > { %6928 = vmatmul.mubr.f32.gmra.mrb[146].mxu0 %v18568_v9  ;;  %v18595_v9 = vld [vmem:[#allocation54_spill] sm:$0xff] }
 0xb74   : > { %9911 = vmatpush3.bf16.msra.mxu0 %v9910_v59  ;;  %6932 = vmatprep.mubr.f32.mxu0 %v18569_v11  ;;  %v18589_v59 = vld [vmem:[#allocation18_spill] sm:$0xff]  ;;  %v18596_v11 = vld [vmem:[#allocation36_spill] sm:$0xff] }
 0xb75   : > { %9913 = vmatprep.subr.bf16.mxu0 %v9912_v56  ;;  %v18590_v56 = vld [vmem:[#allocation23_spill] sm:$0xff] }
 0xb77   : > { %6933 = vmatmul.mubr.f32.gmra.mrb[148].mxu0 %v18570_v63 }
 0xb78   : > { %9915 = vmatpush3.bf16.msra.mxu0 %v9914_v34  ;;  %6937 = vmatprep.mubr.f32.mxu0 %v18571_v0 }
 0xb79   : > { %9917 = vmatprep.subr.bf16.mxu0 %v9916_v4 }
 0xb7b   : > { %6938 = vmatmul.mubr.f32.gmra.mrb[150].mxu0 %v18572_v47 }
 0xb7c   : > { %9919 = vmatpush3.bf16.msra.mxu0 %v9918_v6  ;;  %6942 = vmatprep.mubr.f32.mxu0 %v18573_v19 }
 0xb7d   : > { %9921 = vmatprep.subr.bf16.mxu0 %v9920_v41 }
 0xb7f   : > { %6943 = vmatmul.mubr.f32.gmra.mrb[152].mxu0 %v18574_v32 }
 0xb80   : > { %9923 = vmatpush3.bf16.msra.mxu0 %v9922_v42  ;;  %6947 = vmatprep.mubr.f32.mxu0 %v18575_v16 }
 0xb81   : > { %9925 = vmatprep.subr.bf16.mxu0 %v9924_v55 }
 0xb83   : > { %6948 = vmatmul.mubr.f32.gmra.mrb[154].mxu0 %v18576_v15 }
 0xb84   : > { %9927 = vmatpush3.bf16.msra.mxu0 %v9926_v53  ;;  %6952 = vmatprep.mubr.f32.mxu0 %v18577_v43  ;;  %v7315_v53 = vld [vmem:[%s17706_s18] ss:$0 sm:$0xff] }
 0xb85   : > { %9929 = vmatprep.subr.bf16.mxu0 %v9928_v54 }
 0xb87   : > { %6953 = vmatmul.mubr.f32.gmra.mrb[156].mxu0 %v18578_v12 }
 0xb88   : > { %9931 = vmatpush3.bf16.msra.mxu0 %v9930_v13  ;;  %6957 = vmatprep.mubr.f32.mxu0 %v18579_v3 }
 0xb89   : > { %9933 = vmatprep.subr.bf16.mxu0 %v9932_v1 }
 0xb8b   : > { %6958 = vmatmul.mubr.f32.gmra.mrb[158].mxu0 %v18580_v5 }
 0xb8c   : > { %9935 = vmatpush3.bf16.msra.mxu0 %v9934_v61  ;;  %7027 = vmatprep.mubr.f32.mxu0 %v18581_v50 }
 0xb8f   : > { %7028 = vmatmul.mubr.f32.vlgmr.msra.gmra.mrb[160].mxu0 %v18582_v58 }
 0xb90   : > { %7032 = vmatprep.mubr.f32.mxu0 %v18583_v40 }
 0xb93   : > { %7033 = vmatmul.mubr.f32.gmra.mrb[162].mxu0 %v18584_v35 }
 0xb94   : > { %7037 = vmatprep.mubr.f32.mxu0 %v18585_v45 }
 0xb97   : > { %7038 = vmatmul.mubr.f32.gmra.mrb[164].mxu0 %v18586_v27 }
 0xb98   : > { %7042 = vmatprep.mubr.f32.mxu0 %v18587_v46 }
 0xb9b   : > { %7043 = vmatmul.mubr.f32.gmra.mrb[166].mxu0 %v18588_v33 }
 0xb9c   : > { %7047 = vmatprep.mubr.f32.mxu0 %v18589_v59 }
 0xb9f   : > { %7048 = vmatmul.mubr.f32.gmra.mrb[168].mxu0 %v18590_v56 }
 0xba0   : > { %7052 = vmatprep.mubr.f32.mxu0 %v18591_v22 }
 0xba3   : > { %7053 = vmatmul.mubr.f32.gmra.mrb[170].mxu0 %v18592_v10 }
 0xba4   : > { %7057 = vmatprep.mubr.f32.mxu0 %v18593_v44 }
 0xba7   : > { %7058 = vmatmul.mubr.f32.gmra.mrb[172].mxu0 %v18594_v23 }
 0xba8   : > { %7062 = vmatprep.mubr.f32.mxu0 %v18595_v9 }
 0xbab   : > { %7063 = vmatmul.mubr.f32.gmra.mrb[174].mxu0 %v18596_v11 }
 0xbe2   : > { %v8212_v34 = vpop.f32.mrb[96].mxu0 }
 0xbe3   : > { %v8213_v4 = vpop.f32.mrb[97].mxu0 }
 0xbe4   : > { %v8214_v7 = vadd.f32 %v8213_v4, %v8212_v34 }
 0xbe6   : > { %v8215_v29 = vpop.f32.mrb[98].mxu0  ;;  %v6610_v36 = vadd.f32 %v8214_v7, %v7315_v53 }
 0xbe7   : > { %v8216_v26 = vpop.f32.mrb[99].mxu0 }
 0xbe8   : > { %v8217_v24 = vadd.f32 %v8216_v26, %v8215_v29 }
 0xbea   : > { %v8218_v63 = vpop.f32.mrb[100].mxu0  ;;  %v6615_v13 = vadd.f32 %v8217_v24, %v7315_v53 }
 0xbeb   : > { %v8219_v0 = vpop.f32.mrb[101].mxu0 }
 0xbec   : > { %v8220_v6 = vadd.f32 %v8219_v0, %v8218_v63 }
 0xbee   : > { %v8221_v41 = vpop.f32.mrb[102].mxu0  ;;  %v6620_v3 = vadd.f32 %v8220_v6, %v7315_v53 }
 0xbef   : > { %v8222_v28 = vpop.f32.mrb[103].mxu0 }
 0xbf0   : > { %v8223_v14 = vadd.f32 %v8222_v28, %v8221_v41 }
 0xbf2   : > { %v8224_v21 = vpop.f32.mrb[104].mxu0  ;;  %v6625_v40 = vadd.f32 %v8223_v14, %v7315_v53 }
 0xbf3   : > { %v8225_v62 = vpop.f32.mrb[105].mxu0 }
 0xbf4   : > { %v8226_v47 = vadd.f32 %v8225_v62, %v8224_v21 }
 0xbf6   : > { %v8227_v19 = vpop.f32.mrb[106].mxu0  ;;  %v6630_v33 = vadd.f32 %v8226_v47, %v7315_v53 }
 0xbf7   : > { %v8228_v42 = vpop.f32.mrb[107].mxu0 }
 0xbf8   : > { %v8229_v55 = vadd.f32 %v8228_v42, %v8227_v19 }
 0xbfa   : > { %v8230_v51 = vpop.f32.mrb[108].mxu0  ;;  %v6635_v44 = vadd.f32 %v8229_v55, %v7315_v53 }
 0xbfb   : > { %v8231_v17 = vpop.f32.mrb[109].mxu0 }
 0xbfc   : > { %v8232_v31 = vadd.f32 %v8231_v17, %v8230_v51 }
 0xbfe   : > { %v8233_v25 = vpop.f32.mrb[110].mxu0  ;;  %v6640_v4 = vadd.f32 %v8232_v31, %v7315_v53 }
 0xbff   : > { %v8234_v32 = vpop.f32.mrb[111].mxu0 }
 0xc00   : > { %v8235_v16 = vadd.f32 %v8234_v32, %v8233_v25 }
 0xc02   : > { %v8268_v54 = vpop.f32.mrb[112].mxu0  ;;  %v6645_v63 = vadd.f32 %v8235_v16, %v7315_v53 }
 0xc03   : > { %v8269_v38 = vpop.f32.mrb[113].mxu0 }
 0xc04   : > { %v8270_v49 = vadd.f32 %v8269_v38, %v8268_v54 }
 0xc06   : > { %v6715_v30 = vadd.f32 %v8270_v49, %v6610_v36  ;;  %v8271_v15 = vpop.f32.mrb[114].mxu0 }
 0xc07   : > { %v8272_v43 = vpop.f32.mrb[115].mxu0 }
 0xc08   : > { %v8273_v1 = vadd.f32 %v8272_v43, %v8271_v15 }
 0xc0a   : > { %v6720_v37 = vadd.f32 %v8273_v1, %v6615_v13  ;;  %v8274_v60 = vpop.f32.mrb[116].mxu0 }
 0xc0b   : > { %v8275_v12 = vpop.f32.mrb[117].mxu0 }
 0xc0c   : > { %v8276_v61 = vadd.f32 %v8275_v12, %v8274_v60 }
 0xc0e   : > { %v6725_v5 = vadd.f32 %v8276_v61, %v6620_v3  ;;  %v8277_v50 = vpop.f32.mrb[118].mxu0 }
 0xc0f   : > { %v8278_v58 = vpop.f32.mrb[119].mxu0 }
 0xc10   : > { %v8279_v35 = vadd.f32 %v8278_v58, %v8277_v50 }
 0xc12   : > { %v6730_v45 = vadd.f32 %v8279_v35, %v6625_v40  ;;  %v8280_v27 = vpop.f32.mrb[120].mxu0 }
 0xc13   : > { %v8281_v46 = vpop.f32.mrb[121].mxu0 }
 0xc14   : > { %v8282_v59 = vadd.f32 %v8281_v46, %v8280_v27 }
 0xc16   : > { %v6735_v56 = vadd.f32 %v8282_v59, %v6630_v33  ;;  %v8283_v22 = vpop.f32.mrb[122].mxu0 }
 0xc17   : > { %v8284_v10 = vpop.f32.mrb[123].mxu0 }
 0xc18   : > { %v8285_v23 = vadd.f32 %v8284_v10, %v8283_v22  ;;  %v10331_v10 = vld [vmem:[%s17704_s16] sm:$0x3] }
 0xc1a   : > { %v6740_v9 = vadd.f32 %v8285_v23, %v6635_v44  ;;  %v8286_v11 = vpop.f32.mrb[124].mxu0  ;;  %v18597_v44 = vld [vmem:[#allocation11_spill] sm:$0xff] }
 0xc1b   : > { %v8287_v34 = vpop.f32.mrb[125].mxu0  ;;  %v18598_v23 = vsub.s32 0, %v18597_v44  ;;  %v18605_v44 = vld [vmem:[#allocation83_spill] sm:$0xff] }
 0xc1c   : > { %v8288_v7 = vadd.f32 %v8287_v34, %v8286_v11 }
 0xc1e   : > { %v6745_v29 = vadd.f32 %v8288_v7, %v6640_v4  ;;  %v8289_v26 = vpop.f32.mrb[126].mxu0 }
 0xc1f   : > { %v8290_v24 = vpop.f32.mrb[127].mxu0 }
 0xc20   : > { %v8291_v0 = vadd.f32 %v8290_v24, %v8289_v26 }
 0xc22   : > { %v6750_v6 = vadd.f32 %v8291_v0, %v6645_v63  ;;  %v8324_v41 = vpop.f32.mrb[128].mxu0 }
 0xc23   : > { %v8325_v28 = vpop.f32.mrb[129].mxu0 }
 0xc24   : > { %v8326_v14 = vadd.f32 %v8325_v28, %v8324_v41 }
 0xc26   : > { %v6820_v21 = vadd.f32 %v8326_v14, %v6715_v30  ;;  %v8327_v62 = vpop.f32.mrb[130].mxu0  ;;  %v18600_v14 = vld [vmem:[#allocation47_spill] sm:$0xff] }
 0xc27   : > { %v8328_v47 = vpop.f32.mrb[131].mxu0 }
 0xc28   : > { %v8329_v19 = vadd.f32 %v8328_v47, %v8327_v62 }
 0xc2a   : > { %v6825_v42 = vadd.f32 %v8329_v19, %v6720_v37  ;;  %v8330_v55 = vpop.f32.mrb[132].mxu0 }
 0xc2b   : > { %v8331_v51 = vpop.f32.mrb[133].mxu0 }
 0xc2c   : > { %v8332_v17 = vadd.f32 %v8331_v51, %v8330_v55  ;;  %v18601_v51 = vld [vmem:[#allocation62_spill] sm:$0xff] }
 0xc2e   : > { %v6830_v25 = vadd.f32 %v8332_v17, %v6725_v5  ;;  %v8333_v31 = vpop.f32.mrb[134].mxu0 }
 0xc2f   : > { %v8334_v32 = vpop.f32.mrb[135].mxu0 }
 0xc30   : > { %v8335_v54 = vadd.f32 %v8334_v32, %v8333_v31 }
 0xc32   : > { %v6835_v38 = vadd.f32 %v8335_v54, %v6730_v45  ;;  %v8336_v36 = vpop.f32.mrb[136].mxu0 }
 0xc33   : > { %v8337_v16 = vpop.f32.mrb[137].mxu0 }
 0xc34   : > { %v8338_v53 = vadd.f32 %v8337_v16, %v8336_v36  ;;  %v18602_v36 = vld [vmem:[#allocation45_spill] sm:$0xff] }
 0xc36   : > { %v6840_v49 = vadd.f32 %v8338_v53, %v6735_v56  ;;  %v8339_v15 = vpop.f32.mrb[138].mxu0 }
 0xc37   : > { %v8340_v43 = vpop.f32.mrb[139].mxu0 }
 0xc38   : > { %v8341_v13 = vadd.f32 %v8340_v43, %v8339_v15 }
 0xc3a   : > { %v6845_v30 = vadd.f32 %v8341_v13, %v6740_v9  ;;  %v8342_v1 = vpop.f32.mrb[140].mxu0  ;;  %v17579_v9 = vrot.slane %v10331_v10, %v18598_v23  ;;  %v18603_v13 = vld [vmem:[#allocation81_spill] sm:$0xff] }
 0xc3b   : > { %v8343_v60 = vpop.f32.mrb[141].mxu0 }
 0xc3c   : > { %v8344_v12 = vadd.f32 %v8343_v60, %v8342_v1  ;;  %v9956_v17 = vadd.f32 %v18601_v51, %v17579_v9  ;;  %v9958_v16 = vadd.f32 %v18602_v36, %v17579_v9  ;;  %v9960_v1 = vadd.f32 %v18603_v13, %v17579_v9 }
 0xc3d   : > { %v9964_v23 = vadd.f32 %v18605_v44, %v17579_v9 }
 0xc3e   : > { %v6850_v37 = vadd.f32 %v8344_v12, %v6745_v29  ;;  %v8345_v3 = vpop.f32.mrb[142].mxu0  ;;  %v18599_v29 = vld [vmem:[#allocation58_spill] sm:$0xff] }
 0xc3f   : > { %v8346_v61 = vpop.f32.mrb[143].mxu0  ;;  %v9952_v26 = vadd.f32 %v18599_v29, %v17579_v9 }
 0xc40   : > { %v8347_v50 = vadd.f32 %v8346_v61, %v8345_v3 }
 0xc41   : > { %v6272_v41 = vmul.f32 0.5, %v9952_v26 }
 0xc42   : > { %v6855_v5 = vadd.f32 %v8347_v50, %v6750_v6  ;;  %v8380_v58 = vpop.f32.mrb[144].mxu0 }
 0xc43   : > { %v8381_v40 = vpop.f32.mrb[145].mxu0  ;;  %10266 = vtanh.f32 %v6272_v41 }
 0xc44   : > { %v8382_v35 = vadd.f32 %v8381_v40, %v8380_v58  ;;  %v6280_v40 = vmul.f32 0.5, %v9960_v1 }
 0xc46   : > { %v6925_v45 = vadd.f32 %v8382_v35, %v6820_v21  ;;  %v8383_v27 = vpop.f32.mrb[146].mxu0  ;;  %v9954_v21 = vadd.f32 %v18600_v14, %v17579_v9 }
 0xc47   : > { %v8384_v46 = vpop.f32.mrb[147].mxu0 }
 0xc48   : > { %v8385_v33 = vadd.f32 %v8384_v46, %v8383_v27  ;;  %v6274_v55 = vmul.f32 0.5, %v9954_v21 }
 0xc4a   : > { %v6930_v59 = vadd.f32 %v8385_v33, %v6825_v42  ;;  %v8386_v56 = vpop.f32.mrb[148].mxu0  ;;  %10268 = vtanh.f32 %v6274_v55 }
 0xc4b   : > { %v8387_v22 = vpop.f32.mrb[149].mxu0 }
 0xc4c   : > { %v8388_v11 = vadd.f32 %v8387_v22, %v8386_v56 }
 0xc4d   : > { %v10267_v60 = vpop.eup %10266 }
 0xc4e   : > { %v17581_v34 = vadd.f32 %v8388_v11, %v6830_v25  ;;  %v8389_v4 = vpop.f32.mrb[150].mxu0  ;;  %v6304_v58 = vadd.f32 1.0, %v10267_v60 }
 0xc4f   : > { %v8390_v7 = vpop.f32.mrb[151].mxu0 }
 0xc50   : > { %v8391_v24 = vadd.f32 %v8390_v7, %v8389_v4  ;;  %v6320_v10 = vmul.f32 0.5, %v6304_v58 }
 0xc52   : > { %v17585_v63 = vadd.f32 %v8391_v24, %v6835_v38  ;;  %v8392_v0 = vpop.f32.mrb[152].mxu0  ;;  %v6276_v38 = vmul.f32 0.5, %v9956_v17  ;;  %v7076_v24 = vsub.f32 1.0, %v6320_v10 }
 0xc53   : > { %v8393_v6 = vpop.f32.mrb[153].mxu0 }
 0xc54   : > { %v8394_v28 = vadd.f32 %v8393_v6, %v8392_v0  ;;  %10270 = vtanh.f32 %v6276_v38  ;;  %v10269_v56 = vpop.eup %10268  ;;  %v6284_v0 = vmul.f32 0.5, %v9964_v23  ;;  %v18606_v6 = vld [vmem:[#allocation64_spill] sm:$0xff]  ;;  %v7084_v51 = vmul.f32 %v7076_v24, %v15841_v20 }
 0xc55   : > { %v6306_v7 = vadd.f32 1.0, %v10269_v56  ;;  %v9966_v41 = vadd.f32 %v18606_v6, %v17579_v9 }
 0xc56   : > { %v17589_v62 = vadd.f32 %v8394_v28, %v6840_v49  ;;  %v8395_v47 = vpop.f32.mrb[154].mxu0 }
 0xc57   : > { %v8396_v19 = vpop.f32.mrb[155].mxu0  ;;  %v6322_v21 = vmul.f32 0.5, %v6306_v7  ;;  %v6286_v17 = vmul.f32 0.5, %v9966_v41 }
 0xc58   : > { %v8397_v42 = vadd.f32 %v8396_v19, %v8395_v47 }
 0xc5a   : > { %v17593_v25 = vadd.f32 %v8397_v42, %v6845_v30  ;;  %v8398_v31 = vpop.f32.mrb[156].mxu0  ;;  %v6278_v30 = vmul.f32 0.5, %v9958_v16 }
 0xc5b   : > { %v8399_v32 = vpop.f32.mrb[157].mxu0 }
 0xc5c   : > { %v8400_v54 = vadd.f32 %v8399_v32, %v8398_v31  ;;  %10272 = vtanh.f32 %v6278_v30 }
 0xc5e   : > { %v17597_v53 = vadd.f32 %v8400_v54, %v6850_v37  ;;  %v8401_v49 = vpop.f32.mrb[158].mxu0  ;;  %v18604_v37 = vld [vmem:[#allocation82_spill] sm:$0xff]  ;;  %v10271_v26 = vpop.eup %10270  ;;  %v7077_v54 = vsub.f32 1.0, %v6322_v21 }
 0xc5f   : > { %v8402_v15 = vpop.f32.mrb[159].mxu0  ;;  %v9962_v35 = vadd.f32 %v18604_v37, %v17579_v9  ;;  %v6308_v47 = vadd.f32 1.0, %v10271_v26 }
 0xc60   : > { %v8403_v43 = vadd.f32 %v8402_v15, %v8401_v49  ;;  %v7085_v60 = vmul.f32 %v7077_v54, %v15845_v57 }
 0xc62   : > { %v17601_v12 = vadd.f32 %v8403_v43, %v6855_v5  ;;  %v8436_v3 = vpop.f32.mrb[160].mxu0  ;;  %v6282_v5 = vmul.f32 0.5, %v9962_v35 }
 0xc63   : > { %v8437_v61 = vpop.f32.mrb[161].mxu0 }
 0xc64   : > { %v8438_v50 = vadd.f32 %v8437_v61, %v8436_v3 }
 0xc66   : > { %v7030_v27 = vadd.f32 %v8438_v50, %v6925_v45  ;;  %v8439_v46 = vpop.f32.mrb[162].mxu0  ;;  %v10273_v19 = vpop.eup %10272 }
 0xc67   : > { %v8440_v33 = vpop.f32.mrb[163].mxu0  ;;  %v6310_v38 = vadd.f32 1.0, %v10273_v19 }
 0xc68   : > { %10274 = vtanh.f32 %v7030_v27  ;;  %v8441_v22 = vadd.f32 %v8440_v33, %v8439_v46 }
 0xc69   : > { %10276 = vtanh.f32 %v6280_v40 }
 0xc6a   : > { %v7035_v11 = vadd.f32 %v8441_v22, %v6930_v59  ;;  %v8442_v4 = vpop.f32.mrb[164].mxu0 }
 0xc6b   : > { %v8443_v29 = vpop.f32.mrb[165].mxu0 }
 0xc6c   : > { %10278 = vtanh.f32 %v7035_v11  ;;  %v8444_v45 = vadd.f32 %v8443_v29, %v8442_v4 }
 0xc6d   : > { %10280 = vtanh.f32 %v6282_v5 }
 0xc6e   : > { %v7040_v28 = vadd.f32 %v8444_v45, %v17581_v34  ;;  %v8445_v14 = vpop.f32.mrb[166].mxu0  ;;  %v6324_v34 = vmul.f32 0.5, %v6308_v47 }
 0xc6f   : > { %v8446_v59 = vpop.f32.mrb[167].mxu0 }
 0xc70   : > { %10282 = vtanh.f32 %v7040_v28  ;;  %v8447_v42 = vadd.f32 %v8446_v59, %v8445_v14  ;;  %v7078_v30 = vsub.f32 1.0, %v6324_v34 }
 0xc71   : > { %10284 = vtanh.f32 %v6284_v0 }
 0xc72   : > { %v10275_v55 = vpop.eup %10274  ;;  %v7045_v31 = vadd.f32 %v8447_v42, %v17585_v63  ;;  %v8448_v9 = vpop.f32.mrb[168].mxu0  ;;  %v6326_v63 = vmul.f32 0.5, %v6310_v38  ;;  %v7086_v57 = vmul.f32 %v7078_v30, %v15849_v18 }
 0xc73   : > { %v10277_v32 = vpop.eup %10276  ;;  %v7092_v36 = vmul.f32 %v10275_v55, %v6320_v10  ;;  %v8449_v16 = vpop.f32.mrb[169].mxu0 }
 0xc74   : > { %10286 = vtanh.f32 %v7045_v31  ;;  %v8450_v49 = vadd.f32 %v8449_v16, %v8448_v9  ;;  %v6312_v13 = vadd.f32 1.0, %v10277_v32  ;;  %v7079_v46 = vsub.f32 1.0, %v6326_v63 }
 0xc75   : > { %v7100_v15 = vadd.f32 %v7092_v36, %v7084_v51  ;;  %10288 = vtanh.f32 %v6286_v17 }
 0xc76   : > { %v10279_v43 = vpop.eup %10278  ;;  %v7050_v1 = vadd.f32 %v8450_v49, %v17589_v62  ;;  %v8451_v20 = vpop.f32.mrb[170].mxu0  ;;  %v6328_v35 = vmul.f32 0.5, %v6312_v13 }
 0xc77   : > { %7108 = vst [vmem:[%s17617_s20] sm:$0xff] %v7100_v15  ;;  %v7093_v3 = vmul.f32 %v10279_v43, %v6322_v21  ;;  %v8452_v61 = vpop.f32.mrb[171].mxu0  ;;  %v10281_v50 = vpop.eup %10280 }
 0xc78   : > { %10290 = vtanh.f32 %v7050_v1  ;;  %v8453_v58 = vadd.f32 %v8452_v61, %v8451_v20  ;;  %v6314_v33 = vadd.f32 1.0, %v10281_v50  ;;  %v7080_v11 = vsub.f32 1.0, %v6328_v35 }
 0xc79   : > { %v7101_v40 = vadd.f32 %v7093_v3, %v7085_v60 }
 0xc7a   : > { %v10283_v37 = vpop.eup %10282  ;;  %v7055_v62 = vadd.f32 %v8453_v58, %v17593_v25  ;;  %v8454_v27 = vpop.f32.mrb[172].mxu0  ;;  %v7087_v25 = vmul.f32 %v7079_v46, %v15853_v39  ;;  %v6330_v29 = vmul.f32 0.5, %v6314_v33  ;;  %v7088_v28 = vmul.f32 %v7080_v11, %v15857_v8 }
 0xc7b   : > { %7109 = vst [vmem:[%s17617_s20 + $0x8] sm:$0xff] %v7101_v40  ;;  %v7094_v56 = vmul.f32 %v10283_v37, %v6324_v34  ;;  %v8455_v22 = vpop.f32.mrb[173].mxu0  ;;  %v10285_v10 = vpop.eup %10284 }
 0xc7c   : > { %10292 = vtanh.f32 %v7055_v62  ;;  %v8456_v5 = vadd.f32 %v8455_v22, %v8454_v27  ;;  %v6316_v18 = vadd.f32 1.0, %v10285_v10 }
 0xc7d   : > { %v7102_v44 = vadd.f32 %v7094_v56, %v7086_v57 }
 0xc7e   : > { %v10287_v23 = vpop.eup %10286  ;;  %v7060_v4 = vadd.f32 %v8456_v5, %v17597_v53  ;;  %v8457_v7 = vpop.f32.mrb[174].mxu0  ;;  %v7081_v53 = vsub.f32 1.0, %v6330_v29  ;;  %v6332_v21 = vmul.f32 0.5, %v6316_v18 }
 0xc7f   : > { %7110 = vst [vmem:[%s17617_s20 + $0x10] sm:$0xff] %v7102_v44  ;;  %v7095_v26 = vmul.f32 %v10287_v23, %v6326_v63  ;;  %v8458_v45 = vpop.f32.mrb[175].mxu0  ;;  %v10289_v24 = vpop.eup %10288 }
 0xc80   : > { %10294 = vtanh.f32 %v7060_v4  ;;  %v8459_v0 = vadd.f32 %v8458_v45, %v8457_v7  ;;  %v6318_v39 = vadd.f32 1.0, %v10289_v24  ;;  %v7089_v42 = vmul.f32 %v7081_v53, %v15860_v48 }
 0xc81   : > { %v7103_v6 = vadd.f32 %v7095_v26, %v7087_v25  ;;  %v7082_v55 = vsub.f32 1.0, %v6332_v21 }
 0xc82   : > { %v10291_v41 = vpop.eup %10290  ;;  %v7065_v14 = vadd.f32 %v8459_v0, %v17601_v12  ;;  %v6334_v51 = vmul.f32 0.5, %v6318_v39 }
 0xc83   : > { %7111 = vst [vmem:[%s17617_s20 + $0x18] sm:$0xff] %v7103_v6  ;;  %v7096_v47 = vmul.f32 %v10291_v41, %v6328_v35  ;;  %v7090_v31 = vmul.f32 %v7082_v55, %v15864_v52 }
 0xc84   : > { %10296 = vtanh.f32 %v7065_v14  ;;  %v7083_v9 = vsub.f32 1.0, %v6334_v51 }
 0xc85   : > { %v7104_v59 = vadd.f32 %v7096_v47, %v7088_v28 }
 0xc86   : > { %v10293_v19 = vpop.eup %10292  ;;  %v7091_v48 = vmul.f32 %v7083_v9, %v15874_v2 }
 0xc87   : > { %7112 = vst [vmem:[%s17617_s20 + $0x20] sm:$0xff] %v7104_v59  ;;  %v7097_v8 = vmul.f32 %v10293_v19, %v6330_v29 }
 0xc89   : > { %v7105_v17 = vadd.f32 %v7097_v8, %v7089_v42 }
 0xc8a   : > { %v10295_v12 = vpop.eup %10294 }
 0xc8b   : > { %7113 = vst [vmem:[%s17617_s20 + $0x28] sm:$0xff] %v7105_v17  ;;  %v7098_v32 = vmul.f32 %v10295_v12, %v6332_v21 }
 0xc8d   : > { %v7106_v54 = vadd.f32 %v7098_v32, %v7090_v31 }
 0xc8e   : > { %v10297_v34 = vpop.eup %10296 }
 0xc8f   : > { %7114 = vst [vmem:[%s17617_s20 + $0x30] sm:$0xff] %v7106_v54  ;;  %v7099_v38 = vmul.f32 %v10297_v34, %v6334_v51 }
 0xc91   : > { %v7107_v52 = vadd.f32 %v7099_v38, %v7091_v48 }
 0xc93   : > { %7115 = vst [vmem:[%s17617_s20 + $0x38] sm:$0xff] %v7107_v52 }
 0xc94   : > { %10345 = shalt.err (!%p10342_p3)
}
 0xc95   : > { %s10346_s27 = scalar_lea.hbm %s17640_s23, 1024  ;;  %s10350_s21 = scalar_lea.hbm %s18607_s2, 2048 }
 0xc96   : > { %p10347_p4 = scmp.ne.s32.totalorder %s17640_s23, %s10346_s27  ;;  %p10351_p9 = scmp.lt.u32.totalorder %s17640_s23, %s18607_s2 }
 0xc97   : > { %p10352_p10 = scmp.lt.u32.totalorder %s10350_s21, %s10346_s27  ;;  %p10354_p12 = scmp.lt.u32.totalorder %s10346_s27, %s17640_s23 }
 0xc98   : > { %p10348_p7 = pnand %p10347_p4, %p10538_p5 }
 0xc99   : > { %p10353_p11 = por %p10352_p10, %p10351_p9 }
 0xc9a   : > { %p10349_p8 = pneg %p10348_p7 }
 0xc9b   : > { %p10355_p13 = por %p10354_p12, %p10353_p11 }
 0xc9d   : > { %p10356_p0 = pnand %p10355_p13, %p10349_p8 }
 0xc9f   : > { %10359 = shalt.err (!%p10356_p0)
}
 0xca0   : > { %s10398_s22 = smov 128   ;;  %s10399_s25 = smov 8  }
 0xca1   : > { %10096 = dma.vmem_to_hbm [thread:$0]  (%p10538_p5), %s17642_s19, 1024, %s17640_s23, %s17647_s1, %s10398_s22, %s10398_s22, %s10399_s25  }
 0xca2 PF: > { %s18608_s24 = sld [smem:[#allocation7_spill]]  ;;  %s18609_s20 = sld [smem:[#allocation5_spill]] }
 0xca8   : > { %p10102_p1 = scmp.ge.s32.totalorder %s18608_s24, 2  ;;  %s7145_s28 = sand.u32 1, %s18609_s20  }
 0xca9   : > { %s7146_s27 = scalar_lea.sflag [#allocation3], %s7145_s28 }
 0xcaa   : > { %p10099_p2 = pnand %p10102_p1, %p10542_p6 }
 0xcac   : > { %10377 = dma.done.wait (!%p10099_p2), %s7146_s27, 1024  }
 0xcad   : > { %10379 = vsyncadd (!%p10099_p2), %s7146_s27, 4294966272  ;;  %s18611_s21 = sld [smem:[#allocation8_spill]]  ;;  %s18612_s26 = sld [smem:[#allocation6_spill]] }
 0xcae   : > { %s18613_s20 = sld [smem:[#allocation9_spill]]  ;;  %s18614_s0 = smov %s10386_s30 }
 0xcb3   : > { %p29_p3 = scmp.ge.s32.totalorder %s18611_s21, 4   ;;  %s18615_s30 = smov %s18612_s26 }
 0xcb5   :  { %31 = sbr.rel (!%p29_p3) target bundleno = 9 (0x9), region = 134 }
 0xcbc   :  { %7151 = vsyncpa [#allocation3], 1 }
 0xcbd   :  { %7153 = vsyncpa [#allocation3 + $0x1], 1 }

</bundles_post_ra>
